<compile_context>
chip_gen: v5e
topology: v5e:2x2
jax: 0.10.0
libtpu: 0.0.40
codegen_flags: <defaults>
</compile_context>

<pallas_src>
import functools
import math

import jax
import jax.numpy as jnp
from jax.experimental import pallas as pl
from jax.experimental.pallas import tpu as pltpu

# ----------------------------- model config (small) -------------------------
B = 2            # batch
NC = 6           # num_choices (forward hard-codes indices 0 and 1..5)
S = 16           # sequence length (original uses 256)
H = 64           # hidden size (original BERT-base uses 768)
NH = 4           # attention heads
HD = H // NH     # head dim
I = 4 * H        # FFN intermediate size
L = 2            # number of encoder layers (original: 12)
VOCAB = 50
TYPEVOCAB = 2
MAXPOS = S
LN_EPS = 1e-12


# ----------------------------- in-kernel helpers ----------------------------
def _ln(x, g, b, eps=LN_EPS):
    """LayerNorm over the last (lane) dim.  All math in f32."""
    mu = jnp.mean(x, axis=-1, keepdims=True)
    xc = x - mu
    var = jnp.mean(xc * xc, axis=-1, keepdims=True)
    inv = jax.lax.rsqrt(var + eps)
    return xc * inv * g.astype(jnp.float32) + b.astype(jnp.float32)


# ----------------------------- embedding LayerNorm ---------------------------
def _emb_ln_kernel(x_ref, g_ref, b_ref, o_ref):
    o_ref[...] = _ln(x_ref[...].astype(jnp.float32),
                     g_ref[...], b_ref[...]).astype(o_ref.dtype)


def embed_layernorm(x, gamma, beta):
    """x: [M*S, H] f32 -> LayerNorm(x).  Single full-block kernel."""
    return pl.pallas_call(
        _emb_ln_kernel,
        out_shape=jax.ShapeDtypeStruct(x.shape, x.dtype),
    )(x, gamma, beta)


# ----------------------------- fused BERT encoder layer ---------------------
def _layer_kernel(x_ref, bias_ref, wqkv_ref, bqkv_ref, wo_ref, bo_ref,
                  ln1g_ref, ln1b_ref, w1_ref, b1_ref, w2_ref, b2_ref,
                  ln2g_ref, ln2b_ref, o_ref, *, scale):
    bm, Sq, Hd = x_ref.shape

    x3 = x_ref[...].astype(jnp.float32)            # [bm, S, H]
    x2 = x3.reshape(bm * Sq, Hd)                   # [bm*S, H]

    # --- fused QKV projection (bf16 MXU inputs, f32 accumulation) ---
    qkv = jnp.dot(x2.astype(jnp.bfloat16), wqkv_ref[...],
                  preferred_element_type=jnp.float32)
    qkv = qkv + bqkv_ref[...].astype(jnp.float32)  # [bm*S, 3H]
    qkv3 = qkv.reshape(bm, Sq, 3 * Hd)

    bias = bias_ref[...].astype(jnp.float32)       # [bm, 1, S] additive mask

    # --- per-head attention, batched over the bm sequences ---
    ctx_heads = []
    for h in range(NH):
        qh = qkv3[:, :, h * HD:(h + 1) * HD]                       # [bm,S,HD]
        kh = qkv3[:, :, Hd + h * HD:Hd + (h + 1) * HD]
        vh = qkv3[:, :, 2 * Hd + h * HD:2 * Hd + (h + 1) * HD]
        s = jnp.einsum('bqd,bkd->bqk', qh, kh,
                       preferred_element_type=jnp.float32) * scale
        s = s + bias                                               # BERT bias
        s = s - jnp.max(s, axis=-1, keepdims=True)
        p = jnp.exp(s)
        p = p / jnp.sum(p, axis=-1, keepdims=True)
        ctx_heads.append(jnp.einsum('bqk,bkd->bqd', p, vh,
                                    preferred_element_type=jnp.float32))
    ctx = jnp.concatenate(ctx_heads, axis=-1).reshape(bm * Sq, Hd)

    # --- attention output projection + residual + LN1 ---
    attn_out = jnp.dot(ctx.astype(jnp.bfloat16), wo_ref[...],
                       preferred_element_type=jnp.float32)
    attn_out = attn_out + bo_ref[...].astype(jnp.float32)
    h1 = _ln(attn_out + x2, ln1g_ref[...], ln1b_ref[...])

    # --- FFN + residual + LN2 ---
    ffn = jnp.dot(h1.astype(jnp.bfloat16), w1_ref[...],
                  preferred_element_type=jnp.float32)
    ffn = ffn + b1_ref[...].astype(jnp.float32)
    # TODO(synk): HF BERT uses erf-based gelu; tanh approximation used here.
    ffn = jax.nn.gelu(ffn, approximate=True)
    ffn2 = jnp.dot(ffn.astype(jnp.bfloat16), w2_ref[...],
                   preferred_element_type=jnp.float32)
    ffn2 = ffn2 + b2_ref[...].astype(jnp.float32)
    out = _ln(ffn2 + h1, ln2g_ref[...], ln2b_ref[...])

    o_ref[...] = out.reshape(bm, Sq, Hd).astype(o_ref.dtype)


def bert_layer(lp, h, ext_bias):
    """h: [M, S, H] f32   ext_bias: [M, 1, S] additive mask bias."""
    M, Sq, Hd = h.shape
    bm = M // 2 if M % 2 == 0 else M       # 2 parallel blocks (v7x megacore)
    grid = (M // bm,)
    const2 = lambda i: (0, 0)
    kernel = functools.partial(_layer_kernel, scale=1.0 / math.sqrt(HD))
    return pl.pallas_call(
        kernel,
        out_shape=jax.ShapeDtypeStruct((M, Sq, Hd), h.dtype),
        grid_spec=pltpu.PrefetchScalarGridSpec(
            num_scalar_prefetch=0,
            grid=grid,
            in_specs=[
                pl.BlockSpec((bm, Sq, Hd), lambda i: (i, 0, 0)),   # x
                pl.BlockSpec((bm, 1, Sq), lambda i: (i, 0, 0)),    # mask bias
                pl.BlockSpec((Hd, 3 * Hd), const2),                # wqkv (bf16)
                pl.BlockSpec((1, 3 * Hd), const2),                 # bqkv
                pl.BlockSpec((Hd, Hd), const2),                    # wo
                pl.BlockSpec((1, Hd), const2),                     # bo
                pl.BlockSpec((1, Hd), const2),                     # ln1_g
                pl.BlockSpec((1, Hd), const2),                     # ln1_b
                pl.BlockSpec((Hd, I), const2),                     # w1
                pl.BlockSpec((1, I), const2),                      # b1
                pl.BlockSpec((I, Hd), const2),                     # w2
                pl.BlockSpec((1, Hd), const2),                     # b2
                pl.BlockSpec((1, Hd), const2),                     # ln2_g
                pl.BlockSpec((1, Hd), const2),                     # ln2_b
            ],
            out_specs=pl.BlockSpec((bm, Sq, Hd), lambda i: (i, 0, 0)),
        ),
        compiler_params=pltpu.CompilerParams(dimension_semantics=("parallel",)),
    )(h, ext_bias, lp["wqkv"], lp["bqkv"], lp["wo"], lp["bo"],
      lp["ln1_g"], lp["ln1_b"], lp["w1"], lp["b1"], lp["w2"], lp["b2"],
      lp["ln2_g"], lp["ln2_b"])


# ---------------- cross attention (query pos 0 only) + classifier -----------
def _cross_cls_kernel(a_ref, kv_ref, m_ref, w_ref, b_ref, o_ref, *, scale):
    a = a_ref[...].astype(jnp.float32)        # [B, 5, H]  (query position 0)
    kv = kv_ref[...].astype(jnp.float32)      # [B, S, H]  (choice-0 hidden)
    m = m_ref[...].astype(jnp.float32)        # [B, S]     (choice-0 mask)

    s = jnp.einsum('bch,bsh->bcs', a, kv,
                   preferred_element_type=jnp.float32) * scale     # [B,5,S]
    s = jnp.where(m[:, None, :] == 0.0, jnp.float32(-1e9), s)      # masked_fill
    s = s - jnp.max(s, axis=-1, keepdims=True)
    p = jnp.exp(s)
    p = p / jnp.sum(p, axis=-1, keepdims=True)
    ctx = jnp.einsum('bcs,bsh->bch', p, kv,
                     preferred_element_type=jnp.float32)           # [B,5,H]
    # dropout(p=0.1): identity at inference time.

    w = w_ref[...].astype(jnp.float32)        # [1, H] classifier weight row
    logits = jnp.sum(ctx * w, axis=-1) + b_ref[...].astype(jnp.float32)  # [B,5]
    o_ref[...] = logits.astype(o_ref.dtype)


def cross_attn_classifier(a0, kv, mask0, cls_w, cls_b):
    Bq, C, Hd = a0.shape
    kernel = functools.partial(_cross_cls_kernel, scale=1.0 / math.sqrt(Hd))
    return pl.pallas_call(
        kernel,
        out_shape=jax.ShapeDtypeStruct((Bq, C), jnp.float32),
    )(a0, kv, mask0, cls_w, cls_b)


# ----------------------------- full model forward ---------------------------
def model_forward(params, x):
    # x: [B, NC, 3, S] int32
    xp = jnp.transpose(x, (2, 0, 1, 3))
    input_ids, token_type_ids, attention_mask = xp[0], xp[1], xp[2]
    batch, num_choices, seq = input_ids.shape

    ids = input_ids.reshape(-1, seq)
    tt = token_type_ids.reshape(-1, seq)
    am = attention_mask.reshape(-1, seq)
    M = batch * num_choices

    # ----- embeddings (gathers in plain JAX) + LayerNorm kernel -----
    emb = (params["word_emb"][ids]
           + params["pos_emb"][None, :seq]
           + params["type_emb"][tt])                        # [M, S, H]
    h = embed_layernorm(emb.reshape(M * seq, H),
                        params["emb_ln_g"], params["emb_ln_b"])
    h = h.reshape(M, seq, H)

    # ----- encoder: one fused kernel per layer -----
    ext_bias = ((1.0 - am.astype(jnp.float32)) * -10000.0).reshape(M, 1, seq)
    for lp in params["layers"]:
        h = bert_layer(lp, h, ext_bias)

    # ----- choice-0 vs choices-1..5 cross attention + classifier -----
    reshaped = h.reshape(batch, num_choices, seq, H)
    a0 = reshaped[:, 1:6, 0, :]                             # [B, 5, H]  (only query pos 0 is consumed)
    kv = reshaped[:, 0, :, :]                               # [B, S, H]
    mask0 = am.reshape(batch, num_choices, seq)[:, 0, :].astype(jnp.float32)
    logits = cross_attn_classifier(a0, kv, mask0,
                                   params["cls_w"], params["cls_b"])
    return logits.reshape(-1, num_choices - 1)              # [B, 5]


# ----------------------------- deterministic init ---------------------------
def init_params(key):
    keys = iter(jax.random.split(key, 64))
    std = 0.02

    def nrm(shape, dtype=jnp.float32):
        return (jax.random.normal(next(keys), shape, jnp.float32) * std).astype(dtype)

    params = {
        "word_emb": nrm((VOCAB, H)),
        "pos_emb": nrm((MAXPOS, H)),
        "type_emb": nrm((TYPEVOCAB, H)),
        "emb_ln_g": jnp.ones((1, H), jnp.float32),
        "emb_ln_b": jnp.zeros((1, H), jnp.float32),
        "layers": [],
        "cls_w": nrm((1, H)),                    # nn.Linear(H, 1): normal(0, 0.02)
        "cls_b": jnp.zeros((1, 1), jnp.float32),
    }
    for _ in range(L):
        params["layers"].append({
            # fused [Wq | Wk | Wv] -> lane-dense [H, 3H], stored bf16 for the MXU
            "wqkv": nrm((H, 3 * H), jnp.bfloat16),
            "bqkv": jnp.zeros((1, 3 * H), jnp.float32),
            "wo": nrm((H, H), jnp.bfloat16), "bo": jnp.zeros((1, H), jnp.float32),
            "ln1_g": jnp.ones((1, H), jnp.float32),
            "ln1_b": jnp.zeros((1, H), jnp.float32),
            "w1": nrm((H, I), jnp.bfloat16), "b1": jnp.zeros((1, I), jnp.float32),
            "w2": nrm((I, H), jnp.bfloat16), "b2": jnp.zeros((1, H), jnp.float32),
            "ln2_g": jnp.ones((1, H), jnp.float32),
            "ln2_b": jnp.zeros((1, H), jnp.float32),
        })
    return params


# ----------------------------- main ------------------------------------------
if __name__ == "__main__":
    key = jax.random.PRNGKey(0)
    kp, kid, ktt = jax.random.split(key, 3)
    params = init_params(kp)

    input_ids = jax.random.randint(kid, (B, NC, S), 0, VOCAB, dtype=jnp.int32)
    token_type_ids = jax.random.randint(ktt, (B, NC, S), 0, TYPEVOCAB, dtype=jnp.int32)
    attention_mask = jnp.concatenate(
        [jnp.ones((B, NC, S // 2), jnp.int32),
         jnp.zeros((B, NC, S - S // 2), jnp.int32)], axis=-1)
    x = jnp.stack([input_ids, token_type_ids, attention_mask], axis=2)  # [B, NC, 3, S]

    out = jax.jit(model_forward)(params, x)
    out = jax.block_until_ready(out)
    assert out.shape == (B, NC - 1), out.shape
    assert bool(jnp.all(jnp.isfinite(out)))
    print("KERNEL_OK")
</pallas_src>

<mosaic_0001>
module attributes {stable_mosaic.version = 11 : i64} {
  func.func @_emb_ln_kernel(%arg0: memref<192x64xf32, #tpu.memory_space<vmem>>, %arg1: memref<1x64xf32, #tpu.memory_space<vmem>>, %arg2: memref<1x64xf32, #tpu.memory_space<vmem>>, %arg3: memref<192x64xf32, #tpu.memory_space<vmem>>) attributes {dimension_semantics = [], scalar_prefetch = 0 : i64, scratch_operands = 0 : i64, tpu.core_type = #tpu.core_type<tc>} {
    %c0 = arith.constant 0 : index
    %c0_0 = arith.constant 0 : index
    %0 = vector.load %arg0[%c0, %c0_0] : memref<192x64xf32, #tpu.memory_space<vmem>>, vector<192x64xf32>
    %c0_1 = arith.constant 0 : index
    %c0_2 = arith.constant 0 : index
    %1 = vector.load %arg1[%c0_1, %c0_2] : memref<1x64xf32, #tpu.memory_space<vmem>>, vector<1x64xf32>
    %c0_3 = arith.constant 0 : index
    %c0_4 = arith.constant 0 : index
    %2 = vector.load %arg2[%c0_3, %c0_4] : memref<1x64xf32, #tpu.memory_space<vmem>>, vector<1x64xf32>
    %cst = arith.constant dense<0.000000e+00> : vector<192xf32>
    %3 = vector.multi_reduction <add>, %0, %cst [1] : vector<192x64xf32> to vector<192xf32>
    %4 = vector.shape_cast %3 : vector<192xf32> to vector<192x1xf32>
    %cst_5 = arith.constant 6.400000e+01 : f32
    %5 = vector.broadcast %cst_5 : f32 to vector<192x1xf32>
    %6 = arith.divf %4, %5 : vector<192x1xf32>
    %7 = vector.broadcast %6 : vector<192x1xf32> to vector<192x64xf32>
    %8 = arith.subf %0, %7 : vector<192x64xf32>
    %9 = arith.mulf %8, %8 : vector<192x64xf32>
    %cst_6 = arith.constant dense<0.000000e+00> : vector<192xf32>
    %10 = vector.multi_reduction <add>, %9, %cst_6 [1] : vector<192x64xf32> to vector<192xf32>
    %11 = vector.shape_cast %10 : vector<192xf32> to vector<192x1xf32>
    %cst_7 = arith.constant 6.400000e+01 : f32
    %12 = vector.broadcast %cst_7 : f32 to vector<192x1xf32>
    %13 = arith.divf %11, %12 : vector<192x1xf32>
    %cst_8 = arith.constant 9.99999996E-13 : f32
    %14 = vector.broadcast %cst_8 : f32 to vector<192x1xf32>
    %15 = arith.addf %13, %14 : vector<192x1xf32>
    %16 = math.rsqrt %15 : vector<192x1xf32>
    %17 = vector.broadcast %16 : vector<192x1xf32> to vector<192x64xf32>
    %18 = arith.mulf %8, %17 : vector<192x64xf32>
    %19 = vector.broadcast %1 : vector<1x64xf32> to vector<192x64xf32>
    %20 = arith.mulf %18, %19 : vector<192x64xf32>
    %21 = vector.broadcast %2 : vector<1x64xf32> to vector<192x64xf32>
    %22 = arith.addf %20, %21 : vector<192x64xf32>
    %c0_9 = arith.constant 0 : index
    %c0_10 = arith.constant 0 : index
    %23 = vector.load %arg3[%c0_9, %c0_10] : memref<192x64xf32, #tpu.memory_space<vmem>>, vector<192x64xf32>
    tpu.vector_store %arg3[%c0_9, %c0_10], %22 {strides = array<i32>} : memref<192x64xf32, #tpu.memory_space<vmem>>, vector<192x64xf32>,
    return
  }
}

module attributes {stable_mosaic.version = 11 : i64} {
  func.func @_layer_kernel(%arg0: i32, %arg1: memref<6x16x64xf32, #tpu.memory_space<vmem>>, %arg2: memref<6x1x16xf32, #tpu.memory_space<vmem>>, %arg3: memref<64x192xbf16, #tpu.memory_space<vmem>>, %arg4: memref<1x192xf32, #tpu.memory_space<vmem>>, %arg5: memref<64x64xbf16, #tpu.memory_space<vmem>>, %arg6: memref<1x64xf32, #tpu.memory_space<vmem>>, %arg7: memref<1x64xf32, #tpu.memory_space<vmem>>, %arg8: memref<1x64xf32, #tpu.memory_space<vmem>>, %arg9: memref<64x256xbf16, #tpu.memory_space<vmem>>, %arg10: memref<1x256xf32, #tpu.memory_space<vmem>>, %arg11: memref<256x64xbf16, #tpu.memory_space<vmem>>, %arg12: memref<1x64xf32, #tpu.memory_space<vmem>>, %arg13: memref<1x64xf32, #tpu.memory_space<vmem>>, %arg14: memref<1x64xf32, #tpu.memory_space<vmem>>, %arg15: memref<6x16x64xf32, #tpu.memory_space<vmem>>) attributes {dimension_semantics = [#tpu.dimension_semantics<parallel>], iteration_bounds = array<i64: 2>, scalar_prefetch = 0 : i64, scratch_operands = 0 : i64, tpu.core_type = #tpu.core_type<tc>, window_params = [{transform_indices = @transform_0, window_bounds = array<i64: 6, 16, 64>}, {transform_indices = @transform_1, window_bounds = array<i64: 6, 1, 16>}, {pipeline_mode = #tpu.pipeline_mode<synchronous>, transform_indices = @transform_2, window_bounds = array<i64: 64, 192>}, {pipeline_mode = #tpu.pipeline_mode<synchronous>, transform_indices = @transform_3, window_bounds = array<i64: 1, 192>}, {pipeline_mode = #tpu.pipeline_mode<synchronous>, transform_indices = @transform_4, window_bounds = array<i64: 64, 64>}, {pipeline_mode = #tpu.pipeline_mode<synchronous>, transform_indices = @transform_5, window_bounds = array<i64: 1, 64>}, {pipeline_mode = #tpu.pipeline_mode<synchronous>, transform_indices = @transform_6, window_bounds = array<i64: 1, 64>}, {pipeline_mode = #tpu.pipeline_mode<synchronous>, transform_indices = @transform_7, window_bounds = array<i64: 1, 64>}, {pipeline_mode = #tpu.pipeline_mode<synchronous>, transform_indices = @transform_8, window_bounds = array<i64: 64, 256>}, {pipeline_mode = #tpu.pipeline_mode<synchronous>, transform_indices = @transform_9, window_bounds = array<i64: 1, 256>}, {pipeline_mode = #tpu.pipeline_mode<synchronous>, transform_indices = @transform_10, window_bounds = array<i64: 256, 64>}, {pipeline_mode = #tpu.pipeline_mode<synchronous>, transform_indices = @transform_11, window_bounds = array<i64: 1, 64>}, {pipeline_mode = #tpu.pipeline_mode<synchronous>, transform_indices = @transform_12, window_bounds = array<i64: 1, 64>}, {pipeline_mode = #tpu.pipeline_mode<synchronous>, transform_indices = @transform_13, window_bounds = array<i64: 1, 64>}, {transform_indices = @transform_14, window_bounds = array<i64: 6, 16, 64>}]} {
    %c0 = arith.constant 0 : index
    %c0_0 = arith.constant 0 : index
    %c0_1 = arith.constant 0 : index
    %0 = vector.load %arg1[%c0, %c0_0, %c0_1] : memref<6x16x64xf32, #tpu.memory_space<vmem>>, vector<6x16x64xf32>
    %1 = vector.shape_cast %0 : vector<6x16x64xf32> to vector<96x64xf32>
    %2 = arith.truncf %1 : vector<96x64xf32> to vector<96x64xbf16>
    %c0_2 = arith.constant 0 : index
    %c0_3 = arith.constant 0 : index
    %3 = vector.load %arg3[%c0_2, %c0_3] : memref<64x192xbf16, #tpu.memory_space<vmem>>, vector<64x192xbf16>
    %cst = arith.constant dense<0.000000e+00> : vector<96x192xf32>
    %4 = tpu.matmul %2, %3, %cst {dimension_numbers = #tpu.dot_dimension_numbers<[1], [0], [0], [1], [0, 0, 1, 1], [], []>} : vector<96x64xbf16>, vector<64x192xbf16>, vector<96x192xf32> -> vector<96x192xf32>
    %c0_4 = arith.constant 0 : index
    %c0_5 = arith.constant 0 : index
    %5 = vector.load %arg4[%c0_4, %c0_5] : memref<1x192xf32, #tpu.memory_space<vmem>>, vector<1x192xf32>
    %6 = vector.broadcast %5 : vector<1x192xf32> to vector<96x192xf32>
    %7 = arith.addf %4, %6 : vector<96x192xf32>
    %8 = vector.shape_cast %7 : vector<96x192xf32> to vector<6x16x192xf32>
    %c0_6 = arith.constant 0 : index
    %c0_7 = arith.constant 0 : index
    %c0_8 = arith.constant 0 : index
    %9 = vector.load %arg2[%c0_6, %c0_7, %c0_8] : memref<6x1x16xf32, #tpu.memory_space<vmem>>, vector<6x1x16xf32>
    %10 = vector.extract_strided_slice %8 {offsets = [0, 0, 0], sizes = [6, 16, 16], strides = [1, 1, 1]} : vector<6x16x192xf32> to vector<6x16x16xf32>
    %11 = vector.extract_strided_slice %8 {offsets = [0, 0, 64], sizes = [6, 16, 16], strides = [1, 1, 1]} : vector<6x16x192xf32> to vector<6x16x16xf32>
    %12 = vector.extract_strided_slice %8 {offsets = [0, 0, 128], sizes = [6, 16, 16], strides = [1, 1, 1]} : vector<6x16x192xf32> to vector<6x16x16xf32>
    "tpu.trace_start"() <{level = 10 : i32, message = "bqd,bkd->bqk"}> : () -> ()
    %cst_9 = arith.constant dense<0.000000e+00> : vector<6x16x16xf32>
    %13 = tpu.matmul %10, %11, %cst_9 {dimension_numbers = #tpu.dot_dimension_numbers<[2], [2], [1], [1], [0, 0, 0, 1, 1, 1], [0], [0]>} : vector<6x16x16xf32>, vector<6x16x16xf32>, vector<6x16x16xf32> -> vector<6x16x16xf32>
    "tpu.trace_stop"() : () -> ()
    %cst_10 = arith.constant 2.500000e-01 : f32
    %14 = vector.broadcast %cst_10 : f32 to vector<6x16x16xf32>
    %15 = arith.mulf %13, %14 : vector<6x16x16xf32>
    %16 = vector.broadcast %9 : vector<6x1x16xf32> to vector<6x16x16xf32>
    %17 = arith.addf %15, %16 : vector<6x16x16xf32>
    %cst_11 = arith.constant dense<0xFF800000> : vector<6x16xf32>
    %18 = vector.multi_reduction <maximumf>, %17, %cst_11 [2] : vector<6x16x16xf32> to vector<6x16xf32>
    %19 = vector.shape_cast %18 : vector<6x16xf32> to vector<6x16x1xf32>
    %20 = vector.broadcast %19 : vector<6x16x1xf32> to vector<6x16x16xf32>
    %21 = arith.subf %17, %20 : vector<6x16x16xf32>
    %22 = math.exp %21 : vector<6x16x16xf32>
    %cst_12 = arith.constant dense<0.000000e+00> : vector<6x16xf32>
    %23 = vector.multi_reduction <add>, %22, %cst_12 [2] : vector<6x16x16xf32> to vector<6x16xf32>
    %24 = vector.shape_cast %23 : vector<6x16xf32> to vector<6x16x1xf32>
    %25 = vector.broadcast %24 : vector<6x16x1xf32> to vector<6x16x16xf32>
    %26 = arith.divf %22, %25 : vector<6x16x16xf32>
    "tpu.trace_start"() <{level = 10 : i32, message = "bqk,bkd->bqd"}> : () -> ()
    %cst_13 = arith.constant dense<0.000000e+00> : vector<6x16x16xf32>
    %27 = tpu.matmul %26, %12, %cst_13 {dimension_numbers = #tpu.dot_dimension_numbers<[2], [1], [1], [2], [0, 0, 0, 1, 1, 2], [0], [0]>} : vector<6x16x16xf32>, vector<6x16x16xf32>, vector<6x16x16xf32> -> vector<6x16x16xf32>
    "tpu.trace_stop"() : () -> ()
    %28 = vector.extract_strided_slice %8 {offsets = [0, 0, 16], sizes = [6, 16, 16], strides = [1, 1, 1]} : vector<6x16x192xf32> to vector<6x16x16xf32>
    %29 = vector.extract_strided_slice %8 {offsets = [0, 0, 80], sizes = [6, 16, 16], strides = [1, 1, 1]} : vector<6x16x192xf32> to vector<6x16x16xf32>
    %30 = vector.extract_strided_slice %8 {offsets = [0, 0, 144], sizes = [6, 16, 16], strides = [1, 1, 1]} : vector<6x16x192xf32> to vector<6x16x16xf32>
    "tpu.trace_start"() <{level = 10 : i32, message = "bqd,bkd->bqk"}> : () -> ()
    %cst_14 = arith.constant dense<0.000000e+00> : vector<6x16x16xf32>
    %31 = tpu.matmul %28, %29, %cst_14 {dimension_numbers = #tpu.dot_dimension_numbers<[2], [2], [1], [1], [0, 0, 0, 1, 1, 1], [0], [0]>} : vector<6x16x16xf32>, vector<6x16x16xf32>, vector<6x16x16xf32> -> vector<6x16x16xf32>
    "tpu.trace_stop"() : () -> ()
    %cst_15 = arith.constant 2.500000e-01 : f32
    %32 = vector.broadcast %cst_15 : f32 to vector<6x16x16xf32>
    %33 = arith.mulf %31, %32 : vector<6x16x16xf32>
    %34 = vector.broadcast %9 : vector<6x1x16xf32> to vector<6x16x16xf32>
    %35 = arith.addf %33, %34 : vector<6x16x16xf32>
    %cst_16 = arith.constant dense<0xFF800000> : vector<6x16xf32>
    %36 = vector.multi_reduction <maximumf>, %35, %cst_16 [2] : vector<6x16x16xf32> to vector<6x16xf32>
    %37 = vector.shape_cast %36 : vector<6x16xf32> to vector<6x16x1xf32>
    %38 = vector.broadcast %37 : vector<6x16x1xf32> to vector<6x16x16xf32>
    %39 = arith.subf %35, %38 : vector<6x16x16xf32>
    %40 = math.exp %39 : vector<6x16x16xf32>
    %cst_17 = arith.constant dense<0.000000e+00> : vector<6x16xf32>
    %41 = vector.multi_reduction <add>, %40, %cst_17 [2] : vector<6x16x16xf32> to vector<6x16xf32>
    %42 = vector.shape_cast %41 : vector<6x16xf32> to vector<6x16x1xf32>
    %43 = vector.broadcast %42 : vector<6x16x1xf32> to vector<6x16x16xf32>
    %44 = arith.divf %40, %43 : vector<6x16x16xf32>
    "tpu.trace_start"() <{level = 10 : i32, message = "bqk,bkd->bqd"}> : () -> ()
    %cst_18 = arith.constant dense<0.000000e+00> : vector<6x16x16xf32>
    %45 = tpu.matmul %44, %30, %cst_18 {dimension_numbers = #tpu.dot_dimension_numbers<[2], [1], [1], [2], [0, 0, 0, 1, 1, 2], [0], [0]>} : vector<6x16x16xf32>, vector<6x16x16xf32>, vector<6x16x16xf32> -> vector<6x16x16xf32>
    "tpu.trace_stop"() : () -> ()
    %46 = vector.extract_strided_slice %8 {offsets = [0, 0, 32], sizes = [6, 16, 16], strides = [1, 1, 1]} : vector<6x16x192xf32> to vector<6x16x16xf32>
    %47 = vector.extract_strided_slice %8 {offsets = [0, 0, 96], sizes = [6, 16, 16], strides = [1, 1, 1]} : vector<6x16x192xf32> to vector<6x16x16xf32>
    %48 = vector.extract_strided_slice %8 {offsets = [0, 0, 160], sizes = [6, 16, 16], strides = [1, 1, 1]} : vector<6x16x192xf32> to vector<6x16x16xf32>
    "tpu.trace_start"() <{level = 10 : i32, message = "bqd,bkd->bqk"}> : () -> ()
    %cst_19 = arith.constant dense<0.000000e+00> : vector<6x16x16xf32>
    %49 = tpu.matmul %46, %47, %cst_19 {dimension_numbers = #tpu.dot_dimension_numbers<[2], [2], [1], [1], [0, 0, 0, 1, 1, 1], [0], [0]>} : vector<6x16x16xf32>, vector<6x16x16xf32>, vector<6x16x16xf32> -> vector<6x16x16xf32>
    "tpu.trace_stop"() : () -> ()
    %cst_20 = arith.constant 2.500000e-01 : f32
    %50 = vector.broadcast %cst_20 : f32 to vector<6x16x16xf32>
    %51 = arith.mulf %49, %50 : vector<6x16x16xf32>
    %52 = vector.broadcast %9 : vector<6x1x16xf32> to vector<6x16x16xf32>
    %53 = arith.addf %51, %52 : vector<6x16x16xf32>
    %cst_21 = arith.constant dense<0xFF800000> : vector<6x16xf32>
    %54 = vector.multi_reduction <maximumf>, %53, %cst_21 [2] : vector<6x16x16xf32> to vector<6x16xf32>
    %55 = vector.shape_cast %54 : vector<6x16xf32> to vector<6x16x1xf32>
    %56 = vector.broadcast %55 : vector<6x16x1xf32> to vector<6x16x16xf32>
    %57 = arith.subf %53, %56 : vector<6x16x16xf32>
    %58 = math.exp %57 : vector<6x16x16xf32>
    %cst_22 = arith.constant dense<0.000000e+00> : vector<6x16xf32>
    %59 = vector.multi_reduction <add>, %58, %cst_22 [2] : vector<6x16x16xf32> to vector<6x16xf32>
    %60 = vector.shape_cast %59 : vector<6x16xf32> to vector<6x16x1xf32>
    %61 = vector.broadcast %60 : vector<6x16x1xf32> to vector<6x16x16xf32>
    %62 = arith.divf %58, %61 : vector<6x16x16xf32>
    "tpu.trace_start"() <{level = 10 : i32, message = "bqk,bkd->bqd"}> : () -> ()
    %cst_23 = arith.constant dense<0.000000e+00> : vector<6x16x16xf32>
    %63 = tpu.matmul %62, %48, %cst_23 {dimension_numbers = #tpu.dot_dimension_numbers<[2], [1], [1], [2], [0, 0, 0, 1, 1, 2], [0], [0]>} : vector<6x16x16xf32>, vector<6x16x16xf32>, vector<6x16x16xf32> -> vector<6x16x16xf32>
    "tpu.trace_stop"() : () -> ()
    %64 = vector.extract_strided_slice %8 {offsets = [0, 0, 48], sizes = [6, 16, 16], strides = [1, 1, 1]} : vector<6x16x192xf32> to vector<6x16x16xf32>
    %65 = vector.extract_strided_slice %8 {offsets = [0, 0, 112], sizes = [6, 16, 16], strides = [1, 1, 1]} : vector<6x16x192xf32> to vector<6x16x16xf32>
    %66 = vector.extract_strided_slice %8 {offsets = [0, 0, 176], sizes = [6, 16, 16], strides = [1, 1, 1]} : vector<6x16x192xf32> to vector<6x16x16xf32>
    "tpu.trace_start"() <{level = 10 : i32, message = "bqd,bkd->bqk"}> : () -> ()
    %cst_24 = arith.constant dense<0.000000e+00> : vector<6x16x16xf32>
    %67 = tpu.matmul %64, %65, %cst_24 {dimension_numbers = #tpu.dot_dimension_numbers<[2], [2], [1], [1], [0, 0, 0, 1, 1, 1], [0], [0]>} : vector<6x16x16xf32>, vector<6x16x16xf32>, vector<6x16x16xf32> -> vector<6x16x16xf32>
    "tpu.trace_stop"() : () -> ()
    %cst_25 = arith.constant 2.500000e-01 : f32
    %68 = vector.broadcast %cst_25 : f32 to vector<6x16x16xf32>
    %69 = arith.mulf %67, %68 : vector<6x16x16xf32>
    %70 = vector.broadcast %9 : vector<6x1x16xf32> to vector<6x16x16xf32>
    %71 = arith.addf %69, %70 : vector<6x16x16xf32>
    %cst_26 = arith.constant dense<0xFF800000> : vector<6x16xf32>
    %72 = vector.multi_reduction <maximumf>, %71, %cst_26 [2] : vector<6x16x16xf32> to vector<6x16xf32>
    %73 = vector.shape_cast %72 : vector<6x16xf32> to vector<6x16x1xf32>
    %74 = vector.broadcast %73 : vector<6x16x1xf32> to vector<6x16x16xf32>
    %75 = arith.subf %71, %74 : vector<6x16x16xf32>
    %76 = math.exp %75 : vector<6x16x16xf32>
    %cst_27 = arith.constant dense<0.000000e+00> : vector<6x16xf32>
    %77 = vector.multi_reduction <add>, %76, %cst_27 [2] : vector<6x16x16xf32> to vector<6x16xf32>
    %78 = vector.shape_cast %77 : vector<6x16xf32> to vector<6x16x1xf32>
    %79 = vector.broadcast %78 : vector<6x16x1xf32> to vector<6x16x16xf32>
    %80 = arith.divf %76, %79 : vector<6x16x16xf32>
    "tpu.trace_start"() <{level = 10 : i32, message = "bqk,bkd->bqd"}> : () -> ()
    %cst_28 = arith.constant dense<0.000000e+00> : vector<6x16x16xf32>
    %81 = tpu.matmul %80, %66, %cst_28 {dimension_numbers = #tpu.dot_dimension_numbers<[2], [1], [1], [2], [0, 0, 0, 1, 1, 2], [0], [0]>} : vector<6x16x16xf32>, vector<6x16x16xf32>, vector<6x16x16xf32> -> vector<6x16x16xf32>
    "tpu.trace_stop"() : () -> ()
    %82 = tpu.concatenate %27, %45, %63, %81 in 2 : vector<6x16x16xf32>, vector<6x16x16xf32>, vector<6x16x16xf32>, vector<6x16x16xf32> -> vector<6x16x64xf32>
    %83 = vector.shape_cast %82 : vector<6x16x64xf32> to vector<96x64xf32>
    %84 = arith.truncf %83 : vector<96x64xf32> to vector<96x64xbf16>
    %c0_29 = arith.constant 0 : index
    %c0_30 = arith.constant 0 : index
    %85 = vector.load %arg5[%c0_29, %c0_30] : memref<64x64xbf16, #tpu.memory_space<vmem>>, vector<64x64xbf16>
    %cst_31 = arith.constant dense<0.000000e+00> : vector<96x64xf32>
    %86 = tpu.matmul %84, %85, %cst_31 {dimension_numbers = #tpu.dot_dimension_numbers<[1], [0], [0], [1], [0, 0, 1, 1], [], []>} : vector<96x64xbf16>, vector<64x64xbf16>, vector<96x64xf32> -> vector<96x64xf32>
    %c0_32 = arith.constant 0 : index
    %c0_33 = arith.constant 0 : index
    %87 = vector.load %arg6[%c0_32, %c0_33] : memref<1x64xf32, #tpu.memory_space<vmem>>, vector<1x64xf32>
    %88 = vector.broadcast %87 : vector<1x64xf32> to vector<96x64xf32>
    %89 = arith.addf %86, %88 : vector<96x64xf32>
    %90 = arith.addf %89, %1 : vector<96x64xf32>
    %c0_34 = arith.constant 0 : index
    %c0_35 = arith.constant 0 : index
    %91 = vector.load %arg7[%c0_34, %c0_35] : memref<1x64xf32, #tpu.memory_space<vmem>>, vector<1x64xf32>
    %c0_36 = arith.constant 0 : index
    %c0_37 = arith.constant 0 : index
    %92 = vector.load %arg8[%c0_36, %c0_37] : memref<1x64xf32, #tpu.memory_space<vmem>>, vector<1x64xf32>
    %cst_38 = arith.constant dense<0.000000e+00> : vector<96xf32>
    %93 = vector.multi_reduction <add>, %90, %cst_38 [1] : vector<96x64xf32> to vector<96xf32>
    %94 = vector.shape_cast %93 : vector<96xf32> to vector<96x1xf32>
    %cst_39 = arith.constant 6.400000e+01 : f32
    %95 = vector.broadcast %cst_39 : f32 to vector<96x1xf32>
    %96 = arith.divf %94, %95 : vector<96x1xf32>
    %97 = vector.broadcast %96 : vector<96x1xf32> to vector<96x64xf32>
    %98 = arith.subf %90, %97 : vector<96x64xf32>
    %99 = arith.mulf %98, %98 : vector<96x64xf32>
    %cst_40 = arith.constant dense<0.000000e+00> : vector<96xf32>
    %100 = vector.multi_reduction <add>, %99, %cst_40 [1] : vector<96x64xf32> to vector<96xf32>
    %101 = vector.shape_cast %100 : vector<96xf32> to vector<96x1xf32>
    %cst_41 = arith.constant 6.400000e+01 : f32
    %102 = vector.broadcast %cst_41 : f32 to vector<96x1xf32>
    %103 = arith.divf %101, %102 : vector<96x1xf32>
    %cst_42 = arith.constant 9.99999996E-13 : f32
    %104 = vector.broadcast %cst_42 : f32 to vector<96x1xf32>
    %105 = arith.addf %103, %104 : vector<96x1xf32>
    %106 = math.rsqrt %105 : vector<96x1xf32>
    %107 = vector.broadcast %106 : vector<96x1xf32> to vector<96x64xf32>
    %108 = arith.mulf %98, %107 : vector<96x64xf32>
    %109 = vector.broadcast %91 : vector<1x64xf32> to vector<96x64xf32>
    %110 = arith.mulf %108, %109 : vector<96x64xf32>
    %111 = vector.broadcast %92 : vector<1x64xf32> to vector<96x64xf32>
    %112 = arith.addf %110, %111 : vector<96x64xf32>
    %113 = arith.truncf %112 : vector<96x64xf32> to vector<96x64xbf16>
    %c0_43 = arith.constant 0 : index
    %c0_44 = arith.constant 0 : index
    %114 = vector.load %arg9[%c0_43, %c0_44] : memref<64x256xbf16, #tpu.memory_space<vmem>>, vector<64x256xbf16>
    %cst_45 = arith.constant dense<0.000000e+00> : vector<96x256xf32>
    %115 = tpu.matmul %113, %114, %cst_45 {dimension_numbers = #tpu.dot_dimension_numbers<[1], [0], [0], [1], [0, 0, 1, 1], [], []>} : vector<96x64xbf16>, vector<64x256xbf16>, vector<96x256xf32> -> vector<96x256xf32>
    %c0_46 = arith.constant 0 : index
    %c0_47 = arith.constant 0 : index
    %116 = vector.load %arg10[%c0_46, %c0_47] : memref<1x256xf32, #tpu.memory_space<vmem>>, vector<1x256xf32>
    %117 = vector.broadcast %116 : vector<1x256xf32> to vector<96x256xf32>
    %118 = arith.addf %115, %117 : vector<96x256xf32>
    %119 = arith.mulf %118, %118 : vector<96x256xf32>
    %120 = arith.mulf %118, %119 : vector<96x256xf32>
    %cst_48 = arith.constant 4.471500e-02 : f32
    %121 = vector.broadcast %cst_48 : f32 to vector<96x256xf32>
    %122 = arith.mulf %121, %120 : vector<96x256xf32>
    %123 = arith.addf %118, %122 : vector<96x256xf32>
    %cst_49 = arith.constant 0.797884583 : f32
    %124 = vector.broadcast %cst_49 : f32 to vector<96x256xf32>
    %125 = arith.mulf %124, %123 : vector<96x256xf32>
    %126 = math.tanh %125 : vector<96x256xf32>
    %cst_50 = arith.constant 1.000000e+00 : f32
    %127 = vector.broadcast %cst_50 : f32 to vector<96x256xf32>
    %128 = arith.addf %127, %126 : vector<96x256xf32>
    %cst_51 = arith.constant 5.000000e-01 : f32
    %129 = vector.broadcast %cst_51 : f32 to vector<96x256xf32>
    %130 = arith.mulf %129, %128 : vector<96x256xf32>
    %131 = arith.mulf %118, %130 : vector<96x256xf32>
    %132 = arith.truncf %131 : vector<96x256xf32> to vector<96x256xbf16>
    %c0_52 = arith.constant 0 : index
    %c0_53 = arith.constant 0 : index
    %133 = vector.load %arg11[%c0_52, %c0_53] : memref<256x64xbf16, #tpu.memory_space<vmem>>, vector<256x64xbf16>
    %cst_54 = arith.constant dense<0.000000e+00> : vector<96x64xf32>
    %134 = tpu.matmul %132, %133, %cst_54 {dimension_numbers = #tpu.dot_dimension_numbers<[1], [0], [0], [1], [0, 0, 1, 1], [], []>} : vector<96x256xbf16>, vector<256x64xbf16>, vector<96x64xf32> -> vector<96x64xf32>
    %c0_55 = arith.constant 0 : index
    %c0_56 = arith.constant 0 : index
    %135 = vector.load %arg12[%c0_55, %c0_56] : memref<1x64xf32, #tpu.memory_space<vmem>>, vector<1x64xf32>
    %136 = vector.broadcast %135 : vector<1x64xf32> to vector<96x64xf32>
    %137 = arith.addf %134, %136 : vector<96x64xf32>
    %138 = arith.addf %137, %112 : vector<96x64xf32>
    %c0_57 = arith.constant 0 : index
    %c0_58 = arith.constant 0 : index
    %139 = vector.load %arg13[%c0_57, %c0_58] : memref<1x64xf32, #tpu.memory_space<vmem>>, vector<1x64xf32>
    %c0_59 = arith.constant 0 : index
    %c0_60 = arith.constant 0 : index
    %140 = vector.load %arg14[%c0_59, %c0_60] : memref<1x64xf32, #tpu.memory_space<vmem>>, vector<1x64xf32>
    %cst_61 = arith.constant dense<0.000000e+00> : vector<96xf32>
    %141 = vector.multi_reduction <add>, %138, %cst_61 [1] : vector<96x64xf32> to vector<96xf32>
    %142 = vector.shape_cast %141 : vector<96xf32> to vector<96x1xf32>
    %cst_62 = arith.constant 6.400000e+01 : f32
    %143 = vector.broadcast %cst_62 : f32 to vector<96x1xf32>
    %144 = arith.divf %142, %143 : vector<96x1xf32>
    %145 = vector.broadcast %144 : vector<96x1xf32> to vector<96x64xf32>
    %146 = arith.subf %138, %145 : vector<96x64xf32>
    %147 = arith.mulf %146, %146 : vector<96x64xf32>
    %cst_63 = arith.constant dense<0.000000e+00> : vector<96xf32>
    %148 = vector.multi_reduction <add>, %147, %cst_63 [1] : vector<96x64xf32> to vector<96xf32>
    %149 = vector.shape_cast %148 : vector<96xf32> to vector<96x1xf32>
    %cst_64 = arith.constant 6.400000e+01 : f32
    %150 = vector.broadcast %cst_64 : f32 to vector<96x1xf32>
    %151 = arith.divf %149, %150 : vector<96x1xf32>
    %cst_65 = arith.constant 9.99999996E-13 : f32
    %152 = vector.broadcast %cst_65 : f32 to vector<96x1xf32>
    %153 = arith.addf %151, %152 : vector<96x1xf32>
    %154 = math.rsqrt %153 : vector<96x1xf32>
    %155 = vector.broadcast %154 : vector<96x1xf32> to vector<96x64xf32>
    %156 = arith.mulf %146, %155 : vector<96x64xf32>
    %157 = vector.broadcast %139 : vector<1x64xf32> to vector<96x64xf32>
    %158 = arith.mulf %156, %157 : vector<96x64xf32>
    %159 = vector.broadcast %140 : vector<1x64xf32> to vector<96x64xf32>
    %160 = arith.addf %158, %159 : vector<96x64xf32>
    %161 = vector.shape_cast %160 : vector<96x64xf32> to vector<6x16x64xf32>
    %c0_66 = arith.constant 0 : index
    %c0_67 = arith.constant 0 : index
    %c0_68 = arith.constant 0 : index
    %162 = vector.load %arg15[%c0_66, %c0_67, %c0_68] : memref<6x16x64xf32, #tpu.memory_space<vmem>>, vector<6x16x64xf32>
    tpu.vector_store %arg15[%c0_66, %c0_67, %c0_68], %161 {strides = array<i32>} : memref<6x16x64xf32, #tpu.memory_space<vmem>>, vector<6x16x64xf32>,
    return
  }
  func.func @transform_0(%arg0: i32) -> (i32, i32, i32) {
    %c0_i32 = arith.constant 0 : i32
    %c0_i32_0 = arith.constant 0 : i32
    %c0_i32_1 = arith.constant 0 : i32
    return %arg0, %c0_i32, %c0_i32_0 : i32, i32, i32
  }
  func.func @transform_1(%arg0: i32) -> (i32, i32, i32) {
    %c0_i32 = arith.constant 0 : i32
    %c0_i32_0 = arith.constant 0 : i32
    %c0_i32_1 = arith.constant 0 : i32
    return %arg0, %c0_i32, %c0_i32_0 : i32, i32, i32
  }
  func.func @transform_2(%arg0: i32) -> (i32, i32) {
    %c0_i32 = arith.constant 0 : i32
    %c0_i32_0 = arith.constant 0 : i32
    %c0_i32_1 = arith.constant 0 : i32
    return %c0_i32, %c0_i32_0 : i32, i32
  }
  func.func @transform_3(%arg0: i32) -> (i32, i32) {
    %c0_i32 = arith.constant 0 : i32
    %c0_i32_0 = arith.constant 0 : i32
    %c0_i32_1 = arith.constant 0 : i32
    return %c0_i32, %c0_i32_0 : i32, i32
  }
  func.func @transform_4(%arg0: i32) -> (i32, i32) {
    %c0_i32 = arith.constant 0 : i32
    %c0_i32_0 = arith.constant 0 : i32
    %c0_i32_1 = arith.constant 0 : i32
    return %c0_i32, %c0_i32_0 : i32, i32
  }
  func.func @transform_5(%arg0: i32) -> (i32, i32) {
    %c0_i32 = arith.constant 0 : i32
    %c0_i32_0 = arith.constant 0 : i32
    %c0_i32_1 = arith.constant 0 : i32
    return %c0_i32, %c0_i32_0 : i32, i32
  }
  func.func @transform_6(%arg0: i32) -> (i32, i32) {
    %c0_i32 = arith.constant 0 : i32
    %c0_i32_0 = arith.constant 0 : i32
    %c0_i32_1 = arith.constant 0 : i32
    return %c0_i32, %c0_i32_0 : i32, i32
  }
  func.func @transform_7(%arg0: i32) -> (i32, i32) {
    %c0_i32 = arith.constant 0 : i32
    %c0_i32_0 = arith.constant 0 : i32
    %c0_i32_1 = arith.constant 0 : i32
    return %c0_i32, %c0_i32_0 : i32, i32
  }
  func.func @transform_8(%arg0: i32) -> (i32, i32) {
    %c0_i32 = arith.constant 0 : i32
    %c0_i32_0 = arith.constant 0 : i32
    %c0_i32_1 = arith.constant 0 : i32
    return %c0_i32, %c0_i32_0 : i32, i32
  }
  func.func @transform_9(%arg0: i32) -> (i32, i32) {
    %c0_i32 = arith.constant 0 : i32
    %c0_i32_0 = arith.constant 0 : i32
    %c0_i32_1 = arith.constant 0 : i32
    return %c0_i32, %c0_i32_0 : i32, i32
  }
  func.func @transform_10(%arg0: i32) -> (i32, i32) {
    %c0_i32 = arith.constant 0 : i32
    %c0_i32_0 = arith.constant 0 : i32
    %c0_i32_1 = arith.constant 0 : i32
    return %c0_i32, %c0_i32_0 : i32, i32
  }
  func.func @transform_11(%arg0: i32) -> (i32, i32) {
    %c0_i32 = arith.constant 0 : i32
    %c0_i32_0 = arith.constant 0 : i32
    %c0_i32_1 = arith.constant 0 : i32
    return %c0_i32, %c0_i32_0 : i32, i32
  }
  func.func @transform_12(%arg0: i32) -> (i32, i32) {
    %c0_i32 = arith.constant 0 : i32
    %c0_i32_0 = arith.constant 0 : i32
    %c0_i32_1 = arith.constant 0 : i32
    return %c0_i32, %c0_i32_0 : i32, i32
  }
  func.func @transform_13(%arg0: i32) -> (i32, i32) {
    %c0_i32 = arith.constant 0 : i32
    %c0_i32_0 = arith.constant 0 : i32
    %c0_i32_1 = arith.constant 0 : i32
    return %c0_i32, %c0_i32_0 : i32, i32
  }
  func.func @transform_14(%arg0: i32) -> (i32, i32, i32) {
    %c0_i32 = arith.constant 0 : i32
    %c0_i32_0 = arith.constant 0 : i32
    %c0_i32_1 = arith.constant 0 : i32
    return %arg0, %c0_i32, %c0_i32_0 : i32, i32, i32
  }
}

module attributes {stable_mosaic.version = 11 : i64} {
  func.func @_cross_cls_kernel(%arg0: memref<2x5x64xf32, #tpu.memory_space<vmem>>, %arg1: memref<2x16x64xf32, #tpu.memory_space<vmem>>, %arg2: memref<2x16xf32, #tpu.memory_space<vmem>>, %arg3: memref<1x64xf32, #tpu.memory_space<vmem>>, %arg4: memref<1x1xf32, #tpu.memory_space<vmem>>, %arg5: memref<2x5xf32, #tpu.memory_space<vmem>>) attributes {dimension_semantics = [], scalar_prefetch = 0 : i64, scratch_operands = 0 : i64, tpu.core_type = #tpu.core_type<tc>} {
    %c0 = arith.constant 0 : index
    %c0_0 = arith.constant 0 : index
    %c0_1 = arith.constant 0 : index
    %0 = vector.load %arg0[%c0, %c0_0, %c0_1] : memref<2x5x64xf32, #tpu.memory_space<vmem>>, vector<2x5x64xf32>
    %c0_2 = arith.constant 0 : index
    %c0_3 = arith.constant 0 : index
    %c0_4 = arith.constant 0 : index
    %1 = vector.load %arg1[%c0_2, %c0_3, %c0_4] : memref<2x16x64xf32, #tpu.memory_space<vmem>>, vector<2x16x64xf32>
    %c0_5 = arith.constant 0 : index
    %c0_6 = arith.constant 0 : index
    %2 = vector.load %arg2[%c0_5, %c0_6] : memref<2x16xf32, #tpu.memory_space<vmem>>, vector<2x16xf32>
    "tpu.trace_start"() <{level = 10 : i32, message = "bch,bsh->bcs"}> : () -> ()
    %cst = arith.constant dense<0.000000e+00> : vector<2x5x16xf32>
    %3 = tpu.matmul %0, %1, %cst {dimension_numbers = #tpu.dot_dimension_numbers<[2], [2], [1], [1], [0, 0, 0, 1, 1, 1], [0], [0]>} : vector<2x5x64xf32>, vector<2x16x64xf32>, vector<2x5x16xf32> -> vector<2x5x16xf32>
    "tpu.trace_stop"() : () -> ()
    %cst_7 = arith.constant 1.250000e-01 : f32
    %4 = vector.broadcast %cst_7 : f32 to vector<2x5x16xf32>
    %5 = arith.mulf %3, %4 : vector<2x5x16xf32>
    %6 = vector.shape_cast %2 : vector<2x16xf32> to vector<2x1x16xf32>
    %cst_8 = arith.constant 0.000000e+00 : f32
    %7 = vector.broadcast %cst_8 : f32 to vector<2x1x16xf32>
    %8 = arith.cmpf oeq, %6, %7 : vector<2x1x16xf32>
    %cst_9 = arith.constant -1.000000e+09 : f32
    %9 = vector.shape_cast %8 : vector<2x1x16xi1> to vector<2x1x16xi1>
    %10 = vector.broadcast %9 : vector<2x1x16xi1> to vector<2x5x16xi1>
    %11 = vector.broadcast %cst_9 : f32 to vector<2x5x16xf32>
    %12 = arith.select %10, %11, %5 : vector<2x5x16xi1>, vector<2x5x16xf32>
    %cst_10 = arith.constant dense<0xFF800000> : vector<2x5xf32>
    %13 = vector.multi_reduction <maximumf>, %12, %cst_10 [2] : vector<2x5x16xf32> to vector<2x5xf32>
    %14 = vector.shape_cast %13 : vector<2x5xf32> to vector<2x5x1xf32>
    %15 = vector.broadcast %14 : vector<2x5x1xf32> to vector<2x5x16xf32>
    %16 = arith.subf %12, %15 : vector<2x5x16xf32>
    %17 = math.exp %16 : vector<2x5x16xf32>
    %cst_11 = arith.constant dense<0.000000e+00> : vector<2x5xf32>
    %18 = vector.multi_reduction <add>, %17, %cst_11 [2] : vector<2x5x16xf32> to vector<2x5xf32>
    %19 = vector.shape_cast %18 : vector<2x5xf32> to vector<2x5x1xf32>
    %20 = vector.broadcast %19 : vector<2x5x1xf32> to vector<2x5x16xf32>
    %21 = arith.divf %17, %20 : vector<2x5x16xf32>
    "tpu.trace_start"() <{level = 10 : i32, message = "bcs,bsh->bch"}> : () -> ()
    %cst_12 = arith.constant dense<0.000000e+00> : vector<2x5x64xf32>
    %22 = tpu.matmul %21, %1, %cst_12 {dimension_numbers = #tpu.dot_dimension_numbers<[2], [1], [1], [2], [0, 0, 0, 1, 1, 2], [0], [0]>} : vector<2x5x16xf32>, vector<2x16x64xf32>, vector<2x5x64xf32> -> vector<2x5x64xf32>
    "tpu.trace_stop"() : () -> ()
    %c0_13 = arith.constant 0 : index
    %c0_14 = arith.constant 0 : index
    %23 = vector.load %arg3[%c0_13, %c0_14] : memref<1x64xf32, #tpu.memory_space<vmem>>, vector<1x64xf32>
    %24 = vector.shape_cast %23 : vector<1x64xf32> to vector<1x1x64xf32>
    %25 = vector.broadcast %24 : vector<1x1x64xf32> to vector<2x5x64xf32>
    %26 = arith.mulf %22, %25 : vector<2x5x64xf32>
    %cst_15 = arith.constant dense<0.000000e+00> : vector<2x5xf32>
    %27 = vector.multi_reduction <add>, %26, %cst_15 [2] : vector<2x5x64xf32> to vector<2x5xf32>
    %c0_16 = arith.constant 0 : index
    %c0_17 = arith.constant 0 : index
    %28 = vector.load %arg4[%c0_16, %c0_17] : memref<1x1xf32, #tpu.memory_space<vmem>>, vector<1x1xf32>
    %29 = vector.broadcast %28 : vector<1x1xf32> to vector<2x5xf32>
    %30 = arith.addf %27, %29 : vector<2x5xf32>
    %c0_18 = arith.constant 0 : index
    %c0_19 = arith.constant 0 : index
    %31 = vector.load %arg5[%c0_18, %c0_19] : memref<2x5xf32, #tpu.memory_space<vmem>>, vector<2x5xf32>
    tpu.vector_store %arg5[%c0_18, %c0_19], %30 {strides = array<i32>} : memref<2x5xf32, #tpu.memory_space<vmem>>, vector<2x5xf32>,
    return
  }
}

</mosaic_0001>

<bundles_post_ra>
// kernel: model_forward.4
= control target key start
LH: loop header
LB: loop body
LE: loop exit
PB: predicated region body
PF: predicated region fallthrough
CT: control target
= control target key end

     0   :  { %vm40_vm0 = vcmask 523264   ;;  %v711_v48 = vmov 64.0   ;;  %s1551_s0 = inlined_call_operand.vmem [shape: f32[192,64], index: 0, kind: input, shape index: {}]   ;;  %s1552_s1 = inlined_call_operand.vmem [shape: f32[1,64], index: 1, kind: input, shape index: {}]   ;;  %s1553_s2 = inlined_call_operand.vmem [shape: f32[1,64], index: 2, kind: input, shape index: {}]   ;;  %s1554_s3 = inlined_call_operand.vmem [shape: f32[192,64], index: 3, kind: output, shape index: {}]  }
   0x1   :  { %v735_v0 = vld [vmem:[%s1551_s0 + $0x20] sm:$0xff]  ;;  %v740_v1 = vld [vmem:[%s1551_s0 + $0x10] sm:$0xff]  ;;  %v756_v6 = vld [vmem:[%s1551_s0 + $0x28] sm:$0xff]  ;;  %661 = vrcp.f32 %v711_v48 }
   0x2   :  { %v745_v2 = vld [vmem:[%s1551_s0] sm:$0xff]  ;;  %v53_v3 = vsel %vm40_vm0, %v735_v0, 0.0  ;;  %v47_v4 = vsel %vm40_vm0, %v740_v1, 0.0  ;;  %v761_v7 = vld [vmem:[%s1551_s0 + $0x18] sm:$0xff]  ;;  %v766_v8 = vld [vmem:[%s1551_s0 + $0x8] sm:$0xff]  ;;  %v56_v9 = vsel %vm40_vm0, %v756_v6, 0.0 }
   0x3   :  { %v41_v5 = vsel %vm40_vm0, %v745_v2, 0.0  ;;  %54 = vadd.xlane.f32.xlu2 %v53_v3  ;;  %48 = vadd.xlane.f32.xlu1 %v47_v4  ;;  %v50_v10 = vsel %vm40_vm0, %v761_v7, 0.0  ;;  %v44_v11 = vsel %vm40_vm0, %v766_v8, 0.0  ;;  %v777_v12 = vld [vmem:[%s1551_s0 + $0x40] sm:$0xff]  ;;  %v782_v13 = vld [vmem:[%s1551_s0 + $0x38] sm:$0xff]  ;;  %v787_v14 = vld [vmem:[%s1551_s0 + $0x30] sm:$0xff] }
   0x4   :  { %42 = vadd.xlane.f32.xlu0 %v41_v5  ;;  %v65_v15 = vsel %vm40_vm0, %v777_v12, 0.0  ;;  %v62_v16 = vsel %vm40_vm0, %v782_v13, 0.0  ;;  %v59_v17 = vsel %vm40_vm0, %v787_v14, 0.0  ;;  %v798_v18 = vld [vmem:[%s1551_s0 + $0x58] sm:$0xff]  ;;  %v803_v19 = vld [vmem:[%s1551_s0 + $0x50] sm:$0xff]  ;;  %v808_v20 = vld [vmem:[%s1551_s0 + $0x48] sm:$0xff] }
   0x5   :  { %v74_v21 = vsel %vm40_vm0, %v798_v18, 0.0  ;;  %v71_v22 = vsel %vm40_vm0, %v803_v19, 0.0  ;;  %v68_v23 = vsel %vm40_vm0, %v808_v20, 0.0  ;;  %v819_v24 = vld [vmem:[%s1551_s0 + $0x70] sm:$0xff]  ;;  %v824_v25 = vld [vmem:[%s1551_s0 + $0x68] sm:$0xff]  ;;  %v829_v26 = vld [vmem:[%s1551_s0 + $0x60] sm:$0xff] }
   0x6   :  { %v83_v27 = vsel %vm40_vm0, %v819_v24, 0.0  ;;  %v80_v28 = vsel %vm40_vm0, %v824_v25, 0.0  ;;  %v77_v29 = vsel %vm40_vm0, %v829_v26, 0.0  ;;  %v840_v30 = vld [vmem:[%s1551_s0 + $0x88] sm:$0xff]  ;;  %v845_v31 = vld [vmem:[%s1551_s0 + $0x80] sm:$0xff]  ;;  %v850_v32 = vld [vmem:[%s1551_s0 + $0x78] sm:$0xff] }
   0x7   :  { %v92_v33 = vsel %vm40_vm0, %v840_v30, 0.0  ;;  %v89_v34 = vsel %vm40_vm0, %v845_v31, 0.0  ;;  %v86_v35 = vsel %vm40_vm0, %v850_v32, 0.0  ;;  %v861_v36 = vld [vmem:[%s1551_s0 + $0xa0] sm:$0xff]  ;;  %v866_v37 = vld [vmem:[%s1551_s0 + $0x98] sm:$0xff]  ;;  %v871_v38 = vld [vmem:[%s1551_s0 + $0x90] sm:$0xff]  ;;  %v662_v49 = vpop.eup %661 }
   0x8   :  { %v101_v39 = vsel %vm40_vm0, %v861_v36, 0.0  ;;  %v98_v40 = vsel %vm40_vm0, %v866_v37, 0.0  ;;  %v95_v41 = vsel %vm40_vm0, %v871_v38, 0.0  ;;  %v882_v42 = vld [vmem:[%s1551_s0 + $0xb8] sm:$0xff]  ;;  %v887_v43 = vld [vmem:[%s1551_s0 + $0xb0] sm:$0xff]  ;;  %v892_v44 = vld [vmem:[%s1551_s0 + $0xa8] sm:$0xff]  ;;  %vm118_vm1 = vweird.f32 %v662_v49 }
   0x9   :  { %v110_v45 = vsel %vm40_vm0, %v882_v42, 0.0  ;;  %v107_v46 = vsel %vm40_vm0, %v887_v43, 0.0  ;;  %v104_v47 = vsel %vm40_vm0, %v892_v44, 0.0  ;;  %v114_v50 = vmul.f32 64.0, %v662_v49 }
   0xb   :  { %57 = vadd.xlane.f32.xlu2 %v56_v9  ;;  %51 = vadd.xlane.f32.xlu1 %v50_v10  ;;  %v115_v51 = vsub.f32 1.0, %v114_v50 }
   0xc   :  { %45 = vadd.xlane.f32.xlu0 %v44_v11 }
   0xd   :  { %v116_v52 = vmul.f32 %v662_v49, %v115_v51 }
   0xf   :  { %v117_v53 = vadd.f32 %v662_v49, %v116_v52 }
  0x11   :  { %v900_v54 = vsel %vm118_vm1, %v662_v49, %v117_v53 }
  0x13   :  { %66 = vadd.xlane.f32.xlu2 %v65_v15  ;;  %63 = vadd.xlane.f32.xlu1 %v62_v16 }
  0x14   :  { %60 = vadd.xlane.f32.xlu0 %v59_v17 }
  0x1b   :  { %75 = vadd.xlane.f32.xlu2 %v74_v21  ;;  %72 = vadd.xlane.f32.xlu1 %v71_v22 }
  0x1c   :  { %69 = vadd.xlane.f32.xlu0 %v68_v23 }
  0x23   :  { %84 = vadd.xlane.f32.xlu2 %v83_v27  ;;  %81 = vadd.xlane.f32.xlu1 %v80_v28 }
  0x24   :  { %78 = vadd.xlane.f32.xlu0 %v77_v29 }
  0x2b   :  { %93 = vadd.xlane.f32.xlu2 %v92_v33  ;;  %90 = vadd.xlane.f32.xlu1 %v89_v34 }
  0x2c   :  { %87 = vadd.xlane.f32.xlu0 %v86_v35 }
  0x33   :  { %102 = vadd.xlane.f32.xlu2 %v101_v39  ;;  %99 = vadd.xlane.f32.xlu1 %v98_v40 }
  0x34   :  { %96 = vadd.xlane.f32.xlu0 %v95_v41 }
  0x3b   :  { %111 = vadd.xlane.f32.xlu2 %v110_v45  ;;  %108 = vadd.xlane.f32.xlu1 %v107_v46 }
  0x3c   :  { %105 = vadd.xlane.f32.xlu0 %v104_v47 }
  0x76   :  { %v55_v55 = vpop.xlane.xlu2 %54  ;;  %v49_v56 = vpop.xlane.xlu1 %48 }
  0x77   :  { %v122_v57 = vmul.f32 %v900_v54, %v49_v56  ;;  %v43_v58 = vpop.xlane.xlu0 %42  ;;  %v124_v17 = vmul.f32 %v900_v54, %v55_v55 }
  0x78   :  { %v120_v59 = vmul.f32 %v900_v54, %v43_v58 }
  0x79   :  { %v905_v60 = vsub.f32 %v740_v1, %v122_v57 }
  0x7a   :  { %v908_v61 = vsub.f32 %v745_v2, %v120_v59 }
  0x7b   :  { %v170_v62 = vmul.f32 %v905_v60, %v905_v60 }
  0x7c   :  { %v168_v63 = vmul.f32 %v908_v61, %v908_v61 }
  0x7d   :  { %v198_v3 = vsel %vm40_vm0, %v170_v62, 0.0 }
  0x7e   :  { %v58_v4 = vpop.xlane.xlu2 %57  ;;  %199 = vadd.xlane.f32.xlu2 %v198_v3  ;;  %v52_v5 = vpop.xlane.xlu1 %51  ;;  %v192_v9 = vsel %vm40_vm0, %v168_v63, 0.0 }
  0x7f   :  { %v125_v10 = vmul.f32 %v900_v54, %v58_v4  ;;  %v123_v1 = vmul.f32 %v900_v54, %v52_v5  ;;  %193 = vadd.xlane.f32.xlu0 %v192_v9  ;;  %v46_v2 = vpop.xlane.xlu0 %45 }
  0x80   :  { %v121_v11 = vmul.f32 %v900_v54, %v46_v2 }
  0x81   :  { %v920_v15 = vsub.f32 %v756_v6, %v125_v10  ;;  %v923_v16 = vsub.f32 %v761_v7, %v123_v1  ;;  %v938_v7 = vsub.f32 %v735_v0, %v124_v17 }
  0x82   :  { %v927_v21 = vsub.f32 %v766_v8, %v121_v11 }
  0x83   :  { %v173_v22 = vmul.f32 %v920_v15, %v920_v15  ;;  %v171_v23 = vmul.f32 %v923_v16, %v923_v16  ;;  %v172_v45 = vmul.f32 %v938_v7, %v938_v7 }
  0x84   :  { %v169_v27 = vmul.f32 %v927_v21, %v927_v21 }
  0x85   :  { %v207_v6 = vsel %vm40_vm0, %v173_v22, 0.0  ;;  %v201_v28 = vsel %vm40_vm0, %v171_v23, 0.0 }
  0x86   :  { %v67_v29 = vpop.xlane.xlu2 %66  ;;  %208 = vadd.xlane.f32.xlu2 %v207_v6  ;;  %v195_v8 = vsel %vm40_vm0, %v169_v27, 0.0  ;;  %v64_v33 = vpop.xlane.xlu1 %63 }
  0x87   :  { %v128_v34 = vmul.f32 %v900_v54, %v67_v29  ;;  %202 = vadd.xlane.f32.xlu0 %v201_v28  ;;  %196 = vadd.xlane.f32.xlu1 %v195_v8  ;;  %v61_v35 = vpop.xlane.xlu0 %60  ;;  %v127_v40 = vmul.f32 %v900_v54, %v64_v33 }
  0x88   :  { %v126_v39 = vmul.f32 %v900_v54, %v61_v35 }
  0x89   :  { %v945_v41 = vsub.f32 %v777_v12, %v128_v34  ;;  %v955_v47 = vsub.f32 %v782_v13, %v127_v40  ;;  %v204_v12 = vsel %vm40_vm0, %v172_v45, 0.0 }
  0x8a   :  { %v948_v0 = vsub.f32 %v787_v14, %v126_v39 }
  0x8b   :  { %v176_v46 = vmul.f32 %v945_v41, %v945_v41  ;;  %v175_v56 = vmul.f32 %v955_v47, %v955_v47 }
  0x8c   :  { %v174_v48 = vmul.f32 %v948_v0, %v948_v0 }
  0x8d   :  { %v216_v49 = vsel %vm40_vm0, %v176_v46, 0.0  ;;  %v213_v63 = vsel %vm40_vm0, %v175_v56, 0.0 }
  0x8e   :  { %v76_v50 = vpop.xlane.xlu2 %75  ;;  %217 = vadd.xlane.f32.xlu2 %v216_v49  ;;  %v210_v14 = vsel %vm40_vm0, %v174_v48, 0.0  ;;  %v73_v51 = vpop.xlane.xlu1 %72 }
  0x8f   :  { %v131_v52 = vmul.f32 %v900_v54, %v76_v50  ;;  %205 = vadd.xlane.f32.xlu1 %v204_v12  ;;  %211 = vadd.xlane.f32.xlu0 %v210_v14  ;;  %v70_v53 = vpop.xlane.xlu0 %69  ;;  %v130_v55 = vmul.f32 %v900_v54, %v73_v51 }
  0x90   :  { %v129_v13 = vmul.f32 %v900_v54, %v70_v53 }
  0x91   :  { %v968_v57 = vsub.f32 %v798_v18, %v131_v52  ;;  %v976_v62 = vsub.f32 %v803_v19, %v130_v55 }
  0x92   :  { %v971_v58 = vsub.f32 %v808_v20, %v129_v13 }
  0x93   :  { %v179_v59 = vmul.f32 %v968_v57, %v968_v57  ;;  %v178_v2 = vmul.f32 %v976_v62, %v976_v62 }
  0x94   :  { %v177_v3 = vmul.f32 %v971_v58, %v971_v58 }
  0x95   :  { %v225_v4 = vsel %vm40_vm0, %v179_v59, 0.0  ;;  %v222_v27 = vsel %vm40_vm0, %v178_v2, 0.0 }
  0x96   :  { %v85_v5 = vpop.xlane.xlu2 %84  ;;  %226 = vadd.xlane.f32.xlu2 %v225_v4  ;;  %v219_v18 = vsel %vm40_vm0, %v177_v3, 0.0  ;;  %v82_v9 = vpop.xlane.xlu1 %81 }
  0x97   :  { %v134_v20 = vmul.f32 %v900_v54, %v85_v5  ;;  %214 = vadd.xlane.f32.xlu1 %v213_v63  ;;  %220 = vadd.xlane.f32.xlu0 %v219_v18  ;;  %v79_v10 = vpop.xlane.xlu0 %78  ;;  %v133_v1 = vmul.f32 %v900_v54, %v82_v9 }
  0x98   :  { %v132_v19 = vmul.f32 %v900_v54, %v79_v10 }
  0x99   :  { %v989_v11 = vsub.f32 %v819_v24, %v134_v20  ;;  %v997_v23 = vsub.f32 %v824_v25, %v133_v1 }
  0x9a   :  { %v992_v17 = vsub.f32 %v829_v26, %v132_v19 }
  0x9b   :  { %v182_v22 = vmul.f32 %v989_v11, %v989_v11  ;;  %v181_v35 = vmul.f32 %v997_v23, %v997_v23 }
  0x9c   :  { %v180_v6 = vmul.f32 %v992_v17, %v992_v17 }
  0x9d   :  { %v234_v28 = vsel %vm40_vm0, %v182_v22, 0.0  ;;  %v231_v48 = vsel %vm40_vm0, %v181_v35, 0.0 }
  0x9e   :  { %v94_v29 = vpop.xlane.xlu2 %93  ;;  %235 = vadd.xlane.f32.xlu2 %v234_v28  ;;  %v228_v24 = vsel %vm40_vm0, %v180_v6, 0.0  ;;  %v91_v8 = vpop.xlane.xlu1 %90 }
  0x9f   :  { %v137_v26 = vmul.f32 %v900_v54, %v94_v29  ;;  %223 = vadd.xlane.f32.xlu1 %v222_v27  ;;  %229 = vadd.xlane.f32.xlu0 %v228_v24  ;;  %v88_v33 = vpop.xlane.xlu0 %87  ;;  %v136_v34 = vmul.f32 %v900_v54, %v91_v8 }
  0xa0   :  { %v135_v25 = vmul.f32 %v900_v54, %v88_v33 }
  0xa1   :  { %v1010_v39 = vsub.f32 %v840_v30, %v137_v26  ;;  %v1018_v46 = vsub.f32 %v845_v31, %v136_v34 }
  0xa2   :  { %v1013_v40 = vsub.f32 %v850_v32, %v135_v25 }
  0xa3   :  { %v185_v45 = vmul.f32 %v1010_v39, %v1010_v39  ;;  %v184_v53 = vmul.f32 %v1018_v46, %v1018_v46 }
  0xa4   :  { %v183_v49 = vmul.f32 %v1013_v40, %v1013_v40 }
  0xa5   :  { %v243_v50 = vsel %vm40_vm0, %v185_v45, 0.0  ;;  %v240_v63 = vsel %vm40_vm0, %v184_v53, 0.0 }
  0xa6   :  { %v103_v12 = vpop.xlane.xlu2 %102  ;;  %244 = vadd.xlane.f32.xlu2 %v243_v50  ;;  %v237_v30 = vsel %vm40_vm0, %v183_v49, 0.0  ;;  %v100_v14 = vpop.xlane.xlu1 %99 }
  0xa7   :  { %v140_v32 = vmul.f32 %v900_v54, %v103_v12  ;;  %232 = vadd.xlane.f32.xlu1 %v231_v48  ;;  %238 = vadd.xlane.f32.xlu0 %v237_v30  ;;  %v97_v51 = vpop.xlane.xlu0 %96  ;;  %v139_v52 = vmul.f32 %v900_v54, %v100_v14 }
  0xa8   :  { %v138_v31 = vmul.f32 %v900_v54, %v97_v51 }
  0xa9   :  { %v1031_v13 = vsub.f32 %v861_v36, %v140_v32  ;;  %v1039_v59 = vsub.f32 %v866_v37, %v139_v52 }
  0xaa   :  { %v1034_v55 = vsub.f32 %v871_v38, %v138_v31 }
  0xab   :  { %v188_v56 = vmul.f32 %v1031_v13, %v1031_v13  ;;  %v187_v10 = vmul.f32 %v1039_v59, %v1039_v59 }
  0xac   :  { %v186_v3 = vmul.f32 %v1034_v55, %v1034_v55 }
  0xad   :  { %v252_v4 = vsel %vm40_vm0, %v188_v56, 0.0  ;;  %v249_v27 = vsel %vm40_vm0, %v187_v10, 0.0 }
  0xae   :  { %v112_v5 = vpop.xlane.xlu2 %111  ;;  %253 = vadd.xlane.f32.xlu2 %v252_v4  ;;  %v246_v36 = vsel %vm40_vm0, %v186_v3, 0.0  ;;  %v109_v18 = vpop.xlane.xlu1 %108 }
  0xaf   :  { %v143_v38 = vmul.f32 %v900_v54, %v112_v5  ;;  %241 = vadd.xlane.f32.xlu1 %v240_v63  ;;  %247 = vadd.xlane.f32.xlu0 %v246_v36  ;;  %v106_v9 = vpop.xlane.xlu0 %105  ;;  %v142_v20 = vmul.f32 %v900_v54, %v109_v18 }
  0xb0   :  { %v141_v37 = vmul.f32 %v900_v54, %v106_v9 }
  0xb1   :  { %v1052_v19 = vsub.f32 %v882_v42, %v143_v38  ;;  %v1060_v22 = vsub.f32 %v887_v43, %v142_v20 }
  0xb2   :  { %v1055_v1 = vsub.f32 %v892_v44, %v141_v37 }
  0xb3   :  { %v191_v2 = vmul.f32 %v1052_v19, %v1052_v19  ;;  %v190_v44 = vmul.f32 %v1060_v22, %v1060_v22 }
  0xb4   :  { %v189_v6 = vmul.f32 %v1055_v1, %v1055_v1 }
  0xb5   :  { %v261_v28 = vsel %vm40_vm0, %v191_v2, 0.0  ;;  %v258_v29 = vsel %vm40_vm0, %v190_v44, 0.0  ;;  %v1102_v44 = vld [vmem:[%s1552_s1] ss:$0 sm:$0xff] }
  0xb6   :  { %262 = vadd.xlane.f32.xlu2 %v261_v28  ;;  %v255_v42 = vsel %vm40_vm0, %v189_v6, 0.0 }
  0xb7   :  { %250 = vadd.xlane.f32.xlu1 %v249_v27  ;;  %256 = vadd.xlane.f32.xlu0 %v255_v42 }
  0xbf   :  { %259 = vadd.xlane.f32.xlu1 %v258_v29 }
  0xf1   :  { %v200_v43 = vpop.xlane.xlu2 %199 }
  0xf2   :  { %v266_v24 = vmul.f32 %v200_v43, %v900_v54  ;;  %v194_v8 = vpop.xlane.xlu0 %193 }
  0xf3   :  { %v264_v26 = vmul.f32 %v194_v8, %v900_v54 }
  0xf4   :  { %v290_v33 = vadd.f32 1e-12, %v266_v24 }
  0xf5   :  { %v288_v25 = vadd.f32 1e-12, %v264_v26 }
  0xf6   :  { %663 = vrsqrt.f32 %v290_v33  ;;  %vm338_vm2 = vweird.f32 %v290_v33 }
  0xf7   :  { %665 = vrsqrt.f32 %v288_v25  ;;  %vm318_vm4 = vweird.f32 %v288_v25 }
  0xf9   :  { %v209_v34 = vpop.xlane.xlu2 %208 }
  0xfa   :  { %v269_v35 = vmul.f32 %v209_v34, %v900_v54  ;;  %v197_v45 = vpop.xlane.xlu1 %196  ;;  %v203_v48 = vpop.xlane.xlu0 %202 }
  0xfb   :  { %v265_v49 = vmul.f32 %v197_v45, %v900_v54  ;;  %v267_v50 = vmul.f32 %v203_v48, %v900_v54 }
  0xfc   :  { %v664_v12 = vpop.eup %663  ;;  %v1075_v30 = vadd.f32 1e-12, %v269_v35 }
  0xfd   :  { %v666_v14 = vpop.eup %665  ;;  %v333_v32 = vmul.f32 %v664_v12, %v290_v33  ;;  %v1077_v51 = vadd.f32 1e-12, %v265_v49  ;;  %v1079_v31 = vadd.f32 1e-12, %v267_v50  ;;  %vm339_vm3 = vweird.f32 %v664_v12  ;;  %v1118_v33 = vld [vmem:[%s1553_s2] ss:$0 sm:$0xff] }
  0xfe   :  { %v313_v52 = vmul.f32 %v666_v14, %v288_v25  ;;  %667 = vrsqrt.f32 %v1075_v30  ;;  %vm319_vm5 = vweird.f32 %v666_v14  ;;  %vm368_vm6 = vweird.f32 %v1075_v30  ;;  %vm340_vm7 = vmor %vm338_vm2, %vm339_vm3 }
  0xff   :  { %v334_v53 = vmul.f32 %v664_v12, %v333_v32  ;;  %669 = vrsqrt.f32 %v1077_v51  ;;  %vm320_vm8 = vmor %vm318_vm4, %vm319_vm5  ;;  %vm348_vm9 = vweird.f32 %v1079_v31  ;;  %vm328_vm14 = vweird.f32 %v1077_v51 }
 0x100   :  { %v314_v56 = vmul.f32 %v666_v14, %v313_v52  ;;  %671 = vrsqrt.f32 %v1079_v31 }
 0x101   :  { %v335_v63 = vmul.f32 0.5, %v334_v53  ;;  %v218_v3 = vpop.xlane.xlu2 %217 }
 0x102   :  { %v315_v4 = vmul.f32 0.5, %v314_v56  ;;  %v272_v5 = vmul.f32 %v218_v3, %v900_v54  ;;  %v206_v36 = vpop.xlane.xlu1 %205  ;;  %v212_v18 = vpop.xlane.xlu0 %211 }
 0x103   :  { %v336_v38 = vsub.f32 1.5, %v335_v63  ;;  %v268_v9 = vmul.f32 %v206_v36, %v900_v54  ;;  %v270_v24 = vmul.f32 %v212_v18, %v900_v54 }
 0x104   :  { %v1086_v37 = vpop.eup %667  ;;  %v316_v20 = vsub.f32 1.5, %v315_v4  ;;  %v1088_v10 = vadd.f32 1e-12, %v272_v5 }
 0x105   :  { %v1090_v2 = vpop.eup %669  ;;  %v337_v27 = vmul.f32 %v664_v12, %v336_v38  ;;  %v363_v6 = vmul.f32 %v1086_v37, %v1075_v30  ;;  %v1095_v28 = vadd.f32 1e-12, %v268_v9  ;;  %vm369_vm10 = vweird.f32 %v1086_v37 }
 0x106   :  { %v1097_v42 = vpop.eup %671  ;;  %v317_v29 = vmul.f32 %v666_v14, %v316_v20  ;;  %v323_v43 = vmul.f32 %v1090_v2, %v1077_v51  ;;  %673 = vrsqrt.f32 %v1088_v10  ;;  %vm329_vm11 = vweird.f32 %v1090_v2  ;;  %vm370_vm13 = vmor %vm368_vm6, %vm369_vm10 }
 0x107   :  { %v341_v8 = vsel %vm340_vm7, %v664_v12, %v337_v27  ;;  %v364_v26 = vmul.f32 %v1086_v37, %v363_v6  ;;  %v343_v34 = vmul.f32 %v1097_v42, %v1079_v31  ;;  %675 = vrsqrt.f32 %v1095_v28  ;;  %vm330_vm1 = vmor %vm328_vm14, %vm329_vm11 }
 0x108   :  { %v554_v35 = vmul.f32 %v341_v8, %v905_v60  ;;  %v321_v45 = vsel %vm320_vm8, %v666_v14, %v317_v29  ;;  %v324_v25 = vmul.f32 %v1090_v2, %v323_v43  ;;  %v1128_v53 = vadd.f32 1e-12, %v270_v24 }
 0x109   :  { %v552_v48 = vmul.f32 %v321_v45, %v908_v61  ;;  %v365_v49 = vmul.f32 0.5, %v364_v26  ;;  %v344_v50 = vmul.f32 %v1097_v42, %v343_v34  ;;  %v227_v12 = vpop.xlane.xlu2 %226  ;;  %vm349_vm12 = vweird.f32 %v1097_v42 }
 0x10a   :  { %v581_v32 = vmul.f32 %v1102_v44, %v554_v35  ;;  %v325_v52 = vmul.f32 0.5, %v324_v25  ;;  %v215_v60 = vpop.xlane.xlu1 %214  ;;  %v221_v14 = vpop.xlane.xlu0 %220  ;;  %v275_v61 = vmul.f32 %v227_v12, %v900_v54  ;;  %677 = vrsqrt.f32 %v1128_v53  ;;  %vm350_vm2 = vmor %vm348_vm9, %vm349_vm12 }
 0x10b   :  { %v579_v56 = vmul.f32 %v1102_v44, %v552_v48  ;;  %v366_v63 = vsub.f32 1.5, %v365_v49  ;;  %v345_v3 = vmul.f32 0.5, %v344_v50  ;;  %vm398_vm15 = vweird.f32 %v1088_v10 }
 0x10c   :  { %v1132_v4 = vpop.eup %673  ;;  %v608_v5 = vadd.f32 %v1118_v33, %v581_v32  ;;  %v326_v36 = vsub.f32 1.5, %v325_v52  ;;  %v1152_v6 = vadd.f32 1e-12, %v275_v61  ;;  %v271_v24 = vmul.f32 %v215_v60, %v900_v54 }
 0x10d   :  { %v606_v18 = vadd.f32 %v1118_v33, %v579_v56  ;;  %v367_v38 = vmul.f32 %v1086_v37, %v366_v63  ;;  %v346_v9 = vsub.f32 1.5, %v345_v3  ;;  %v393_v20 = vmul.f32 %v1132_v4, %v1088_v10  ;;  %v1154_v29 = vpop.eup %675 }
 0x10e   :  { %632 = vst.msk [vmem:[%s1554_s3 + $0x10] sm:$0xff] %vm40_vm0, %v608_v5  ;;  %v327_v27 = vmul.f32 %v1090_v2, %v326_v36  ;;  %v273_v34 = vmul.f32 %v221_v14, %v900_v54  ;;  %679 = vrsqrt.f32 %v1152_v6  ;;  %vm358_vm3 = vweird.f32 %v1095_v28 }
 0x10f   :  { %630 = vst.msk [vmem:[%s1554_s3] sm:$0xff] %vm40_vm0, %v606_v18  ;;  %v371_v43 = vsel %vm370_vm13, %v1086_v37, %v367_v38  ;;  %v347_v30 = vmul.f32 %v1097_v42, %v346_v9  ;;  %v394_v51 = vmul.f32 %v1132_v4, %v393_v20  ;;  %v353_v37 = vmul.f32 %v1154_v29, %v1095_v28 }
 0x110   :  { %v557_v8 = vmul.f32 %v371_v43, %v920_v15  ;;  %v331_v26 = vsel %vm330_vm1, %v1090_v2, %v327_v27  ;;  %v1178_v48 = vpop.eup %677  ;;  %vm399_vm4 = vweird.f32 %v1132_v4  ;;  %v1195_v61 = vadd.f32 1e-12, %v273_v34 }
 0x111   :  { %v553_v35 = vmul.f32 %v331_v26, %v927_v21  ;;  %v351_v45 = vsel %vm350_vm2, %v1097_v42, %v347_v30  ;;  %v395_v25 = vmul.f32 0.5, %v394_v51  ;;  %v236_v15 = vpop.xlane.xlu2 %235  ;;  %v354_v49 = vmul.f32 %v1154_v29, %v353_v37  ;;  %vm400_vm5 = vmor %vm398_vm15, %vm399_vm4 }
 0x112   :  { %v584_v2 = vmul.f32 %v1102_v44, %v557_v8  ;;  %v555_v31 = vmul.f32 %v351_v45, %v923_v16  ;;  %v224_v50 = vpop.xlane.xlu1 %223  ;;  %v230_v12 = vpop.xlane.xlu0 %229  ;;  %v373_v42 = vmul.f32 %v1178_v48, %v1128_v53  ;;  %v1190_v16 = vadd.f32 1e-12, %v271_v24 }
 0x113   :  { %v580_v21 = vmul.f32 %v1102_v44, %v553_v35  ;;  %v396_v32 = vsub.f32 1.5, %v395_v25  ;;  %v355_v14 = vmul.f32 0.5, %v354_v49  ;;  %vm359_vm6 = vweird.f32 %v1154_v29 }
 0x114   :  { %v611_v52 = vadd.f32 %v1118_v33, %v584_v2  ;;  %v582_v60 = vmul.f32 %v1102_v44, %v555_v31  ;;  %v374_v3 = vmul.f32 %v1178_v48, %v373_v42  ;;  %681 = vrsqrt.f32 %v1190_v16  ;;  %v680_v18 = vpop.eup %679  ;;  %vm360_vm9 = vmor %vm358_vm3, %vm359_vm6 }
 0x115   :  { %v607_v56 = vadd.f32 %v1118_v33, %v580_v21  ;;  %v397_v63 = vmul.f32 %v1132_v4, %v396_v32  ;;  %v356_v36 = vsub.f32 1.5, %v355_v14  ;;  %vm378_vm7 = vweird.f32 %v1128_v53 }
 0x116   :  { %635 = vst.msk [vmem:[%s1554_s3 + $0x28] sm:$0xff] %vm40_vm0, %v611_v52  ;;  %v609_v5 = vadd.f32 %v1118_v33, %v582_v60  ;;  %v375_v9 = vmul.f32 0.5, %v374_v3  ;;  %683 = vrsqrt.f32 %v1195_v61  ;;  %vm379_vm8 = vweird.f32 %v1178_v48 }
 0x117   :  { %631 = vst.msk [vmem:[%s1554_s3 + $0x8] sm:$0xff] %vm40_vm0, %v607_v56  ;;  %v401_v38 = vsel %vm400_vm5, %v1132_v4, %v397_v63  ;;  %v357_v20 = vmul.f32 %v1154_v29, %v356_v36  ;;  %v423_v27 = vmul.f32 %v680_v18, %v1152_v6  ;;  %v278_v43 = vmul.f32 %v236_v15, %v900_v54  ;;  %vm380_vm11 = vmor %vm378_vm7, %vm379_vm8 }
 0x118   :  { %633 = vst.msk [vmem:[%s1554_s3 + $0x18] sm:$0xff] %vm40_vm0, %v609_v5  ;;  %v560_v10 = vmul.f32 %v401_v38, %v945_v41  ;;  %v376_v4 = vsub.f32 1.5, %v375_v9  ;;  %v274_v30 = vmul.f32 %v224_v50, %v900_v54  ;;  %v276_v51 = vmul.f32 %v230_v12, %v900_v54 }
 0x119   :  { %v245_v24 = vpop.xlane.xlu2 %244  ;;  %v361_v41 = vsel %vm360_vm9, %v1154_v29, %v357_v20  ;;  %v424_v26 = vmul.f32 %v680_v18, %v423_v27  ;;  %vm428_vm10 = vweird.f32 %v1152_v6  ;;  %v1232_v25 = vadd.f32 1e-12, %v278_v43 }
 0x11a   :  { %v587_v8 = vmul.f32 %v1102_v44, %v560_v10  ;;  %v281_v37 = vmul.f32 %v245_v24, %v900_v54  ;;  %v233_v34 = vpop.xlane.xlu1 %232  ;;  %v239_v35 = vpop.xlane.xlu0 %238  ;;  %v556_v28 = vmul.f32 %v361_v41, %v938_v7  ;;  %v377_v45 = vmul.f32 %v1178_v48, %v376_v4 }
 0x11b   :  { %v1234_v15 = vpop.eup %681  ;;  %v425_v29 = vmul.f32 0.5, %v424_v26  ;;  %vm429_vm12 = vweird.f32 %v680_v18  ;;  %v1241_v31 = vadd.f32 1e-12, %v274_v30  ;;  %v1249_v21 = vadd.f32 1e-12, %v276_v51 }
 0x11c   :  { %v614_v2 = vadd.f32 %v1118_v33, %v587_v8  ;;  %v1243_v7 = vpop.eup %683  ;;  %v583_v49 = vmul.f32 %v1102_v44, %v556_v28  ;;  %v381_v50 = vsel %vm380_vm11, %v1178_v48, %v377_v45  ;;  %v383_v12 = vmul.f32 %v1234_v15, %v1190_v16  ;;  %vm430_vm13 = vmor %vm428_vm10, %vm429_vm12 }
 0x11d   :  { %v558_v53 = vmul.f32 %v381_v50, %v948_v0  ;;  %v426_v32 = vsub.f32 1.5, %v425_v29  ;;  %v403_v42 = vmul.f32 %v1243_v7, %v1195_v61  ;;  %v1258_v52 = vadd.f32 1e-12, %v281_v37 }
 0x11e   :  { %638 = vst.msk [vmem:[%s1554_s3 + $0x40] sm:$0xff] %vm40_vm0, %v614_v2  ;;  %v610_v48 = vadd.f32 %v1118_v33, %v583_v49  ;;  %v384_v60 = vmul.f32 %v1234_v15, %v383_v12  ;;  %685 = vrsqrt.f32 %v1232_v25  ;;  %vm388_vm14 = vweird.f32 %v1190_v16 }
 0x11f   :  { %v585_v14 = vmul.f32 %v1102_v44, %v558_v53  ;;  %v427_v56 = vmul.f32 %v680_v18, %v426_v32  ;;  %v404_v63 = vmul.f32 %v1243_v7, %v403_v42  ;;  %687 = vrsqrt.f32 %v1241_v31 }
 0x120   :  { %634 = vst.msk [vmem:[%s1554_s3 + $0x20] sm:$0xff] %vm40_vm0, %v610_v48  ;;  %v385_v0 = vmul.f32 0.5, %v384_v60  ;;  %689 = vrsqrt.f32 %v1249_v21  ;;  %vm389_vm15 = vweird.f32 %v1234_v15  ;;  %v277_v6 = vmul.f32 %v233_v34, %v900_v54 }
 0x121   :  { %v612_v3 = vadd.f32 %v1118_v33, %v585_v14  ;;  %v431_v5 = vsel %vm430_vm13, %v680_v18, %v427_v56  ;;  %v405_v36 = vmul.f32 0.5, %v404_v63  ;;  %691 = vrsqrt.f32 %v1258_v52  ;;  %v254_v38 = vpop.xlane.xlu2 %253  ;;  %vm390_vm4 = vmor %vm388_vm14, %vm389_vm15 }
 0x122   :  { %v563_v9 = vmul.f32 %v431_v5, %v968_v57  ;;  %v386_v10 = vsub.f32 1.5, %v385_v0  ;;  %v242_v20 = vpop.xlane.xlu1 %241  ;;  %vm408_vm1 = vweird.f32 %v1195_v61  ;;  %vm409_vm2 = vweird.f32 %v1243_v7  ;;  %v248_v18 = vpop.xlane.xlu0 %247 }
 0x123   :  { %636 = vst.msk [vmem:[%s1554_s3 + $0x30] sm:$0xff] %vm40_vm0, %v612_v3  ;;  %v406_v27 = vsub.f32 1.5, %v405_v36  ;;  %vm458_vm3 = vweird.f32 %v1232_v25  ;;  %v279_v30 = vmul.f32 %v239_v35, %v900_v54  ;;  %v284_v51 = vmul.f32 %v254_v38, %v900_v54  ;;  %vm410_vm6 = vmor %vm408_vm1, %vm409_vm2 }
 0x124   :  { %v1287_v57 = vpop.eup %685  ;;  %v590_v4 = vmul.f32 %v1102_v44, %v563_v9  ;;  %v387_v43 = vmul.f32 %v1234_v15, %v386_v10  ;;  %vm438_vm5 = vweird.f32 %v1249_v21  ;;  %v1303_v26 = vadd.f32 1e-12, %v277_v6 }
 0x125   :  { %v1293_v24 = vpop.eup %687  ;;  %v407_v8 = vmul.f32 %v1243_v7, %v406_v27  ;;  %v453_v41 = vmul.f32 %v1287_v57, %v1232_v25  ;;  %v280_v37 = vmul.f32 %v242_v20, %v900_v54  ;;  %vm418_vm7 = vweird.f32 %v1241_v31 }
 0x126   :  { %v1306_v34 = vpop.eup %689  ;;  %v617_v35 = vadd.f32 %v1118_v33, %v590_v4  ;;  %v391_v28 = vsel %vm390_vm4, %v1234_v15, %v387_v43  ;;  %v413_v16 = vmul.f32 %v1293_v24, %v1241_v31  ;;  %vm488_vm8 = vweird.f32 %v1258_v52 }
 0x127   :  { %v282_v45 = vmul.f32 %v248_v18, %v900_v54  ;;  %v692_v2 = vpop.eup %691  ;;  %v559_v29 = vmul.f32 %v391_v28, %v955_v47  ;;  %v411_v49 = vsel %vm410_vm6, %v1243_v7, %v407_v8  ;;  %v454_v15 = vmul.f32 %v1287_v57, %v453_v41 }
 0x128   :  { %v433_v61 = vmul.f32 %v1306_v34, %v1249_v21  ;;  %641 = vst.msk [vmem:[%s1554_s3 + $0x58] sm:$0xff] %vm40_vm0, %v617_v35  ;;  %v561_v50 = vmul.f32 %v411_v49, %v971_v58  ;;  %v414_v12 = vmul.f32 %v1293_v24, %v413_v16  ;;  %v483_v53 = vmul.f32 %v692_v2, %v1258_v52 }
 0x129   :  { %v1331_v32 = vadd.f32 1e-12, %v279_v30  ;;  %v586_v47 = vmul.f32 %v1102_v44, %v559_v29  ;;  %v455_v7 = vmul.f32 0.5, %v454_v15  ;;  %vm459_vm9 = vweird.f32 %v1287_v57  ;;  %v263_v49 = vpop.xlane.xlu2 %262 }
 0x12a   :  { %v434_v42 = vmul.f32 %v1306_v34, %v433_v61  ;;  %v588_v48 = vmul.f32 %v1102_v44, %v561_v50  ;;  %v415_v60 = vmul.f32 0.5, %v414_v12  ;;  %v484_v14 = vmul.f32 %v692_v2, %v483_v53  ;;  %vm460_vm12 = vmor %vm458_vm3, %vm459_vm9  ;;  %v251_v25 = vpop.xlane.xlu1 %250 }
 0x12b   :  { %693 = vrsqrt.f32 %v1303_v26  ;;  %v613_v58 = vadd.f32 %v1118_v33, %v586_v47  ;;  %v456_v56 = vsub.f32 1.5, %v455_v7  ;;  %vm419_vm10 = vweird.f32 %v1293_v24 }
 0x12c   :  { %v435_v63 = vmul.f32 0.5, %v434_v42  ;;  %v615_v0 = vadd.f32 %v1118_v33, %v588_v48  ;;  %v416_v3 = vsub.f32 1.5, %v415_v60  ;;  %v485_v5 = vmul.f32 0.5, %v484_v14  ;;  %vm420_vm14 = vmor %vm418_vm7, %vm419_vm10  ;;  %v257_v42 = vpop.xlane.xlu0 %256 }
 0x12d   :  { %695 = vrsqrt.f32 %v1331_v32  ;;  %637 = vst.msk [vmem:[%s1554_s3 + $0x38] sm:$0xff] %vm40_vm0, %v613_v58  ;;  %v457_v36 = vmul.f32 %v1287_v57, %v456_v56  ;;  %vm439_vm11 = vweird.f32 %v1306_v34  ;;  %v1348_v9 = vadd.f32 1e-12, %v284_v51 }
 0x12e   :  { %v436_v38 = vsub.f32 1.5, %v435_v63  ;;  %639 = vst.msk [vmem:[%s1554_s3 + $0x48] sm:$0xff] %vm40_vm0, %v615_v0  ;;  %v417_v10 = vmul.f32 %v1293_v24, %v416_v3  ;;  %v486_v6 = vsub.f32 1.5, %v485_v5  ;;  %vm489_vm13 = vweird.f32 %v692_v2  ;;  %vm440_vm15 = vmor %vm438_vm5, %vm439_vm11 }
 0x12f   :  { %v1359_v20 = vadd.f32 1e-12, %v280_v37  ;;  %v461_v27 = vsel %vm460_vm12, %v1287_v57, %v457_v36  ;;  %697 = vrsqrt.f32 %v1348_v9  ;;  %v1368_v4 = vadd.f32 1e-12, %v282_v45  ;;  %vm490_vm1 = vmor %vm488_vm8, %vm489_vm13 }
 0x130   :  { %v437_v18 = vmul.f32 %v1306_v34, %v436_v38  ;;  %v566_v30 = vmul.f32 %v461_v27, %v989_v11  ;;  %v421_v51 = vsel %vm420_vm14, %v1293_v24, %v417_v10  ;;  %v487_v31 = vmul.f32 %v692_v2, %v486_v6 }
 0x131   :  { %v1370_v43 = vpop.eup %693  ;;  %699 = vrsqrt.f32 %v1359_v20  ;;  %v562_v57 = vmul.f32 %v421_v51, %v976_v62  ;;  %vm448_vm2 = vweird.f32 %v1303_v26  ;;  %vm468_vm3 = vweird.f32 %v1331_v32 }
 0x132   :  { %v441_v8 = vsel %vm440_vm15, %v1306_v34, %v437_v18  ;;  %v443_v11 = vmul.f32 %v1370_v43, %v1303_v26  ;;  %v593_v21 = vmul.f32 %v1102_v44, %v566_v30  ;;  %v491_v37 = vsel %vm490_vm1, %v692_v2, %v487_v31  ;;  %v260_v0 = vpop.xlane.xlu1 %259 }
 0x133   :  { %v1387_v24 = vpop.eup %695  ;;  %v564_v41 = vmul.f32 %v441_v8, %v992_v17  ;;  %v589_v62 = vmul.f32 %v1102_v44, %v562_v57  ;;  %v569_v34 = vmul.f32 %v491_v37, %v1010_v39  ;;  %vm518_vm4 = vweird.f32 %v1348_v9 }
 0x134   :  { %v444_v52 = vmul.f32 %v1370_v43, %v443_v11  ;;  %v463_v35 = vmul.f32 %v1387_v24, %v1331_v32  ;;  %v620_v28 = vadd.f32 %v1118_v33, %v593_v21  ;;  %701 = vrsqrt.f32 %v1368_v4 }
 0x135   :  { %v591_v16 = vmul.f32 %v1102_v44, %v564_v41  ;;  %v1401_v17 = vpop.eup %697  ;;  %v616_v45 = vadd.f32 %v1118_v33, %v589_v62  ;;  %v596_v2 = vmul.f32 %v1102_v44, %v569_v34  ;;  %vm449_vm5 = vweird.f32 %v1370_v43 }
 0x136   :  { %v445_v39 = vmul.f32 0.5, %v444_v52  ;;  %v464_v29 = vmul.f32 %v1387_v24, %v463_v35  ;;  %644 = vst.msk [vmem:[%s1554_s3 + $0x70] sm:$0xff] %vm40_vm0, %v620_v28  ;;  %vm469_vm6 = vweird.f32 %v1387_v24  ;;  %v513_v50 = vmul.f32 %v1401_v17, %v1348_v9  ;;  %vm450_vm10 = vmor %vm448_vm2, %vm449_vm5 }
 0x137   :  { %v1406_v15 = vpop.eup %699  ;;  %v618_v61 = vadd.f32 %v1118_v33, %v591_v16  ;;  %640 = vst.msk [vmem:[%s1554_s3 + $0x50] sm:$0xff] %vm40_vm0, %v616_v45  ;;  %v623_v12 = vadd.f32 %v1118_v33, %v596_v2  ;;  %vm478_vm7 = vweird.f32 %v1359_v20  ;;  %vm519_vm8 = vweird.f32 %v1401_v17  ;;  %vm470_vm11 = vmor %vm468_vm3, %vm469_vm6 }
 0x138   :  { %v446_v53 = vsub.f32 1.5, %v445_v39  ;;  %v465_v47 = vmul.f32 0.5, %v464_v29  ;;  %v473_v7 = vmul.f32 %v1406_v15, %v1359_v20  ;;  %v514_v48 = vmul.f32 %v1401_v17, %v513_v50  ;;  %vm520_vm13 = vmor %vm518_vm4, %vm519_vm8 }
 0x139   :  { %642 = vst.msk [vmem:[%s1554_s3 + $0x60] sm:$0xff] %vm40_vm0, %v618_v61  ;;  %v287_v60 = vmul.f32 %v263_v49, %v900_v54  ;;  %v283_v14 = vmul.f32 %v251_v25, %v900_v54  ;;  %vm498_vm9 = vweird.f32 %v1368_v4  ;;  %v285_v10 = vmul.f32 %v257_v42, %v900_v54 }
 0x13a   :  { %647 = vst.msk [vmem:[%s1554_s3 + $0x88] sm:$0xff] %vm40_vm0, %v623_v12  ;;  %v447_v58 = vmul.f32 %v1370_v43, %v446_v53  ;;  %v466_v56 = vsub.f32 1.5, %v465_v47  ;;  %v474_v63 = vmul.f32 %v1406_v15, %v473_v7  ;;  %v702_v3 = vpop.eup %701  ;;  %v515_v5 = vmul.f32 0.5, %v514_v48 }
 0x13b   :  { %v1444_v36 = vadd.f32 1e-12, %v287_v60  ;;  %v1446_v38 = vadd.f32 1e-12, %v283_v14  ;;  %v493_v25 = vmul.f32 %v702_v3, %v1368_v4  ;;  %v286_v51 = vmul.f32 %v260_v0, %v900_v54 }
 0x13c   :  { %v451_v6 = vsel %vm450_vm10, %v1370_v43, %v447_v58  ;;  %v467_v27 = vmul.f32 %v1387_v24, %v466_v56  ;;  %v475_v18 = vmul.f32 0.5, %v474_v63  ;;  %v516_v26 = vsub.f32 1.5, %v515_v5 }
 0x13d   :  { %v565_v30 = vmul.f32 %v451_v6, %v997_v23  ;;  %703 = vrsqrt.f32 %v1444_v36  ;;  %vm479_vm12 = vweird.f32 %v1406_v15  ;;  %v494_v57 = vmul.f32 %v702_v3, %v493_v25 }
 0x13e   :  { %v471_v31 = vsel %vm470_vm11, %v1387_v24, %v467_v27  ;;  %v476_v43 = vsub.f32 1.5, %v475_v18  ;;  %v517_v11 = vmul.f32 %v1401_v17, %v516_v26  ;;  %705 = vrsqrt.f32 %v1446_v38  ;;  %vm480_vm15 = vmor %vm478_vm7, %vm479_vm12 }
 0x13f   :  { %v592_v8 = vmul.f32 %v1102_v44, %v565_v30  ;;  %v567_v23 = vmul.f32 %v471_v31, %v1013_v40  ;;  %v495_v32 = vmul.f32 0.5, %v494_v57  ;;  %vm499_vm14 = vweird.f32 %v702_v3 }
 0x140   :  { %v477_v54 = vmul.f32 %v1406_v15, %v476_v43  ;;  %v1470_v24 = vadd.f32 1e-12, %v285_v10  ;;  %v521_v40 = vsel %vm520_vm13, %v1401_v17, %v517_v11  ;;  %v1477_v37 = vadd.f32 1e-12, %v286_v51  ;;  %vm500_vm1 = vmor %vm498_vm9, %vm499_vm14 }
 0x141   :  { %v619_v21 = vadd.f32 %v1118_v33, %v592_v8  ;;  %v594_v41 = vmul.f32 %v1102_v44, %v567_v23  ;;  %v572_v9 = vmul.f32 %v521_v40, %v1031_v13  ;;  %v496_v34 = vsub.f32 1.5, %v495_v32 }
 0x142   :  { %v481_v62 = vsel %vm480_vm15, %v1406_v15, %v477_v54  ;;  %707 = vrsqrt.f32 %v1470_v24  ;;  %vm548_vm2 = vweird.f32 %v1444_v36  ;;  %vm508_vm6 = vweird.f32 %v1446_v38 }
 0x143   :  { %v704_v52 = vpop.eup %703  ;;  %643 = vst.msk [vmem:[%s1554_s3 + $0x68] sm:$0xff] %vm40_vm0, %v619_v21  ;;  %v621_v35 = vadd.f32 %v1118_v33, %v594_v41  ;;  %v568_v20 = vmul.f32 %v481_v62, %v1018_v46  ;;  %709 = vrsqrt.f32 %v1477_v37  ;;  %v599_v28 = vmul.f32 %v1102_v44, %v572_v9 }
 0x144   :  { %v497_v13 = vmul.f32 %v702_v3, %v496_v34  ;;  %v543_v16 = vmul.f32 %v704_v52, %v1444_v36  ;;  %v706_v17 = vpop.eup %705  ;;  %vm549_vm3 = vweird.f32 %v704_v52  ;;  %vm528_vm8 = vweird.f32 %v1470_v24 }
 0x145   :  { %645 = vst.msk [vmem:[%s1554_s3 + $0x78] sm:$0xff] %vm40_vm0, %v621_v35  ;;  %v595_v45 = vmul.f32 %v1102_v44, %v568_v20  ;;  %v626_v46 = vadd.f32 %v1118_v33, %v599_v28  ;;  %v503_v29 = vmul.f32 %v706_v17, %v1446_v38  ;;  %vm509_vm4 = vweird.f32 %v706_v17  ;;  %vm550_vm5 = vmor %vm548_vm2, %vm549_vm3 }
 0x146   :  { %v501_v2 = vsel %vm500_vm1, %v702_v3, %v497_v13  ;;  %v544_v39 = vmul.f32 %v704_v52, %v543_v16  ;;  %vm510_vm7 = vmor %vm508_vm6, %vm509_vm4  ;;  %vm538_vm12 = vweird.f32 %v1477_v37 }
 0x147   :  { %v622_v49 = vadd.f32 %v1118_v33, %v595_v45  ;;  %v570_v15 = vmul.f32 %v501_v2, %v1034_v55  ;;  %650 = vst.msk [vmem:[%s1554_s3 + $0xa0] sm:$0xff] %vm40_vm0, %v626_v46  ;;  %v504_v12 = vmul.f32 %v706_v17, %v503_v29 }
 0x148   :  { %v708_v61 = vpop.eup %707  ;;  %v545_v50 = vmul.f32 0.5, %v544_v39 }
 0x149   :  { %v710_v4 = vpop.eup %709  ;;  %646 = vst.msk [vmem:[%s1554_s3 + $0x80] sm:$0xff] %vm40_vm0, %v622_v49  ;;  %v597_v53 = vmul.f32 %v1102_v44, %v570_v15  ;;  %v523_v55 = vmul.f32 %v708_v61, %v1470_v24  ;;  %v505_v7 = vmul.f32 0.5, %v504_v12  ;;  %vm529_vm9 = vweird.f32 %v708_v61 }
 0x14a   :  { %v546_v47 = vsub.f32 1.5, %v545_v50  ;;  %v533_v42 = vmul.f32 %v710_v4, %v1477_v37  ;;  %vm539_vm10 = vweird.f32 %v710_v4  ;;  %vm530_vm11 = vmor %vm528_vm8, %vm529_vm9 }
 0x14b   :  { %v624_v48 = vadd.f32 %v1118_v33, %v597_v53  ;;  %v524_v60 = vmul.f32 %v708_v61, %v523_v55  ;;  %v506_v58 = vsub.f32 1.5, %v505_v7  ;;  %vm540_vm13 = vmor %vm538_vm12, %vm539_vm10 }
 0x14c   :  { %v547_v14 = vmul.f32 %v704_v52, %v546_v47  ;;  %v534_v56 = vmul.f32 %v710_v4, %v533_v42 }
 0x14d   :  { %648 = vst.msk [vmem:[%s1554_s3 + $0x90] sm:$0xff] %vm40_vm0, %v624_v48  ;;  %v525_v63 = vmul.f32 0.5, %v524_v60  ;;  %v507_v3 = vmul.f32 %v706_v17, %v506_v58 }
 0x14e   :  { %v551_v0 = vsel %vm550_vm5, %v704_v52, %v547_v14  ;;  %v535_v5 = vmul.f32 0.5, %v534_v56 }
 0x14f   :  { %v575_v36 = vmul.f32 %v551_v0, %v1052_v19  ;;  %v526_v10 = vsub.f32 1.5, %v525_v63  ;;  %v511_v6 = vsel %vm510_vm7, %v706_v17, %v507_v3 }
 0x150   :  { %v536_v27 = vsub.f32 1.5, %v535_v5  ;;  %v571_v25 = vmul.f32 %v511_v6, %v1039_v59 }
 0x151   :  { %v602_v18 = vmul.f32 %v1102_v44, %v575_v36  ;;  %v527_v30 = vmul.f32 %v708_v61, %v526_v10 }
 0x152   :  { %v537_v26 = vmul.f32 %v710_v4, %v536_v27  ;;  %v598_v19 = vmul.f32 %v1102_v44, %v571_v25 }
 0x153   :  { %v629_v38 = vadd.f32 %v1118_v33, %v602_v18  ;;  %v531_v51 = vsel %vm530_vm11, %v708_v61, %v527_v30 }
 0x154   :  { %v573_v31 = vmul.f32 %v531_v51, %v1055_v1  ;;  %v541_v43 = vsel %vm540_vm13, %v710_v4, %v537_v26  ;;  %v625_v59 = vadd.f32 %v1118_v33, %v598_v19 }
 0x155   :  { %653 = vst.msk [vmem:[%s1554_s3 + $0xb8] sm:$0xff] %vm40_vm0, %v629_v38  ;;  %v574_v57 = vmul.f32 %v541_v43, %v1060_v22 }
 0x156   :  { %v600_v8 = vmul.f32 %v1102_v44, %v573_v31  ;;  %649 = vst.msk [vmem:[%s1554_s3 + $0x98] sm:$0xff] %vm40_vm0, %v625_v59 }
 0x157   :  { %v601_v23 = vmul.f32 %v1102_v44, %v574_v57 }
 0x158   :  { %v627_v1 = vadd.f32 %v1118_v33, %v600_v8 }
 0x159   :  { %v628_v11 = vadd.f32 %v1118_v33, %v601_v23 }
 0x15a   :  { %651 = vst.msk [vmem:[%s1554_s3 + $0xa8] sm:$0xff] %vm40_vm0, %v627_v1 }
 0x15b   :  { %652 = vst.msk [vmem:[%s1554_s3 + $0xb0] sm:$0xff] %vm40_vm0, %v628_v11 }

// kernel: model_forward.7
= control target key start
LH: loop header
LB: loop body
LE: loop exit
PB: predicated region body
PF: predicated region fallthrough
CT: control target
= control target key end

     0   :  { %s370_s0 = inlined_call_operand.vmem [shape: f32[2,5,64], index: 0, kind: input, shape index: {}]   ;;  %s371_s1 = inlined_call_operand.vmem [shape: f32[2,16,64], index: 1, kind: input, shape index: {}]   ;;  %s372_s2 = inlined_call_operand.vmem [shape: f32[2,16], index: 2, kind: input, shape index: {}]   ;;  %s373_s3 = inlined_call_operand.vmem [shape: f32[1,64], index: 3, kind: input, shape index: {}]   ;;  %s374_s4 = inlined_call_operand.<no memory space> [shape: f32[1,1], index: 4, kind: input, shape index: {}]   ;;  %s375_s5 = inlined_call_operand.hbm [shape: f32[2,5], index: 5, kind: output, shape index: {}]  }
   0x1   :  { %v10_v0 = vstv %s374_s4 }
   0x2   :  { %11 = vst [vmem:[#allocation2] sm:$0x1] %v10_v0 }
   0x3   :  { %v26_v1 = vld [vmem:[%s371_s1 + $0x8] sm:$0xff]  ;;  %vm30_vm0 = vcmask 523264   ;;  %v25_v2 = vld [vmem:[%s371_s1] sm:$0xff]  ;;  %v28_v3 = vld [vmem:[%s371_s1 + $0x18] sm:$0xff] }
   0x4   :  { %249 = vmatpush.xpose.msk.msra.mxu0 %vm30_vm0, %v26_v1  ;;  %171 = vmatpush.msra.mxu2 %v26_v1 }
   0x5   :  { %252 = vmatpush.xpose.msk.msra.mxu1 %vm30_vm0, %v28_v3  ;;  %194 = vmatpush.msra.mxu3 %v28_v3 }
   0x6   :  { %12 = vsyncpa [#allocation4], 0  ;;  %v27_v4 = vld [vmem:[%s371_s1 + $0x10] sm:$0xff]  ;;  %172 = vmatpush.msra.mxu2 %v25_v2  ;;  %v23_v5 = vld [vmem:[%s370_s0] sm:$0x1f]  ;;  %v296_v7 = vmov 0   ;;  %v224_v1 = vlaneseq }
   0x7   :  { %195 = vmatpush.msra.mxu3 %v27_v4  ;;  %v24_v6 = vld [vmem:[%s370_s0 + $0x8] sm:$0x1f]  ;;  %259 = vset.pattern.permute.xlu0 %v296_v7  ;;  %v29_v8 = vld [vmem:[%s372_s2] sm:$0x3]  ;;  %vm104_vm4 = vcmask 126976   ;;  %vm153_vm10 = vcmask 130048  }
   0x8   :  { %250 = vmatpush.xpose.msk.msra.mxu0 %vm30_vm0, %v25_v2  ;;  %vm94_vm1 = vcmp.eq.f32.partialorder %v29_v8, 0.0  ;;  %v92_v9 = vrot.slane %v29_v8, 1  ;;  %v260_v57 = vld [vmem:[%s373_s3] ss:$0 sm:$0xff]  ;;  %vm206_vm15 = vcmask 520192   ;;  %v225_v3 = vand.u32 127, %v224_v1 }
   0x9   :  { %253 = vmatpush.xpose.msk.msra.mxu1 %vm30_vm0, %v27_v4  ;;  %v96_v10 = vsel %vm94_vm1, 1, %v296_v7  ;;  %v261_v56 = vld [vmem:[#allocation2] ss:$0 sm:$0xff]  ;;  %s297_s7 = smov [#allocation3]   ;;  %s240_s10 = sshll.u32 %s375_s5, 4  ;;  %vm231_vm1 = vcmask 33792   ;;  %s241_s10 = int_to_ptr.hbm [resolvable:$true] %s240_s10 }
   0xa   :  { %vm95_vm2 = vcmp.eq.f32.partialorder %v92_v9, 0.0  ;;  %v98_v11 = vperm.slane %v96_v10, 0  ;;  %s238_s8 = sshll.u32 %s297_s7, 4  ;;  %s239_s8 = int_to_ptr.vmem [resolvable:$true] %s238_s8 }
   0xb   :  { %251 = vmatmul.msk.f32.vlgmr.msra.gmra.mxu0 %vm30_vm0, %v23_v5  ;;  %v97_v12 = vsel %vm95_vm2, 1, %v296_v7 }
   0xc   :  { %254 = vmatmul.msk.f32.vlgmr.msra.gmra.mxu1 %vm30_vm0, %v24_v6  ;;  %vm100_vm3 = vcmp.eq.s32.totalorder %v98_v11, 1  ;;  %v99_v14 = vperm.slane %v97_v12, 0  ;;  %vm228_vm0 = vcmask 1041409  }
   0xe   :  { %vm101_vm5 = vcmp.eq.s32.totalorder %v99_v14, 1 }
  0x88   :  { %v57_v13 = vpop.f32.mrf.mxu0 }
  0x89   :  { %v89_v15 = vmul.f32 0.125, %v57_v13  ;;  %v86_v16 = vpop.f32.mrf.mxu1 }
  0x8a   :  { %v90_v18 = vmul.f32 0.125, %v86_v16 }
  0x8b   :  { %v102_v17 = vsel %vm100_vm3, -1e+09, %v89_v15 }
  0x8c   :  { %v105_v19 = vsel %vm104_vm4, %v102_v17, -inf  ;;  %v103_v20 = vsel %vm101_vm5, -1e+09, %v90_v18 }
  0x8d   :  { %106 = vmax.xlane.f32.xlu0 %v105_v19  ;;  %v108_v21 = vsel %vm104_vm4, %v103_v20, -inf }
  0x95   :  { %109 = vmax.xlane.f32.xlu0 %v108_v21 }
  0xa9   :  { %217 = vperm.xlu0 %259, %v261_v56  }
 0x100   :  { %v107_v22 = vpop.xlane.xlu0 %106 }
 0x101   :  { %v111_v23 = vsub.f32 %v102_v17, %v107_v22 }
 0x103   :  { %v113_v24 = vmul.f32 1.442695, %v111_v23 }
 0x105   :  { %262 = vpow2.f32 %v113_v24 }
 0x108   :  { %v110_v25 = vpop.xlane.xlu0 %109 }
 0x109   :  { %v112_v26 = vsub.f32 %v103_v20, %v110_v25 }
 0x10b   :  { %v263_v27 = vpop.eup %262  ;;  %v115_v28 = vmul.f32 1.442695, %v112_v26 }
 0x10c   :  { %v117_v29 = vsel %vm104_vm4, %v263_v27, 0.0 }
 0x10d   :  { %264 = vpow2.f32 %v115_v28  ;;  %118 = vadd.xlane.f32.xlu1 %v117_v29 }
 0x113   :  { %v265_v30 = vpop.eup %264 }
 0x114   :  { %v120_v31 = vsel %vm104_vm4, %v265_v30, 0.0 }
 0x115   :  { %121 = vadd.xlane.f32.xlu1 %v120_v31 }
 0x11b   :  { %v218_v2 = vpop.permute.xlu0 %217 }
 0x180   :  { %v119_v32 = vpop.xlane.xlu1 %118 }
 0x181   :  { %266 = vrcp.f32 %v119_v32  ;;  %v134_v37 = vand.u32 2147483648, %v119_v32  ;;  %v132_v39 = vand.u32 2147483647, %v119_v32  ;;  %vm128_vm7 = vweird.f32 %v119_v32 }
 0x183   :  { %v135_v42 = vor.u32 1.1754944e-38, %v134_v37  ;;  %vm133_vm9 = vcmp.eq.f32.partialorder %v132_v39, 8.507059e+37 }
 0x187   :  { %v267_v33 = vpop.eup %266 }
 0x188   :  { %v124_v34 = vmul.f32 %v267_v33, %v119_v32  ;;  %v122_v35 = vpop.xlane.xlu1 %121  ;;  %vm129_vm6 = vweird.f32 %v267_v33 }
 0x189   :  { %268 = vrcp.f32 %v122_v35  ;;  %vm130_vm8 = vmor %vm128_vm7, %vm129_vm6  ;;  %v149_v48 = vand.u32 2147483648, %v122_v35  ;;  %v147_v50 = vand.u32 2147483647, %v122_v35  ;;  %vm143_vm12 = vweird.f32 %v122_v35 }
 0x18a   :  { %v125_v36 = vsub.f32 1.0, %v124_v34 }
 0x18b   :  { %v150_v52 = vor.u32 1.1754944e-38, %v149_v48  ;;  %vm148_vm14 = vcmp.eq.f32.partialorder %v147_v50, 8.507059e+37 }
 0x18c   :  { %v126_v38 = vmul.f32 %v267_v33, %v125_v36 }
 0x18e   :  { %v127_v40 = vadd.f32 %v267_v33, %v126_v38 }
 0x18f   :  { %v269_v41 = vpop.eup %268 }
 0x190   :  { %v139_v43 = vmul.f32 %v269_v41, %v122_v35  ;;  %v131_v44 = vsel %vm130_vm8, %v267_v33, %v127_v40  ;;  %vm144_vm11 = vweird.f32 %v269_v41 }
 0x191   :  { %v136_v45 = vsel %vm133_vm9, %v135_v42, %v131_v44  ;;  %vm145_vm13 = vmor %vm143_vm12, %vm144_vm11 }
 0x192   :  { %v140_v46 = vsub.f32 1.0, %v139_v43  ;;  %v137_v47 = vmul.f32 %v263_v27, %v136_v45 }
 0x194   :  { %v141_v49 = vmul.f32 %v269_v41, %v140_v46  ;;  %255 = vmatmul.msk.f32.vlgmr.msra.gmra.mxu2 %vm153_vm10, %v137_v47 }
 0x196   :  { %v142_v51 = vadd.f32 %v269_v41, %v141_v49 }
 0x198   :  { %v146_v53 = vsel %vm145_vm13, %v269_v41, %v142_v51 }
 0x199   :  { %v151_v54 = vsel %vm148_vm14, %v150_v52, %v146_v53 }
 0x19a   :  { %v152_v55 = vmul.f32 %v265_v30, %v151_v54 }
 0x19c   :  { %256 = vmatmul.msk.f32.vlgmr.msra.gmra.mxu3 %vm153_vm10, %v152_v55 }
 0x217   :  { %v174_v58 = vpop.f32.mrf.mxu2 }
 0x218   :  { %v204_v59 = vmul.f32 %v260_v57, %v174_v58 }
 0x21a   :  { %v207_v60 = vsel %vm206_vm15, %v204_v59, 0.0 }
 0x21b   :  { %208 = vadd.xlane.f32.xlu2 %v207_v60 }
 0x21f   :  { %v197_v61 = vpop.f32.mrf.mxu3 }
 0x220   :  { %v205_v62 = vmul.f32 %v260_v57, %v197_v61 }
 0x222   :  { %v210_v63 = vsel %vm206_vm15, %v205_v62, 0.0 }
 0x223   :  { %211 = vadd.xlane.f32.xlu2 %v210_v63 }
 0x28e   :  { %v209_v0 = vpop.xlane.xlu2 %208 }
 0x28f   :  { %v220_v4 = vadd.f32 %v218_v2, %v209_v0 }
 0x291   :  { %v226_v7 = vperm.slane %v220_v4, %v225_v3 }
 0x296   :  { %v212_v5 = vpop.xlane.xlu2 %211 }
 0x297   :  { %v221_v6 = vadd.f32 %v218_v2, %v212_v5 }
 0x299   :  { %v227_v8 = vperm.slane %v221_v6, %v225_v3 }
 0x29b   :  { %v229_v9 = vsel %vm228_vm0, %v227_v8, %v226_v7 }
 0x29c   :  { %232 = vst.msk [vmem:[#allocation3] sm:$0x3] %vm231_vm1, %v229_v9 }
 0x29d   :  { %243 = dma.vmem_to_hbm [thread:$0]  %s239_s8, 32, %s241_s10, [#allocation4]  }
 0x29e   :  { %294 = dma.done.wait [#allocation4], 32  }
 0x29f   :  { %295 = vsyncadd [#allocation4], 4294967264 }
 0x2a0   :  { %248 = vsyncpa [#allocation4], 1 }

// kernel: model_forward.5
= control target key start
LH: loop header
LB: loop body
LE: loop exit
PB: predicated region body
PF: predicated region fallthrough
CT: control target
= control target key end

     0   :  { %s6243_s29 = smov 0   ;;  %s8614_s0 = inlined_call_operand.vmem [shape: f32[12,16,64], index: 0, kind: input, shape index: {}]   ;;  %s8615_s1 = inlined_call_operand.vmem [shape: f32[12,1,16], index: 1, kind: input, shape index: {}]   ;;  %s8616_s2 = inlined_call_operand.vmem [shape: bf16[64,192], index: 2, kind: input, shape index: {}]   ;;  %s8617_s3 = inlined_call_operand.vmem [shape: f32[1,192], index: 3, kind: input, shape index: {}]   ;;  %s8618_s4 = inlined_call_operand.vmem [shape: bf16[64,64], index: 4, kind: input, shape index: {}]   ;;  %s8619_s5 = inlined_call_operand.vmem [shape: f32[1,64], index: 5, kind: input, shape index: {}]   ;;  %s8620_s6 = inlined_call_operand.vmem [shape: f32[1,64], index: 6, kind: input, shape index: {}]   ;;  %s8621_s7 = inlined_call_operand.vmem [shape: f32[1,64], index: 7, kind: input, shape index: {}]   ;;  %s8622_s8 = inlined_call_operand.vmem [shape: bf16[64,256], index: 8, kind: input, shape index: {}]   ;;  %s8623_s9 = inlined_call_operand.vmem [shape: f32[1,256], index: 9, kind: input, shape index: {}]   ;;  %s8624_s10 = inlined_call_operand.vmem [shape: bf16[256,64], index: 10, kind: input, shape index: {}]   ;;  %s8625_s11 = inlined_call_operand.vmem [shape: f32[1,64], index: 11, kind: input, shape index: {}]   ;;  %s8626_s12 = inlined_call_operand.vmem [shape: f32[1,64], index: 12, kind: input, shape index: {}]   ;;  %s8627_s13 = inlined_call_operand.vmem [shape: f32[1,64], index: 13, kind: input, shape index: {}]   ;;  %s8628_s14 = inlined_call_operand.vmem [shape: f32[12,16,64], index: 14, kind: output, shape index: {}]  }
   0x1 LB: > { %s5255_s30 = sadd.s32 4294967295, %s6158_s29   ;;  %p5259_p0 = scmp.ge.s32.totalorder %s6158_s29, 1  ;;  %s6158_s29 = sphi %s6243_s29, %s24_s29  }
   0x2   : > { %p424_p1 = scmp.lt.s32.totalorder %s6158_s29, 3 }
   0x4   : > { %p425_p2 = pnand %p5259_p0, %p424_p1 }
   0x6   : > { %428 = sbr.rel (%p425_p2) target bundleno = 3978 (0xf8a), region = 76 }
   0xb   : > { %v5290_v0 = vld [vmem:[%s8616_s2 + $0x30] sm:$0xf]  ;;  %v5593_v1 = vld [vmem:[%s8616_s2 + $0x34] sm:$0xf0]  ;;  %v5282_v2 = vld [vmem:[%s8616_s2 + $0x20] sm:$0xf] }
   0xc   : > { %v5291_v3 = vor.u32 %v5593_v1, %v5290_v0  ;;  %v5591_v4 = vld [vmem:[%s8616_s2 + $0x24] sm:$0xf0]  ;;  %v5274_v5 = vld [vmem:[%s8616_s2 + $0x10] sm:$0xf]  ;;  %v5589_v6 = vld [vmem:[%s8616_s2 + $0x14] sm:$0xf0] }
   0xd   : > { %s476_s27 = smul.u32 6, %s5255_s30  ;;  %v5283_v7 = vor.u32 %v5591_v4, %v5282_v2  ;;  %v5275_v8 = vor.u32 %v5589_v6, %v5274_v5  ;;  %v5266_v9 = vld [vmem:[%s8616_s2] sm:$0xf]  ;;  %v5587_v10 = vld [vmem:[%s8616_s2 + $0x4] sm:$0xf0]  ;;  %vm568_vm0 = vcmask 523264  }
   0xe   : > { %591 = vmatpush.bf16.msra.mxu0 %v5291_v3  ;;  %v5267_v11 = vor.u32 %v5587_v10, %v5266_v9  ;;  %v6324_v31 = vld [vmem:[%s8617_s3] sm:$0x3]  ;;  %s6160_s23 = smov 64   ;;  %s6161_s24 = smov 48   ;;  %vm677_vm1 = vcmask 130048  }
   0xf   : > { %p477_p3 = scmp.lt.s32.totalorder %s476_s27, 11  ;;  %v524_v32 = vperm.slane %v6324_v31, 0  ;;  %s6162_s25 = smov 112  }
  0x10   : > { %s6163_s26 = smov 96   ;;  %s6165_s28 = smov 16  }
  0x11   : > { %s8686_s27 = smov (!%p477_p3, %s476_s27), 11  ;;  %s6166_s16 = smov 80  }
  0x12   : > { %592 = vmatpush.bf16.msra.mxu0 %v5283_v7  ;;  %s5584_s18 = sshll.u32 %s8686_s27, 4  ;;  %s6397_s15 = scalar_lea.vmem %s8615_s1, %s8686_s27 }
  0x13   : > { %s6283_s20 = scalar_lea.vmem %s8614_s0, %s5584_s18  ;;  %v5828_v6 = vld [vmem:[%s6397_s15] ss:$0 sm:$0xff] }
  0x14   : > { %v496_v12 = vld [vmem:[%s6283_s20] sm:$0xff]  ;;  %v497_v13 = vld [vmem:[%s6283_s20 + $0x8] sm:$0xff]  ;;  %v498_v15 = vld [vmem:[%s6283_s20 + $0x10] sm:$0xff] }
  0x15   : > { %v6287_v14 = vpack.c.bf16 %v497_v13, %v496_v12  ;;  %v499_v16 = vld [vmem:[%s6283_s20 + $0x18] sm:$0xff]  ;;  %v500_v18 = vld [vmem:[%s6283_s20 + $0x20] sm:$0xff]  ;;  %v501_v19 = vld [vmem:[%s6283_s20 + $0x28] sm:$0xff] }
  0x16   : > { %593 = vmatpush.bf16.msra.mxu0 %v5275_v8  ;;  %v6293_v17 = vpack.c.bf16 %v499_v16, %v498_v15  ;;  %v6299_v20 = vpack.c.bf16 %v501_v19, %v500_v18  ;;  %v502_v21 = vld [vmem:[%s6283_s20 + $0x30] sm:$0xff]  ;;  %v503_v22 = vld [vmem:[%s6283_s20 + $0x38] sm:$0xff]  ;;  %v504_v24 = vld [vmem:[%s6283_s20 + $0x40] sm:$0xff] }
  0x17   : > { %v6305_v23 = vpack.c.bf16 %v503_v22, %v502_v21  ;;  %v505_v25 = vld [vmem:[%s6283_s20 + $0x48] sm:$0xff]  ;;  %v506_v27 = vld [vmem:[%s6283_s20 + $0x50] sm:$0xff]  ;;  %v507_v28 = vld [vmem:[%s6283_s20 + $0x58] sm:$0xff] }
  0x18   : > { %v6311_v26 = vpack.c.bf16 %v505_v25, %v504_v24  ;;  %v6317_v29 = vpack.c.bf16 %v507_v28, %v506_v27  ;;  %v5829_v15 = vld [vmem:[%s6397_s15 + $0x1] ss:$0 sm:$0xff] }
  0x1a   : > { %594 = vmatpush.bf16.msra.mxu0 %v5267_v11 }
  0x1d   : > { %5296 = vmatmul.msk.bf16.vlgmr.msra.gmra.mxu0 %vm568_vm0, %v6287_v14 }
  0x2d   : > { %5297 = vmatmul.msk.bf16.gmra.mxu0 %vm568_vm0, %v6293_v17 }
  0x3d   : > { %5298 = vmatmul.msk.bf16.gmra.mxu0 %vm568_vm0, %v6299_v20 }
  0x4d   : > { %5299 = vmatmul.msk.bf16.gmra.mxu0 %vm568_vm0, %v6305_v23 }
  0x5d   : > { %5300 = vmatmul.msk.bf16.gmra.mxu0 %vm568_vm0, %v6311_v26 }
  0x6d   : > { %5301 = vmatmul.msk.bf16.gmra.mxu0 %vm568_vm0, %v6317_v29 }
  0x9a   : > { %v596_v30 = vpop.f32.mrf.mxu0 }
  0x9b   : > { %v6331_v36 = vadd.f32 %v596_v30, %v524_v32  ;;  %v6454_v30 = vld [vmem:[%s6397_s15 + $0x2] ss:$0 sm:$0xff] }
  0xa2   : > { %v598_v33 = vpop.f32.mrf.mxu0 }
  0xa3   : > { %v6327_v34 = vadd.f32 %v598_v33, %v524_v32 }
  0xa5   : > { %675 = vrot.lane.b32.xlu0 %v6327_v34, %s6160_s23 }
  0xaa   : > { %v601_v35 = vpop.f32.mrf.mxu0 }
  0xab   : > { %v6333_v37 = vadd.f32 %v601_v35, %v524_v32 }
  0xad   : > { %711 = vrot.lane.b32.xlu2 %v6333_v37, %s6160_s23  ;;  %673 = vrot.lane.b32.xlu0 %v6331_v36, %s6160_s23 }
  0xb2   : > { %v603_v38 = vpop.f32.mrf.mxu0 }
  0xb3   : > { %v6339_v39 = vadd.f32 %v603_v38, %v524_v32 }
  0xb5   : > { %713 = vrot.lane.b32.xlu1 %v6339_v39, %s6160_s23 }
  0xba   : > { %v606_v40 = vpop.f32.mrf.mxu0 }
  0xbb   : > { %v6343_v41 = vadd.f32 %v606_v40, %v524_v32 }
  0xbd   : > { %748 = vrot.lane.b32.xlu2 %v6343_v41, %s6160_s23 }
  0xc2   : > { %v608_v42 = vpop.f32.mrf.mxu0 }
  0xc3   : > { %v6347_v43 = vadd.f32 %v608_v42, %v524_v32 }
  0xc5   : > { %750 = vrot.lane.b32.xlu1 %v6347_v43, %s6160_s23 }
  0xca   : > { %v611_v44 = vpop.f32.mrf.mxu0 }
  0xcb   : > { %v6351_v45 = vadd.f32 %v611_v44, %v524_v32 }
  0xcd   : > { %785 = vrot.lane.b32.xlu2 %v6351_v45, %s6160_s23 }
  0xd2   : > { %v613_v46 = vpop.f32.mrf.mxu0 }
  0xd3   : > { %v6355_v47 = vadd.f32 %v613_v46, %v524_v32 }
  0xd5   : > { %787 = vrot.lane.b32.xlu0 %v6355_v47, %s6160_s23 }
  0xda   : > { %v616_v48 = vpop.f32.mrf.mxu0 }
  0xdb   : > { %v6359_v49 = vadd.f32 %v616_v48, %v524_v32  ;;  %v5592_v48 = vld [vmem:[%s8616_s2 + $0x34] sm:$0xf] }
  0xdd   : > { %822 = vrot.lane.b32.xlu0 %v6359_v49, %s6160_s23 }
  0xe2   : > { %v618_v50 = vpop.f32.mrf.mxu0 }
  0xe3   : > { %v6363_v51 = vadd.f32 %v618_v50, %v524_v32  ;;  %v5292_v50 = vld [vmem:[%s8616_s2 + $0x38] sm:$0xf0] }
  0xe5   : > { %824 = vrot.lane.b32.xlu1 %v6363_v51, %s6160_s23  ;;  %1402 = vrot.lane.b32.xlu0 %v6331_v36, %s6161_s24 }
  0xea   : > { %v621_v52 = vpop.f32.mrf.mxu0 }
  0xeb   : > { %v6369_v53 = vadd.f32 %v621_v52, %v524_v32  ;;  %v5590_v52 = vld [vmem:[%s8616_s2 + $0x24] sm:$0xf] }
  0xed   : > { %859 = vrot.lane.b32.xlu2 %v6369_v53, %s6160_s23  ;;  %1398 = vrot.lane.b32.xlu1 %v6331_v36, %s6162_s25 }
  0xee   : > { %1400 = vrot.lane.b32.xlu0 %v6327_v34, %s6162_s25 }
  0xf2   : > { %v623_v54 = vpop.f32.mrf.mxu0 }
  0xf3   : > { %v6383_v55 = vadd.f32 %v623_v54, %v524_v32  ;;  %v6476_v54 = vld [vmem:[%s6397_s15 + $0x3] ss:$0 sm:$0xff] }
  0xf5   : > { %1404 = vrot.lane.b32.xlu2 %v6327_v34, %s6161_s24  ;;  %1560 = vrot.lane.b32.xlu1 %v6363_v51, %s6161_s24  ;;  %8631 = vst [vmem:[#allocation2_spill] sm:$0xff] %v6383_v55 }
  0xf6   : > { %1441 = vrot.lane.b32.xlu0 %v6333_v37, %s6161_s24 }
  0xfd   : > { %1443 = vrot.lane.b32.xlu2 %v6339_v39, %s6161_s24  ;;  %861 = vrot.lane.b32.xlu1 %v6383_v55, %s6160_s23 }
 0x107   : > { %v712_v59 = vpop.permute.xlu2 %711 }
 0x117   : > { %v676_v56 = vpop.permute.xlu0 %675  ;;  %v749_v61 = vpop.permute.xlu2 %748 }
 0x118   : > { %5308 = vmatpush.xpose.msk.msra.mxu2 %vm677_vm1, %v676_v56  ;;  %v5295_v56 = vor.u32 %v5592_v48, %v5292_v50 }
 0x11a   : > { %630 = vmatpush.bf16.msra.mxu1 %v5295_v56 }
 0x11f   : > { %v674_v57 = vpop.permute.xlu0 %673 }
 0x120   : > { %5309 = vmatpush.xpose.msk.msra.mxu2 %vm677_vm1, %v674_v57  ;;  %v5284_v57 = vld [vmem:[%s8616_s2 + $0x28] sm:$0xf0] }
 0x123   : > { %5310 = vmatmul.msk.f32.vlgmr.msra.gmra.mxu2 %vm677_vm1, %v6331_v36 }
 0x127   : > { %v714_v58 = vpop.permute.xlu1 %713  ;;  %v786_v63 = vpop.permute.xlu2 %785 }
 0x128   : > { %5312 = vmatpush.xpose.msk.msra.mxu3 %vm677_vm1, %v714_v58 }
 0x12b   : > { %5311 = vmatmul.msk.f32.gmra.mxu2 %vm677_vm1, %v6327_v34 }
 0x12c   : > { %5313 = vmatpush.xpose.msk.msra.mxu3 %vm677_vm1, %v712_v59 }
 0x12f   : > { %5314 = vmatmul.msk.f32.vlgmr.msra.gmra.mxu3 %vm677_vm1, %v6333_v37 }
 0x137   : > { %v751_v60 = vpop.permute.xlu1 %750  ;;  %5315 = vmatmul.msk.f32.gmra.mxu3 %vm677_vm1, %v6339_v39 }
 0x138   : > { %5316 = vmatpush.xpose.msk.msrb.mxu2 %vm677_vm1, %v751_v60  ;;  %v5287_v60 = vor.u32 %v5590_v52, %v5284_v57 }
 0x13a   : > { %631 = vmatpush.bf16.msra.mxu1 %v5287_v60 }
 0x13c   : > { %5317 = vmatpush.xpose.msk.msrb.mxu2 %vm677_vm1, %v749_v61 }
 0x13f   : > { %5318 = vmatmul.msk.f32.vlgmr.msrb.gmra.mxu2 %vm677_vm1, %v6343_v41 }
 0x147   : > { %5319 = vmatmul.msk.f32.gmra.mxu2 %vm677_vm1, %v6347_v43  ;;  %v788_v62 = vpop.permute.xlu0 %787  ;;  %v860_v5 = vpop.permute.xlu2 %859 }
 0x148   : > { %5320 = vmatpush.xpose.msk.msrb.mxu3 %vm677_vm1, %v788_v62 }
 0x14c   : > { %5321 = vmatpush.xpose.msk.msrb.mxu3 %vm677_vm1, %v786_v63 }
 0x14f   : > { %5322 = vmatmul.msk.f32.vlgmr.msrb.gmra.mxu3 %vm677_vm1, %v6351_v45  ;;  %v823_v1 = vpop.permute.xlu0 %822  ;;  %v6539_v57 = vpop.permute.xlu2 %1404 }
 0x157   : > { %v825_v0 = vpop.permute.xlu1 %824  ;;  %5323 = vmatmul.msk.f32.gmra.mxu3 %vm677_vm1, %v6355_v47 }
 0x158   : > { %5324 = vmatpush.xpose.msk.msra.mxu2 %vm677_vm1, %v825_v0 }
 0x15c   : > { %5325 = vmatpush.xpose.msk.msra.mxu2 %vm677_vm1, %v823_v1  ;;  %v5588_v1 = vld [vmem:[%s8616_s2 + $0x14] sm:$0xf] }
 0x15f   : > { %v6421_v2 = vpop.permute.xlu1 %1398  ;;  %5326 = vmatmul.msk.f32.vlgmr.msra.gmra.mxu2 %vm677_vm1, %v6359_v49 }
 0x167   : > { %v6425_v3 = vpop.permute.xlu1 %1560  ;;  %5327 = vmatmul.msk.f32.gmra.mxu2 %vm677_vm1, %v6363_v51 }
 0x16f   : > { %v862_v4 = vpop.permute.xlu1 %861 }
 0x170   : > { %5328 = vmatpush.xpose.msk.msra.mxu3 %vm677_vm1, %v862_v4  ;;  %v5276_v4 = vld [vmem:[%s8616_s2 + $0x18] sm:$0xf0] }
 0x174   : > { %5329 = vmatpush.xpose.msk.msra.mxu3 %vm677_vm1, %v860_v5  ;;  %v5279_v5 = vor.u32 %v5588_v1, %v5276_v4 }
 0x176   : > { %632 = vmatpush.bf16.msra.mxu1 %v5279_v5 }
 0x177   : > { %5330 = vmatmul.msk.f32.vlgmr.msra.gmra.mxu3 %vm677_vm1, %v6369_v53 }
 0x17f   : > { %5331 = vmatmul.msk.f32.gmra.mxu3 %vm677_vm1, %v6383_v55 }
 0x1a6   : > { %v703_v7 = vpop.f32.mrf.mxu2 }
 0x1a7   : > { %v894_v8 = vmul.f32 0.25, %v703_v7 }
 0x1a9   : > { %v6436_v9 = vadd.f32 %v5828_v6, %v894_v8  ;;  %v5586_v8 = vld [vmem:[%s8616_s2 + $0x4] sm:$0xf] }
 0x1ab   : > { %v936_v10 = vsel %vm677_vm1, %v6436_v9, -inf }
 0x1ac   : > { %937 = vmax.xlane.f32.xlu0 %v936_v10  ;;  %v5268_v10 = vld [vmem:[%s8616_s2 + $0x8] sm:$0xf0] }
 0x1ae   : > { %v706_v11 = vpop.f32.mrf.mxu2 }
 0x1af   : > { %v895_v12 = vmul.f32 0.25, %v706_v11  ;;  %v5271_v11 = vor.u32 %v5586_v8, %v5268_v10 }
 0x1b1   : > { %v6440_v13 = vadd.f32 %v5828_v6, %v895_v12  ;;  %v5832_v12 = vld [vmem:[%s6397_s15 + $0x4] ss:$0 sm:$0xff]  ;;  %633 = vmatpush.bf16.msra.mxu1 %v5271_v11 }
 0x1b2   : > { %v740_v16 = vpop.f32.mrf.mxu3 }
 0x1b3   : > { %v896_v18 = vmul.f32 0.25, %v740_v16  ;;  %v939_v19 = vsel %vm677_vm1, %v6440_v13, -inf }
 0x1b4   : > { %940 = vmax.xlane.f32.xlu1 %v939_v19  ;;  %5302 = vmatmul.msk.bf16.vlgmr.msra.gmra.mxu1 %vm568_vm0, %v6287_v14 }
 0x1b5   : > { %v6445_v21 = vadd.f32 %v5829_v15, %v896_v18 }
 0x1b7   : > { %v942_v22 = vsel %vm677_vm1, %v6445_v21, -inf }
 0x1b8   : > { %943 = vmax.xlane.f32.xlu2 %v942_v22 }
 0x1ba   : > { %v743_v24 = vpop.f32.mrf.mxu3 }
 0x1bb   : > { %v897_v25 = vmul.f32 0.25, %v743_v24 }
 0x1bd   : > { %v6449_v27 = vadd.f32 %v5829_v15, %v897_v25 }
 0x1bf   : > { %v945_v28 = vsel %vm677_vm1, %v6449_v27, -inf }
 0x1c0   : > { %946 = vmax.xlane.f32.xlu0 %v945_v28 }
 0x1c2   : > { %v777_v32 = vpop.f32.mrf.mxu2 }
 0x1c3   : > { %v898_v33 = vmul.f32 0.25, %v777_v32  ;;  %v6517_v32 = vld [vmem:[%s6397_s15 + $0x5] ss:$0 sm:$0xff] }
 0x1c4   : > { %5303 = vmatmul.msk.bf16.gmra.mxu1 %vm568_vm0, %v6293_v17 }
 0x1c5   : > { %v6457_v35 = vadd.f32 %v6454_v30, %v898_v33 }
 0x1c7   : > { %v948_v38 = vsel %vm677_vm1, %v6457_v35, -inf }
 0x1c8   : > { %949 = vmax.xlane.f32.xlu2 %v948_v38 }
 0x1ca   : > { %v780_v40 = vpop.f32.mrf.mxu2 }
 0x1cb   : > { %v899_v42 = vmul.f32 0.25, %v780_v40 }
 0x1cd   : > { %v6462_v44 = vadd.f32 %v6454_v30, %v899_v42 }
 0x1cf   : > { %v951_v46 = vsel %vm677_vm1, %v6462_v44, -inf }
 0x1d0   : > { %952 = vmax.xlane.f32.xlu1 %v951_v46  ;;  %v6524_v46 = vpop.permute.xlu0 %1402 }
 0x1d2   : > { %v814_v58 = vpop.f32.mrf.mxu3 }
 0x1d3   : > { %v900_v59 = vmul.f32 0.25, %v814_v58 }
 0x1d4   : > { %5304 = vmatmul.msk.bf16.gmra.mxu1 %vm568_vm0, %v6299_v20 }
 0x1d5   : > { %v6482_v61 = vadd.f32 %v6476_v54, %v900_v59 }
 0x1d7   : > { %v954_v62 = vsel %vm677_vm1, %v6482_v61, -inf }
 0x1d8   : > { %955 = vmax.xlane.f32.xlu2 %v954_v62  ;;  %v6533_v52 = vpop.permute.xlu0 %1400  ;;  %v6542_v62 = vpop.permute.xlu2 %1443 }
 0x1da   : > { %v817_v63 = vpop.f32.mrf.mxu3 }
 0x1db   : > { %v901_v0 = vmul.f32 0.25, %v817_v63 }
 0x1dd   : > { %v6493_v6 = vadd.f32 %v6476_v54, %v901_v0 }
 0x1df   : > { %v957_v7 = vsel %vm677_vm1, %v6493_v6, -inf }
 0x1e0   : > { %958 = vmax.xlane.f32.xlu1 %v957_v7  ;;  %v6537_v56 = vpop.permute.xlu0 %1441 }
 0x1e2   : > { %v851_v15 = vpop.f32.mrf.mxu2 }
 0x1e3   : > { %v902_v16 = vmul.f32 0.25, %v851_v15 }
 0x1e4   : > { %5305 = vmatmul.msk.bf16.gmra.mxu1 %vm568_vm0, %v6305_v23 }
 0x1e5   : > { %v6504_v18 = vadd.f32 %v5832_v12, %v902_v16 }
 0x1e7   : > { %v960_v19 = vsel %vm677_vm1, %v6504_v18, -inf }
 0x1e8   : > { %961 = vmax.xlane.f32.xlu0 %v960_v19 }
 0x1ea   : > { %v854_v22 = vpop.f32.mrf.mxu2 }
 0x1eb   : > { %v903_v24 = vmul.f32 0.25, %v854_v22 }
 0x1ed   : > { %v6510_v25 = vadd.f32 %v5832_v12, %v903_v24 }
 0x1ef   : > { %v963_v28 = vsel %vm677_vm1, %v6510_v25, -inf }
 0x1f0   : > { %964 = vmax.xlane.f32.xlu2 %v963_v28  ;;  %v6579_v28 = vperm.slane %v6324_v31, 1 }
 0x1f4   : > { %5306 = vmatmul.msk.bf16.gmra.mxu1 %vm568_vm0, %v6311_v26 }
 0x1fa   : > { %v888_v33 = vpop.f32.mrf.mxu3 }
 0x1fb   : > { %v904_v38 = vmul.f32 0.25, %v888_v33 }
 0x1fd   : > { %v6520_v14 = vadd.f32 %v6517_v32, %v904_v38 }
 0x1ff   : > { %v966_v40 = vsel %vm677_vm1, %v6520_v14, -inf }
 0x200   : > { %967 = vmax.xlane.f32.xlu0 %v966_v40 }
 0x202   : > { %v891_v42 = vpop.f32.mrf.mxu3 }
 0x203   : > { %v905_v48 = vmul.f32 0.25, %v891_v42 }
 0x204   : > { %5307 = vmatmul.msk.bf16.gmra.mxu1 %vm568_vm0, %v6317_v29 }
 0x205   : > { %v6527_v50 = vadd.f32 %v6517_v32, %v905_v48 }
 0x207   : > { %v969_v17 = vsel %vm677_vm1, %v6527_v50, -inf }
 0x208   : > { %970 = vmax.xlane.f32.xlu2 %v969_v17 }
 0x21f   : > { %v938_v58 = vpop.xlane.xlu0 %937 }
 0x220   : > { %v972_v59 = vsub.f32 %v6436_v9, %v938_v58 }
 0x222   : > { %v984_v60 = vmul.f32 1.442695, %v972_v59 }
 0x224   : > { %5840 = vpow2.f32 %v984_v60 }
 0x227   : > { %v941_v20 = vpop.xlane.xlu1 %940 }
 0x228   : > { %v973_v63 = vsub.f32 %v6440_v13, %v941_v20 }
 0x22a   : > { %v6547_v0 = vpop.eup %5840  ;;  %v986_v23 = vmul.f32 1.442695, %v973_v63 }
 0x22b   : > { %v944_v1 = vpop.xlane.xlu2 %943  ;;  %v1008_v4 = vsel %vm677_vm1, %v6547_v0, 0.0 }
 0x22c   : > { %5842 = vpow2.f32 %v986_v23  ;;  %v974_v9 = vsub.f32 %v6445_v21, %v944_v1  ;;  %1009 = vadd.xlane.f32.xlu1 %v1008_v4 }
 0x22e   : > { %v988_v5 = vmul.f32 1.442695, %v974_v9 }
 0x230   : > { %5844 = vpow2.f32 %v988_v5 }
 0x232   : > { %v6552_v7 = vpop.eup %5842 }
 0x233   : > { %v947_v8 = vpop.xlane.xlu0 %946  ;;  %v1011_v26 = vsel %vm677_vm1, %v6552_v7, 0.0 }
 0x234   : > { %v975_v13 = vsub.f32 %v6449_v27, %v947_v8  ;;  %1012 = vadd.xlane.f32.xlu0 %v1011_v26 }
 0x236   : > { %v6559_v10 = vpop.eup %5844  ;;  %v990_v11 = vmul.f32 1.442695, %v975_v13 }
 0x237   : > { %v1014_v21 = vsel %vm677_vm1, %v6559_v10, 0.0 }
 0x238   : > { %5846 = vpow2.f32 %v990_v11  ;;  %1015 = vadd.xlane.f32.xlu1 %v1014_v21 }
 0x23b   : > { %v950_v12 = vpop.xlane.xlu2 %949 }
 0x23c   : > { %v976_v15 = vsub.f32 %v6457_v35, %v950_v12  ;;  %v635_v35 = vpop.f32.mrf.mxu1 }
 0x23d   : > { %v6583_v42 = vadd.f32 %v635_v35, %v6579_v28 }
 0x23e   : > { %v6564_v16 = vpop.eup %5846  ;;  %v992_v19 = vmul.f32 1.442695, %v976_v15 }
 0x23f   : > { %v1017_v27 = vsel %vm677_vm1, %v6564_v16, 0.0 }
 0x240   : > { %5848 = vpow2.f32 %v992_v19  ;;  %1018 = vadd.xlane.f32.xlu0 %v1017_v27 }
 0x243   : > { %v953_v24 = vpop.xlane.xlu1 %952 }
 0x244   : > { %v977_v33 = vsub.f32 %v6462_v44, %v953_v24  ;;  %v637_v40 = vpop.f32.mrf.mxu1 }
 0x245   : > { %v6586_v48 = vadd.f32 %v637_v40, %v6579_v28 }
 0x246   : > { %v6568_v29 = vpop.eup %5848  ;;  %v994_v58 = vmul.f32 1.442695, %v977_v33 }
 0x247   : > { %v1020_v22 = vsel %vm677_vm1, %v6568_v29, 0.0  ;;  %1244 = vmatpush.msrb.mxu2 %v6586_v48 }
 0x248   : > { %1021 = vadd.xlane.f32.xlu2 %v1020_v22  ;;  %5850 = vpow2.f32 %v994_v58 }
 0x249   : > { %1245 = vmatpush.msrb.mxu2 %v6583_v42 }
 0x24b   : > { %v956_v20 = vpop.xlane.xlu2 %955 }
 0x24c   : > { %v640_v60 = vpop.f32.mrf.mxu1  ;;  %v978_v1 = vsub.f32 %v6482_v61, %v956_v20 }
 0x24d   : > { %v6600_v8 = vadd.f32 %v640_v60, %v6579_v28 }
 0x24e   : > { %v6592_v23 = vpop.eup %5850  ;;  %v996_v5 = vmul.f32 1.442695, %v978_v1 }
 0x24f   : > { %v1023_v4 = vsel %vm677_vm1, %v6592_v23, 0.0 }
 0x251   : > { %1437 = vrot.lane.b32.xlu1 %v6333_v37, %s6162_s25 }
 0x253   : > { %v959_v59 = vpop.xlane.xlu1 %958 }
 0x254   : > { %1554 = vrot.lane.b32.xlu0 %v6359_v49, %s6162_s25  ;;  %v979_v44 = vsub.f32 %v6493_v6, %v959_v59  ;;  %v642_v9 = vpop.f32.mrf.mxu1 }
 0x255   : > { %v6603_v6 = vadd.f32 %v642_v9, %v6579_v28 }
 0x256   : > { %v998_v63 = vmul.f32 1.442695, %v979_v44 }
 0x257   : > { %1273 = vmatpush.msrb.mxu3 %v6603_v6 }
 0x259   : > { %1274 = vmatpush.msrb.mxu3 %v6600_v8 }
 0x25b   : > { %v962_v38 = vpop.xlane.xlu0 %961 }
 0x25c   : > { %v980_v17 = vsub.f32 %v6504_v18, %v962_v38  ;;  %v645_v12 = vpop.f32.mrf.mxu1 }
 0x25d   : > { %v6623_v24 = vadd.f32 %v645_v12, %v6579_v28 }
 0x25e   : > { %v1000_v31 = vmul.f32 1.442695, %v980_v17 }
 0x260   : > { %1558 = vrot.lane.b32.xlu2 %v6359_v49, %s6161_s24  ;;  %5852 = vpow2.f32 %v1000_v31 }
 0x261   : > { %5854 = vpow2.f32 %v998_v63 }
 0x262   : > { %5856 = vpow2.f32 %v996_v5 }
 0x263   : > { %v965_v26 = vpop.xlane.xlu2 %964 }
 0x264   : > { %v981_v11 = vsub.f32 %v6510_v25, %v965_v26  ;;  %v647_v22 = vpop.f32.mrf.mxu1 }
 0x265   : > { %v6626_v33 = vadd.f32 %v647_v22, %v6579_v28 }
 0x266   : > { %v6595_v18 = vpop.eup %5852  ;;  %v1002_v15 = vmul.f32 1.442695, %v981_v11 }
 0x267   : > { %v1032_v13 = vsel %vm677_vm1, %v6595_v18, 0.0  ;;  %v6608_v61 = vpop.eup %5854  ;;  %1302 = vmatpush.msra.mxu2 %v6626_v33 }
 0x268   : > { %v1029_v21 = vsel %vm677_vm1, %v6608_v61, 0.0  ;;  %v6614_v19 = vpop.eup %5856  ;;  %5858 = vpow2.f32 %v1002_v15 }
 0x269   : > { %v1026_v27 = vsel %vm677_vm1, %v6614_v19, 0.0  ;;  %1303 = vmatpush.msra.mxu2 %v6623_v24 }
 0x26c   : > { %v650_v38 = vpop.f32.mrf.mxu1 }
 0x26d   : > { %v6637_v17 = vadd.f32 %v650_v38, %v6579_v28 }
 0x26e   : > { %v6618_v35 = vpop.eup %5858 }
 0x26f   : > { %v1035_v25 = vsel %vm677_vm1, %v6618_v35, 0.0 }
 0x273   : > { %v6642_v59 = vpop.xlane.xlu0 %967 }
 0x274   : > { %v652_v40 = vpop.f32.mrf.mxu1 }
 0x275   : > { %v6640_v58 = vadd.f32 %v652_v40, %v6579_v28 }
 0x277   : > { %1331 = vmatpush.msra.mxu3 %v6640_v58 }
 0x279   : > { %1332 = vmatpush.msra.mxu3 %v6637_v17 }
 0x27b   : > { %1024 = vadd.xlane.f32.xlu1 %v1023_v4 }
 0x27c   : > { %v655_v44 = vpop.f32.mrf.mxu1 }
 0x27e   : > { %1033 = vadd.xlane.f32.xlu0 %v1032_v13 }
 0x283   : > { %1030 = vadd.xlane.f32.xlu1 %v1029_v21 }
 0x284   : > { %v657_v11 = vpop.f32.mrf.mxu1 }
 0x289   : > { %1027 = vadd.xlane.f32.xlu2 %v1026_v27 }
 0x291   : > { %1036 = vadd.xlane.f32.xlu2 %v1035_v25  ;;  %v6657_v25 = vadd.f32 %v657_v11, %v6579_v28 }
 0x292   : > { %1439 = vrot.lane.b32.xlu0 %v6339_v39, %s6162_s25 }
 0x29a   : > { %1476 = vrot.lane.b32.xlu0 %v6343_v41, %s6162_s25 }
 0x29c   : > { %1480 = vrot.lane.b32.xlu1 %v6343_v41, %s6161_s24 }
 0x29f   : > { %v1010_v31 = vpop.xlane.xlu1 %1009 }
 0x2a0   : > { %5860 = vrcp.f32 %v1010_v31  ;;  %v1055_v4 = vand.u32 2147483648, %v1010_v31  ;;  %v1053_v5 = vand.u32 2147483647, %v1010_v31  ;;  %vm1049_vm3 = vweird.f32 %v1010_v31 }
 0x2a2   : > { %1478 = vrot.lane.b32.xlu0 %v6347_v43, %s6162_s25  ;;  %v1056_v12 = vor.u32 1.1754944e-38, %v1055_v4  ;;  %vm1054_vm5 = vcmp.eq.f32.partialorder %v1053_v5, 8.507059e+37  ;;  %v6665_v4 = vpop.xlane.xlu2 %970 }
 0x2a4   : > { %1599 = vrot.lane.b32.xlu1 %v6383_v55, %s6161_s24 }
 0x2a6   : > { %v5861_v60 = vpop.eup %5860 }
 0x2a7   : > { %v1045_v20 = vmul.f32 %v5861_v60, %v1010_v31  ;;  %v1013_v63 = vpop.xlane.xlu0 %1012  ;;  %vm1050_vm2 = vweird.f32 %v5861_v60 }
 0x2a8   : > { %5862 = vrcp.f32 %v1013_v63  ;;  %vm1051_vm4 = vmor %vm1049_vm3, %vm1050_vm2  ;;  %v1070_v31 = vand.u32 2147483648, %v1013_v63  ;;  %vm1064_vm7 = vweird.f32 %v1013_v63 }
 0x2a9   : > { %v1046_v1 = vsub.f32 1.0, %v1045_v20  ;;  %1482 = vrot.lane.b32.xlu2 %v6347_v43, %s6161_s24 }
 0x2aa   : > { %1595 = vrot.lane.b32.xlu0 %v6383_v55, %s6162_s25 }
 0x2ab   : > { %v1047_v9 = vmul.f32 %v5861_v60, %v1046_v1  ;;  %v1016_v26 = vpop.xlane.xlu1 %1015  ;;  %v1068_v1 = vand.u32 2147483647, %v1013_v63 }
 0x2ac   : > { %5864 = vrcp.f32 %v1016_v26  ;;  %1593 = vrot.lane.b32.xlu1 %v6369_v53, %s6162_s25  ;;  %vm1079_vm11 = vweird.f32 %v1016_v26 }
 0x2ad   : > { %v1048_v13 = vadd.f32 %v5861_v60, %v1047_v9  ;;  %v6663_v9 = vadd.f32 %v655_v44, %v6579_v28  ;;  %vm1069_vm9 = vcmp.eq.f32.partialorder %v1068_v1, 8.507059e+37  ;;  %v1071_v44 = vor.u32 1.1754944e-38, %v1070_v31 }
 0x2ae   : > { %v5863_v21 = vpop.eup %5862 }
 0x2af   : > { %v1052_v15 = vsel %vm1051_vm4, %v5861_v60, %v1048_v13  ;;  %v1060_v27 = vmul.f32 %v5863_v21, %v1013_v63  ;;  %vm1065_vm6 = vweird.f32 %v5863_v21 }
 0x2b0   : > { %v1057_v22 = vsel %vm1054_vm5, %v1056_v12, %v1052_v15  ;;  %vm1066_vm8 = vmor %vm1064_vm7, %vm1065_vm6  ;;  %v1085_v15 = vand.u32 2147483648, %v1016_v26 }
 0x2b1   : > { %v1061_v38 = vsub.f32 1.0, %v1060_v27  ;;  %1556 = vrot.lane.b32.xlu2 %v6363_v51, %s6162_s25  ;;  %v1058_v40 = vmul.f32 %v6547_v0, %v1057_v22  ;;  %v1083_v22 = vand.u32 2147483647, %v1016_v26 }
 0x2b2   : > { %v5865_v20 = vpop.eup %5864  ;;  %v1086_v1 = vor.u32 1.1754944e-38, %v1085_v15  ;;  %v982_v15 = vsub.f32 %v6520_v14, %v6642_v59 }
 0x2b3   : > { %v1075_v60 = vmul.f32 %v5865_v20, %v1016_v26  ;;  %5332 = vmatmul.msk.f32.vlgmr.msrb.gmra.mxu2 %vm677_vm1, %v1058_v40  ;;  %v1019_v5 = vpop.xlane.xlu0 %1018  ;;  %v1062_v13 = vmul.f32 %v5863_v21, %v1061_v38  ;;  %vm1080_vm10 = vweird.f32 %v5865_v20  ;;  %vm1084_vm13 = vcmp.eq.f32.partialorder %v1083_v22, 8.507059e+37 }
 0x2b4   : > { %5866 = vrcp.f32 %v1019_v5  ;;  %1519 = vrot.lane.b32.xlu1 %v6351_v45, %s6161_s24  ;;  %1360 = vmatpush.msrb.mxu2 %v6657_v25  ;;  %vm1081_vm12 = vmor %vm1079_vm11, %vm1080_vm10  ;;  %v1100_v26 = vand.u32 2147483648, %v1019_v5  ;;  %vm1094_vm15 = vweird.f32 %v1019_v5 }
 0x2b5   : > { %v1076_v0 = vsub.f32 1.0, %v1075_v60  ;;  %v1063_v11 = vadd.f32 %v5863_v21, %v1062_v13 }
 0x2b6   : > { %1361 = vmatpush.msrb.mxu2 %v6663_v9 }
 0x2b7   : > { %v1077_v12 = vmul.f32 %v5865_v20, %v1076_v0  ;;  %v1067_v27 = vsel %vm1066_vm8, %v5863_v21, %v1063_v11 }
 0x2b8   : > { %v1072_v38 = vsel %vm1069_vm9, %v1071_v44, %v1067_v27  ;;  %v1101_v27 = vor.u32 1.1754944e-38, %v1100_v26 }
 0x2b9   : > { %v1078_v40 = vadd.f32 %v5865_v20, %v1077_v12  ;;  %1597 = vrot.lane.b32.xlu2 %v6369_v53, %s6161_s24  ;;  %v1073_v60 = vmul.f32 %v6552_v7, %v1072_v38  ;;  %v1098_v12 = vand.u32 2147483647, %v1019_v5 }
 0x2ba   : > { %v5867_v13 = vpop.eup %5866 }
 0x2bb   : > { %v1082_v63 = vsel %vm1081_vm12, %v5865_v20, %v1078_v40  ;;  %v1090_v31 = vmul.f32 %v5867_v13, %v1019_v5  ;;  %v1022_v55 = vpop.xlane.xlu2 %1021  ;;  %5333 = vmatmul.msk.f32.gmra.mxu2 %vm677_vm1, %v1073_v60  ;;  %vm1095_vm14 = vweird.f32 %v5867_v13  ;;  %vm1099_vm3 = vcmp.eq.f32.partialorder %v1098_v12, 8.507059e+37 }
 0x2bc   : > { %5868 = vrcp.f32 %v1022_v55  ;;  %v1087_v0 = vsel %vm1084_vm13, %v1086_v1, %v1082_v63  ;;  %vm1096_vm2 = vmor %vm1094_vm15, %vm1095_vm14  ;;  %v1004_v63 = vmul.f32 1.442695, %v982_v15  ;;  %v1115_v1 = vand.u32 2147483648, %v1022_v55 }
 0x2bd   : > { %v1091_v21 = vsub.f32 1.0, %v1090_v31  ;;  %v1088_v11 = vmul.f32 %v6559_v10, %v1087_v0  ;;  %vm1109_vm5 = vweird.f32 %v1022_v55 }
 0x2be   : > { %5870 = vpow2.f32 %v1004_v63  ;;  %v1116_v14 = vor.u32 1.1754944e-38, %v1115_v1 }
 0x2bf   : > { %v1092_v44 = vmul.f32 %v5867_v13, %v1091_v21  ;;  %5334 = vmatmul.msk.f32.vlgmr.msrb.gmra.mxu3 %vm677_vm1, %v1088_v11  ;;  %v1113_v21 = vand.u32 2147483647, %v1022_v55 }
 0x2c1   : > { %1521 = vrot.lane.b32.xlu2 %v6355_v47, %s6161_s24  ;;  %v1093_v7 = vadd.f32 %v5867_v13, %v1092_v44  ;;  %vm1114_vm7 = vcmp.eq.f32.partialorder %v1113_v21, 8.507059e+37 }
 0x2c2   : > { %v5869_v20 = vpop.eup %5868 }
 0x2c3   : > { %v1105_v22 = vmul.f32 %v5869_v20, %v1022_v55  ;;  %v1097_v38 = vsel %vm1096_vm2, %v5867_v13, %v1093_v7  ;;  %vm1110_vm4 = vweird.f32 %v5869_v20  ;;  %v6702_v44 = vpop.permute.xlu1 %1437 }
 0x2c4   : > { %v1102_v10 = vsel %vm1099_vm3, %v1101_v27, %v1097_v38  ;;  %vm1111_vm6 = vmor %vm1109_vm5, %vm1110_vm4  ;;  %v6690_v11 = vpop.eup %5870  ;;  %v6714_v27 = vpop.permute.xlu2 %1558 }
 0x2c5   : > { %v1106_v40 = vsub.f32 1.0, %v1105_v22  ;;  %v1103_v60 = vmul.f32 %v6564_v16, %v1102_v10  ;;  %v983_v16 = vsub.f32 %v6527_v50, %v6665_v4  ;;  %v1038_v55 = vsel %vm677_vm1, %v6690_v11, 0.0  ;;  %v660_v4 = vpop.f32.mrf.mxu1 }
 0x2c6   : > { %v6704_v12 = vpop.permute.xlu0 %1554  ;;  %v6707_v7 = vadd.f32 %v660_v4, %v6579_v28 }
 0x2c7   : > { %v1107_v31 = vmul.f32 %v5869_v20, %v1106_v40  ;;  %5335 = vmatmul.msk.f32.gmra.mxu3 %vm677_vm1, %v1103_v60  ;;  %v1006_v26 = vmul.f32 1.442695, %v983_v16 }
 0x2c9   : > { %v1108_v5 = vadd.f32 %v5869_v20, %v1107_v31  ;;  %1515 = vrot.lane.b32.xlu2 %v6351_v45, %s6162_s25  ;;  %5872 = vpow2.f32 %v1006_v26 }
 0x2cb   : > { %v1112_v59 = vsel %vm1111_vm6, %v5869_v20, %v1108_v5 }
 0x2cc   : > { %v1117_v13 = vsel %vm1114_vm7, %v1116_v14, %v1112_v59 }
 0x2cd   : > { %v1118_v0 = vmul.f32 %v6568_v29, %v1117_v13 }
 0x2cf   : > { %5336 = vmatmul.msk.f32.vlgmr.msra.gmra.mxu2 %vm677_vm1, %v1118_v0  ;;  %v6698_v50 = vpop.eup %5872 }
 0x2d0   : > { %5344 = vmatpush.xpose.msk.msra.mxu2 %vm677_vm1, %v6539_v57  ;;  %v1041_v29 = vsel %vm677_vm1, %v6698_v50, 0.0  ;;  %v662_v57 = vpop.f32.mrf.mxu1 }
 0x2d1   : > { %v6710_v20 = vadd.f32 %v662_v57, %v6579_v28 }
 0x2d3   : > { %1389 = vmatpush.msrb.mxu3 %v6710_v20 }
 0x2d4   : > { %5345 = vmatpush.xpose.msk.msra.mxu2 %vm677_vm1, %v6524_v46  ;;  %1039 = vadd.xlane.f32.xlu0 %v1038_v55 }
 0x2d5   : > { %1390 = vmatpush.msrb.mxu3 %v6707_v7 }
 0x2de   : > { %1042 = vadd.xlane.f32.xlu1 %v1041_v29 }
 0x2ee   : > { %v1025_v46 = vpop.xlane.xlu1 %1024 }
 0x2ef   : > { %5874 = vrcp.f32 %v1025_v46  ;;  %v1130_v63 = vand.u32 2147483648, %v1025_v46  ;;  %v1128_v31 = vand.u32 2147483647, %v1025_v46  ;;  %vm1124_vm9 = vweird.f32 %v1025_v46 }
 0x2f1   : > { %v1034_v15 = vpop.xlane.xlu0 %1033  ;;  %v1131_v13 = vor.u32 1.1754944e-38, %v1130_v63  ;;  %vm1129_vm12 = vcmp.eq.f32.partialorder %v1128_v31, 8.507059e+37 }
 0x2f2   : > { %5876 = vrcp.f32 %v1034_v15  ;;  %v1175_v55 = vand.u32 2147483648, %v1034_v15  ;;  %vm1169_vm13 = vweird.f32 %v1034_v15  ;;  %v1173_v4 = vand.u32 2147483647, %v1034_v15 }
 0x2f4   : > { %vm1174_vm15 = vcmp.eq.f32.partialorder %v1173_v4, 8.507059e+37 }
 0x2f5   : > { %v5875_v22 = vpop.eup %5874 }
 0x2f6   : > { %v1120_v38 = vmul.f32 %v5875_v22, %v1025_v46  ;;  %v6716_v10 = vpop.xlane.xlu1 %1030  ;;  %vm1125_vm8 = vweird.f32 %v5875_v22 }
 0x2f7   : > { %5878 = vrcp.f32 %v6716_v10  ;;  %1517 = vrot.lane.b32.xlu1 %v6355_v47, %s6162_s25  ;;  %vm1126_vm10 = vmor %vm1124_vm9, %vm1125_vm8  ;;  %vm1154_vm7 = vweird.f32 %v6716_v10 }
 0x2f8   : > { %v5877_v28 = vpop.eup %5876  ;;  %v1121_v40 = vsub.f32 1.0, %v1120_v38 }
 0x2f9   : > { %v1165_v60 = vmul.f32 %v5877_v28, %v1034_v15  ;;  %vm1170_vm11 = vweird.f32 %v5877_v28 }
 0x2fa   : > { %v1122_v1 = vmul.f32 %v5875_v22, %v1121_v40  ;;  %vm1171_vm14 = vmor %vm1169_vm13, %vm1170_vm11 }
 0x2fb   : > { %v1166_v21 = vsub.f32 1.0, %v1165_v60  ;;  %v1176_v60 = vor.u32 1.1754944e-38, %v1175_v55 }
 0x2fc   : > { %v1028_v5 = vpop.xlane.xlu2 %1027  ;;  %v1123_v14 = vadd.f32 %v5875_v22, %v1122_v1 }
 0x2fd   : > { %v6721_v59 = vpop.eup %5878  ;;  %v1167_v16 = vmul.f32 %v5877_v28, %v1166_v21  ;;  %5880 = vrcp.f32 %v1028_v5  ;;  %vm1139_vm3 = vweird.f32 %v1028_v5 }
 0x2fe   : > { %v1127_v0 = vsel %vm1126_vm10, %v5875_v22, %v1123_v14  ;;  %v1150_v57 = vmul.f32 %v6721_v59, %v6716_v10  ;;  %v1143_v14 = vand.u32 2147483647, %v1028_v5  ;;  %vm1155_vm5 = vweird.f32 %v6721_v59 }
 0x2ff   : > { %v1168_v26 = vadd.f32 %v5877_v28, %v1167_v16  ;;  %v1132_v29 = vsel %vm1129_vm12, %v1131_v13, %v1127_v0  ;;  %v1145_v16 = vand.u32 2147483648, %v1028_v5  ;;  %vm1156_vm8 = vmor %vm1154_vm7, %vm1155_vm5 }
 0x300   : > { %v1133_v38 = vmul.f32 %v6592_v23, %v1132_v29  ;;  %v1151_v63 = vsub.f32 1.0, %v1150_v57  ;;  %vm1144_vm6 = vcmp.eq.f32.partialorder %v1143_v14, 8.507059e+37 }
 0x301   : > { %v1172_v46 = vsel %vm1171_vm14, %v5877_v28, %v1168_v26  ;;  %v1146_v55 = vor.u32 1.1754944e-38, %v1145_v16 }
 0x302   : > { %5337 = vmatmul.msk.f32.gmra.mxu2 %vm677_vm1, %v1133_v38  ;;  %v1177_v21 = vsel %vm1174_vm15, %v1176_v60, %v1172_v46  ;;  %v1152_v28 = vmul.f32 %v6721_v59, %v1151_v63  ;;  %v1160_v46 = vand.u32 2147483648, %v6716_v10 }
 0x303   : > { %v5881_v40 = vpop.eup %5880  ;;  %v1178_v23 = vmul.f32 %v6595_v18, %v1177_v21 }
 0x304   : > { %v1135_v22 = vmul.f32 %v5881_v40, %v1028_v5  ;;  %v1037_v1 = vpop.xlane.xlu2 %1036  ;;  %v6727_v31 = vpop.permute.xlu0 %1439  ;;  %vm1140_vm2 = vweird.f32 %v5881_v40  ;;  %v1153_v18 = vadd.f32 %v6721_v59, %v1152_v28 }
 0x305   : > { %5882 = vrcp.f32 %v1037_v1  ;;  %vm1141_vm4 = vmor %vm1139_vm3, %vm1140_vm2  ;;  %v1188_v14 = vand.u32 2147483647, %v1037_v1  ;;  %vm1184_vm11 = vweird.f32 %v1037_v1 }
 0x306   : > { %v1136_v15 = vsub.f32 1.0, %v1135_v22  ;;  %v1190_v22 = vand.u32 2147483648, %v1037_v1  ;;  %v1157_v21 = vsel %vm1156_vm8, %v6721_v59, %v1153_v18 }
 0x307   : > { %vm1189_vm13 = vcmp.eq.f32.partialorder %v1188_v14, 8.507059e+37 }
 0x308   : > { %v1137_v13 = vmul.f32 %v5881_v40, %v1136_v15  ;;  %v1191_v16 = vor.u32 1.1754944e-38, %v1190_v22 }
 0x30a   : > { %v1138_v0 = vadd.f32 %v5881_v40, %v1137_v13  ;;  %5340 = vmatmul.msk.f32.vlgmr.msrb.gmra.mxu2 %vm677_vm1, %v1178_v23 }
 0x30b   : > { %v5883_v26 = vpop.eup %5882  ;;  %5360 = vmatpush.xpose.msk.msrb.mxu2 %vm677_vm1, %v6425_v3 }
 0x30c   : > { %v1142_v29 = vsel %vm1141_vm4, %v5881_v40, %v1138_v0  ;;  %v1180_v4 = vmul.f32 %v5883_v26, %v1037_v1  ;;  %v1483_v57 = vpop.permute.xlu2 %1482  ;;  %v1477_v38 = vpop.permute.xlu0 %1476  ;;  %v1158_v40 = vand.u32 2147483647, %v6716_v10  ;;  %vm1185_vm9 = vweird.f32 %v5883_v26 }
 0x30d   : > { %5352 = vmatpush.xpose.msk.msrb.mxu0 %vm677_vm1, %v1483_v57  ;;  %5622 = vmatpush.xpose.msk.msrb.mxu1 %vm677_vm1, %v1483_v57  ;;  %v1147_v5 = vsel %vm1144_vm6, %v1146_v55, %v1142_v29  ;;  %vm1186_vm12 = vmor %vm1184_vm11, %vm1185_vm9 }
 0x30e   : > { %v1181_v60 = vsub.f32 1.0, %v1180_v4  ;;  %v1481_v63 = vpop.permute.xlu1 %1480  ;;  %v1148_v3 = vmul.f32 %v6614_v19, %v1147_v5  ;;  %v1161_v19 = vor.u32 1.1754944e-38, %v1160_v46  ;;  %vm1159_vm10 = vcmp.eq.f32.partialorder %v1158_v40, 8.507059e+37 }
 0x30f   : > { %5361 = vmatpush.xpose.msk.msrb.mxu2 %vm677_vm1, %v6714_v27 }
 0x310   : > { %5338 = vmatmul.msk.f32.vlgmr.msra.gmra.mxu3 %vm677_vm1, %v1148_v3  ;;  %v1182_v15 = vmul.f32 %v5883_v26, %v1181_v60  ;;  %v1162_v10 = vsel %vm1159_vm10, %v1161_v19, %v1157_v21 }
 0x311   : > { %5348 = vmatpush.xpose.msk.msra.mxu3 %vm677_vm1, %v6542_v62  ;;  %5353 = vmatpush.xpose.msk.msrb.mxu0 %vm677_vm1, %v1481_v63  ;;  %v1163_v0 = vmul.f32 %v6608_v61, %v1162_v10 }
 0x312   : > { %5623 = vmatpush.xpose.msk.msrb.mxu1 %vm677_vm1, %v1481_v63  ;;  %v1183_v27 = vadd.f32 %v5883_v26, %v1182_v15 }
 0x314   : > { %v1557_v13 = vpop.permute.xlu2 %1556  ;;  %5354 = vmatmul.msk.f32.vlgmr.msrb.gmra.mxu0 %vm677_vm1, %v1477_v38  ;;  %v1479_v59 = vpop.permute.xlu0 %1478  ;;  %v1187_v23 = vsel %vm1186_vm12, %v5883_v26, %v1183_v27 }
 0x315   : > { %5349 = vmatpush.xpose.msk.msra.mxu3 %vm677_vm1, %v6537_v56  ;;  %5355 = vmatmul.msk.f32.vlgmr.msrb.gmra.mxu1 %vm677_vm1, %v1479_v59  ;;  %v1192_v62 = vsel %vm1189_vm13, %v1191_v16, %v1187_v23 }
 0x316   : > { %v1600_v28 = vpop.permute.xlu1 %1599  ;;  %v1193_v1 = vmul.f32 %v6618_v35, %v1192_v62 }
 0x318   : > { %5339 = vmatmul.msk.f32.gmra.mxu3 %vm677_vm1, %v1163_v0  ;;  %5341 = vmatmul.msk.f32.gmra.mxu2 %vm677_vm1, %v1193_v1 }
 0x31c   : > { %v1598_v55 = vpop.permute.xlu2 %1597  ;;  %v1596_v35 = vpop.permute.xlu0 %1595 }
 0x31e   : > { %v1594_v29 = vpop.permute.xlu1 %1593 }
 0x320   : > { %5346 = vmatmul.msk.f32.vlgmr.msra.gmra.mxu2 %vm677_vm1, %v6421_v2 }
 0x324   : > { %v1522_v26 = vpop.permute.xlu2 %1521 }
 0x325   : > { %5356 = vmatpush.xpose.msk.msra.mxu1 %vm677_vm1, %v1522_v26 }
 0x326   : > { %v1520_v56 = vpop.permute.xlu1 %1519 }
 0x328   : > { %5347 = vmatmul.msk.f32.gmra.mxu2 %vm677_vm1, %v6533_v52 }
 0x329   : > { %5357 = vmatpush.xpose.msk.msra.mxu1 %vm677_vm1, %v1520_v56 }
 0x32c   : > { %v1516_v61 = vpop.permute.xlu2 %1515 }
 0x32d   : > { %5358 = vmatmul.msk.f32.vlgmr.msra.gmra.mxu1 %vm677_vm1, %v1516_v61 }
 0x330   : > { %5362 = vmatmul.msk.f32.vlgmr.msrb.gmra.mxu2 %vm677_vm1, %v6704_v12 }
 0x336   : > { %v6786_v56 = vpop.f32.mrf.mxu2 }
 0x337   : > { %8632 = vst [vmem:[#allocation3_spill] sm:$0xff] %v6786_v56 }
 0x338   : > { %5363 = vmatmul.msk.f32.gmra.mxu2 %vm677_vm1, %v1557_v13 }
 0x347   : > { %v1040_v4 = vpop.xlane.xlu0 %1039 }
 0x348   : > { %5884 = vrcp.f32 %v1040_v4  ;;  %v1205_v5 = vand.u32 2147483648, %v1040_v4  ;;  %v1203_v46 = vand.u32 2147483647, %v1040_v4  ;;  %vm1199_vm15 = vweird.f32 %v1040_v4 }
 0x34a   : > { %v1206_v63 = vor.u32 1.1754944e-38, %v1205_v5  ;;  %vm1204_vm3 = vcmp.eq.f32.partialorder %v1203_v46, 8.507059e+37 }
 0x34e   : > { %v5885_v2 = vpop.eup %5884 }
 0x34f   : > { %v1195_v57 = vmul.f32 %v5885_v2, %v1040_v4  ;;  %vm1200_vm14 = vweird.f32 %v5885_v2 }
 0x350   : > { %vm1201_vm2 = vmor %vm1199_vm15, %vm1200_vm14 }
 0x351   : > { %v1196_v38 = vsub.f32 1.0, %v1195_v57  ;;  %v1043_v18 = vpop.xlane.xlu1 %1042 }
 0x352   : > { %5886 = vrcp.f32 %v1043_v18  ;;  %v1220_v14 = vand.u32 2147483648, %v1043_v18  ;;  %v1218_v27 = vand.u32 2147483647, %v1043_v18  ;;  %vm1214_vm5 = vweird.f32 %v1043_v18 }
 0x353   : > { %v1197_v52 = vmul.f32 %v5885_v2, %v1196_v38  ;;  %v6805_v38 = vpack.i.bf16 %v6663_v9, %v6600_v8 }
 0x354   : > { %v1221_v16 = vor.u32 1.1754944e-38, %v1220_v14  ;;  %vm1219_vm7 = vcmp.eq.f32.partialorder %v1218_v27, 8.507059e+37 }
 0x355   : > { %v1198_v60 = vadd.f32 %v5885_v2, %v1197_v52  ;;  %v6813_v52 = vpop.f32.mrf.mxu3 }
 0x356   : > { %8638 = vst [vmem:[#allocation9_spill] sm:$0xff] %v6813_v52 }
 0x357   : > { %v1202_v3 = vsel %vm1201_vm2, %v5885_v2, %v1198_v60 }
 0x358   : > { %v5887_v12 = vpop.eup %5886  ;;  %v1207_v40 = vsel %vm1204_vm3, %v1206_v63, %v1202_v3  ;;  %v6822_v3 = vld [vmem:[%s6397_s15] ss:$0 sm:$0xff] }
 0x359   : > { %v1210_v22 = vmul.f32 %v5887_v12, %v1043_v18  ;;  %v1208_v21 = vmul.f32 %v6690_v11, %v1207_v40  ;;  %vm1215_vm4 = vweird.f32 %v5887_v12 }
 0x35a   : > { %vm1216_vm6 = vmor %vm1214_vm5, %vm1215_vm4 }
 0x35b   : > { %v1211_v15 = vsub.f32 1.0, %v1210_v22  ;;  %5342 = vmatmul.msk.f32.vlgmr.msrb.gmra.mxu3 %vm677_vm1, %v1208_v21 }
 0x35c   : > { %5364 = vmatpush.xpose.msk.msrb.mxu3 %vm677_vm1, %v1600_v28 }
 0x35d   : > { %v1212_v19 = vmul.f32 %v5887_v12, %v1211_v15 }
 0x35f   : > { %v1213_v10 = vadd.f32 %v5887_v12, %v1212_v19 }
 0x360   : > { %5365 = vmatpush.xpose.msk.msrb.mxu3 %vm677_vm1, %v1598_v55 }
 0x361   : > { %v1217_v13 = vsel %vm1216_vm6, %v5887_v12, %v1213_v10 }
 0x362   : > { %v1222_v59 = vsel %vm1219_vm7, %v1221_v16, %v1217_v13  ;;  %v6842_v16 = vpack.i.bf16 %v6623_v24, %v6626_v33 }
 0x363   : > { %v1223_v11 = vmul.f32 %v6698_v50, %v1222_v59 }
 0x365   : > { %5343 = vmatmul.msk.f32.gmra.mxu3 %vm677_vm1, %v1223_v11 }
 0x369   : > { %v1518_v23 = vpop.permute.xlu1 %1517 }
 0x36a   : > { %5359 = vmatmul.msk.f32.gmra.mxu1 %vm677_vm1, %v1518_v23 }
 0x36d   : > { %5350 = vmatmul.msk.f32.vlgmr.msra.gmra.mxu3 %vm677_vm1, %v6702_v44 }
 0x375   : > { %5351 = vmatmul.msk.f32.gmra.mxu3 %vm677_vm1, %v6727_v31  ;;  %v6789_v31 = vpop.f32.mrf.mxu2 }
 0x376   : > { %8633 = vst [vmem:[#allocation4_spill] sm:$0xff] %v6789_v31 }
 0x37d   : > { %5366 = vmatmul.msk.f32.vlgmr.msrb.gmra.mxu3 %vm677_vm1, %v1594_v29  ;;  %v6792_v4 = vpop.f32.mrf.mxu2 }
 0x37e   : > { %8634 = vst [vmem:[#allocation5_spill] sm:$0xff] %v6792_v4 }
 0x385   : > { %5367 = vmatmul.msk.f32.gmra.mxu3 %vm677_vm1, %v1596_v35  ;;  %v6799_v57 = vpop.f32.mrf.mxu2 }
 0x386   : > { %8635 = vst [vmem:[#allocation6_spill] sm:$0xff] %v6799_v57 }
 0x38d   : > { %v6809_v18 = vpop.f32.mrf.mxu2 }
 0x38e   : > { %8636 = vst [vmem:[#allocation7_spill] sm:$0xff] %v6809_v18 }
 0x391   : > { %v1509_v62 = vpop.f32.mrf.mxu0 }
 0x392   : > { %v1636_v28 = vmul.f32 0.25, %v1509_v62  ;;  %v1512_v0 = vpop.f32.mrf.mxu1 }
 0x393   : > { %v1637_v1 = vmul.f32 0.25, %v1512_v0 }
 0x394   : > { %v1648_v50 = vadd.f32 %v6454_v30, %v1636_v28 }
 0x395   : > { %v1649_v26 = vadd.f32 %v6454_v30, %v1637_v1  ;;  %v6797_v30 = vpack.i.bf16 %v6583_v42, %v6586_v48  ;;  %v6817_v48 = vpop.f32.mrf.mxu3 }
 0x396   : > { %v1668_v55 = vsel %vm677_vm1, %v1648_v50, -inf  ;;  %8639 = vst [vmem:[#allocation10_spill] sm:$0xff] %v6817_v48 }
 0x397   : > { %1669 = vmax.xlane.f32.xlu2 %v1668_v55  ;;  %v1671_v44 = vsel %vm677_vm1, %v1649_v26, -inf }
 0x39b   : > { %v6811_v5 = vpop.f32.mrf.mxu2 }
 0x39c   : > { %8637 = vst [vmem:[#allocation8_spill] sm:$0xff] %v6811_v5 }
 0x39d   : > { %v6819_v46 = vpop.f32.mrf.mxu3 }
 0x39e   : > { %8640 = vst [vmem:[#allocation11_spill] sm:$0xff] %v6819_v46 }
 0x39f   : > { %1672 = vmax.xlane.f32.xlu2 %v1671_v44 }
 0x3a3   : > { %v6815_v42 = vpop.f32.mrf.mxu2 }
 0x3a5   : > { %v6827_v40 = vpop.f32.mrf.mxu3 }
 0x3a6   : > { %8641 = vst [vmem:[#allocation12_spill] sm:$0xff] %v6827_v40 }
 0x3aa   : > { %v1548_v29 = vpop.f32.mrf.mxu1 }
 0x3ab   : > { %v1638_v61 = vmul.f32 0.25, %v1548_v29  ;;  %v1434_v60 = vpop.f32.mrf.mxu2 }
 0x3ac   : > { %v1633_v63 = vmul.f32 0.25, %v1434_v60 }
 0x3ad   : > { %v1650_v35 = vadd.f32 %v6476_v54, %v1638_v61 }
 0x3ae   : > { %v6825_v12 = vadd.f32 %v6822_v3, %v1633_v63 }
 0x3af   : > { %v1674_v2 = vsel %vm677_vm1, %v1650_v35, -inf }
 0x3b0   : > { %1675 = vmax.xlane.f32.xlu0 %v1674_v2  ;;  %v1659_v21 = vsel %vm677_vm1, %v6825_v12, -inf }
 0x3b7   : > { %5649 = vrot.lane.b32.xlu2 %v6797_v30, %s6162_s25 }
 0x3bf   : > { %5659 = vrot.lane.b32.xlu2 %v6805_v38, %s6162_s25 }
 0x3de   : > { %v6836_v27 = vpop.f32.mrf.mxu3 }
 0x3df   : > { %8642 = vst [vmem:[#allocation13_spill] sm:$0xff] %v6836_v27 }
 0x3e7   : > { %v1551_v22 = vpop.f32.mrf.mxu1 }
 0x3e8   : > { %v1639_v15 = vmul.f32 0.25, %v1551_v22  ;;  %1660 = vmax.xlane.f32.xlu2 %v1659_v21  ;;  %v6838_v10 = vpop.f32.mrf.mxu3 }
 0x3e9   : > { %8643 = vst [vmem:[#allocation14_spill] sm:$0xff] %v6838_v10 }
 0x3ea   : > { %v6832_v14 = vadd.f32 %v6476_v54, %v1639_v15 }
 0x3ec   : > { %v1677_v19 = vsel %vm677_vm1, %v6832_v14, -inf }
 0x3ed   : > { %1678 = vmax.xlane.f32.xlu1 %v1677_v19 }
 0x3f0   : > { %v1470_v13 = vpop.f32.mrf.mxu3 }
 0x3f8   : > { %v1473_v59 = vpop.f32.mrf.mxu3 }
 0x400   : > { %5664 = vrot.lane.b32.xlu2 %v6842_v16, %s6162_s25  ;;  %v1626_v28 = vpop.f32.mrf.mxu3 }
 0x408   : > { %v1629_v61 = vpop.f32.mrf.mxu3 }
 0x40a   : > { %v1670_v11 = vpop.xlane.xlu2 %1669 }
 0x40b   : > { %v1696_v54 = vsub.f32 %v1648_v50, %v1670_v11  ;;  %v1634_v11 = vmul.f32 0.25, %v1470_v13 }
 0x40d   : > { %v1712_v23 = vmul.f32 1.442695, %v1696_v54 }
 0x40f   : > { %5888 = vpow2.f32 %v1712_v23  ;;  %v6865_v23 = vpack.i.bf16 %v6657_v25, %v6603_v6 }
 0x412   : > { %v1673_v62 = vpop.xlane.xlu2 %1672 }
 0x413   : > { %v1697_v0 = vsub.f32 %v1649_v26, %v1673_v62  ;;  %v1643_v26 = vmul.f32 0.25, %v1629_v61 }
 0x415   : > { %v6846_v1 = vpop.eup %5888  ;;  %v1714_v55 = vmul.f32 1.442695, %v1697_v0  ;;  %v6855_v22 = vadd.f32 %v6517_v32, %v1643_v26  ;;  %v1635_v0 = vmul.f32 0.25, %v1473_v59 }
 0x416   : > { %v1740_v44 = vsel %vm677_vm1, %v6846_v1, 0.0 }
 0x417   : > { %5890 = vpow2.f32 %v1714_v55  ;;  %1741 = vadd.xlane.f32.xlu1 %v1740_v44  ;;  %v1689_v15 = vsel %vm677_vm1, %v6855_v22, -inf  ;;  %v1642_v44 = vmul.f32 0.25, %v1626_v28 }
 0x41a   : > { %v5650_v24 = vpop.permute.xlu2 %5649 }
 0x41b   : > { %v5651_v33 = vunpack.i.l.bf16 %v5650_v24  ;;  %v5652_v2 = vunpack.i.h.bf16 %v5650_v24 }
 0x41d   : > { %v6850_v29 = vpop.eup %5890  ;;  %1972 = vmatpush.msra.mxu0 %v5651_v33  ;;  %v6883_v33 = vadd.f32 %v6517_v32, %v1642_v44  ;;  %v6897_v32 = vpack.i.bf16 %v6707_v7, %v6710_v20 }
 0x41e   : > { %v1743_v50 = vsel %vm677_vm1, %v6850_v29, 0.0 }
 0x41f   : > { %1973 = vmatpush.msra.mxu0 %v5652_v2  ;;  %1744 = vadd.xlane.f32.xlu0 %v1743_v50  ;;  %v1686_v61 = vsel %vm677_vm1, %v6883_v33, -inf  ;;  %v1632_v2 = vmul.f32 0.25, %v6815_v42  ;;  %v1587_v50 = vpop.f32.mrf.mxu2 }
 0x421   : > { %v6891_v26 = vadd.f32 %v6822_v3, %v1632_v2 }
 0x422   : > { %v6887_v59 = vpop.permute.xlu2 %5659 }
 0x423   : > { %v1676_v60 = vpop.xlane.xlu0 %1675 }
 0x424   : > { %v1698_v63 = vsub.f32 %v1650_v35, %v1676_v60  ;;  %v6870_v35 = vld [vmem:[%s6397_s15 + $0x1] ss:$0 sm:$0xff]  ;;  %v1640_v60 = vmul.f32 0.25, %v1587_v50 }
 0x425   : > { %v6873_v62 = vadd.f32 %v6870_v35, %v1634_v11  ;;  %v6878_v55 = vadd.f32 %v6870_v35, %v1635_v0 }
 0x426   : > { %v1716_v21 = vmul.f32 1.442695, %v1698_v63  ;;  %v1656_v63 = vsel %vm677_vm1, %v6891_v26, -inf }
 0x427   : > { %v1662_v13 = vsel %vm677_vm1, %v6873_v62, -inf  ;;  %v1665_v24 = vsel %vm677_vm1, %v6878_v55, -inf  ;;  %v1590_v42 = vpop.f32.mrf.mxu2 }
 0x428   : > { %5892 = vpow2.f32 %v1716_v21 }
 0x429   : > { %1690 = vmax.xlane.f32.xlu2 %v1689_v15  ;;  %v6900_v15 = vld [vmem:[%s6397_s15 + $0x4] ss:$0 sm:$0xff] }
 0x42a   : > { %v6903_v11 = vadd.f32 %v6900_v15, %v1640_v60 }
 0x42c   : > { %v1680_v7 = vsel %vm677_vm1, %v6903_v11, -inf }
 0x42e   : > { %v6859_v19 = vpop.eup %5892 }
 0x42f   : > { %v1746_v54 = vsel %vm677_vm1, %v6859_v19, 0.0 }
 0x430   : > { %1747 = vadd.xlane.f32.xlu1 %v1746_v54 }
 0x433   : > { %5654 = vrot.lane.b32.xlu0 %v6865_v23, %s6162_s25 }
 0x438   : > { %1663 = vmax.xlane.f32.xlu1 %v1662_v13 }
 0x440   : > { %1666 = vmax.xlane.f32.xlu1 %v1665_v24  ;;  %v1641_v24 = vmul.f32 0.25, %v1590_v42 }
 0x442   : > { %v6916_v50 = vadd.f32 %v6900_v15, %v1641_v24 }
 0x448   : > { %1687 = vmax.xlane.f32.xlu1 %v1686_v61 }
 0x45b   : > { %v1661_v28 = vpop.xlane.xlu2 %1660 }
 0x45c   : > { %v1693_v0 = vsub.f32 %v6825_v12, %v1661_v28  ;;  %v1683_v28 = vsel %vm677_vm1, %v6916_v50, -inf }
 0x45d   : > { %1657 = vmax.xlane.f32.xlu0 %v1656_v63 }
 0x45e   : > { %v1706_v2 = vmul.f32 1.442695, %v1693_v0 }
 0x460   : > { %v1679_v21 = vpop.xlane.xlu1 %1678 }
 0x461   : > { %v1699_v54 = vsub.f32 %v6832_v14, %v1679_v21  ;;  %5669 = vrot.lane.b32.xlu1 %v6897_v32, %s6162_s25  ;;  %v6913_v14 = vpack.i.bf16 %v6637_v17, %v6640_v58 }
 0x463   : > { %v1718_v13 = vmul.f32 1.442695, %v1699_v54  ;;  %v5665_v44 = vpop.permute.xlu2 %5664 }
 0x464   : > { %v5666_v61 = vunpack.i.l.bf16 %v5665_v44  ;;  %v5667_v20 = vunpack.i.h.bf16 %v5665_v44 }
 0x465   : > { %5894 = vpow2.f32 %v1718_v13  ;;  %1681 = vmax.xlane.f32.xlu0 %v1680_v7 }
 0x466   : > { %2046 = vmatpush.msra.mxu2 %v5666_v61  ;;  %5896 = vpow2.f32 %v1706_v2 }
 0x468   : > { %2047 = vmatpush.msra.mxu2 %v5667_v20 }
 0x469   : > { %5674 = vrot.lane.b32.xlu1 %v6913_v14, %s6162_s25  ;;  %s6164_s25 = smov 32  }
 0x46b   : > { %v6920_v12 = vpop.eup %5894 }
 0x46c   : > { %v1749_v60 = vsel %vm677_vm1, %v6920_v12, 0.0  ;;  %v6926_v17 = vpop.eup %5896 }
 0x46d   : > { %1684 = vmax.xlane.f32.xlu0 %v1683_v28  ;;  %1750 = vadd.xlane.f32.xlu2 %v1749_v60  ;;  %v1731_v58 = vsel %vm677_vm1, %v6926_v17, 0.0 }
 0x471   : > { %2166 = vrot.lane.b32.xlu1 %v6331_v36, %s6163_s26 }
 0x475   : > { %1732 = vadd.xlane.f32.xlu2 %v1731_v58 }
 0x479   : > { %2168 = vrot.lane.b32.xlu1 %v6327_v34, %s6163_s26 }
 0x481   : > { %2250 = vrot.lane.b32.xlu0 %v6347_v43, %s6164_s25  ;;  %2287 = vrot.lane.b32.xlu1 %v6351_v45, %s6164_s25 }
 0x489   : > { %2172 = vrot.lane.b32.xlu0 %v6327_v34, %s6164_s25  ;;  %2283 = vrot.lane.b32.xlu1 %v6351_v45, %s6163_s26 }
 0x48a   : > { %v1742_v63 = vpop.xlane.xlu1 %1741 }
 0x48b   : > { %5898 = vrcp.f32 %v1742_v63  ;;  %v1835_v13 = vand.u32 2147483648, %v1742_v63  ;;  %v1833_v24 = vand.u32 2147483647, %v1742_v63  ;;  %vm1829_vm9 = vweird.f32 %v1742_v63 }
 0x48d   : > { %2246 = vrot.lane.b32.xlu2 %v6347_v43, %s6163_s26  ;;  %v1836_v20 = vor.u32 1.1754944e-38, %v1835_v13  ;;  %vm1834_vm11 = vcmp.eq.f32.partialorder %v1833_v24, 8.507059e+37 }
 0x491   : > { %v5899_v21 = vpop.eup %5898  ;;  %2248 = vrot.lane.b32.xlu0 %v6343_v41, %s6164_s25 }
 0x492   : > { %v1825_v42 = vmul.f32 %v5899_v21, %v1742_v63  ;;  %v1745_v54 = vpop.xlane.xlu0 %1744  ;;  %vm1830_vm8 = vweird.f32 %v5899_v21 }
 0x493   : > { %5900 = vrcp.f32 %v1745_v54  ;;  %vm1831_vm10 = vmor %vm1829_vm9, %vm1830_vm8  ;;  %vm1844_vm13 = vweird.f32 %v1745_v54 }
 0x494   : > { %v1826_v0 = vsub.f32 1.0, %v1825_v42 }
 0x495   : > { %2209 = vrot.lane.b32.xlu2 %v6333_v37, %s6164_s25 }
 0x496   : > { %v1827_v44 = vmul.f32 %v5899_v21, %v1826_v0  ;;  %v1850_v0 = vand.u32 2147483648, %v1745_v54 }
 0x498   : > { %v1828_v61 = vadd.f32 %v5899_v21, %v1827_v44  ;;  %v1848_v44 = vand.u32 2147483647, %v1745_v54 }
 0x499   : > { %v5901_v7 = vpop.eup %5900  ;;  %2244 = vrot.lane.b32.xlu0 %v6343_v41, %s6163_s26 }
 0x49a   : > { %v1832_v2 = vsel %vm1831_vm10, %v5899_v21, %v1828_v61  ;;  %v1840_v28 = vmul.f32 %v5901_v7, %v1745_v54  ;;  %vm1845_vm12 = vweird.f32 %v5901_v7  ;;  %v1851_v21 = vor.u32 1.1754944e-38, %v1850_v0 }
 0x49b   : > { %v1837_v60 = vsel %vm1834_vm11, %v1836_v20, %v1832_v2  ;;  %vm1846_vm14 = vmor %vm1844_vm13, %vm1845_vm12  ;;  %vm1849_vm15 = vcmp.eq.f32.partialorder %v1848_v44, 8.507059e+37  ;;  %v5662_v54 = vunpack.i.h.bf16 %v6887_v59 }
 0x49c   : > { %v1841_v58 = vsub.f32 1.0, %v1840_v28  ;;  %v1838_v42 = vmul.f32 %v6846_v1, %v1837_v60 }
 0x49d   : > { %2322 = vrot.lane.b32.xlu2 %v6359_v49, %s6163_s26 }
 0x49e   : > { %5372 = vmatmul.msk.f32.vlgmr.msra.gmra.mxu2 %vm677_vm1, %v1838_v42  ;;  %v1842_v63 = vmul.f32 %v5901_v7, %v1841_v58  ;;  %v5661_v58 = vunpack.i.l.bf16 %v6887_v59 }
 0x4a0   : > { %v1843_v13 = vadd.f32 %v5901_v7, %v1842_v63 }
 0x4a1   : > { %2170 = vrot.lane.b32.xlu0 %v6331_v36, %s6164_s25 }
 0x4a2   : > { %v1847_v24 = vsel %vm1846_vm14, %v5901_v7, %v1843_v13 }
 0x4a3   : > { %v1748_v61 = vpop.xlane.xlu1 %1747  ;;  %v1852_v1 = vsel %vm1849_vm15, %v1851_v21, %v1847_v24 }
 0x4a4   : > { %v1853_v2 = vmul.f32 %v6850_v29, %v1852_v1  ;;  %vm1859_vm3 = vweird.f32 %v1748_v61 }
 0x4a5   : > { %2324 = vrot.lane.b32.xlu2 %v6363_v51, %s6163_s26  ;;  %v5655_v20 = vpop.permute.xlu0 %5654 }
 0x4a6   : > { %v5657_v28 = vunpack.i.h.bf16 %v5655_v20  ;;  %v5656_v60 = vunpack.i.l.bf16 %v5655_v20  ;;  %5373 = vmatmul.msk.f32.gmra.mxu2 %vm677_vm1, %v1853_v2 }
 0x4a8   : > { %2009 = vmatpush.msrb.mxu1 %v5656_v60  ;;  %2120 = vmatpush.msrb.mxu0 %v5657_v28 }
 0x4aa   : > { %2010 = vmatpush.msrb.mxu1 %v5661_v58  ;;  %2121 = vmatpush.msrb.mxu0 %v5662_v54  ;;  %v1865_v58 = vand.u32 2147483648, %v1748_v61 }
 0x4ab   : > { %v1664_v7 = vpop.xlane.xlu1 %1663 }
 0x4ac   : > { %v1694_v42 = vsub.f32 %v6873_v62, %v1664_v7 }
 0x4ad   : > { %2361 = vrot.lane.b32.xlu2 %v6369_v53, %s6163_s26 }
 0x4ae   : > { %v1708_v0 = vmul.f32 1.442695, %v1694_v42  ;;  %v1863_v42 = vand.u32 2147483647, %v1748_v61 }
 0x4b0   : > { %5902 = vpow2.f32 %v1708_v0  ;;  %v6976_v0 = vpop.xlane.xlu2 %1690  ;;  %vm1864_vm5 = vcmp.eq.f32.partialorder %v1863_v42, 8.507059e+37 }
 0x4b1   : > { %5904 = vrcp.f32 %v1748_v61 }
 0x4b3   : > { %v6969_v59 = vpop.xlane.xlu1 %1666 }
 0x4b6   : > { %v6965_v29 = vpop.eup %5902 }
 0x4b7   : > { %v1734_v63 = vsel %vm677_vm1, %v6965_v29, 0.0  ;;  %v5905_v44 = vpop.eup %5904 }
 0x4b8   : > { %1735 = vadd.xlane.f32.xlu1 %v1734_v63  ;;  %v1855_v13 = vmul.f32 %v5905_v44, %v1748_v61  ;;  %vm1860_vm2 = vweird.f32 %v5905_v44 }
 0x4b9   : > { %vm1861_vm4 = vmor %vm1859_vm3, %vm1860_vm2 }
 0x4ba   : > { %v1856_v24 = vsub.f32 1.0, %v1855_v13 }
 0x4bb   : > { %v6971_v21 = vpop.xlane.xlu1 %1687 }
 0x4bc   : > { %v1857_v1 = vmul.f32 %v5905_v44, %v1856_v24 }
 0x4be   : > { %v1858_v54 = vadd.f32 %v5905_v44, %v1857_v1 }
 0x4c0   : > { %v1862_v63 = vsel %vm1861_vm4, %v5905_v44, %v1858_v54 }
 0x4d0   : > { %v1658_v62 = vpop.xlane.xlu0 %1657 }
 0x4d1   : > { %v1692_v20 = vsub.f32 %v6891_v26, %v1658_v62  ;;  %2205 = vrot.lane.b32.xlu1 %v6333_v37, %s6163_s26  ;;  %v1866_v26 = vor.u32 1.1754944e-38, %v1865_v58 }
 0x4d3   : > { %v1704_v2 = vmul.f32 1.442695, %v1692_v20  ;;  %v5670_v28 = vpop.permute.xlu1 %5669  ;;  %v1867_v20 = vsel %vm1864_vm5, %v1866_v26, %v1862_v63 }
 0x4d4   : > { %v5671_v60 = vunpack.i.l.bf16 %v5670_v28  ;;  %v5672_v7 = vunpack.i.h.bf16 %v5670_v28 }
 0x4d5   : > { %5906 = vpow2.f32 %v1704_v2  ;;  %v1868_v2 = vmul.f32 %v6859_v19, %v1867_v20 }
 0x4d6   : > { %2157 = vmatpush.msra.mxu1 %v5671_v60 }
 0x4d8   : > { %2158 = vmatpush.msra.mxu1 %v5672_v7  ;;  %v1682_v44 = vpop.xlane.xlu0 %1681 }
 0x4d9   : > { %2207 = vrot.lane.b32.xlu1 %v6339_v39, %s6163_s26 }
 0x4db   : > { %v6980_v13 = vpop.eup %5906  ;;  %v5675_v24 = vpop.permute.xlu1 %5674 }
 0x4dc   : > { %v5676_v62 = vunpack.i.l.bf16 %v5675_v24  ;;  %v1728_v1 = vsel %vm677_vm1, %v6980_v13, 0.0  ;;  %v5677_v61 = vunpack.i.h.bf16 %v5675_v24 }
 0x4dd   : > { %1729 = vadd.xlane.f32.xlu0 %v1728_v1 }
 0x4de   : > { %2083 = vmatpush.msra.mxu3 %v5676_v62 }
 0x4e0   : > { %v1751_v28 = vpop.xlane.xlu2 %1750  ;;  %2084 = vmatpush.msra.mxu3 %v5677_v61  ;;  %v6988_v7 = vpop.xlane.xlu0 %1684 }
 0x4e1   : > { %5908 = vrcp.f32 %v1751_v28  ;;  %2365 = vrot.lane.b32.xlu1 %v6369_v53, %s6164_s25  ;;  %5374 = vmatmul.msk.f32.vlgmr.msra.gmra.mxu3 %vm677_vm1, %v1868_v2  ;;  %v1880_v42 = vand.u32 2147483648, %v1751_v28  ;;  %v1878_v26 = vand.u32 2147483647, %v1751_v28  ;;  %vm1874_vm7 = vweird.f32 %v1751_v28 }
 0x4e3   : > { %v1881_v19 = vor.u32 1.1754944e-38, %v1880_v42  ;;  %vm1879_vm9 = vcmp.eq.f32.partialorder %v1878_v26, 8.507059e+37  ;;  %v1700_v42 = vsub.f32 %v6903_v11, %v1682_v44 }
 0x4e5   : > { %v1720_v26 = vmul.f32 1.442695, %v1700_v42 }
 0x4e7   : > { %v5909_v60 = vpop.eup %5908  ;;  %5910 = vpow2.f32 %v1720_v26 }
 0x4e8   : > { %v1870_v54 = vmul.f32 %v5909_v60, %v1751_v28  ;;  %vm1875_vm6 = vweird.f32 %v5909_v60 }
 0x4e9   : > { %vm1876_vm8 = vmor %vm1874_vm7, %vm1875_vm6 }
 0x4ea   : > { %v1871_v58 = vsub.f32 1.0, %v1870_v54 }
 0x4ec   : > { %v1872_v63 = vmul.f32 %v5909_v60, %v1871_v58 }
 0x4ee   : > { %v1873_v24 = vadd.f32 %v5909_v60, %v1872_v63 }
 0x4f0   : > { %v1877_v62 = vsel %vm1876_vm8, %v5909_v60, %v1873_v24  ;;  %v2167_v60 = vpop.permute.xlu1 %2166  ;;  %v1695_v24 = vsub.f32 %v6878_v55, %v6969_v59 }
 0x4f1   : > { %2289 = vrot.lane.b32.xlu0 %v6355_v47, %s6164_s25  ;;  %v1882_v1 = vsel %vm1879_vm9, %v1881_v19, %v1877_v62 }
 0x4f2   : > { %v1883_v20 = vmul.f32 %v6920_v12, %v1882_v1  ;;  %v1710_v62 = vmul.f32 1.442695, %v1695_v24  ;;  %v7015_v1 = vpop.eup %5910 }
 0x4f3   : > { %v6993_v61 = vpop.permute.xlu0 %2250 }
 0x4f4   : > { %5375 = vmatmul.msk.f32.gmra.mxu3 %vm677_vm1, %v1883_v20  ;;  %5912 = vpow2.f32 %v1710_v62  ;;  %v1752_v20 = vsel %vm677_vm1, %v7015_v1, 0.0 }
 0x4f8   : > { %v2169_v58 = vpop.permute.xlu1 %2168 }
 0x4f9   : > { %2211 = vrot.lane.b32.xlu0 %v6339_v39, %s6164_s25 }
 0x4fa   : > { %v7019_v11 = vpop.eup %5912 }
 0x4fb   : > { %v2173_v2 = vpop.permute.xlu0 %2172 }
 0x4fc   : > { %5380 = vmatpush.xpose.msk.msrb.mxu2 %vm677_vm1, %v2173_v2 }
 0x500   : > { %v7008_v63 = vpop.permute.xlu1 %2287 }
 0x501   : > { %2328 = vrot.lane.b32.xlu0 %v6363_v51, %s6164_s25 }
 0x503   : > { %v7001_v28 = vpop.permute.xlu0 %2248 }
 0x508   : > { %v7013_v19 = vpop.permute.xlu1 %2283 }
 0x50b   : > { %v7003_v54 = vpop.permute.xlu0 %2244 }
 0x513   : > { %v2171_v12 = vpop.permute.xlu0 %2170 }
 0x514   : > { %5381 = vmatpush.xpose.msk.msrb.mxu2 %vm677_vm1, %v2171_v12 }
 0x517   : > { %5382 = vmatmul.msk.f32.vlgmr.msrb.gmra.mxu2 %vm677_vm1, %v2167_v60  ;;  %v1737_v60 = vsel %vm677_vm1, %v7019_v11, 0.0 }
 0x51f   : > { %5383 = vmatmul.msk.f32.gmra.mxu2 %vm677_vm1, %v2169_v58 }
 0x52b   : > { %v1736_v2 = vpop.xlane.xlu1 %1735  ;;  %1753 = vadd.xlane.f32.xlu0 %v1752_v20 }
 0x52c   : > { %5914 = vrcp.f32 %v1736_v2  ;;  %v1805_v58 = vand.u32 2147483648, %v1736_v2  ;;  %v1803_v42 = vand.u32 2147483647, %v1736_v2  ;;  %vm1799_vm11 = vweird.f32 %v1736_v2 }
 0x52e   : > { %v1806_v24 = vor.u32 1.1754944e-38, %v1805_v58  ;;  %vm1804_vm13 = vcmp.eq.f32.partialorder %v1803_v42, 8.507059e+37 }
 0x532   : > { %v5915_v44 = vpop.eup %5914 }
 0x533   : > { %v1795_v55 = vmul.f32 %v5915_v44, %v1736_v2  ;;  %1738 = vadd.xlane.f32.xlu0 %v1737_v60  ;;  %vm1800_vm10 = vweird.f32 %v5915_v44  ;;  %v1733_v60 = vpop.xlane.xlu2 %1732 }
 0x534   : > { %vm1801_vm12 = vmor %vm1799_vm11, %vm1800_vm10  ;;  %5916 = vrcp.f32 %v1733_v60  ;;  %vm1784_vm5 = vweird.f32 %v1733_v60 }
 0x535   : > { %v1796_v59 = vsub.f32 1.0, %v1795_v55 }
 0x537   : > { %v1797_v12 = vmul.f32 %v5915_v44, %v1796_v59 }
 0x539   : > { %v1798_v26 = vadd.f32 %v5915_v44, %v1797_v12 }
 0x53a   : > { %v5917_v59 = vpop.eup %5916 }
 0x53b   : > { %v1802_v62 = vsel %vm1801_vm12, %v5915_v44, %v1798_v26  ;;  %v1780_v2 = vmul.f32 %v5917_v59, %v1733_v60  ;;  %v8644_v44 = vld [vmem:[#allocation2_spill] sm:$0xff]  ;;  %vm1785_vm4 = vweird.f32 %v5917_v59 }
 0x53c   : > { %v1807_v20 = vsel %vm1804_vm13, %v1806_v24, %v1802_v62  ;;  %vm1786_vm6 = vmor %vm1784_vm5, %vm1785_vm4 }
 0x53d   : > { %v1808_v27 = vmul.f32 %v6965_v29, %v1807_v20  ;;  %v1781_v12 = vsub.f32 1.0, %v1780_v2  ;;  %v1790_v2 = vand.u32 2147483648, %v1733_v60 }
 0x53f   : > { %5370 = vmatmul.msk.f32.vlgmr.msrb.gmra.mxu1 %vm677_vm1, %v1808_v27  ;;  %v1782_v62 = vmul.f32 %v5917_v59, %v1781_v12  ;;  %v7036_v12 = vpop.permute.xlu2 %2246 }
 0x541   : > { %v1783_v5 = vadd.f32 %v5917_v59, %v1782_v62 }
 0x547   : > { %2326 = vrot.lane.b32.xlu0 %v6359_v49, %s6164_s25 }
 0x54f   : > { %2285 = vrot.lane.b32.xlu0 %v6355_v47, %s6163_s26 }
 0x550   : > { %v1730_v55 = vpop.xlane.xlu0 %1729 }
 0x551   : > { %5918 = vrcp.f32 %v1730_v55  ;;  %v1775_v27 = vand.u32 2147483648, %v1730_v55  ;;  %v1773_v24 = vand.u32 2147483647, %v1730_v55  ;;  %vm1769_vm15 = vweird.f32 %v1730_v55 }
 0x553   : > { %v1776_v10 = vor.u32 1.1754944e-38, %v1775_v27  ;;  %vm1774_vm3 = vcmp.eq.f32.partialorder %v1773_v24, 8.507059e+37 }
 0x557   : > { %v5919_v58 = vpop.eup %5918  ;;  %2367 = vrot.lane.b32.xlu0 %v8644_v44, %s6164_s25 }
 0x558   : > { %v1765_v29 = vmul.f32 %v5919_v58, %v1730_v55  ;;  %vm1770_vm14 = vweird.f32 %v5919_v58  ;;  %v1787_v55 = vsel %vm1786_vm6, %v5917_v59, %v1783_v5  ;;  %v2210_v5 = vpop.permute.xlu2 %2209 }
 0x559   : > { %vm1771_vm2 = vmor %vm1769_vm15, %vm1770_vm14 }
 0x55a   : > { %v1766_v42 = vsub.f32 1.0, %v1765_v29 }
 0x55c   : > { %v1767_v26 = vmul.f32 %v5919_v58, %v1766_v42  ;;  %v1788_v42 = vand.u32 2147483647, %v1733_v60 }
 0x55e   : > { %v1768_v20 = vadd.f32 %v5919_v58, %v1767_v26  ;;  %vm1789_vm7 = vcmp.eq.f32.partialorder %v1788_v42, 8.507059e+37 }
 0x55f   : > { %2363 = vrot.lane.b32.xlu0 %v8644_v44, %s6163_s26 }
 0x560   : > { %v1772_v18 = vsel %vm1771_vm2, %v5919_v58, %v1768_v20  ;;  %v1791_v58 = vor.u32 1.1754944e-38, %v1790_v2 }
 0x561   : > { %v1777_v46 = vsel %vm1774_vm3, %v1776_v10, %v1772_v18 }
 0x562   : > { %v1778_v29 = vmul.f32 %v6980_v13, %v1777_v46  ;;  %v1792_v18 = vsel %vm1789_vm7, %v1791_v58, %v1787_v55 }
 0x563   : > { %v2290_v40 = vpop.permute.xlu0 %2289  ;;  %v1793_v46 = vmul.f32 %v6926_v17, %v1792_v18 }
 0x564   : > { %5368 = vmatmul.msk.f32.vlgmr.msra.gmra.mxu0 %vm677_vm1, %v1778_v29  ;;  %5392 = vmatpush.xpose.msk.msrb.mxu1 %vm677_vm1, %v2290_v40  ;;  %v2206_v40 = vpop.permute.xlu1 %2205 }
 0x565   : > { %5388 = vmatpush.xpose.msk.msra.mxu0 %vm677_vm1, %v6993_v61 }
 0x568   : > { %5393 = vmatpush.xpose.msk.msrb.mxu1 %vm677_vm1, %v7008_v63 }
 0x569   : > { %5389 = vmatpush.xpose.msk.msra.mxu0 %vm677_vm1, %v7001_v28  ;;  %v7051_v28 = vpop.f32.mrf.mxu2 }
 0x56a   : > { %8645 = vst [vmem:[#allocation2_spill] sm:$0xff] %v7051_v28 }
 0x56b   : > { %v2212_v10 = vpop.permute.xlu0 %2211 }
 0x56c   : > { %5369 = vmatmul.msk.f32.gmra.mxu0 %vm677_vm1, %v1793_v46  ;;  %5384 = vmatpush.xpose.msk.msrb.mxu3 %vm677_vm1, %v2212_v10  ;;  %v2208_v61 = vpop.permute.xlu1 %2207 }
 0x570   : > { %5385 = vmatpush.xpose.msk.msrb.mxu3 %vm677_vm1, %v2210_v5 }
 0x571   : > { %v7053_v17 = vpop.f32.mrf.mxu2 }
 0x572   : > { %8646 = vst [vmem:[#allocation15_spill] sm:$0xff] %v7053_v17 }
 0x573   : > { %5386 = vmatmul.msk.f32.vlgmr.msrb.gmra.mxu3 %vm677_vm1, %v2206_v40  ;;  %v2329_v13 = vpop.permute.xlu0 %2328 }
 0x574   : > { %5396 = vmatpush.xpose.msk.msra.mxu2 %vm677_vm1, %v2329_v13 }
 0x57b   : > { %5387 = vmatmul.msk.f32.gmra.mxu3 %vm677_vm1, %v2208_v61 }
 0x59a   : > { %v2199_v63 = vpop.f32.mrf.mxu2 }
 0x59b   : > { %v2400_v60 = vmul.f32 0.25, %v2199_v63 }
 0x59d   : > { %v7056_v59 = vadd.f32 %v6822_v3, %v2400_v60 }
 0x59e   : > { %v1754_v27 = vpop.xlane.xlu0 %1753 }
 0x59f   : > { %5920 = vrcp.f32 %v1754_v27  ;;  %v2424_v26 = vsel %vm677_vm1, %v7056_v59, -inf  ;;  %v1895_v18 = vand.u32 2147483648, %v1754_v27  ;;  %v1893_v10 = vand.u32 2147483647, %v1754_v27 }
 0x5a0   : > { %2425 = vmax.xlane.f32.xlu0 %v2424_v26  ;;  %vm1889_vm9 = vweird.f32 %v1754_v27 }
 0x5a1   : > { %v1896_v13 = vor.u32 1.1754944e-38, %v1895_v18  ;;  %vm1894_vm11 = vcmp.eq.f32.partialorder %v1893_v10, 8.507059e+37  ;;  %v2323_v10 = vpop.permute.xlu2 %2322 }
 0x5a2   : > { %v2202_v24 = vpop.f32.mrf.mxu2 }
 0x5a3   : > { %v2401_v62 = vmul.f32 0.25, %v2202_v24 }
 0x5a5   : > { %v5921_v20 = vpop.eup %5920  ;;  %v7061_v2 = vadd.f32 %v6822_v3, %v2401_v62 }
 0x5a6   : > { %v1885_v29 = vmul.f32 %v5921_v20, %v1754_v27  ;;  %v1739_v42 = vpop.xlane.xlu0 %1738  ;;  %vm1890_vm8 = vweird.f32 %v5921_v20 }
 0x5a7   : > { %5922 = vrcp.f32 %v1739_v42  ;;  %v2427_v55 = vsel %vm677_vm1, %v7061_v2, -inf  ;;  %vm1891_vm10 = vmor %vm1889_vm9, %vm1890_vm8  ;;  %v1820_v24 = vand.u32 2147483648, %v1739_v42  ;;  %vm1814_vm13 = vweird.f32 %v1739_v42 }
 0x5a8   : > { %v1886_v58 = vsub.f32 1.0, %v1885_v29  ;;  %2428 = vmax.xlane.f32.xlu2 %v2427_v55  ;;  %v1818_v29 = vand.u32 2147483647, %v1739_v42 }
 0x5a9   : > { %v1821_v27 = vor.u32 1.1754944e-38, %v1820_v24 }
 0x5aa   : > { %v1887_v46 = vmul.f32 %v5921_v20, %v1886_v58  ;;  %vm1819_vm15 = vcmp.eq.f32.partialorder %v1818_v29, 8.507059e+37  ;;  %v1702_v29 = vsub.f32 %v6883_v33, %v6971_v21 }
 0x5ac   : > { %v1888_v5 = vadd.f32 %v5921_v20, %v1887_v46 }
 0x5ad   : > { %v5923_v40 = vpop.eup %5922 }
 0x5ae   : > { %v1892_v61 = vsel %vm1891_vm10, %v5921_v20, %v1888_v5  ;;  %v1810_v3 = vmul.f32 %v5923_v40, %v1739_v42  ;;  %vm1815_vm12 = vweird.f32 %v5923_v40  ;;  %v2325_v5 = vpop.permute.xlu2 %2324 }
 0x5af   : > { %v1897_v63 = vsel %vm1894_vm11, %v1896_v13, %v1892_v61  ;;  %vm1816_vm14 = vmor %vm1814_vm13, %vm1815_vm12  ;;  %v7078_v61 = vpop.f32.mrf.mxu3 }
 0x5b0   : > { %v1811_v60 = vsub.f32 1.0, %v1810_v3  ;;  %v1898_v26 = vmul.f32 %v7015_v1, %v1897_v63  ;;  %8647 = vst [vmem:[#allocation16_spill] sm:$0xff] %v7078_v61  ;;  %v1701_v63 = vsub.f32 %v6916_v50, %v6988_v7  ;;  %v1703_v7 = vsub.f32 %v6855_v22, %v6976_v0 }
 0x5b2   : > { %5376 = vmatmul.msk.f32.vlgmr.msrb.gmra.mxu0 %vm677_vm1, %v1898_v26  ;;  %v1812_v62 = vmul.f32 %v5923_v40, %v1811_v60  ;;  %v1722_v60 = vmul.f32 1.442695, %v1701_v63 }
 0x5b4   : > { %v1813_v55 = vadd.f32 %v5923_v40, %v1812_v62  ;;  %5924 = vpow2.f32 %v1722_v60 }
 0x5b6   : > { %v1817_v58 = vsel %vm1816_vm14, %v5923_v40, %v1813_v55  ;;  %v2366_v40 = vpop.permute.xlu1 %2365 }
 0x5b7   : > { %v1822_v18 = vsel %vm1819_vm15, %v1821_v27, %v1817_v58  ;;  %v7080_v3 = vpop.f32.mrf.mxu3  ;;  %v1724_v27 = vmul.f32 1.442695, %v1702_v29 }
 0x5b8   : > { %v1823_v20 = vmul.f32 %v7019_v11, %v1822_v18  ;;  %v2362_v11 = vpop.permute.xlu2 %2361  ;;  %8648 = vst [vmem:[#allocation17_spill] sm:$0xff] %v7080_v3 }
 0x5b9   : > { %v2327_v46 = vpop.permute.xlu0 %2326  ;;  %5926 = vpow2.f32 %v1724_v27 }
 0x5ba   : > { %5371 = vmatmul.msk.f32.gmra.mxu1 %vm677_vm1, %v1823_v20  ;;  %5397 = vmatpush.xpose.msk.msra.mxu2 %vm677_vm1, %v2327_v46  ;;  %v7091_v20 = vpop.eup %5924  ;;  %v1726_v46 = vmul.f32 1.442695, %v1703_v7 }
 0x5bb   : > { %v1755_v33 = vsel %vm677_vm1, %v7091_v20, 0.0 }
 0x5bc   : > { %5928 = vpow2.f32 %v1726_v46 }
 0x5bd   : > { %5398 = vmatmul.msk.f32.vlgmr.msra.gmra.mxu2 %vm677_vm1, %v2323_v10 }
 0x5bf   : > { %v7102_v10 = vpop.eup %5926 }
 0x5c1   : > { %v7071_v1 = vpop.permute.xlu0 %2285 }
 0x5c5   : > { %5399 = vmatmul.msk.f32.gmra.mxu2 %vm677_vm1, %v2325_v5  ;;  %v7106_v5 = vpop.eup %5928 }
 0x5c6   : > { %v1761_v22 = vsel %vm677_vm1, %v7106_v5, 0.0 }
 0x5c9   : > { %v2368_v42 = vpop.permute.xlu0 %2367 }
 0x5ca   : > { %5400 = vmatpush.xpose.msk.msra.mxu3 %vm677_vm1, %v2368_v42 }
 0x5ce   : > { %5401 = vmatpush.xpose.msk.msra.mxu3 %vm677_vm1, %v2366_v40 }
 0x5d1   : > { %5402 = vmatmul.msk.f32.vlgmr.msra.gmra.mxu3 %vm677_vm1, %v2362_v11  ;;  %v2364_v13 = vpop.permute.xlu0 %2363 }
 0x5d9   : > { %5403 = vmatmul.msk.f32.gmra.mxu3 %vm677_vm1, %v2364_v13 }
 0x5f6   : > { %v2238_v26 = vpop.f32.mrf.mxu3 }
 0x5f7   : > { %v2402_v24 = vmul.f32 0.25, %v2238_v26 }
 0x5f9   : > { %v7085_v62 = vadd.f32 %v6870_v35, %v2402_v24 }
 0x5fb   : > { %v2430_v55 = vsel %vm677_vm1, %v7085_v62, -inf }
 0x5fc   : > { %2431 = vmax.xlane.f32.xlu1 %v2430_v55  ;;  %v6133_v55 = vld [vmem:[%s6397_s15 + $0x5] ss:$0 sm:$0xff] }
 0x5fe   : > { %v2241_v58 = vpop.f32.mrf.mxu3 }
 0x5ff   : > { %v2403_v18 = vmul.f32 0.25, %v2241_v58 }
 0x601   : > { %v7094_v50 = vadd.f32 %v6870_v35, %v2403_v18  ;;  %v1758_v35 = vsel %vm677_vm1, %v7102_v10, 0.0 }
 0x603   : > { %v2433_v21 = vsel %vm677_vm1, %v7094_v50, -inf }
 0x604   : > { %1756 = vadd.xlane.f32.xlu1 %v1755_v33  ;;  %2434 = vmax.xlane.f32.xlu0 %v2433_v21 }
 0x60c   : > { %1759 = vadd.xlane.f32.xlu1 %v1758_v35 }
 0x614   : > { %1762 = vadd.xlane.f32.xlu1 %v1761_v22 }
 0x640   : > { %v2355_v0 = vpop.f32.mrf.mxu2 }
 0x641   : > { %v2408_v42 = vmul.f32 0.25, %v2355_v0 }
 0x643   : > { %v7111_v40 = vadd.f32 %v6900_v15, %v2408_v42 }
 0x645   : > { %v2448_v11 = vsel %vm677_vm1, %v7111_v40, -inf }
 0x646   : > { %2449 = vmax.xlane.f32.xlu2 %v2448_v11 }
 0x648   : > { %v2358_v13 = vpop.f32.mrf.mxu2 }
 0x649   : > { %v2409_v63 = vmul.f32 0.25, %v2358_v13 }
 0x64b   : > { %v7116_v60 = vadd.f32 %v6900_v15, %v2409_v63 }
 0x64d   : > { %v2451_v26 = vsel %vm677_vm1, %v7116_v60, -inf }
 0x64e   : > { %2452 = vmax.xlane.f32.xlu1 %v2451_v26 }
 0x654   : > { %v2394_v24 = vpop.f32.mrf.mxu3 }
 0x655   : > { %v2410_v29 = vmul.f32 0.25, %v2394_v24 }
 0x657   : > { %v7121_v27 = vadd.f32 %v6133_v55, %v2410_v29 }
 0x659   : > { %v2454_v58 = vsel %vm677_vm1, %v7121_v27, -inf }
 0x65a   : > { %2455 = vmax.xlane.f32.xlu2 %v2454_v58 }
 0x65c   : > { %v2397_v18 = vpop.f32.mrf.mxu3 }
 0x65d   : > { %v2411_v7 = vmul.f32 0.25, %v2397_v18 }
 0x65f   : > { %v7125_v33 = vadd.f32 %v6133_v55, %v2411_v7 }
 0x661   : > { %v2457_v15 = vsel %vm677_vm1, %v7125_v33, -inf }
 0x662   : > { %2458 = vmax.xlane.f32.xlu0 %v2457_v15 }
 0x667   : > { %2928 = vrot.lane.b32.xlu1 %v6327_v34, %s6165_s28 }
 0x66f   : > { %v7131_v21 = vpop.xlane.xlu1 %2431  ;;  %2922 = vrot.lane.b32.xlu1 %v6331_v36, %s6166_s16 }
 0x672   : > { %5679 = vrot.lane.b32.xlu2 %v6842_v16, %s6163_s26 }
 0x676   : > { %5684 = vrot.lane.b32.xlu0 %v6797_v30, %s6163_s26 }
 0x677   : > { %v1757_v46 = vpop.xlane.xlu1 %1756 }
 0x678   : > { %5930 = vrcp.f32 %v1757_v46  ;;  %v1910_v11 = vand.u32 2147483648, %v1757_v46  ;;  %v1908_v63 = vand.u32 2147483647, %v1757_v46  ;;  %vm1904_vm3 = vweird.f32 %v1757_v46 }
 0x67a   : > { %5689 = vrot.lane.b32.xlu2 %v6913_v14, %s6163_s26  ;;  %v1911_v29 = vor.u32 1.1754944e-38, %v1910_v11  ;;  %vm1909_vm5 = vcmp.eq.f32.partialorder %v1908_v63, 8.507059e+37 }
 0x67e   : > { %v5931_v35 = vpop.eup %5930 }
 0x67f   : > { %v1900_v22 = vmul.f32 %v5931_v35, %v1757_v46  ;;  %v1760_v0 = vpop.xlane.xlu1 %1759  ;;  %vm1905_vm2 = vweird.f32 %v5931_v35 }
 0x680   : > { %5932 = vrcp.f32 %v1760_v0  ;;  %vm1906_vm4 = vmor %vm1904_vm3, %vm1905_vm2  ;;  %v1925_v4 = vand.u32 2147483648, %v1760_v0  ;;  %vm1919_vm7 = vweird.f32 %v1760_v0 }
 0x681   : > { %v1901_v42 = vsub.f32 1.0, %v1900_v22 }
 0x682   : > { %2926 = vrot.lane.b32.xlu2 %v6331_v36, %s6165_s28  ;;  %v2426_v36 = vpop.xlane.xlu0 %2425 }
 0x683   : > { %v1902_v13 = vmul.f32 %v5931_v35, %v1901_v42  ;;  %v1923_v42 = vand.u32 2147483647, %v1760_v0  ;;  %v2460_v11 = vsub.f32 %v7056_v59, %v2426_v36 }
 0x685   : > { %v1903_v26 = vadd.f32 %v5931_v35, %v1902_v13  ;;  %vm1924_vm9 = vcmp.eq.f32.partialorder %v1923_v42, 8.507059e+37 }
 0x686   : > { %v5933_v24 = vpop.eup %5932 }
 0x687   : > { %v1915_v55 = vmul.f32 %v5933_v24, %v1760_v0  ;;  %v1763_v58 = vpop.xlane.xlu1 %1762  ;;  %v1907_v18 = vsel %vm1906_vm4, %v5931_v35, %v1903_v26  ;;  %vm1920_vm6 = vweird.f32 %v5933_v24  ;;  %v1926_v35 = vor.u32 1.1754944e-38, %v1925_v4 }
 0x688   : > { %5934 = vrcp.f32 %v1763_v58  ;;  %v1912_v7 = vsel %vm1909_vm5, %v1911_v29, %v1907_v18  ;;  %vm1921_vm8 = vmor %vm1919_vm7, %vm1920_vm6  ;;  %v2472_v18 = vmul.f32 1.442695, %v2460_v11  ;;  %v1938_v59 = vand.u32 2147483647, %v1763_v58 }
 0x689   : > { %v1916_v15 = vsub.f32 1.0, %v1915_v55  ;;  %v1913_v22 = vmul.f32 %v7091_v20, %v1912_v7  ;;  %v1940_v7 = vand.u32 2147483648, %v1763_v58  ;;  %vm1934_vm11 = vweird.f32 %v1763_v58 }
 0x68a   : > { %5936 = vpow2.f32 %v2472_v18  ;;  %vm1939_vm13 = vcmp.eq.f32.partialorder %v1938_v59, 8.507059e+37 }
 0x68b   : > { %v1917_v57 = vmul.f32 %v5933_v24, %v1916_v15  ;;  %5377 = vmatmul.msk.f32.gmra.mxu0 %vm677_vm1, %v1913_v22  ;;  %v2429_v15 = vpop.xlane.xlu2 %2428 }
 0x68c   : > { %v2461_v4 = vsub.f32 %v7061_v2, %v2429_v15 }
 0x68d   : > { %v1918_v46 = vadd.f32 %v5933_v24, %v1917_v57 }
 0x68e   : > { %v5935_v13 = vpop.eup %5934  ;;  %v2474_v42 = vmul.f32 1.442695, %v2461_v4 }
 0x68f   : > { %v1922_v63 = vsel %vm1921_vm8, %v5933_v24, %v1918_v46  ;;  %v1930_v26 = vmul.f32 %v5935_v13, %v1763_v58  ;;  %vm1935_vm10 = vweird.f32 %v5935_v13  ;;  %v1941_v24 = vor.u32 1.1754944e-38, %v1940_v7 }
 0x690   : > { %v1927_v29 = vsel %vm1924_vm9, %v1926_v35, %v1922_v63  ;;  %vm1936_vm12 = vmor %vm1934_vm11, %vm1935_vm10  ;;  %5938 = vpow2.f32 %v2474_v42  ;;  %v2462_v58 = vsub.f32 %v7085_v62, %v7131_v21 }
 0x691   : > { %v1931_v55 = vsub.f32 1.0, %v1930_v26  ;;  %v1928_v20 = vmul.f32 %v7102_v10, %v1927_v29 }
 0x692   : > { %v2476_v46 = vmul.f32 1.442695, %v2462_v58 }
 0x693   : > { %5378 = vmatmul.msk.f32.vlgmr.msra.gmra.mxu1 %vm677_vm1, %v1928_v20  ;;  %5390 = vmatmul.msk.f32.vlgmr.msra.gmra.mxu0 %vm677_vm1, %v7003_v54  ;;  %v1932_v57 = vmul.f32 %v5935_v13, %v1931_v55  ;;  %v7155_v54 = vpop.eup %5936 }
 0x694   : > { %v2496_v2 = vsel %vm677_vm1, %v7155_v54, 0.0  ;;  %5940 = vpow2.f32 %v2476_v46 }
 0x695   : > { %v1933_v0 = vadd.f32 %v5935_v13, %v1932_v57 }
 0x697   : > { %v1937_v22 = vsel %vm1936_vm12, %v5935_v13, %v1933_v0  ;;  %v2435_v13 = vpop.xlane.xlu0 %2434 }
 0x698   : > { %v1942_v10 = vsel %vm1939_vm13, %v1941_v24, %v1937_v22 }
 0x699   : > { %v1943_v36 = vmul.f32 %v7106_v5, %v1942_v10  ;;  %v7163_v5 = vpop.eup %5938 }
 0x69a   : > { %v2499_v11 = vsel %vm677_vm1, %v7163_v5, 0.0  ;;  %v7170_v62 = vpop.eup %5940 }
 0x69b   : > { %5379 = vmatmul.msk.f32.gmra.mxu1 %vm677_vm1, %v1943_v36  ;;  %5391 = vmatmul.msk.f32.gmra.mxu0 %vm677_vm1, %v7036_v12  ;;  %v2463_v12 = vsub.f32 %v7094_v50, %v2435_v13  ;;  %v2502_v21 = vsel %vm677_vm1, %v7170_v62, 0.0 }
 0x69d   : > { %v2478_v35 = vmul.f32 1.442695, %v2463_v12 }
 0x69f   : > { %5942 = vpow2.f32 %v2478_v35  ;;  %v7197_v35 = vpop.f32.mrf.mxu0 }
 0x6a0   : > { %2497 = vadd.xlane.f32.xlu0 %v2496_v2 }
 0x6a3   : > { %5394 = vmatmul.msk.f32.vlgmr.msrb.gmra.mxu1 %vm677_vm1, %v7013_v19 }
 0x6a5   : > { %v7174_v19 = vpop.eup %5942 }
 0x6a6   : > { %v2505_v50 = vsel %vm677_vm1, %v7174_v19, 0.0 }
 0x6a8   : > { %2500 = vadd.xlane.f32.xlu0 %v2499_v11 }
 0x6ab   : > { %5395 = vmatmul.msk.f32.gmra.mxu1 %vm677_vm1, %v7071_v1 }
 0x6b0   : > { %2503 = vadd.xlane.f32.xlu0 %v2502_v21  ;;  %v7199_v21 = vpop.f32.mrf.mxu0 }
 0x6b8   : > { %2506 = vadd.xlane.f32.xlu0 %v2505_v50  ;;  %v7201_v50 = vpop.f32.mrf.mxu1 }
 0x6b9   : > { %v2450_v63 = vpop.xlane.xlu2 %2449 }
 0x6ba   : > { %v2468_v26 = vsub.f32 %v7111_v40, %v2450_v63  ;;  %v7203_v63 = vpop.f32.mrf.mxu0 }
 0x6bb   : > { %8649 = vst [vmem:[#allocation18_spill] sm:$0xff] %v7203_v63 }
 0x6bc   : > { %v2488_v29 = vmul.f32 1.442695, %v2468_v26 }
 0x6be   : > { %5944 = vpow2.f32 %v2488_v29 }
 0x6c0   : > { %v7205_v26 = vpop.f32.mrf.mxu1 }
 0x6c1   : > { %v2453_v55 = vpop.xlane.xlu1 %2452  ;;  %8650 = vst [vmem:[#allocation19_spill] sm:$0xff] %v7205_v26 }
 0x6c2   : > { %v2469_v1 = vsub.f32 %v7116_v60, %v2453_v55 }
 0x6c4   : > { %v7180_v20 = vpop.eup %5944  ;;  %v2490_v18 = vmul.f32 1.442695, %v2469_v1 }
 0x6c5   : > { %v2520_v7 = vsel %vm677_vm1, %v7180_v20, 0.0 }
 0x6c6   : > { %5946 = vpow2.f32 %v2490_v18  ;;  %2521 = vadd.xlane.f32.xlu1 %v2520_v7 }
 0x6cc   : > { %v7184_v15 = vpop.eup %5946 }
 0x6cd   : > { %v2456_v57 = vpop.xlane.xlu2 %2455  ;;  %v2523_v59 = vsel %vm677_vm1, %v7184_v15, 0.0 }
 0x6ce   : > { %v2470_v40 = vsub.f32 %v7121_v27, %v2456_v57  ;;  %2524 = vadd.xlane.f32.xlu2 %v2523_v59  ;;  %v7212_v57 = vld [vmem:[%s6397_s15 + $0x2] ss:$0 sm:$0xff] }
 0x6d0   : > { %v2492_v0 = vmul.f32 1.442695, %v2470_v40 }
 0x6d2   : > { %5948 = vpow2.f32 %v2492_v0 }
 0x6d5   : > { %v5680_v60 = vpop.permute.xlu2 %5679  ;;  %v7194_v27 = vpop.xlane.xlu0 %2458 }
 0x6d6   : > { %v5681_v4 = vunpack.i.l.bf16 %v5680_v60  ;;  %v5682_v22 = vunpack.i.h.bf16 %v5680_v60 }
 0x6d8   : > { %v7189_v24 = vpop.eup %5948  ;;  %2808 = vmatpush.msrb.mxu2 %v5681_v4 }
 0x6d9   : > { %v2929_v10 = vpop.permute.xlu1 %2928  ;;  %v2526_v36 = vsel %vm677_vm1, %v7189_v24, 0.0 }
 0x6da   : > { %2527 = vadd.xlane.f32.xlu1 %v2526_v36  ;;  %2809 = vmatpush.msrb.mxu2 %v5682_v22 }
 0x6dc   : > { %5416 = vmatpush.xpose.msk.msra.mxu2 %vm677_vm1, %v2929_v10 }
 0x6dd   : > { %v5690_v42 = vpop.permute.xlu2 %5689 }
 0x6de   : > { %v5691_v58 = vunpack.i.l.bf16 %v5690_v42  ;;  %v5692_v2 = vunpack.i.h.bf16 %v5690_v42 }
 0x6e0   : > { %2843 = vmatpush.msrb.mxu3 %v5691_v58 }
 0x6e2   : > { %2844 = vmatpush.msrb.mxu3 %v5692_v2 }
 0x6e5   : > { %v2927_v46 = vpop.permute.xlu2 %2926 }
 0x6e6   : > { %5417 = vmatpush.xpose.msk.msra.mxu2 %vm677_vm1, %v2927_v46 }
 0x6e8   : > { %v5685_v13 = vpop.permute.xlu0 %5684 }
 0x6e9   : > { %v5686_v12 = vunpack.i.l.bf16 %v5685_v13  ;;  %v5687_v11 = vunpack.i.h.bf16 %v5685_v13 }
 0x6eb   : > { %2738 = vmatpush.msrb.mxu0 %v5686_v12 }
 0x6ed   : > { %2739 = vmatpush.msrb.mxu0 %v5687_v11 }
 0x708   : > { %v7207_v29 = vpop.f32.mrf.mxu0 }
 0x709   : > { %8651 = vst [vmem:[#allocation20_spill] sm:$0xff] %v7207_v29 }
 0x710   : > { %v7209_v55 = vpop.f32.mrf.mxu1  ;;  %v2277_v1 = vpop.f32.mrf.mxu0 }
 0x711   : > { %8652 = vst [vmem:[#allocation21_spill] sm:$0xff] %v7209_v55  ;;  %v2404_v18 = vmul.f32 0.25, %v2277_v1 }
 0x713   : > { %v2498_v7 = vpop.xlane.xlu0 %2497  ;;  %v7215_v59 = vadd.f32 %v7212_v57, %v2404_v18 }
 0x714   : > { %5950 = vrcp.f32 %v2498_v7  ;;  %v2543_v46 = vand.u32 2147483648, %v2498_v7  ;;  %v2541_v12 = vand.u32 2147483647, %v2498_v7  ;;  %vm2537_vm15 = vweird.f32 %v2498_v7 }
 0x715   : > { %v2436_v40 = vsel %vm677_vm1, %v7215_v59, -inf }
 0x716   : > { %2437 = vmax.xlane.f32.xlu1 %v2436_v40  ;;  %vm2542_vm3 = vcmp.eq.f32.partialorder %v2541_v12, 8.507059e+37 }
 0x718   : > { %v7219_v0 = vpop.f32.mrf.mxu1  ;;  %v2280_v60 = vpop.f32.mrf.mxu0 }
 0x719   : > { %8653 = vst [vmem:[#allocation22_spill] sm:$0xff] %v7219_v0  ;;  %v2405_v4 = vmul.f32 0.25, %v2280_v60  ;;  %v2544_v60 = vor.u32 1.1754944e-38, %v2543_v46 }
 0x71a   : > { %v5951_v22 = vpop.eup %5950 }
 0x71b   : > { %v2533_v10 = vmul.f32 %v5951_v22, %v2498_v7  ;;  %v2501_v36 = vpop.xlane.xlu0 %2500  ;;  %v7222_v42 = vadd.f32 %v7212_v57, %v2405_v4  ;;  %vm2538_vm14 = vweird.f32 %v5951_v22 }
 0x71c   : > { %5952 = vrcp.f32 %v2501_v36  ;;  %vm2539_vm2 = vmor %vm2537_vm15, %vm2538_vm14  ;;  %v2558_v7 = vand.u32 2147483648, %v2501_v36  ;;  %vm2552_vm5 = vweird.f32 %v2501_v36 }
 0x71d   : > { %v2534_v58 = vsub.f32 1.0, %v2533_v10  ;;  %v2439_v2 = vsel %vm677_vm1, %v7222_v42, -inf  ;;  %v7227_v10 = vld [vmem:[%s6397_s15 + $0x3] ss:$0 sm:$0xff] }
 0x71e   : > { %2440 = vmax.xlane.f32.xlu2 %v2439_v2 }
 0x71f   : > { %v2535_v13 = vmul.f32 %v5951_v22, %v2534_v58 }
 0x720   : > { %v2316_v11 = vpop.f32.mrf.mxu1 }
 0x721   : > { %v2536_v1 = vadd.f32 %v5951_v22, %v2535_v13  ;;  %v2406_v18 = vmul.f32 0.25, %v2316_v11 }
 0x722   : > { %v5953_v40 = vpop.eup %5952 }
 0x723   : > { %v2540_v4 = vsel %vm2539_vm2, %v5951_v22, %v2536_v1  ;;  %v2548_v52 = vmul.f32 %v5953_v40, %v2501_v36  ;;  %v7230_v48 = vadd.f32 %v7227_v10, %v2406_v18  ;;  %vm2553_vm4 = vweird.f32 %v5953_v40 }
 0x724   : > { %v2545_v56 = vsel %vm2542_vm3, %v2544_v60, %v2540_v4  ;;  %v2556_v22 = vand.u32 2147483647, %v2501_v36  ;;  %v2559_v18 = vor.u32 1.1754944e-38, %v2558_v7  ;;  %vm2554_vm6 = vmor %vm2552_vm5, %vm2553_vm4 }
 0x725   : > { %v2549_v2 = vsub.f32 1.0, %v2548_v52  ;;  %v2442_v58 = vsel %vm677_vm1, %v7230_v48, -inf  ;;  %v2546_v13 = vmul.f32 %v7155_v54, %v2545_v56 }
 0x726   : > { %2443 = vmax.xlane.f32.xlu1 %v2442_v58  ;;  %vm2557_vm7 = vcmp.eq.f32.partialorder %v2556_v22, 8.507059e+37 }
 0x727   : > { %v2550_v11 = vmul.f32 %v5953_v40, %v2549_v2  ;;  %5404 = vmatmul.msk.f32.vlgmr.msrb.gmra.mxu0 %vm677_vm1, %v2546_v13 }
 0x728   : > { %v2319_v46 = vpop.f32.mrf.mxu1 }
 0x729   : > { %v2407_v12 = vmul.f32 0.25, %v2319_v46  ;;  %v2551_v1 = vadd.f32 %v5953_v40, %v2550_v11  ;;  %v2504_v46 = vpop.xlane.xlu0 %2503 }
 0x72a   : > { %v2573_v31 = vand.u32 2147483648, %v2504_v46  ;;  %vm2567_vm10 = vweird.f32 %v2504_v46 }
 0x72b   : > { %v7237_v52 = vadd.f32 %v7227_v10, %v2407_v12  ;;  %v2555_v60 = vsel %vm2554_vm6, %v5953_v40, %v2551_v1 }
 0x72c   : > { %v2560_v4 = vsel %vm2557_vm7, %v2559_v18, %v2555_v60 }
 0x72d   : > { %v2445_v56 = vsel %vm677_vm1, %v7237_v52, -inf  ;;  %v2561_v54 = vmul.f32 %v7163_v5, %v2560_v4  ;;  %v2471_v5 = vsub.f32 %v7125_v33, %v7194_v27 }
 0x72e   : > { %2446 = vmax.xlane.f32.xlu0 %v2445_v56 }
 0x72f   : > { %5405 = vmatmul.msk.f32.gmra.mxu0 %vm677_vm1, %v2561_v54  ;;  %v2494_v36 = vmul.f32 1.442695, %v2471_v5 }
 0x731   : > { %5954 = vpow2.f32 %v2494_v36  ;;  %v7282_v60 = vpop.xlane.xlu0 %2506 }
 0x732   : > { %vm2582_vm2 = vweird.f32 %v7282_v60 }
 0x736   : > { %2924 = vrot.lane.b32.xlu2 %v6327_v34, %s6166_s16  ;;  %v7257_v34 = vpop.permute.xlu1 %2922 }
 0x737   : > { %v7255_v40 = vpop.eup %5954 }
 0x738   : > { %v2529_v2 = vsel %vm677_vm1, %v7255_v40, 0.0 }
 0x73e   : > { %2965 = vrot.lane.b32.xlu2 %v6333_v37, %s6165_s28 }
 0x73f   : > { %5699 = vrot.lane.b32.xlu1 %v6805_v38, %s6163_s26  ;;  %v7261_v38 = vpop.xlane.xlu1 %2521 }
 0x740   : > { %vm2657_vm12 = vweird.f32 %v7261_v38  ;;  %v2661_v55 = vand.u32 2147483647, %v7261_v38 }
 0x742   : > { %5694 = vrot.lane.b32.xlu0 %v6865_v23, %s6163_s26  ;;  %v7267_v23 = vpop.xlane.xlu2 %2524  ;;  %vm2662_vm15 = vcmp.eq.f32.partialorder %v2661_v55, 8.507059e+37  ;;  %v2586_v55 = vand.u32 2147483647, %v7282_v60 }
 0x743   : > { %vm2672_vm5 = vweird.f32 %v7267_v23 }
 0x74a   : > { %2967 = vrot.lane.b32.xlu0 %v6339_v39, %s6165_s28 }
 0x74d   : > { %v7263_v58 = vpop.xlane.xlu1 %2527 }
 0x774   : > { %2530 = vadd.xlane.f32.xlu0 %v2529_v2 }
 0x788   : > { %3039 = vrot.lane.b32.xlu0 %v6351_v45, %s6166_s16 }
 0x789   : > { %v2438_v33 = vpop.xlane.xlu1 %2437 }
 0x78a   : > { %v2464_v27 = vsub.f32 %v7215_v59, %v2438_v33 }
 0x78c   : > { %v2480_v13 = vmul.f32 1.442695, %v2464_v27 }
 0x78e   : > { %5956 = vpow2.f32 %v2480_v13 }
 0x790   : > { %3121 = vrot.lane.b32.xlu0 %v6369_v53, %s6165_s28 }
 0x791   : > { %v2441_v7 = vpop.xlane.xlu2 %2440 }
 0x792   : > { %v2465_v11 = vsub.f32 %v7222_v42, %v2441_v7 }
 0x794   : > { %v7273_v22 = vpop.eup %5956  ;;  %v2482_v12 = vmul.f32 1.442695, %v2465_v11 }
 0x795   : > { %v2508_v1 = vsel %vm677_vm1, %v7273_v22, 0.0 }
 0x796   : > { %5958 = vpow2.f32 %v2482_v12  ;;  %2509 = vadd.xlane.f32.xlu1 %v2508_v1 }
 0x797   : > { %5960 = vrcp.f32 %v2504_v46 }
 0x798   : > { %5962 = vrcp.f32 %v7261_v38 }
 0x799   : > { %5964 = vrcp.f32 %v7282_v60  ;;  %v7295_v12 = vpop.xlane.xlu1 %2443 }
 0x79a   : > { %5966 = vrcp.f32 %v7267_v23 }
 0x79c   : > { %v7278_v59 = vpop.eup %5958 }
 0x79d   : > { %v2511_v18 = vsel %vm677_vm1, %v7278_v59, 0.0  ;;  %v5961_v42 = vpop.eup %5960 }
 0x79e   : > { %2512 = vadd.xlane.f32.xlu2 %v2511_v18  ;;  %v5963_v4 = vpop.eup %5962  ;;  %v2563_v56 = vmul.f32 %v5961_v42, %v2504_v46  ;;  %vm2568_vm8 = vweird.f32 %v5961_v42 }
 0x79f   : > { %v2653_v54 = vmul.f32 %v5963_v4, %v7261_v38  ;;  %v7287_v36 = vpop.eup %5964  ;;  %vm2658_vm9 = vweird.f32 %v5963_v4  ;;  %vm2569_vm11 = vmor %vm2567_vm10, %vm2568_vm8  ;;  %vm2587_vm8 = vcmp.eq.f32.partialorder %v2586_v55, 8.507059e+37 }
 0x7a0   : > { %v2564_v5 = vsub.f32 1.0, %v2563_v56  ;;  %v7289_v33 = vpop.eup %5966  ;;  %v2578_v13 = vmul.f32 %v7287_v36, %v7282_v60  ;;  %vm2659_vm13 = vmor %vm2657_vm12, %vm2658_vm9  ;;  %vm2583_vm3 = vweird.f32 %v7287_v36 }
 0x7a1   : > { %v2654_v2 = vsub.f32 1.0, %v2653_v54  ;;  %v2668_v11 = vmul.f32 %v7289_v33, %v7267_v23  ;;  %v7297_v1 = vpop.xlane.xlu0 %2446  ;;  %vm2673_vm4 = vweird.f32 %v7289_v33  ;;  %vm2584_vm6 = vmor %vm2582_vm2, %vm2583_vm3 }
 0x7a2   : > { %v2565_v27 = vmul.f32 %v5961_v42, %v2564_v5  ;;  %v2579_v56 = vsub.f32 1.0, %v2578_v13  ;;  %v2571_v5 = vand.u32 2147483647, %v2504_v46  ;;  %v2574_v13 = vor.u32 1.1754944e-38, %v2573_v31  ;;  %vm2674_vm7 = vmor %vm2672_vm5, %vm2673_vm4 }
 0x7a3   : > { %v2655_v7 = vmul.f32 %v5963_v4, %v2654_v2  ;;  %v2669_v54 = vsub.f32 1.0, %v2668_v11  ;;  %v2663_v2 = vand.u32 2147483648, %v7261_v38  ;;  %v7307_v38 = vpop.permute.xlu2 %2924 }
 0x7a4   : > { %v2566_v18 = vadd.f32 %v5961_v42, %v2565_v27  ;;  %v2580_v27 = vmul.f32 %v7287_v36, %v2579_v56  ;;  %vm2572_vm14 = vcmp.eq.f32.partialorder %v2571_v5, 8.507059e+37 }
 0x7a5   : > { %v2656_v0 = vadd.f32 %v5963_v4, %v2655_v7  ;;  %v2670_v11 = vmul.f32 %v7289_v33, %v2669_v54  ;;  %v2664_v63 = vor.u32 1.1754944e-38, %v2663_v2 }
 0x7a6   : > { %v2570_v29 = vsel %vm2569_vm11, %v5961_v42, %v2566_v18  ;;  %v2581_v31 = vadd.f32 %v7287_v36, %v2580_v27 }
 0x7a7   : > { %v2660_v7 = vsel %vm2659_vm13, %v5963_v4, %v2656_v0  ;;  %v2575_v46 = vsel %vm2572_vm14, %v2574_v13, %v2570_v29  ;;  %v2588_v0 = vand.u32 2147483648, %v7282_v60 }
 0x7a8   : > { %v2665_v26 = vsel %vm2662_vm15, %v2664_v63, %v2660_v7  ;;  %v2678_v63 = vand.u32 2147483648, %v7267_v23  ;;  %vm2687_vm15 = vweird.f32 %v7263_v58 }
 0x7a9   : > { %v2666_v4 = vmul.f32 %v7180_v20, %v2665_v26 }
 0x7aa   : > { %v2679_v18 = vor.u32 1.1754944e-38, %v2678_v63 }
 0x7ab   : > { %v2966_v60 = vpop.permute.xlu2 %2965 }
 0x7af   : > { %3006 = vrot.lane.b32.xlu1 %v6347_v43, %s6165_s28 }
 0x7b1   : > { %v5700_v3 = vpop.permute.xlu1 %5699 }
 0x7b2   : > { %v5701_v42 = vunpack.i.l.bf16 %v5700_v3  ;;  %v5702_v29 = vunpack.i.h.bf16 %v5700_v3  ;;  %v2589_v3 = vor.u32 1.1754944e-38, %v2588_v0 }
 0x7b4   : > { %v5695_v61 = vpop.permute.xlu0 %5694 }
 0x7b5   : > { %v5697_v17 = vunpack.i.h.bf16 %v5695_v61  ;;  %v5696_v28 = vunpack.i.l.bf16 %v5695_v61  ;;  %v2671_v61 = vadd.f32 %v7289_v33, %v2670_v11 }
 0x7b6   : > { %2961 = vrot.lane.b32.xlu2 %v6333_v37, %s6166_s16  ;;  %v2576_v37 = vmul.f32 %v7170_v62, %v2575_v46 }
 0x7b7   : > { %3004 = vrot.lane.b32.xlu1 %v6343_v41, %s6165_s28  ;;  %2773 = vmatpush.msra.mxu1 %v5696_v28  ;;  %v2676_v28 = vand.u32 2147483647, %v7267_v23  ;;  %v2675_v62 = vsel %vm2674_vm7, %v7289_v33, %v2671_v61  ;;  %v2466_v33 = vsub.f32 %v7230_v48, %v7295_v12 }
 0x7b8   : > { %2878 = vmatpush.msra.mxu0 %v5697_v17  ;;  %v2585_v17 = vsel %vm2584_vm6, %v7287_v36, %v2581_v31 }
 0x7b9   : > { %2774 = vmatpush.msra.mxu1 %v5701_v42  ;;  %v2590_v26 = vsel %vm2587_vm8, %v2589_v3, %v2585_v17  ;;  %vm2677_vm9 = vcmp.eq.f32.partialorder %v2676_v28, 8.507059e+37  ;;  %v2484_v54 = vmul.f32 1.442695, %v2466_v33 }
 0x7ba   : > { %2879 = vmatpush.msra.mxu0 %v5702_v29  ;;  %5406 = vmatmul.msk.f32.vlgmr.msra.gmra.mxu1 %vm677_vm1, %v2576_v37  ;;  %v2680_v23 = vsel %vm2677_vm9, %v2679_v18, %v2675_v62  ;;  %v2591_v36 = vmul.f32 %v7174_v19, %v2590_v26  ;;  %v2467_v19 = vsub.f32 %v7237_v52, %v7297_v1  ;;  %v2693_v18 = vand.u32 2147483648, %v7263_v58 }
 0x7bb   : > { %5412 = vmatmul.msk.f32.vlgmr.msra.gmra.mxu0 %vm677_vm1, %v2666_v4  ;;  %v2681_v56 = vmul.f32 %v7184_v15, %v2680_v23  ;;  %5968 = vpow2.f32 %v2484_v54  ;;  %v2691_v26 = vand.u32 2147483647, %v7263_v58 }
 0x7bc   : > { %v2968_v20 = vpop.permute.xlu0 %2967  ;;  %v2486_v15 = vmul.f32 1.442695, %v2467_v19 }
 0x7bd   : > { %5420 = vmatpush.xpose.msk.msra.mxu3 %vm677_vm1, %v2968_v20  ;;  %vm2692_vm6 = vcmp.eq.f32.partialorder %v2691_v26, 8.507059e+37 }
 0x7be   : > { %5704 = vrot.lane.b32.xlu2 %v6897_v32, %s6163_s26  ;;  %5970 = vpow2.f32 %v2486_v15 }
 0x7bf   : > { %5972 = vrcp.f32 %v7263_v58 }
 0x7c1   : > { %5421 = vmatpush.xpose.msk.msra.mxu3 %vm677_vm1, %v2966_v60  ;;  %v7350_v5 = vpop.eup %5968 }
 0x7c2   : > { %5407 = vmatmul.msk.f32.gmra.mxu1 %vm677_vm1, %v2591_v36 }
 0x7c3   : > { %5413 = vmatmul.msk.f32.gmra.mxu0 %vm677_vm1, %v2681_v56 }
 0x7c6   : > { %2963 = vrot.lane.b32.xlu2 %v6339_v39, %s6166_s16  ;;  %v2514_v39 = vsel %vm677_vm1, %v7350_v5, 0.0 }
 0x7ce   : > { %3002 = vrot.lane.b32.xlu2 %v6347_v43, %s6166_s16  ;;  %v7356_v43 = vpop.eup %5970 }
 0x7cf   : > { %v5973_v12 = vpop.eup %5972 }
 0x7d0   : > { %v2683_v1 = vmul.f32 %v5973_v12, %v7263_v58  ;;  %vm2688_vm14 = vweird.f32 %v5973_v12 }
 0x7d1   : > { %vm2689_vm3 = vmor %vm2687_vm15, %vm2688_vm14 }
 0x7d6   : > { %3043 = vrot.lane.b32.xlu2 %v6351_v45, %s6165_s28  ;;  %v2517_v45 = vsel %vm677_vm1, %v7356_v43, 0.0 }
 0x7de   : > { %3084 = vrot.lane.b32.xlu2 %v6363_v51, %s6165_s28 }
 0x7e1   : > { %2515 = vadd.xlane.f32.xlu1 %v2514_v39 }
 0x7e6   : > { %3078 = vrot.lane.b32.xlu2 %v6359_v49, %s6166_s16 }
 0x7e7   : > { %v7371_v52 = vpop.xlane.xlu0 %2530 }
 0x7e8   : > { %vm2702_vm9 = vweird.f32 %v7371_v52 }
 0x7e9   : > { %2518 = vadd.xlane.f32.xlu1 %v2517_v45 }
 0x7ee   : > { %3123 = vrot.lane.b32.xlu2 %v8644_v44, %s6165_s28 }
 0x7f6   : > { %3119 = vrot.lane.b32.xlu2 %v8644_v44, %s6166_s16 }
 0x802   : > { %3000 = vrot.lane.b32.xlu1 %v6343_v41, %s6166_s16  ;;  %v2684_v41 = vsub.f32 1.0, %v2683_v1  ;;  %v2708_v1 = vand.u32 2147483648, %v7371_v52 }
 0x804   : > { %v2685_v0 = vmul.f32 %v5973_v12, %v2684_v41  ;;  %v2709_v41 = vor.u32 1.1754944e-38, %v2708_v1  ;;  %v7441_v1 = vpop.f32.mrf.mxu0 }
 0x806   : > { %v2686_v28 = vadd.f32 %v5973_v12, %v2685_v0 }
 0x809   : > { %v2510_v48 = vpop.xlane.xlu1 %2509 }
 0x80a   : > { %5974 = vrcp.f32 %v2510_v48  ;;  %3045 = vrot.lane.b32.xlu1 %v6355_v47, %s6165_s28  ;;  %v2603_v11 = vand.u32 2147483648, %v2510_v48  ;;  %v2601_v31 = vand.u32 2147483647, %v2510_v48  ;;  %vm2597_vm11 = vweird.f32 %v2510_v48 }
 0x80b   : > { %5976 = vrcp.f32 %v7371_v52 }
 0x80c   : > { %v2604_v29 = vor.u32 1.1754944e-38, %v2603_v11  ;;  %vm2602_vm13 = vcmp.eq.f32.partialorder %v2601_v31, 8.507059e+37 }
 0x810   : > { %v5975_v2 = vpop.eup %5974 }
 0x811   : > { %v2593_v27 = vmul.f32 %v5975_v2, %v2510_v48  ;;  %v2513_v44 = vpop.xlane.xlu2 %2512  ;;  %v7377_v7 = vpop.eup %5976  ;;  %vm2598_vm10 = vweird.f32 %v5975_v2 }
 0x812   : > { %5978 = vrcp.f32 %v2513_v44  ;;  %3041 = vrot.lane.b32.xlu1 %v6355_v47, %s6166_s16  ;;  %v2698_v42 = vmul.f32 %v7377_v7, %v7371_v52  ;;  %vm2599_vm12 = vmor %vm2597_vm11, %vm2598_vm10  ;;  %v2618_v20 = vand.u32 2147483648, %v2513_v44  ;;  %v2616_v60 = vand.u32 2147483647, %v2513_v44 }
 0x813   : > { %v2594_v13 = vsub.f32 1.0, %v2593_v27  ;;  %vm2612_vm4 = vweird.f32 %v2513_v44  ;;  %vm2703_vm8 = vweird.f32 %v7377_v7  ;;  %v2706_v27 = vand.u32 2147483647, %v7371_v52 }
 0x814   : > { %v2699_v17 = vsub.f32 1.0, %v2698_v42  ;;  %v2619_v33 = vor.u32 1.1754944e-38, %v2618_v20  ;;  %vm2617_vm7 = vcmp.eq.f32.partialorder %v2616_v60, 8.507059e+37  ;;  %vm2704_vm10 = vmor %vm2702_vm9, %vm2703_vm8 }
 0x815   : > { %v2595_v46 = vmul.f32 %v5975_v2, %v2594_v13  ;;  %vm2707_vm11 = vcmp.eq.f32.partialorder %v2706_v27, 8.507059e+37 }
 0x816   : > { %v2700_v36 = vmul.f32 %v7377_v7, %v2699_v17 }
 0x817   : > { %v2596_v61 = vadd.f32 %v5975_v2, %v2595_v46 }
 0x818   : > { %v5979_v63 = vpop.eup %5978  ;;  %v2701_v48 = vadd.f32 %v7377_v7, %v2700_v36 }
 0x819   : > { %v2600_v37 = vsel %vm2599_vm12, %v5975_v2, %v2596_v61  ;;  %v2608_v47 = vmul.f32 %v5979_v63, %v2513_v44  ;;  %v7381_v55 = vpop.permute.xlu2 %2961  ;;  %vm2613_vm2 = vweird.f32 %v5979_v63 }
 0x81a   : > { %v2605_v4 = vsel %vm2602_vm13, %v2604_v29, %v2600_v37  ;;  %3082 = vrot.lane.b32.xlu1 %v6359_v49, %s6165_s28  ;;  %v2690_v49 = vsel %vm2689_vm3, %v5973_v12, %v2686_v28  ;;  %vm2614_vm5 = vmor %vm2612_vm4, %vm2613_vm2  ;;  %v2705_v44 = vsel %vm2704_vm10, %v7377_v7, %v2701_v48  ;;  %v3040_v37 = vpop.permute.xlu0 %3039 }
 0x81b   : > { %v2609_v3 = vsub.f32 1.0, %v2608_v47  ;;  %v2606_v62 = vmul.f32 %v7273_v22, %v2605_v4  ;;  %v2694_v22 = vor.u32 1.1754944e-38, %v2693_v18  ;;  %v2710_v52 = vsel %vm2707_vm11, %v2709_v41, %v2705_v44 }
 0x81d   : > { %v2610_v23 = vmul.f32 %v5979_v63, %v2609_v3  ;;  %5408 = vmatmul.msk.f32.vlgmr.msrb.gmra.mxu2 %vm677_vm1, %v2606_v62  ;;  %v2695_v58 = vsel %vm2692_vm6, %v2694_v22, %v2690_v49 }
 0x81f   : > { %v2611_v56 = vadd.f32 %v5979_v63, %v2610_v23 }
 0x821   : > { %v5705_v54 = vpop.permute.xlu2 %5704  ;;  %v3007_v19 = vpop.permute.xlu1 %3006  ;;  %v2615_v15 = vsel %vm2614_vm5, %v5979_v63, %v2611_v56 }
 0x822   : > { %v5706_v39 = vunpack.i.l.bf16 %v5705_v54  ;;  %3080 = vrot.lane.b32.xlu1 %v6363_v51, %s6166_s16  ;;  %5424 = vmatpush.xpose.msk.msrb.mxu0 %vm677_vm1, %v3007_v19  ;;  %v2620_v45 = vsel %vm2617_vm7, %v2619_v33, %v2615_v15  ;;  %v5707_v2 = vunpack.i.h.bf16 %v5705_v54  ;;  %v2696_v51 = vmul.f32 %v7189_v24, %v2695_v58  ;;  %v3122_v56 = vpop.permute.xlu0 %3121 }
 0x823   : > { %v2621_v12 = vmul.f32 %v7278_v59, %v2620_v45  ;;  %v2711_v24 = vmul.f32 %v7255_v40, %v2710_v52 }
 0x824   : > { %2913 = vmatpush.msrb.mxu1 %v5706_v39 }
 0x825   : > { %5409 = vmatmul.msk.f32.gmra.mxu2 %vm677_vm1, %v2621_v12 }
 0x826   : > { %2914 = vmatpush.msrb.mxu1 %v5707_v2  ;;  %v7443_v2 = vpop.f32.mrf.mxu0 }
 0x827   : > { %5414 = vmatmul.msk.f32.vlgmr.msrb.gmra.mxu1 %vm677_vm1, %v2696_v51 }
 0x829   : > { %v2964_v59 = vpop.permute.xlu2 %2963  ;;  %v3005_v13 = vpop.permute.xlu1 %3004 }
 0x82a   : > { %3117 = vrot.lane.b32.xlu1 %v6369_v53, %s6166_s16  ;;  %5425 = vmatpush.xpose.msk.msrb.mxu0 %vm677_vm1, %v3005_v13 }
 0x82d   : > { %5418 = vmatmul.msk.f32.vlgmr.msra.gmra.mxu2 %vm677_vm1, %v7257_v34 }
 0x82f   : > { %5415 = vmatmul.msk.f32.gmra.mxu1 %vm677_vm1, %v2711_v24 }
 0x831   : > { %v3003_v11 = vpop.permute.xlu2 %3002 }
 0x835   : > { %5419 = vmatmul.msk.f32.gmra.mxu2 %vm677_vm1, %v7307_v38 }
 0x837   : > { %v7445_v27 = vpop.f32.mrf.mxu1 }
 0x838   : > { %v7447_v51 = vpop.f32.mrf.mxu0 }
 0x839   : > { %v3044_v7 = vpop.permute.xlu2 %3043 }
 0x83f   : > { %v7449_v44 = vpop.f32.mrf.mxu1 }
 0x840   : > { %v7451_v41 = vpop.f32.mrf.mxu0 }
 0x841   : > { %v3085_v46 = vpop.permute.xlu2 %3084 }
 0x842   : > { %5432 = vmatpush.xpose.msk.msrb.mxu2 %vm677_vm1, %v3085_v46 }
 0x849   : > { %v3079_v61 = vpop.permute.xlu2 %3078 }
 0x851   : > { %v3124_v26 = vpop.permute.xlu2 %3123 }
 0x854   : > { %v2516_v31 = vpop.xlane.xlu1 %2515 }
 0x855   : > { %5980 = vrcp.f32 %v2516_v31  ;;  %v2633_v63 = vand.u32 2147483648, %v2516_v31  ;;  %v2631_v29 = vand.u32 2147483647, %v2516_v31  ;;  %vm2627_vm13 = vweird.f32 %v2516_v31 }
 0x857   : > { %v2634_v4 = vor.u32 1.1754944e-38, %v2633_v63  ;;  %vm2632_vm15 = vcmp.eq.f32.partialorder %v2631_v29, 8.507059e+37 }
 0x859   : > { %v3120_v45 = vpop.permute.xlu2 %3119 }
 0x85b   : > { %v5981_v53 = vpop.eup %5980 }
 0x85c   : > { %v2623_v0 = vmul.f32 %v5981_v53, %v2516_v31  ;;  %v2519_v42 = vpop.xlane.xlu1 %2518  ;;  %vm2628_vm12 = vweird.f32 %v5981_v53 }
 0x85d   : > { %5982 = vrcp.f32 %v2519_v42  ;;  %vm2629_vm14 = vmor %vm2627_vm13, %vm2628_vm12  ;;  %v2648_v20 = vand.u32 2147483648, %v2519_v42  ;;  %v2646_v60 = vand.u32 2147483647, %v2519_v42  ;;  %vm2642_vm3 = vweird.f32 %v2519_v42 }
 0x85e   : > { %v2624_v34 = vsub.f32 1.0, %v2623_v0 }
 0x85f   : > { %v2649_v36 = vor.u32 1.1754944e-38, %v2648_v20  ;;  %vm2647_vm5 = vcmp.eq.f32.partialorder %v2646_v60, 8.507059e+37 }
 0x860   : > { %v2625_v40 = vmul.f32 %v5981_v53, %v2624_v34  ;;  %v6136_v34 = vld [vmem:[%s6397_s15] ss:$0 sm:$0xff] }
 0x862   : > { %v2626_v47 = vadd.f32 %v5981_v53, %v2625_v40 }
 0x863   : > { %v5983_v38 = vpop.eup %5982 }
 0x864   : > { %v2630_v28 = vsel %vm2629_vm14, %v5981_v53, %v2626_v47  ;;  %v2638_v17 = vmul.f32 %v5983_v38, %v2519_v42  ;;  %vm2643_vm2 = vweird.f32 %v5983_v38 }
 0x865   : > { %v2635_v3 = vsel %vm2632_vm15, %v2634_v4, %v2630_v28  ;;  %vm2644_vm4 = vmor %vm2642_vm3, %vm2643_vm2 }
 0x866   : > { %v2639_v62 = vsub.f32 1.0, %v2638_v17  ;;  %v2636_v18 = vmul.f32 %v7350_v5, %v2635_v3  ;;  %v6137_v3 = vld [vmem:[%s6397_s15 + $0x1] ss:$0 sm:$0xff] }
 0x868   : > { %v2640_v23 = vmul.f32 %v5983_v38, %v2639_v62  ;;  %5410 = vmatmul.msk.f32.vlgmr.msrb.gmra.mxu3 %vm677_vm1, %v2636_v18 }
 0x869   : > { %5436 = vmatpush.xpose.msk.msrb.mxu3 %vm677_vm1, %v3124_v26 }
 0x86a   : > { %v2641_v49 = vadd.f32 %v5983_v38, %v2640_v23 }
 0x86c   : > { %v2645_v22 = vsel %vm2644_vm4, %v5983_v38, %v2641_v49 }
 0x86d   : > { %5437 = vmatpush.xpose.msk.msrb.mxu3 %vm677_vm1, %v3122_v56  ;;  %v2650_v33 = vsel %vm2647_vm5, %v2649_v36, %v2645_v22 }
 0x86e   : > { %v2651_v5 = vmul.f32 %v7356_v43, %v2650_v33 }
 0x870   : > { %5411 = vmatmul.msk.f32.gmra.mxu3 %vm677_vm1, %v2651_v5 }
 0x874   : > { %v3001_v54 = vpop.permute.xlu1 %3000 }
 0x875   : > { %5426 = vmatmul.msk.f32.vlgmr.msrb.gmra.mxu0 %vm677_vm1, %v3001_v54 }
 0x878   : > { %5422 = vmatmul.msk.f32.vlgmr.msra.gmra.mxu3 %vm677_vm1, %v7381_v55 }
 0x87c   : > { %v3046_v19 = vpop.permute.xlu1 %3045 }
 0x87d   : > { %5427 = vmatmul.msk.f32.gmra.mxu0 %vm677_vm1, %v3003_v11  ;;  %5428 = vmatpush.xpose.msk.msra.mxu1 %vm677_vm1, %v3046_v19 }
 0x880   : > { %5423 = vmatmul.msk.f32.gmra.mxu3 %vm677_vm1, %v2964_v59 }
 0x881   : > { %5429 = vmatpush.xpose.msk.msra.mxu1 %vm677_vm1, %v3044_v7 }
 0x884   : > { %v3042_v15 = vpop.permute.xlu1 %3041  ;;  %5430 = vmatmul.msk.f32.vlgmr.msra.gmra.mxu1 %vm677_vm1, %v3040_v37 }
 0x88c   : > { %v3083_v43 = vpop.permute.xlu1 %3082  ;;  %5431 = vmatmul.msk.f32.gmra.mxu1 %vm677_vm1, %v3042_v15  ;;  %v6138_v15 = vld [vmem:[%s6397_s15 + $0x4] ss:$0 sm:$0xff] }
 0x88d   : > { %5433 = vmatpush.xpose.msk.msrb.mxu2 %vm677_vm1, %v3083_v43 }
 0x890   : > { %5434 = vmatmul.msk.f32.vlgmr.msrb.gmra.mxu2 %vm677_vm1, %v3079_v61 }
 0x894   : > { %v3081_v55 = vpop.permute.xlu1 %3080 }
 0x898   : > { %5435 = vmatmul.msk.f32.gmra.mxu2 %vm677_vm1, %v3081_v55 }
 0x89c   : > { %v3118_v58 = vpop.permute.xlu1 %3117 }
 0x89d   : > { %5438 = vmatmul.msk.f32.vlgmr.msrb.gmra.mxu3 %vm677_vm1, %v3118_v58 }
 0x8a0   : > { %v7434_v39 = vpop.f32.mrf.mxu2 }
 0x8a4   : > { %v7455_v13 = vpop.f32.mrf.mxu1 }
 0x8a5   : > { %5439 = vmatmul.msk.f32.gmra.mxu3 %vm677_vm1, %v3120_v45 }
 0x8a8   : > { %v7437_v48 = vpop.f32.mrf.mxu2 }
 0x8a9   : > { %v5773_v12 = vpack.i.bf16 %v7437_v48, %v7434_v39 }
 0x8ac   : > { %v7463_v42 = vpop.f32.mrf.mxu1 }
 0x8b0   : > { %v2955_v7 = vpop.f32.mrf.mxu2 }
 0x8b1   : > { %v3156_v53 = vmul.f32 0.25, %v2955_v7 }
 0x8b3   : > { %v7466_v63 = vadd.f32 %v6136_v34, %v3156_v53 }
 0x8b5   : > { %v3180_v38 = vsel %vm677_vm1, %v7466_v63, -inf }
 0x8b8   : > { %v2958_v60 = vpop.f32.mrf.mxu2 }
 0x8b9   : > { %v3157_v36 = vmul.f32 0.25, %v2958_v60 }
 0x8bb   : > { %v3169_v22 = vadd.f32 %v6136_v34, %v3157_v36 }
 0x8bd   : > { %v3183_v55 = vsel %vm677_vm1, %v3169_v22, -inf }
 0x8eb   : > { %v7453_v59 = vpop.f32.mrf.mxu3 }
 0x8f2   : > { %v3033_v52 = vpop.f32.mrf.mxu0 }
 0x8f3   : > { %v3160_v24 = vmul.f32 0.25, %v3033_v52  ;;  %v7457_v11 = vpop.f32.mrf.mxu3 }
 0x8f4   : > { %v5788_v46 = vpack.i.bf16 %v7457_v11, %v7453_v59 }
 0x8f5   : > { %v3172_v31 = vadd.f32 %v7212_v57, %v3160_v24 }
 0x8f7   : > { %v3192_v0 = vsel %vm677_vm1, %v3172_v31, -inf }
 0x8f8   : > { %3193 = vmax.xlane.f32.xlu0 %v3192_v0 }
 0x8fa   : > { %v3036_v61 = vpop.f32.mrf.mxu0 }
 0x8fb   : > { %v3161_v40 = vmul.f32 0.25, %v3036_v61  ;;  %v2994_v29 = vpop.f32.mrf.mxu3 }
 0x8fc   : > { %v3158_v47 = vmul.f32 0.25, %v2994_v29 }
 0x8fd   : > { %v3173_v37 = vadd.f32 %v7212_v57, %v3161_v40 }
 0x8fe   : > { %v3170_v62 = vadd.f32 %v6137_v3, %v3158_v47 }
 0x8ff   : > { %v3195_v4 = vsel %vm677_vm1, %v3173_v37, -inf }
 0x900   : > { %3181 = vmax.xlane.f32.xlu0 %v3180_v38  ;;  %3196 = vmax.xlane.f32.xlu2 %v3195_v4  ;;  %v3186_v57 = vsel %vm677_vm1, %v3170_v62, -inf }
 0x901   : > { %v3072_v28 = vpop.f32.mrf.mxu1 }
 0x902   : > { %v3162_v17 = vmul.f32 0.25, %v3072_v28 }
 0x903   : > { %v2997_v33 = vpop.f32.mrf.mxu3 }
 0x904   : > { %v7474_v18 = vadd.f32 %v7227_v10, %v3162_v17  ;;  %v3159_v19 = vmul.f32 0.25, %v2997_v33 }
 0x906   : > { %v3198_v20 = vsel %vm677_vm1, %v7474_v18, -inf  ;;  %v7490_v58 = vadd.f32 %v6137_v3, %v3159_v19 }
 0x908   : > { %3187 = vmax.xlane.f32.xlu2 %v3186_v57  ;;  %3199 = vmax.xlane.f32.xlu0 %v3198_v20  ;;  %v3189_v45 = vsel %vm677_vm1, %v7490_v58, -inf }
 0x909   : > { %v3075_v26 = vpop.f32.mrf.mxu1 }
 0x90a   : > { %v3163_v23 = vmul.f32 0.25, %v3075_v26 }
 0x90c   : > { %v7480_v49 = vadd.f32 %v7227_v10, %v3163_v23 }
 0x90e   : > { %v3201_v56 = vsel %vm677_vm1, %v7480_v49, -inf }
 0x90f   : > { %3202 = vmax.xlane.f32.xlu1 %v3201_v56  ;;  %v6139_v56 = vld [vmem:[%s6397_s15 + $0x5] ss:$0 sm:$0xff] }
 0x913   : > { %v3111_v5 = vpop.f32.mrf.mxu2 }
 0x914   : > { %v3164_v54 = vmul.f32 0.25, %v3111_v5 }
 0x916   : > { %v7485_v43 = vadd.f32 %v6138_v15, %v3164_v54 }
 0x917   : > { %3184 = vmax.xlane.f32.xlu1 %v3183_v55 }
 0x918   : > { %v3204_v10 = vsel %vm677_vm1, %v7485_v43, -inf }
 0x919   : > { %3205 = vmax.xlane.f32.xlu0 %v3204_v10 }
 0x91b   : > { %v3114_v61 = vpop.f32.mrf.mxu2 }
 0x91c   : > { %v3165_v47 = vmul.f32 0.25, %v3114_v61 }
 0x91f   : > { %3190 = vmax.xlane.f32.xlu1 %v3189_v45 }
 0x920   : > { %v3150_v53 = vpop.f32.mrf.mxu3 }
 0x921   : > { %v3166_v26 = vmul.f32 0.25, %v3150_v53 }
 0x923   : > { %v7512_v54 = vadd.f32 %v6139_v56, %v3166_v26 }
 0x938   : > { %5709 = vrot.lane.b32.xlu1 %v6797_v30, %s6166_s16  ;;  %v7500_v30 = vadd.f32 %v6138_v15, %v3165_v47  ;;  %v3210_v15 = vsel %vm677_vm1, %v7512_v54, -inf }
 0x93a   : > { %v3207_v57 = vsel %vm677_vm1, %v7500_v30, -inf }
 0x96b   : > { %v3194_v52 = vpop.xlane.xlu0 %3193 }
 0x96c   : > { %v3220_v24 = vsub.f32 %v3172_v31, %v3194_v52  ;;  %v3153_v31 = vpop.f32.mrf.mxu3 }
 0x96e   : > { %v3236_v7 = vmul.f32 1.442695, %v3220_v24 }
 0x970   : > { %5984 = vpow2.f32 %v3236_v7 }
 0x973   : > { %v3197_v0 = vpop.xlane.xlu2 %3196  ;;  %v3182_v4 = vpop.xlane.xlu0 %3181 }
 0x974   : > { %v3221_v34 = vsub.f32 %v3173_v37, %v3197_v0  ;;  %v3216_v17 = vsub.f32 %v7466_v63, %v3182_v4  ;;  %v3167_v37 = vmul.f32 0.25, %v3153_v31 }
 0x976   : > { %v7496_v40 = vpop.eup %5984  ;;  %v3238_v29 = vmul.f32 1.442695, %v3221_v34  ;;  %v3228_v60 = vmul.f32 1.442695, %v3216_v17  ;;  %v7510_v33 = vadd.f32 %v6139_v56, %v3167_v37  ;;  %v5713_v17 = vpack.i.bf16 %v6600_v8, %v6603_v6 }
 0x977   : > { %v3264_v38 = vsel %vm677_vm1, %v7496_v40, 0.0 }
 0x978   : > { %3265 = vadd.xlane.f32.xlu2 %v3264_v38  ;;  %5986 = vpow2.f32 %v3238_v29  ;;  %v3213_v19 = vsel %vm677_vm1, %v7510_v33, -inf }
 0x979   : > { %5988 = vpow2.f32 %v3228_v60 }
 0x97b   : > { %v3188_v28 = vpop.xlane.xlu2 %3187  ;;  %v3200_v63 = vpop.xlane.xlu0 %3199 }
 0x97c   : > { %v3218_v20 = vsub.f32 %v3170_v62, %v3188_v28  ;;  %v3222_v62 = vsub.f32 %v7474_v18, %v3200_v63 }
 0x97e   : > { %v7503_v3 = vpop.eup %5986  ;;  %v3232_v5 = vmul.f32 1.442695, %v3218_v20  ;;  %v3240_v55 = vmul.f32 1.442695, %v3222_v62 }
 0x97f   : > { %v3267_v23 = vsel %vm677_vm1, %v7503_v3, 0.0  ;;  %v7519_v52 = vpop.eup %5988 }
 0x980   : > { %3208 = vmax.xlane.f32.xlu2 %v3207_v57  ;;  %3268 = vadd.xlane.f32.xlu0 %v3267_v23  ;;  %5990 = vpow2.f32 %v3232_v5  ;;  %v3252_v53 = vsel %vm677_vm1, %v7519_v52, 0.0 }
 0x981   : > { %5992 = vpow2.f32 %v3240_v55 }
 0x982   : > { %v3203_v36 = vpop.xlane.xlu1 %3202 }
 0x983   : > { %v3223_v18 = vsub.f32 %v7480_v49, %v3203_v36 }
 0x985   : > { %v3242_v61 = vmul.f32 1.442695, %v3223_v18 }
 0x986   : > { %v7521_v24 = vpop.eup %5990 }
 0x987   : > { %v3258_v0 = vsel %vm677_vm1, %v7521_v24, 0.0 }
 0x988   : > { %3214 = vmax.xlane.f32.xlu2 %v3213_v19  ;;  %3211 = vmax.xlane.f32.xlu0 %v3210_v15 }
 0x98a   : > { %v3185_v10 = vpop.xlane.xlu1 %3184 }
 0x98b   : > { %v3217_v45 = vsub.f32 %v3169_v22, %v3185_v10  ;;  %v7528_v22 = vpop.eup %5992 }
 0x98c   : > { %v3270_v38 = vsel %vm677_vm1, %v7528_v22, 0.0  ;;  %v3206_v8 = vpop.xlane.xlu0 %3205 }
 0x98d   : > { %v3230_v7 = vmul.f32 1.442695, %v3217_v45  ;;  %v3224_v6 = vsub.f32 %v7485_v43, %v3206_v8 }
 0x98f   : > { %5994 = vpow2.f32 %v3230_v7  ;;  %v3244_v23 = vmul.f32 1.442695, %v3224_v6 }
 0x990   : > { %3253 = vadd.xlane.f32.xlu2 %v3252_v53  ;;  %3259 = vadd.xlane.f32.xlu0 %v3258_v0  ;;  %5996 = vpow2.f32 %v3242_v61 }
 0x992   : > { %v3191_v34 = vpop.xlane.xlu1 %3190 }
 0x993   : > { %v3219_v47 = vsub.f32 %v7490_v58, %v3191_v34 }
 0x995   : > { %v7530_v29 = vpop.eup %5994  ;;  %v3234_v4 = vmul.f32 1.442695, %v3219_v47 }
 0x996   : > { %v3255_v49 = vsel %vm677_vm1, %v7530_v29, 0.0  ;;  %v7537_v31 = vpop.eup %5996 }
 0x997   : > { %3256 = vadd.xlane.f32.xlu1 %v3255_v49  ;;  %5998 = vpow2.f32 %v3234_v4  ;;  %v3273_v28 = vsel %vm677_vm1, %v7537_v31, 0.0 }
 0x998   : > { %3271 = vadd.xlane.f32.xlu2 %v3270_v38  ;;  %6000 = vpow2.f32 %v3244_v23 }
 0x99d   : > { %v7543_v58 = vpop.eup %5998 }
 0x99e   : > { %v3261_v37 = vsel %vm677_vm1, %v7543_v58, 0.0  ;;  %v7553_v60 = vpop.eup %6000 }
 0x99f   : > { %v3276_v36 = vsel %vm677_vm1, %v7553_v60, 0.0 }
 0x9a0   : > { %3274 = vadd.xlane.f32.xlu2 %v3273_v28 }
 0x9a4   : > { %5714 = vrot.lane.b32.xlu0 %v5713_v17, %s6166_s16 }
 0x9a8   : > { %3262 = vadd.xlane.f32.xlu2 %v3261_v37 }
 0x9aa   : > { %v5710_v20 = vpop.permute.xlu1 %5709 }
 0x9ab   : > { %v5711_v57 = vunpack.i.l.bf16 %v5710_v20  ;;  %v5712_v26 = vunpack.i.h.bf16 %v5710_v20 }
 0x9ad   : > { %3494 = vmatpush.msra.mxu0 %v5711_v57 }
 0x9af   : > { %3495 = vmatpush.msra.mxu0 %v5712_v26 }
 0x9b0   : > { %5719 = vrot.lane.b32.xlu1 %v6842_v16, %s6166_s16  ;;  %v5743_v16 = vpack.i.bf16 %v7443_v2, %v7441_v1 }
 0x9b8   : > { %5724 = vrot.lane.b32.xlu1 %v6913_v14, %s6166_s16 }
 0x9ce   : > { %3277 = vadd.xlane.f32.xlu0 %v3276_v36 }
 0x9e2   : > { %5734 = vrot.lane.b32.xlu0 %v6897_v32, %s6166_s16 }
 0x9ea   : > { %5744 = vrot.lane.b32.xlu0 %v5743_v16, %s6164_s25 }
 0x9eb   : > { %v7562_v14 = vpop.xlane.xlu2 %3265 }
 0x9ec   : > { %vm3353_vm5 = vweird.f32 %v7562_v14 }
 0x9f3   : > { %v3209_v56 = vpop.xlane.xlu2 %3208  ;;  %v7565_v5 = vpop.xlane.xlu0 %3268 }
 0x9f4   : > { %v3225_v43 = vsub.f32 %v7500_v30, %v3209_v56 }
 0x9f6   : > { %v3246_v63 = vmul.f32 1.442695, %v3225_v43 }
 0x9f8   : > { %6002 = vpow2.f32 %v3246_v63 }
 0x9fb   : > { %v7567_v62 = vpop.xlane.xlu2 %3214  ;;  %v3212_v19 = vpop.xlane.xlu0 %3211 }
 0x9fc   : > { %v3226_v15 = vsub.f32 %v7512_v54, %v3212_v19 }
 0x9fe   : > { %v7570_v32 = vpop.eup %6002  ;;  %v3248_v55 = vmul.f32 1.442695, %v3226_v15  ;;  %v5738_v15 = vpack.i.bf16 %v7199_v21, %v7197_v35 }
 0x9ff   : > { %v3279_v1 = vsel %vm677_vm1, %v7570_v32, 0.0 }
 0xa00   : > { %3280 = vadd.xlane.f32.xlu2 %v3279_v1  ;;  %6004 = vpow2.f32 %v3248_v55  ;;  %v5728_v1 = vpack.i.bf16 %v6663_v9, %v6657_v25 }
 0xa01   : > { %6006 = vrcp.f32 %v7562_v14 }
 0xa03   : > { %v3254_v2 = vpop.xlane.xlu2 %3253  ;;  %v3260_v30 = vpop.xlane.xlu0 %3259 }
 0xa04   : > { %6008 = vrcp.f32 %v3254_v2  ;;  %v3299_v38 = vand.u32 2147483648, %v3254_v2  ;;  %v3297_v17 = vand.u32 2147483647, %v3254_v2  ;;  %vm3293_vm7 = vweird.f32 %v3254_v2 }
 0xa05   : > { %6010 = vrcp.f32 %v3260_v30  ;;  %v3329_v23 = vand.u32 2147483648, %v3260_v30  ;;  %vm3323_vm11 = vweird.f32 %v3260_v30  ;;  %v3327_v56 = vand.u32 2147483647, %v3260_v30 }
 0xa06   : > { %v7575_v10 = vpop.eup %6004  ;;  %v3300_v8 = vor.u32 1.1754944e-38, %v3299_v38  ;;  %vm3298_vm10 = vcmp.eq.f32.partialorder %v3297_v17, 8.507059e+37 }
 0xa07   : > { %v3282_v45 = vsel %vm677_vm1, %v7575_v10, 0.0  ;;  %v7579_v54 = vpop.eup %6006  ;;  %vm3328_vm14 = vcmp.eq.f32.partialorder %v3327_v56, 8.507059e+37 }
 0xa08   : > { %3283 = vadd.xlane.f32.xlu1 %v3282_v45  ;;  %v3349_v47 = vmul.f32 %v7579_v54, %v7562_v14  ;;  %vm3354_vm3 = vweird.f32 %v7579_v54 }
 0xa0a   : > { %v6009_v7 = vpop.eup %6008  ;;  %v3257_v18 = vpop.xlane.xlu1 %3256  ;;  %v3350_v57 = vsub.f32 1.0, %v3349_v47 }
 0xa0b   : > { %v6011_v53 = vpop.eup %6010  ;;  %v3289_v0 = vmul.f32 %v6009_v7, %v3254_v2  ;;  %6012 = vrcp.f32 %v3257_v18  ;;  %v7581_v61 = vpop.xlane.xlu2 %3271  ;;  %vm3294_vm6 = vweird.f32 %v6009_v7  ;;  %vm3308_vm15 = vweird.f32 %v3257_v18 }
 0xa0c   : > { %v3319_v34 = vmul.f32 %v6011_v53, %v3260_v30  ;;  %6014 = vrcp.f32 %v7565_v5  ;;  %vm3324_vm8 = vweird.f32 %v6011_v53  ;;  %vm3295_vm9 = vmor %vm3293_vm7, %vm3294_vm6  ;;  %v3351_v45 = vmul.f32 %v7579_v54, %v3350_v57 }
 0xa0d   : > { %v3290_v49 = vsub.f32 1.0, %v3289_v0  ;;  %6016 = vrcp.f32 %v7581_v61  ;;  %vm7591_vm12 = vmor %vm3323_vm11, %vm3324_vm8  ;;  %v3314_v0 = vand.u32 2147483648, %v3257_v18  ;;  %vm3368_vm8 = vweird.f32 %v7565_v5 }
 0xa0e   : > { %v3320_v4 = vsub.f32 1.0, %v3319_v34  ;;  %v3330_v34 = vor.u32 1.1754944e-38, %v3329_v23  ;;  %v3359_v23 = vand.u32 2147483648, %v7562_v14  ;;  %vm3355_vm6 = vmor %vm3353_vm5, %vm3354_vm3 }
 0xa0f   : > { %v3291_v28 = vmul.f32 %v6009_v7, %v3290_v49  ;;  %v3312_v49 = vand.u32 2147483647, %v3257_v18 }
 0xa10   : > { %v3321_v37 = vmul.f32 %v6011_v53, %v3320_v4 }
 0xa11   : > { %v6013_v20 = vpop.eup %6012  ;;  %v3292_v26 = vadd.f32 %v6009_v7, %v3291_v28  ;;  %v3315_v28 = vor.u32 1.1754944e-38, %v3314_v0  ;;  %vm3313_vm4 = vcmp.eq.f32.partialorder %v3312_v49, 8.507059e+37  ;;  %v3389_v49 = vand.u32 2147483648, %v7581_v61 }
 0xa12   : > { %v3322_v6 = vadd.f32 %v6011_v53, %v3321_v37  ;;  %v3304_v36 = vmul.f32 %v6013_v20, %v3257_v18  ;;  %v7589_v63 = vpop.eup %6014  ;;  %vm3309_vm13 = vweird.f32 %v6013_v20  ;;  %v3352_v37 = vadd.f32 %v7579_v54, %v3351_v45 }
 0xa13   : > { %v3296_v16 = vsel %vm3295_vm9, %v6009_v7, %v3292_v26  ;;  %v7587_v43 = vpop.xlane.xlu2 %3274  ;;  %v7597_v2 = vpop.eup %6016  ;;  %v3364_v38 = vmul.f32 %v7589_v63, %v7565_v5  ;;  %vm3310_vm2 = vmor %vm3308_vm15, %vm3309_vm13  ;;  %vm3369_vm9 = vweird.f32 %v7589_v63 }
 0xa14   : > { %v3301_v19 = vsel %vm3298_vm10, %v3300_v8, %v3296_v16  ;;  %v3305_v55 = vsub.f32 1.0, %v3304_v36  ;;  %v3326_v30 = vsel %vm7591_vm12, %v6011_v53, %v3322_v6  ;;  %6018 = vrcp.f32 %v7587_v43  ;;  %vm7646_vm11 = vmor %vm3368_vm8, %vm3369_vm9 }
 0xa15   : > { %v3302_v7 = vmul.f32 %v7519_v52, %v3301_v19  ;;  %v3331_v9 = vsel %vm3328_vm14, %v3330_v34, %v3326_v30  ;;  %v3379_v53 = vmul.f32 %v7597_v2, %v7581_v61  ;;  %v3365_v57 = vsub.f32 1.0, %v3364_v38 }
 0xa16   : > { %v3306_v47 = vmul.f32 %v6013_v20, %v3305_v55  ;;  %v5715_v25 = vpop.permute.xlu0 %5714  ;;  %v3332_v26 = vmul.f32 %v7521_v24, %v3331_v9  ;;  %v3356_v56 = vsel %vm3355_vm6, %v7579_v54, %v3352_v37  ;;  %v3360_v55 = vor.u32 1.1754944e-38, %v3359_v23 }
 0xa17   : > { %5440 = vmatmul.msk.f32.vlgmr.msra.gmra.mxu0 %vm677_vm1, %v3302_v7  ;;  %v5716_v4 = vunpack.i.l.bf16 %v5715_v25  ;;  %v5717_v17 = vunpack.i.h.bf16 %v5715_v25  ;;  %v3380_v36 = vsub.f32 1.0, %v3379_v53  ;;  %v3366_v19 = vmul.f32 %v7589_v63, %v3365_v57 }
 0xa18   : > { %v3307_v52 = vadd.f32 %v6013_v20, %v3306_v47  ;;  %5729 = vrot.lane.b32.xlu2 %v5728_v1, %s6166_s16  ;;  %v3374_v30 = vand.u32 2147483648, %v7565_v5  ;;  %vm3384_vm10 = vweird.f32 %v7597_v2  ;;  %v3372_v47 = vand.u32 2147483647, %v7565_v5 }
 0xa19   : > { %3529 = vmatpush.msrb.mxu1 %v5716_v4  ;;  %v3381_v1 = vmul.f32 %v7597_v2, %v3380_v36  ;;  %v3367_v54 = vadd.f32 %v7589_v63, %v3366_v19  ;;  %vm3383_vm12 = vweird.f32 %v7581_v61  ;;  %v3387_v53 = vand.u32 2147483647, %v7581_v61 }
 0xa1a   : > { %v3311_v18 = vsel %vm3310_vm2, %v6013_v20, %v3307_v52  ;;  %v7617_v16 = vpop.eup %6018  ;;  %v3357_v20 = vand.u32 2147483647, %v7562_v14  ;;  %vm7653_vm13 = vmor %vm3383_vm12, %vm3384_vm10  ;;  %v3375_v57 = vor.u32 1.1754944e-38, %v3374_v30  ;;  %vm3373_vm15 = vcmp.eq.f32.partialorder %v3372_v47, 8.507059e+37 }
 0xa1b   : > { %v7613_v8 = vpop.xlane.xlu2 %3262  ;;  %v3316_v6 = vsel %vm3313_vm4, %v3315_v28, %v3311_v18  ;;  %3530 = vmatpush.msrb.mxu1 %v5717_v17  ;;  %v3394_v14 = vmul.f32 %v7617_v16, %v7587_v43  ;;  %v3382_v0 = vadd.f32 %v7597_v2, %v3381_v1  ;;  %v3371_v5 = vsel %vm7646_vm11, %v7589_v63, %v3367_v54  ;;  %v8660_v18 = vld [vmem:[#allocation19_spill] sm:$0xff] }
 0xa1c   : > { %6020 = vrcp.f32 %v7613_v8  ;;  %5442 = vmatmul.msk.f32.vlgmr.msrb.gmra.mxu1 %vm677_vm1, %v3332_v26  ;;  %v3317_v24 = vmul.f32 %v7530_v29, %v3316_v6  ;;  %vm3358_vm7 = vcmp.eq.f32.partialorder %v3357_v20, 8.507059e+37  ;;  %v3344_v4 = vand.u32 2147483648, %v7613_v8  ;;  %v8662_v54 = vld [vmem:[#allocation15_spill] sm:$0xff] }
 0xa1d   : > { %v3361_v7 = vsel %vm3358_vm7, %v3360_v55, %v3356_v56  ;;  %v3395_v34 = vsub.f32 1.0, %v3394_v14  ;;  %v5753_v37 = vpack.i.bf16 %v8660_v18, %v7201_v50  ;;  %v3386_v61 = vsel %vm7653_vm13, %v7597_v2, %v3382_v0 }
 0xa1e   : > { %v3362_v9 = vmul.f32 %v7496_v40, %v3361_v7  ;;  %v3342_v40 = vand.u32 2147483647, %v7613_v8  ;;  %v3390_v6 = vor.u32 1.1754944e-38, %v3389_v49  ;;  %vm3338_vm2 = vweird.f32 %v7613_v8 }
 0xa1f   : > { %5441 = vmatmul.msk.f32.gmra.mxu0 %vm677_vm1, %v3317_v24  ;;  %v3396_v26 = vmul.f32 %v7617_v16, %v3395_v34  ;;  %vm3388_vm3 = vcmp.eq.f32.partialorder %v3387_v53, 8.507059e+37  ;;  %v3345_v63 = vor.u32 1.1754944e-38, %v3344_v4  ;;  %v3376_v36 = vsel %vm3373_vm15, %v3375_v57, %v3371_v5 }
 0xa20   : > { %v3391_v20 = vsel %vm3388_vm3, %v3390_v6, %v3386_v61  ;;  %vm3343_vm5 = vcmp.eq.f32.partialorder %v3342_v40, 8.507059e+37  ;;  %vm3399_vm6 = vweird.f32 %v7617_v16  ;;  %vm3398_vm7 = vweird.f32 %v7587_v43 }
 0xa21   : > { %5739 = vrot.lane.b32.xlu1 %v5738_v15, %s6165_s28  ;;  %v3397_v56 = vadd.f32 %v7617_v16, %v3396_v26  ;;  %v3404_v15 = vand.u32 2147483648, %v7587_v43  ;;  %v3392_v1 = vmul.f32 %v7528_v22, %v3391_v20  ;;  %v3402_v14 = vand.u32 2147483647, %v7587_v43  ;;  %vm3400_vm8 = vmor %vm3398_vm7, %vm3399_vm6 }
 0xa22   : > { %v6021_v45 = vpop.eup %6020  ;;  %v5720_v29 = vpop.permute.xlu1 %5719  ;;  %v3377_v7 = vmul.f32 %v7503_v3, %v3376_v36  ;;  %v5758_v34 = vpack.i.bf16 %v7449_v44, %v7445_v27 }
 0xa23   : > { %v3334_v35 = vmul.f32 %v6021_v45, %v7613_v8  ;;  %v5721_v21 = vunpack.i.l.bf16 %v5720_v29  ;;  %v5722_v25 = vunpack.i.h.bf16 %v5720_v29  ;;  %vm3339_vm14 = vweird.f32 %v6021_v45  ;;  %v8661_v29 = vld [vmem:[#allocation2_spill] sm:$0xff] }
 0xa24   : > { %vm3340_vm4 = vmor %vm3338_vm2, %vm3339_vm14  ;;  %v3401_v22 = vsel %vm3400_vm8, %v7617_v16, %v3397_v56  ;;  %vm3403_vm9 = vcmp.eq.f32.partialorder %v3402_v14, 8.507059e+37 }
 0xa25   : > { %v3335_v38 = vsub.f32 1.0, %v3334_v35  ;;  %3564 = vmatpush.msra.mxu2 %v5721_v21  ;;  %v5768_v35 = vpack.i.bf16 %v8662_v54, %v8661_v29 }
 0xa27   : > { %v3336_v17 = vmul.f32 %v6021_v45, %v3335_v38  ;;  %3565 = vmatpush.msra.mxu2 %v5722_v25 }
 0xa28   : > { %5444 = vmatmul.msk.f32.vlgmr.msra.gmra.mxu2 %vm677_vm1, %v3362_v9 }
 0xa29   : > { %v3337_v23 = vadd.f32 %v6021_v45, %v3336_v17  ;;  %5754 = vrot.lane.b32.xlu1 %v5753_v37, %s6165_s28 }
 0xa2a   : > { %v5725_v50 = vpop.permute.xlu1 %5724 }
 0xa2b   : > { %v5726_v24 = vunpack.i.l.bf16 %v5725_v50  ;;  %v3341_v2 = vsel %vm3340_vm4, %v6021_v45, %v3337_v23  ;;  %v5727_v55 = vunpack.i.h.bf16 %v5725_v50  ;;  %v3227_v45 = vsub.f32 %v7510_v33, %v7567_v62 }
 0xa2c   : > { %v3346_v19 = vsel %vm3343_vm5, %v3345_v63, %v3341_v2 }
 0xa2d   : > { %3599 = vmatpush.msra.mxu3 %v5726_v24  ;;  %v3347_v8 = vmul.f32 %v7543_v58, %v3346_v19  ;;  %v3405_v58 = vor.u32 1.1754944e-38, %v3404_v15  ;;  %v3250_v3 = vmul.f32 1.442695, %v3227_v45 }
 0xa2f   : > { %5443 = vmatmul.msk.f32.gmra.mxu1 %vm677_vm1, %v3347_v8  ;;  %3600 = vmatpush.msra.mxu3 %v5727_v55  ;;  %v3406_v43 = vsel %vm3403_vm9, %v3405_v58, %v3401_v22  ;;  %6022 = vpow2.f32 %v3250_v3 }
 0xa30   : > { %5445 = vmatmul.msk.f32.gmra.mxu2 %vm677_vm1, %v3377_v7  ;;  %5446 = vmatmul.msk.f32.vlgmr.msra.gmra.mxu3 %vm677_vm1, %v3392_v1  ;;  %v3407_v33 = vmul.f32 %v7537_v31, %v3406_v43 }
 0xa31   : > { %5769 = vrot.lane.b32.xlu1 %v5768_v35, %s6165_s28 }
 0xa35   : > { %v7689_v62 = vpop.eup %6022 }
 0xa36   : > { %v3285_v21 = vsel %vm677_vm1, %v7689_v62, 0.0 }
 0xa38   : > { %5447 = vmatmul.msk.f32.gmra.mxu3 %vm677_vm1, %v3407_v33 }
 0xa41   : > { %3286 = vadd.xlane.f32.xlu2 %v3285_v21  ;;  %v3278_v30 = vpop.xlane.xlu0 %3277 }
 0xa42   : > { %6024 = vrcp.f32 %v3278_v30  ;;  %v3419_v53 = vand.u32 2147483648, %v3278_v30  ;;  %vm3413_vm11 = vweird.f32 %v3278_v30  ;;  %v3417_v4 = vand.u32 2147483647, %v3278_v30 }
 0xa44   : > { %v3420_v44 = vor.u32 1.1754944e-38, %v3419_v53  ;;  %vm3418_vm13 = vcmp.eq.f32.partialorder %v3417_v4, 8.507059e+37  ;;  %v5803_v53 = vpack.i.bf16 %v7451_v41, %v7447_v51  ;;  %v5597_v41 = vld [vmem:[%s8618_s4 + $0x18] sm:$0xff] }
 0xa45   : > { %5624 = vmatpush.bf16.msrb.mxu2 %v5597_v41  ;;  %5625 = vmatpush.bf16.msrb.mxu3 %v5597_v41 }
 0xa48   : > { %v6025_v31 = vpop.eup %6024 }
 0xa49   : > { %v3409_v49 = vmul.f32 %v6025_v31, %v3278_v30  ;;  %vm3414_vm10 = vweird.f32 %v6025_v31 }
 0xa4a   : > { %vm3415_vm12 = vmor %vm3413_vm11, %vm3414_vm10 }
 0xa4b   : > { %v3410_v38 = vsub.f32 1.0, %v3409_v49  ;;  %v8664_v49 = vld [vmem:[#allocation17_spill] sm:$0xff] }
 0xa4d   : > { %v3411_v25 = vmul.f32 %v6025_v31, %v3410_v38 }
 0xa4f   : > { %v3412_v52 = vadd.f32 %v6025_v31, %v3411_v25 }
 0xa51   : > { %v3416_v28 = vsel %vm3415_vm12, %v6025_v31, %v3412_v52  ;;  %v8663_v31 = vld [vmem:[#allocation16_spill] sm:$0xff]  ;;  %vm3834_vm12 = vcmask 261120  }
 0xa52   : > { %v3421_v5 = vsel %vm3418_vm13, %v3420_v44, %v3416_v28  ;;  %v5783_v38 = vpack.i.bf16 %v8664_v49, %v8663_v31  ;;  %v8665_v28 = vld [vmem:[#allocation18_spill] sm:$0xff]  ;;  %vm3847_vm13 = vcmask 392192  }
 0xa53   : > { %v3422_v6 = vmul.f32 %v7553_v60, %v3421_v5 }
 0xa54   : > { %v5735_v0 = vpop.permute.xlu0 %5734 }
 0xa55   : > { %v5736_v16 = vunpack.i.l.bf16 %v5735_v0  ;;  %v5737_v47 = vunpack.i.h.bf16 %v5735_v0 }
 0xa57   : > { %3669 = vmatpush.msra.mxu1 %v5736_v16 }
 0xa59   : > { %5759 = vrot.lane.b32.xlu2 %v5758_v34, %s6164_s25  ;;  %3670 = vmatpush.msra.mxu1 %v5737_v47 }
 0xa73   : > { %v3281_v9 = vpop.xlane.xlu2 %3280 }
 0xa74   : > { %6026 = vrcp.f32 %v3281_v9  ;;  %v3434_v61 = vand.u32 2147483648, %v3281_v9  ;;  %v3432_v63 = vand.u32 2147483647, %v3281_v9  ;;  %vm3428_vm15 = vweird.f32 %v3281_v9 }
 0xa76   : > { %v3435_v36 = vor.u32 1.1754944e-38, %v3434_v61  ;;  %vm3433_vm3 = vcmp.eq.f32.partialorder %v3432_v63, 8.507059e+37 }
 0xa7a   : > { %v6027_v27 = vpop.eup %6026 }
 0xa7b   : > { %v3424_v17 = vmul.f32 %v6027_v27, %v3281_v9  ;;  %v5730_v40 = vpop.permute.xlu2 %5729  ;;  %v3284_v37 = vpop.xlane.xlu1 %3283  ;;  %vm3429_vm14 = vweird.f32 %v6027_v27 }
 0xa7c   : > { %v5731_v18 = vunpack.i.l.bf16 %v5730_v40  ;;  %6028 = vrcp.f32 %v3284_v37  ;;  %v5732_v26 = vunpack.i.h.bf16 %v5730_v40  ;;  %vm3430_vm2 = vmor %vm3428_vm15, %vm3429_vm14  ;;  %v3449_v15 = vand.u32 2147483648, %v3284_v37  ;;  %v8668_v40 = vld [vmem:[#allocation22_spill] sm:$0xff] }
 0xa7d   : > { %v3425_v57 = vsub.f32 1.0, %v3424_v17  ;;  %v3447_v8 = vand.u32 2147483647, %v3284_v37  ;;  %vm3443_vm5 = vweird.f32 %v3284_v37  ;;  %v8667_v17 = vld [vmem:[#allocation21_spill] sm:$0xff] }
 0xa7e   : > { %3634 = vmatpush.msrb.mxu0 %v5731_v18  ;;  %v3450_v14 = vor.u32 1.1754944e-38, %v3449_v15  ;;  %v5813_v51 = vpack.i.bf16 %v8668_v40, %v8667_v17 }
 0xa7f   : > { %v3426_v23 = vmul.f32 %v6027_v27, %v3425_v57  ;;  %vm3448_vm7 = vcmp.eq.f32.partialorder %v3447_v8, 8.507059e+37  ;;  %v5745_v57 = vpop.permute.xlu0 %5744 }
 0xa80   : > { %3635 = vmatpush.msrb.mxu0 %v5732_v26 }
 0xa81   : > { %v3427_v50 = vadd.f32 %v6027_v27, %v3426_v23  ;;  %5448 = vmatmul.msk.f32.vlgmr.msrb.gmra.mxu0 %vm677_vm1, %v3422_v6  ;;  %v8669_v23 = vld [vmem:[#allocation4_spill] sm:$0xff] }
 0xa82   : > { %v6029_v20 = vpop.eup %6028  ;;  %3924 = vmatpush.bf16.msra.mxu0 %v5597_v41 }
 0xa83   : > { %v3431_v24 = vsel %vm3430_vm2, %v6027_v27, %v3427_v50  ;;  %v3439_v2 = vmul.f32 %v6029_v20, %v3284_v37  ;;  %vm3444_vm4 = vweird.f32 %v6029_v20  ;;  %v8666_v27 = vld [vmem:[#allocation20_spill] sm:$0xff]  ;;  %v8670_v50 = vld [vmem:[#allocation3_spill] sm:$0xff] }
 0xa84   : > { %v3436_v56 = vsel %vm3433_vm3, %v3435_v36, %v3431_v24  ;;  %vm3445_vm6 = vmor %vm3443_vm5, %vm3444_vm4  ;;  %v5798_v44 = vpack.i.bf16 %v8666_v27, %v8665_v28  ;;  %v5746_v24 = vunpack.i.l.bf16 %v5745_v57 }
 0xa85   : > { %v3440_v19 = vsub.f32 1.0, %v3439_v2  ;;  %v3437_v55 = vmul.f32 %v7570_v32, %v3436_v56 }
 0xa87   : > { %v3441_v60 = vmul.f32 %v6029_v20, %v3440_v19 }
 0xa89   : > { %5449 = vmatmul.msk.f32.gmra.mxu0 %vm677_vm1, %v3437_v55  ;;  %v3442_v1 = vadd.f32 %v6029_v20, %v3441_v60 }
 0xa8b   : > { %v3446_v7 = vsel %vm3445_vm6, %v6029_v20, %v3442_v1  ;;  %v5747_v20 = vunpack.i.h.bf16 %v5745_v57 }
 0xa8c   : > { %v3451_v45 = vsel %vm3448_vm7, %v3450_v14, %v3446_v7 }
 0xa8d   : > { %v3452_v29 = vmul.f32 %v7575_v10, %v3451_v45 }
 0xa8f   : > { %5450 = vmatmul.msk.f32.vlgmr.msra.gmra.mxu1 %vm677_vm1, %v3452_v29 }
 0xa93   : > { %v5740_v61 = vpop.permute.xlu1 %5739 }
 0xa94   : > { %v3497_v54 = vpop.f32.mrf.mxu0  ;;  %v5742_v26 = vunpack.i.h.bf16 %v5740_v61  ;;  %v5741_v6 = vunpack.i.l.bf16 %v5740_v61 }
 0xa96   : > { %v3823_v63 = vsel %vm677_vm1, %v8669_v23, %v5742_v26  ;;  %v3822_v36 = vsel %vm677_vm1, %v8670_v50, %v5741_v6 }
 0xa97   : > { %v3835_v15 = vsel %vm3834_vm12, %v3822_v36, %v5746_v24  ;;  %v3836_v55 = vsel %vm3834_vm12, %v3823_v63, %v5747_v20 }
 0xa99   : > { %v3532_v32 = vpop.f32.mrf.mxu1 }
 0xa9b   : > { %v5755_v1 = vpop.permute.xlu1 %5754 }
 0xa9c   : > { %v3500_v35 = vpop.f32.mrf.mxu0  ;;  %v5757_v45 = vunpack.i.h.bf16 %v5755_v1  ;;  %v5756_v29 = vunpack.i.l.bf16 %v5755_v1  ;;  %v8678_v1 = vld [vmem:[#allocation7_spill] sm:$0xff] }
 0xa9d   : > { %v5748_v22 = vpack.i.bf16 %v3500_v35, %v3497_v54 }
 0xa9f   : > { %5749 = vrot.lane.b32.xlu0 %v5748_v22, %s6161_s24 }
 0xaa3   : > { %v5770_v22 = vpop.permute.xlu1 %5769 }
 0xaa4   : > { %v5772_v31 = vunpack.i.h.bf16 %v5770_v22  ;;  %v5771_v49 = vunpack.i.l.bf16 %v5770_v22 }
 0xaab   : > { %v3567_v58 = vpop.f32.mrf.mxu2 }
 0xaac   : > { %v3535_v3 = vpop.f32.mrf.mxu1 }
 0xaad   : > { %v5763_v43 = vpack.i.bf16 %v3535_v3, %v3532_v32 }
 0xaaf   : > { %5764 = vrot.lane.b32.xlu0 %v5763_v43, %s6161_s24  ;;  %v8672_v43 = vld [vmem:[#allocation9_spill] sm:$0xff] }
 0xab3   : > { %v3570_v33 = vpop.f32.mrf.mxu2  ;;  %v3602_v21 = vpop.f32.mrf.mxu3 }
 0xab4   : > { %v5778_v30 = vpack.i.bf16 %v3570_v33, %v3567_v58  ;;  %v3287_v0 = vpop.xlane.xlu2 %3286  ;;  %v8671_v58 = vld [vmem:[#allocation10_spill] sm:$0xff]  ;;  %v3824_v33 = vsel %vm677_vm1, %v8672_v43, %v5756_v29 }
 0xab5   : > { %6030 = vrcp.f32 %v3287_v0  ;;  %v3464_v9 = vand.u32 2147483648, %v3287_v0  ;;  %v3462_v48 = vand.u32 2147483647, %v3287_v0  ;;  %vm3458_vm9 = vweird.f32 %v3287_v0 }
 0xab6   : > { %5779 = vrot.lane.b32.xlu1 %v5778_v30, %s6161_s24  ;;  %v3825_v3 = vsel %vm677_vm1, %v8671_v58, %v5757_v45 }
 0xab7   : > { %5774 = vrot.lane.b32.xlu0 %v5773_v12, %s6164_s25  ;;  %v3465_v52 = vor.u32 1.1754944e-38, %v3464_v9  ;;  %vm3463_vm11 = vcmp.eq.f32.partialorder %v3462_v48, 8.507059e+37  ;;  %v8673_v48 = vld [vmem:[#allocation6_spill] sm:$0xff] }
 0xabb   : > { %v6031_v10 = vpop.eup %6030  ;;  %v3605_v16 = vpop.f32.mrf.mxu3 }
 0xabc   : > { %v3454_v34 = vmul.f32 %v6031_v10, %v3287_v0  ;;  %v5793_v47 = vpack.i.bf16 %v3605_v16, %v3602_v21  ;;  %vm3459_vm8 = vweird.f32 %v6031_v10  ;;  %v5760_v7 = vpop.permute.xlu2 %5759 }
 0xabd   : > { %vm3460_vm10 = vmor %vm3458_vm9, %vm3459_vm8  ;;  %v5762_v54 = vunpack.i.h.bf16 %v5760_v7  ;;  %v5761_v35 = vunpack.i.l.bf16 %v5760_v7 }
 0xabe   : > { %v3455_v25 = vsub.f32 1.0, %v3454_v34  ;;  %5794 = vrot.lane.b32.xlu2 %v5793_v47, %s6161_s24  ;;  %5789 = vrot.lane.b32.xlu1 %v5788_v46, %s6164_s25  ;;  %v5818_v46 = vpack.i.bf16 %v7463_v42, %v7455_v13  ;;  %v5595_v13 = vld [vmem:[%s8618_s4 + $0x8] sm:$0xff]  ;;  %v5594_v42 = vld [vmem:[%s8618_s4] sm:$0xff] }
 0xabf   : > { %5784 = vrot.lane.b32.xlu0 %v5783_v38, %s6165_s28  ;;  %v3837_v0 = vsel %vm3834_vm12, %v3824_v33, %v5761_v35  ;;  %v7793_v33 = vld [vmem:[%s8619_s5] ss:$0 sm:$0xff] }
 0xac0   : > { %v3456_v39 = vmul.f32 %v6031_v10, %v3455_v25 }
 0xac2   : > { %v3457_v12 = vadd.f32 %v6031_v10, %v3456_v39 }
 0xac4   : > { %v3461_v4 = vsel %vm3460_vm10, %v6031_v10, %v3457_v12  ;;  %v3838_v10 = vsel %vm3834_vm12, %v3825_v3, %v5762_v54  ;;  %v3827_v12 = vsel %vm677_vm1, %v8673_v48, %v5772_v31  ;;  %v8679_v48 = vld [vmem:[#allocation14_spill] sm:$0xff] }
 0xac5   : > { %v3466_v59 = vsel %vm3463_vm11, %v3465_v52, %v3461_v4  ;;  %v8674_v52 = vld [vmem:[#allocation5_spill] sm:$0xff] }
 0xac6   : > { %5804 = vrot.lane.b32.xlu1 %v5803_v53, %s6164_s25  ;;  %v3467_v11 = vmul.f32 %v7689_v62, %v3466_v59  ;;  %v5596_v62 = vld [vmem:[%s8618_s4 + $0x10] sm:$0xff]  ;;  %v3826_v53 = vsel %vm677_vm1, %v8674_v52, %v5771_v49  ;;  %v8680_v52 = vld [vmem:[#allocation13_spill] sm:$0xff] }
 0xac7   : > { %5799 = vrot.lane.b32.xlu0 %v5798_v44, %s6165_s28  ;;  %3925 = vmatpush.bf16.msra.mxu0 %v5596_v62 }
 0xac8   : > { %5451 = vmatmul.msk.f32.gmra.mxu1 %vm677_vm1, %v3467_v11  ;;  %5626 = vmatpush.bf16.msrb.mxu2 %v5596_v62 }
 0xac9   : > { %5627 = vmatpush.bf16.msrb.mxu3 %v5596_v62  ;;  %v8675_v62 = vld [vmem:[#allocation12_spill] sm:$0xff] }
 0xacb   : > { %3926 = vmatpush.bf16.msra.mxu0 %v5595_v13 }
 0xacc   : > { %5628 = vmatpush.bf16.msrb.mxu2 %v5595_v13 }
 0xacd   : > { %5629 = vmatpush.bf16.msrb.mxu3 %v5595_v13 }
 0xace   : > { %5819 = vrot.lane.b32.xlu1 %v5818_v46, %s6164_s25 }
 0xacf   : > { %5814 = vrot.lane.b32.xlu0 %v5813_v51, %s6165_s28  ;;  %3927 = vmatpush.bf16.msra.mxu0 %v5594_v42 }
 0xad0   : > { %5630 = vmatpush.bf16.msrb.mxu2 %v5594_v42 }
 0xad1   : > { %5631 = vmatpush.bf16.msrb.mxu3 %v5594_v42  ;;  %v8676_v42 = vld [vmem:[#allocation11_spill] sm:$0xff] }
 0xafe   : > { %v3637_v5 = vpop.f32.mrf.mxu0 }
 0xb06   : > { %v3640_v18 = vpop.f32.mrf.mxu0 }
 0xb07   : > { %v5808_v37 = vpack.i.bf16 %v3640_v18, %v3637_v5 }
 0xb09   : > { %5809 = vrot.lane.b32.xlu2 %v5808_v37, %s6161_s24 }
 0xb0c   : > { %v3672_v36 = vpop.f32.mrf.mxu1 }
 0xb11   : > { %v5750_v2 = vpop.permute.xlu0 %5749 }
 0xb12   : > { %v5752_v56 = vunpack.i.h.bf16 %v5750_v2  ;;  %v5751_v19 = vunpack.i.l.bf16 %v5750_v2 }
 0xb14   : > { %v3849_v60 = vsel %vm3847_vm13, %v3836_v55, %v5752_v56  ;;  %v3848_v8 = vsel %vm3847_vm13, %v3835_v15, %v5751_v19 }
 0xb15   : > { %v3860_v14 = vpack.c.bf16 %v3849_v60, %v3848_v8  ;;  %v8677_v60 = vld [vmem:[#allocation8_spill] sm:$0xff] }
 0xb17   : > { %5468 = vmatmul.msk.bf16.vlgmr.msra.gmra.mxu0 %vm568_vm0, %v3860_v14 }
 0xb18   : > { %v5795_v18 = vpop.permute.xlu2 %5794 }
 0xb19   : > { %v5797_v6 = vunpack.i.h.bf16 %v5795_v18  ;;  %v5796_v23 = vunpack.i.l.bf16 %v5795_v18 }
 0xb21   : > { %v5765_v32 = vpop.permute.xlu0 %5764 }
 0xb22   : > { %v5767_v21 = vunpack.i.h.bf16 %v5765_v32  ;;  %v5766_v30 = vunpack.i.l.bf16 %v5765_v32 }
 0xb24   : > { %v3851_v16 = vsel %vm3847_vm13, %v3838_v10, %v5767_v21  ;;  %v3850_v34 = vsel %vm3847_vm13, %v3837_v0, %v5766_v30  ;;  %v6140_v0 = vld [vmem:[%s6283_s20] sm:$0xff] }
 0xb25   : > { %v3861_v47 = vpack.c.bf16 %v3851_v16, %v3850_v34 }
 0xb27   : > { %5469 = vmatmul.msk.bf16.gmra.mxu0 %vm568_vm0, %v3861_v47 }
 0xb28   : > { %v5780_v38 = vpop.permute.xlu1 %5779 }
 0xb29   : > { %v5775_v25 = vpop.permute.xlu0 %5774  ;;  %v5782_v4 = vunpack.i.h.bf16 %v5780_v38  ;;  %v5781_v28 = vunpack.i.l.bf16 %v5780_v38 }
 0xb2a   : > { %v5777_v9 = vunpack.i.h.bf16 %v5775_v25  ;;  %v5776_v39 = vunpack.i.l.bf16 %v5775_v25 }
 0xb2c   : > { %v3840_v27 = vsel %vm3834_vm12, %v3827_v12, %v5777_v9  ;;  %v3839_v44 = vsel %vm3834_vm12, %v3826_v53, %v5776_v39  ;;  %v6141_v9 = vld [vmem:[%s6283_s20 + $0x8] sm:$0xff] }
 0xb2d   : > { %v3853_v59 = vsel %vm3847_vm13, %v3840_v27, %v5782_v4  ;;  %v3852_v11 = vsel %vm3847_vm13, %v3839_v44, %v5781_v28 }
 0xb2e   : > { %v3862_v46 = vpack.c.bf16 %v3853_v59, %v3852_v11 }
 0xb30   : > { %5470 = vmatmul.msk.bf16.vlgmr.msrb.gmra.mxu2 %vm568_vm0, %v3862_v46  ;;  %v5790_v41 = vpop.permute.xlu1 %5789 }
 0xb31   : > { %v5785_v17 = vpop.permute.xlu0 %5784  ;;  %v5792_v37 = vunpack.i.h.bf16 %v5790_v41  ;;  %v5791_v57 = vunpack.i.l.bf16 %v5790_v41 }
 0xb32   : > { %v5787_v40 = vunpack.i.h.bf16 %v5785_v17  ;;  %v5786_v51 = vunpack.i.l.bf16 %v5785_v17 }
 0xb34   : > { %v3829_v13 = vsel %vm677_vm1, %v8675_v62, %v5787_v40  ;;  %v3828_v5 = vsel %vm677_vm1, %v8676_v42, %v5786_v51  ;;  %v6142_v42 = vld [vmem:[%s6283_s20 + $0x10] sm:$0xff] }
 0xb35   : > { %v3842_v61 = vsel %vm3834_vm12, %v3829_v13, %v5792_v37  ;;  %v3841_v26 = vsel %vm3834_vm12, %v3828_v5, %v5791_v57 }
 0xb36   : > { %v3854_v63 = vsel %vm3847_vm13, %v3841_v26, %v5796_v23  ;;  %v3855_v50 = vsel %vm3847_vm13, %v3842_v61, %v5797_v6  ;;  %v6143_v61 = vld [vmem:[%s6283_s20 + $0x18] sm:$0xff] }
 0xb37   : > { %v3863_v20 = vpack.c.bf16 %v3855_v50, %v3854_v63  ;;  %v6144_v50 = vld [vmem:[%s6283_s20 + $0x20] sm:$0xff] }
 0xb38   : > { %v5805_v55 = vpop.permute.xlu1 %5804 }
 0xb39   : > { %v5800_v56 = vpop.permute.xlu0 %5799  ;;  %v5807_v7 = vunpack.i.h.bf16 %v5805_v55  ;;  %v5806_v45 = vunpack.i.l.bf16 %v5805_v55 }
 0xb3a   : > { %v5802_v19 = vunpack.i.h.bf16 %v5800_v56  ;;  %v5801_v15 = vunpack.i.l.bf16 %v5800_v56  ;;  %v6145_v56 = vld [vmem:[%s6283_s20 + $0x28] sm:$0xff] }
 0xb3c   : > { %v3831_v8 = vsel %vm677_vm1, %v8677_v60, %v5802_v19  ;;  %v3830_v14 = vsel %vm677_vm1, %v8678_v1, %v5801_v15 }
 0xb3d   : > { %v3843_v22 = vsel %vm3834_vm12, %v3830_v14, %v5806_v45  ;;  %v3844_v32 = vsel %vm3834_vm12, %v3831_v8, %v5807_v7  ;;  %v6146_v8 = vld [vmem:[%s6283_s20 + $0x30] sm:$0xff]  ;;  %v6167_v7 = vmov 64.0  }
 0xb3e   : > { %6032 = vrcp.f32 %v6167_v7 }
 0xb40   : > { %5471 = vmatmul.msk.bf16.gmra.mxu2 %vm568_vm0, %v3863_v20  ;;  %v5820_v25 = vpop.permute.xlu1 %5819 }
 0xb41   : > { %v5815_v16 = vpop.permute.xlu0 %5814  ;;  %v5822_v4 = vunpack.i.h.bf16 %v5820_v25  ;;  %v5821_v28 = vunpack.i.l.bf16 %v5820_v25 }
 0xb42   : > { %v5817_v47 = vunpack.i.h.bf16 %v5815_v16  ;;  %v5816_v31 = vunpack.i.l.bf16 %v5815_v16 }
 0xb44   : > { %v3833_v12 = vsel %vm677_vm1, %v8679_v48, %v5817_v47  ;;  %v3832_v53 = vsel %vm677_vm1, %v8680_v52, %v5816_v31  ;;  %v6033_v45 = vpop.eup %6032 }
 0xb45   : > { %v3675_v24 = vpop.f32.mrf.mxu1  ;;  %v3845_v46 = vsel %vm3834_vm12, %v3832_v53, %v5821_v28  ;;  %v3846_v17 = vsel %vm3834_vm12, %v3833_v12, %v5822_v4  ;;  %vm4014_vm1 = vweird.f32 %v6033_v45  ;;  %v6148_v4 = vld [vmem:[%s6283_s20 + $0x40] sm:$0xff] }
 0xb46   : > { %v5823_v2 = vpack.i.bf16 %v3675_v24, %v3672_v36 }
 0xb48   : > { %5824 = vrot.lane.b32.xlu2 %v5823_v2, %s6161_s24 }
 0xb63   : > { %v5810_v29 = vpop.permute.xlu2 %5809 }
 0xb64   : > { %v5812_v54 = vunpack.i.h.bf16 %v5810_v29  ;;  %v5811_v35 = vunpack.i.l.bf16 %v5810_v29  ;;  %v4010_v29 = vmul.f32 64.0, %v6033_v45 }
 0xb66   : > { %v3857_v58 = vsel %vm3847_vm13, %v3844_v32, %v5812_v54  ;;  %v3856_v3 = vsel %vm3847_vm13, %v3843_v22, %v5811_v35  ;;  %v4011_v54 = vsub.f32 1.0, %v4010_v29 }
 0xb67   : > { %v3864_v43 = vpack.c.bf16 %v3857_v58, %v3856_v3 }
 0xb68   : > { %v4012_v35 = vmul.f32 %v6033_v45, %v4011_v54 }
 0xb69   : > { %5472 = vmatmul.msk.bf16.vlgmr.msrb.gmra.mxu3 %vm568_vm0, %v3864_v43 }
 0xb6a   : > { %v4013_v22 = vadd.f32 %v6033_v45, %v4012_v35  ;;  %v5500_v35 = vld [vmem:[%s8622_s8 + $0x30] sm:$0xf] }
 0xb6c   : > { %v7843_v32 = vsel %vm4014_vm1, %v6033_v45, %v4013_v22  ;;  %v5605_v22 = vld [vmem:[%s8622_s8 + $0x34] sm:$0xf0] }
 0xb94   : > { %v3929_v21 = vpop.f32.mrf.mxu0 }
 0xb95   : > { %v3930_v30 = vadd.f32 %v7793_v33, %v3929_v21 }
 0xb97   : > { %v7797_v10 = vadd.f32 %v6140_v0, %v3930_v30 }
 0xb99   : > { %v3973_v34 = vsel %vm568_vm0, %v7797_v10, 0.0 }
 0xb9a   : > { %3974 = vadd.xlane.f32.xlu0 %v3973_v34 }
 0xb9c   : > { %v3931_v49 = vpop.f32.mrf.mxu0 }
 0xb9d   : > { %v3932_v38 = vadd.f32 %v7793_v33, %v3931_v49  ;;  %v6147_v49 = vld [vmem:[%s6283_s20 + $0x38] sm:$0xff] }
 0xb9f   : > { %v7803_v39 = vadd.f32 %v6141_v9, %v3932_v38 }
 0xba1   : > { %v3976_v44 = vsel %vm568_vm0, %v7803_v39, 0.0 }
 0xba2   : > { %v5825_v27 = vpop.permute.xlu2 %5824  ;;  %3977 = vadd.xlane.f32.xlu1 %v3976_v44 }
 0xba3   : > { %v5827_v59 = vunpack.i.h.bf16 %v5825_v27  ;;  %v5826_v11 = vunpack.i.l.bf16 %v5825_v27 }
 0xba4   : > { %v3934_v41 = vpop.f32.mrf.mxu0 }
 0xba5   : > { %v3859_v40 = vsel %vm3847_vm13, %v3846_v17, %v5827_v59  ;;  %v3858_v51 = vsel %vm3847_vm13, %v3845_v46, %v5826_v11  ;;  %v3935_v13 = vadd.f32 %v7793_v33, %v3934_v41 }
 0xba6   : > { %v3865_v62 = vpack.c.bf16 %v3859_v40, %v3858_v51  ;;  %v6149_v51 = vld [vmem:[%s6283_s20 + $0x48] sm:$0xff] }
 0xba7   : > { %v3961_v5 = vadd.f32 %v6142_v42, %v3935_v13 }
 0xba8   : > { %5473 = vmatmul.msk.bf16.gmra.mxu3 %vm568_vm0, %v3865_v62 }
 0xba9   : > { %v3979_v18 = vsel %vm568_vm0, %v3961_v5, 0.0 }
 0xbaa   : > { %3980 = vadd.xlane.f32.xlu2 %v3979_v18 }
 0xbac   : > { %v3936_v37 = vpop.f32.mrf.mxu0 }
 0xbad   : > { %v3937_v57 = vadd.f32 %v7793_v33, %v3936_v37 }
 0xbaf   : > { %v7821_v26 = vadd.f32 %v6143_v61, %v3937_v57 }
 0xbb1   : > { %v3982_v6 = vsel %vm568_vm0, %v7821_v26, 0.0 }
 0xbb2   : > { %3983 = vadd.xlane.f32.xlu0 %v3982_v6  ;;  %v6150_v6 = vld [vmem:[%s6283_s20 + $0x50] sm:$0xff] }
 0xbb3   : > { %v3939_v23 = vpop.f32.mrf.mxu2 }
 0xbb4   : > { %v3940_v63 = vadd.f32 %v7793_v33, %v3939_v23 }
 0xbb6   : > { %v7827_v36 = vadd.f32 %v6144_v50, %v3940_v63 }
 0xbb8   : > { %v3985_v20 = vsel %vm568_vm0, %v7827_v36, 0.0 }
 0xbb9   : > { %3986 = vadd.xlane.f32.xlu1 %v3985_v20 }
 0xbbb   : > { %v3941_v24 = vpop.f32.mrf.mxu2 }
 0xbbc   : > { %v3942_v2 = vadd.f32 %v7793_v33, %v3941_v24 }
 0xbbe   : > { %v7833_v19 = vadd.f32 %v6145_v56, %v3942_v2 }
 0xbc0   : > { %v3988_v15 = vsel %vm568_vm0, %v7833_v19, 0.0 }
 0xbc1   : > { %3989 = vadd.xlane.f32.xlu2 %v3988_v15 }
 0xbc3   : > { %v3944_v55 = vpop.f32.mrf.mxu2 }
 0xbc4   : > { %v3945_v60 = vadd.f32 %v7793_v33, %v3944_v55  ;;  %v6151_v55 = vld [vmem:[%s6283_s20 + $0x58] sm:$0xff]  ;;  %s8543_s20 = scalar_lea.vmem %s8628_s14, %s5584_s18 }
 0xbc6   : > { %v7839_v1 = vadd.f32 %v6146_v8, %v3945_v60 }
 0xbc8   : > { %v3991_v14 = vsel %vm568_vm0, %v7839_v1, 0.0 }
 0xbc9   : > { %3992 = vadd.xlane.f32.xlu2 %v3991_v14 }
 0xbcb   : > { %v3946_v21 = vpop.f32.mrf.mxu2 }
 0xbcc   : > { %v3947_v0 = vadd.f32 %v7793_v33, %v3946_v21 }
 0xbce   : > { %v7855_v38 = vadd.f32 %v6147_v49, %v3947_v0  ;;  %v5603_v0 = vld [vmem:[%s8622_s8 + $0x24] sm:$0xf0]  ;;  %v5484_v49 = vld [vmem:[%s8622_s8 + $0x10] sm:$0xf] }
 0xbd0   : > { %v3994_v12 = vsel %vm568_vm0, %v7855_v38, 0.0 }
 0xbec   : > { %v3949_v31 = vpop.f32.mrf.mxu3 }
 0xbed   : > { %v3950_v9 = vadd.f32 %v7793_v33, %v3949_v31 }
 0xbef   : > { %v7868_v28 = vadd.f32 %v6148_v4, %v3950_v9  ;;  %v5600_v9 = vld [vmem:[%s8622_s8 + $0x14] sm:$0xf] }
 0xbf1   : > { %v3997_v46 = vsel %vm568_vm0, %v7868_v28, 0.0 }
 0xbf4   : > { %v3951_v27 = vpop.f32.mrf.mxu3 }
 0xbf5   : > { %v3952_v59 = vadd.f32 %v7793_v33, %v3951_v27 }
 0xbf7   : > { %v7880_v41 = vadd.f32 %v6149_v51, %v3952_v59  ;;  %v5599_v59 = vld [vmem:[%s8622_s8 + $0x4] sm:$0xf0] }
 0xbf9   : > { %v4000_v57 = vsel %vm568_vm0, %v7880_v41, 0.0 }
 0xc0d   : > { %v3975_v58 = vpop.xlane.xlu0 %3974 }
 0xc0e   : > { %v4016_v3 = vmul.f32 %v7843_v32, %v3975_v58  ;;  %v5604_v58 = vld [vmem:[%s8622_s8 + $0x34] sm:$0xf] }
 0xc10   : > { %v7847_v43 = vsub.f32 %v7797_v10, %v4016_v3  ;;  %v5502_v3 = vld [vmem:[%s8622_s8 + $0x38] sm:$0xf0] }
 0xc11   : > { %v5505_v21 = vor.u32 %v5604_v58, %v5502_v3 }
 0xc12   : > { %v4040_v30 = vmul.f32 %v7847_v43, %v7847_v43 }
 0xc13   : > { %4395 = vmatpush.bf16.msrb.mxu0 %v5505_v21 }
 0xc14   : > { %v4052_v16 = vsel %vm568_vm0, %v4040_v30, 0.0  ;;  %v5492_v30 = vld [vmem:[%s8622_s8 + $0x20] sm:$0xf] }
 0xc15   : > { %v3978_v34 = vpop.xlane.xlu1 %3977  ;;  %4053 = vadd.xlane.f32.xlu0 %v4052_v16  ;;  %v5602_v16 = vld [vmem:[%s8622_s8 + $0x24] sm:$0xf] }
 0xc16   : > { %v4017_v47 = vmul.f32 %v7843_v32, %v3978_v34  ;;  %v5493_v34 = vor.u32 %v5603_v0, %v5492_v30  ;;  %v7993_v0 = vld [vmem:[%s8620_s6] ss:$0 sm:$0xff] }
 0xc18   : > { %v7858_v10 = vsub.f32 %v7803_v39, %v4017_v47  ;;  %v5494_v47 = vld [vmem:[%s8622_s8 + $0x28] sm:$0xf0] }
 0xc19   : > { %v5497_v31 = vor.u32 %v5602_v16, %v5494_v47 }
 0xc1a   : > { %v4041_v25 = vmul.f32 %v7858_v10, %v7858_v10 }
 0xc1b   : > { %4396 = vmatpush.bf16.msrb.mxu0 %v5497_v31 }
 0xc1c   : > { %v4055_v48 = vsel %vm568_vm0, %v4041_v25, 0.0  ;;  %v5601_v25 = vld [vmem:[%s8622_s8 + $0x14] sm:$0xf0] }
 0xc1d   : > { %v3981_v52 = vpop.xlane.xlu2 %3980  ;;  %4056 = vadd.xlane.f32.xlu1 %v4055_v48  ;;  %3995 = vadd.xlane.f32.xlu0 %v3994_v12  ;;  %v5485_v12 = vor.u32 %v5601_v25, %v5484_v49 }
 0xc1e   : > { %v4018_v53 = vmul.f32 %v7843_v32, %v3981_v52  ;;  %v5486_v52 = vld [vmem:[%s8622_s8 + $0x18] sm:$0xf0] }
 0xc1f   : > { %v5489_v4 = vor.u32 %v5600_v9, %v5486_v52 }
 0xc20   : > { %v7870_v39 = vsub.f32 %v3961_v5, %v4018_v53 }
 0xc21   : > { %4397 = vmatpush.bf16.msrb.mxu0 %v5489_v4 }
 0xc22   : > { %v4042_v44 = vmul.f32 %v7870_v39, %v7870_v39 }
 0xc24   : > { %v4058_v11 = vsel %vm568_vm0, %v4042_v44, 0.0  ;;  %v5476_v44 = vld [vmem:[%s8622_s8] sm:$0xf] }
 0xc25   : > { %4059 = vadd.xlane.f32.xlu1 %v4058_v11  ;;  %3998 = vadd.xlane.f32.xlu0 %v3997_v46  ;;  %v3984_v17 = vpop.xlane.xlu0 %3983  ;;  %v5477_v11 = vor.u32 %v5599_v59, %v5476_v44  ;;  %v5598_v46 = vld [vmem:[%s8622_s8 + $0x4] sm:$0xf] }
 0xc26   : > { %v4019_v40 = vmul.f32 %v7843_v32, %v3984_v17  ;;  %v5478_v17 = vld [vmem:[%s8622_s8 + $0x8] sm:$0xf0] }
 0xc28   : > { %v7883_v62 = vsub.f32 %v7821_v26, %v4019_v40  ;;  %v5481_v40 = vor.u32 %v5598_v46, %v5478_v17 }
 0xc2a   : > { %v4043_v42 = vmul.f32 %v7883_v62, %v7883_v62  ;;  %4398 = vmatpush.bf16.msrb.mxu0 %v5481_v40 }
 0xc2b   : > { %v3954_v13 = vpop.f32.mrf.mxu3 }
 0xc2c   : > { %v3987_v5 = vpop.xlane.xlu1 %3986  ;;  %v3955_v18 = vadd.f32 %v7793_v33, %v3954_v13  ;;  %v4061_v61 = vsel %vm568_vm0, %v4043_v42, 0.0 }
 0xc2d   : > { %v4020_v37 = vmul.f32 %v7843_v32, %v3987_v5  ;;  %4001 = vadd.xlane.f32.xlu1 %v4000_v57  ;;  %4062 = vadd.xlane.f32.xlu2 %v4061_v61 }
 0xc2e   : > { %v7896_v23 = vadd.f32 %v6150_v6, %v3955_v18 }
 0xc2f   : > { %v7893_v26 = vsub.f32 %v7827_v36, %v4020_v37 }
 0xc30   : > { %v4003_v15 = vsel %vm568_vm0, %v7896_v23, 0.0 }
 0xc31   : > { %v4044_v63 = vmul.f32 %v7893_v26, %v7893_v26 }
 0xc33   : > { %v3956_v50 = vpop.f32.mrf.mxu3  ;;  %v4064_v20 = vsel %vm568_vm0, %v4044_v63, 0.0 }
 0xc34   : > { %v3990_v24 = vpop.xlane.xlu2 %3989  ;;  %v3957_v2 = vadd.f32 %v7793_v33, %v3956_v50 }
 0xc35   : > { %v4021_v56 = vmul.f32 %v7843_v32, %v3990_v24  ;;  %4004 = vadd.xlane.f32.xlu1 %v4003_v15  ;;  %4065 = vadd.xlane.f32.xlu2 %v4064_v20 }
 0xc36   : > { %v7909_v60 = vadd.f32 %v6151_v55, %v3957_v2 }
 0xc37   : > { %v7906_v36 = vsub.f32 %v7833_v19, %v4021_v56 }
 0xc38   : > { %v4006_v45 = vsel %vm568_vm0, %v7909_v60, 0.0 }
 0xc39   : > { %v4045_v8 = vmul.f32 %v7906_v36, %v7906_v36 }
 0xc3b   : > { %v4067_v14 = vsel %vm568_vm0, %v4045_v8, 0.0 }
 0xc3c   : > { %v3993_v7 = vpop.xlane.xlu2 %3992  ;;  %4068 = vadd.xlane.f32.xlu0 %v4067_v14 }
 0xc3d   : > { %v4022_v33 = vmul.f32 %v7843_v32, %v3993_v7  ;;  %4007 = vadd.xlane.f32.xlu2 %v4006_v45 }
 0xc3f   : > { %v7918_v29 = vsub.f32 %v7839_v1, %v4022_v33  ;;  %v5501_v1 = vor.u32 %v5605_v22, %v5500_v35 }
 0xc41   : > { %v4046_v19 = vmul.f32 %v7918_v29, %v7918_v29  ;;  %4356 = vmatpush.bf16.msra.mxu3 %v5501_v1 }
 0xc43   : > { %v4070_v54 = vsel %vm568_vm0, %v4046_v19, 0.0 }
 0xc44   : > { %4071 = vadd.xlane.f32.xlu0 %v4070_v54 }
 0xc45   : > { %4357 = vmatpush.bf16.msra.mxu3 %v5493_v34 }
 0xc49   : > { %4358 = vmatpush.bf16.msra.mxu3 %v5485_v12  ;;  %v8004_v12 = vld [vmem:[%s8621_s7] ss:$0 sm:$0xff] }
 0xc4d   : > { %4359 = vmatpush.bf16.msra.mxu3 %v5477_v11 }
 0xc88   : > { %v4054_v48 = vpop.xlane.xlu0 %4053 }
 0xc89   : > { %v4088_v53 = vmul.f32 %v4054_v48, %v7843_v32 }
 0xc8b   : > { %v4100_v27 = vadd.f32 1e-12, %v4088_v53 }
 0xc8d   : > { %6034 = vrsqrt.f32 %v4100_v27  ;;  %vm4118_vm15 = vweird.f32 %v4100_v27 }
 0xc90   : > { %v4057_v51 = vpop.xlane.xlu1 %4056  ;;  %v3996_v13 = vpop.xlane.xlu0 %3995 }
 0xc91   : > { %v4089_v42 = vmul.f32 %v4057_v51, %v7843_v32  ;;  %v4023_v5 = vmul.f32 %v7843_v32, %v3996_v13 }
 0xc93   : > { %v6035_v18 = vpop.eup %6034  ;;  %v4101_v37 = vadd.f32 1e-12, %v4089_v42  ;;  %v7975_v57 = vsub.f32 %v7855_v38, %v4023_v5 }
 0xc94   : > { %v4113_v61 = vmul.f32 %v6035_v18, %v4100_v27  ;;  %vm4119_vm14 = vweird.f32 %v6035_v18 }
 0xc95   : > { %6036 = vrsqrt.f32 %v4101_v37  ;;  %v4047_v6 = vmul.f32 %v7975_v57, %v7975_v57  ;;  %vm4120_vm2 = vmor %vm4118_vm15, %vm4119_vm14  ;;  %vm4128_vm4 = vweird.f32 %v4101_v37 }
 0xc96   : > { %v4114_v63 = vmul.f32 %v6035_v18, %v4113_v61 }
 0xc97   : > { %v4073_v50 = vsel %vm568_vm0, %v4047_v6, 0.0 }
 0xc98   : > { %v4115_v20 = vmul.f32 0.5, %v4114_v63  ;;  %v4060_v24 = vpop.xlane.xlu1 %4059  ;;  %4074 = vadd.xlane.f32.xlu1 %v4073_v50  ;;  %v3999_v2 = vpop.xlane.xlu0 %3998 }
 0xc99   : > { %v4090_v56 = vmul.f32 %v4060_v24, %v7843_v32  ;;  %v4024_v15 = vmul.f32 %v7843_v32, %v3999_v2 }
 0xc9a   : > { %v4116_v55 = vsub.f32 1.5, %v4115_v20 }
 0xc9b   : > { %v6037_v8 = vpop.eup %6036  ;;  %v4102_v38 = vadd.f32 1e-12, %v4090_v56  ;;  %v7983_v14 = vsub.f32 %v7868_v28, %v4024_v15 }
 0xc9c   : > { %v4117_v7 = vmul.f32 %v6035_v18, %v4116_v55  ;;  %v4123_v33 = vmul.f32 %v6037_v8, %v4101_v37  ;;  %vm4129_vm3 = vweird.f32 %v6037_v8 }
 0xc9d   : > { %6038 = vrsqrt.f32 %v4102_v38  ;;  %v4048_v45 = vmul.f32 %v7983_v14, %v7983_v14  ;;  %vm4130_vm5 = vmor %vm4128_vm4, %vm4129_vm3  ;;  %vm4138_vm7 = vweird.f32 %v4102_v38 }
 0xc9e   : > { %v4124_v19 = vmul.f32 %v6037_v8, %v4123_v33  ;;  %v4121_v35 = vsel %vm4120_vm2, %v6035_v18, %v4117_v7 }
 0xc9f   : > { %v4076_v54 = vsel %vm568_vm0, %v4048_v45, 0.0  ;;  %v4232_v16 = vmul.f32 %v4121_v35, %v7847_v43 }
 0xca0   : > { %v4125_v22 = vmul.f32 0.5, %v4124_v19  ;;  %v4002_v58 = vpop.xlane.xlu1 %4001  ;;  %v4063_v1 = vpop.xlane.xlu2 %4062  ;;  %4077 = vadd.xlane.f32.xlu2 %v4076_v54 }
 0xca1   : > { %v4025_v28 = vmul.f32 %v7843_v32, %v4002_v58  ;;  %v4091_v3 = vmul.f32 %v4063_v1, %v7843_v32  ;;  %v4247_v43 = vmul.f32 %v7993_v0, %v4232_v16 }
 0xca2   : > { %v4126_v21 = vsub.f32 1.5, %v4125_v22 }
 0xca3   : > { %v6039_v30 = vpop.eup %6038  ;;  %v7997_v34 = vsub.f32 %v7880_v41, %v4025_v28  ;;  %v4103_v47 = vadd.f32 1e-12, %v4091_v3  ;;  %v8013_v40 = vadd.f32 %v8004_v12, %v4247_v43 }
 0xca4   : > { %v4127_v31 = vmul.f32 %v6037_v8, %v4126_v21  ;;  %v4133_v49 = vmul.f32 %v6039_v30, %v4102_v38  ;;  %vm4139_vm6 = vweird.f32 %v6039_v30 }
 0xca5   : > { %6040 = vrsqrt.f32 %v4103_v47  ;;  %v4049_v25 = vmul.f32 %v7997_v34, %v7997_v34  ;;  %vm4140_vm8 = vmor %vm4138_vm7, %vm4139_vm6  ;;  %vm4148_vm10 = vweird.f32 %v4103_v47 }
 0xca6   : > { %v4131_v9 = vsel %vm4130_vm5, %v6037_v8, %v4127_v31  ;;  %v4134_v48 = vmul.f32 %v6039_v30, %v4133_v49 }
 0xca7   : > { %v4233_v41 = vmul.f32 %v4131_v9, %v7858_v10  ;;  %v4079_v52 = vsel %vm568_vm0, %v4049_v25, 0.0 }
 0xca8   : > { %v4135_v53 = vmul.f32 0.5, %v4134_v48  ;;  %v4005_v4 = vpop.xlane.xlu1 %4004  ;;  %4080 = vadd.xlane.f32.xlu0 %v4079_v52  ;;  %v4066_v27 = vpop.xlane.xlu2 %4065 }
 0xca9   : > { %v4248_v44 = vmul.f32 %v7993_v0, %v4233_v41  ;;  %v4026_v59 = vmul.f32 %v7843_v32, %v4005_v4  ;;  %v4092_v11 = vmul.f32 %v4066_v27, %v7843_v32 }
 0xcaa   : > { %v4136_v46 = vsub.f32 1.5, %v4135_v53 }
 0xcab   : > { %v6041_v17 = vpop.eup %6040  ;;  %v8016_v51 = vadd.f32 %v8004_v12, %v4248_v44  ;;  %v8019_v10 = vsub.f32 %v7896_v23, %v4026_v59  ;;  %v4104_v13 = vadd.f32 1e-12, %v4092_v11 }
 0xcac   : > { %v4137_v42 = vmul.f32 %v6039_v30, %v4136_v46  ;;  %v4143_v5 = vmul.f32 %v6041_v17, %v4103_v47  ;;  %vm4149_vm9 = vweird.f32 %v6041_v17 }
 0xcad   : > { %v4274_v18 = vpack.c.bf16 %v8016_v51, %v8013_v40  ;;  %6042 = vrsqrt.f32 %v4104_v13  ;;  %v4050_v37 = vmul.f32 %v8019_v10, %v8019_v10  ;;  %vm4150_vm11 = vmor %vm4148_vm10, %vm4149_vm9  ;;  %vm4158_vm13 = vweird.f32 %v4104_v13 }
 0xcae   : > { %v4144_v61 = vmul.f32 %v6041_v17, %v4143_v5  ;;  %v4141_v50 = vsel %vm4140_vm8, %v6039_v30, %v4137_v42 }
 0xcaf   : > { %v4069_v6 = vpop.xlane.xlu0 %4068  ;;  %5506 = vmatmul.msk.bf16.vlgmr.msra.gmra.mxu3 %vm568_vm0, %v4274_v18  ;;  %5512 = vmatmul.msk.bf16.vlgmr.msrb.gmra.mxu0 %vm568_vm0, %v4274_v18  ;;  %v4082_v63 = vsel %vm568_vm0, %v4050_v37, 0.0  ;;  %v4234_v8 = vmul.f32 %v4141_v50, %v7870_v39  ;;  %v5621_v37 = vld [vmem:[%s8624_s10 + $0x78] sm:$0xff] }
 0xcb0   : > { %v4093_v23 = vmul.f32 %v4069_v6, %v7843_v32  ;;  %v4145_v20 = vmul.f32 0.5, %v4144_v61  ;;  %v4008_v24 = vpop.xlane.xlu2 %4007  ;;  %4083 = vadd.xlane.f32.xlu1 %v4082_v63  ;;  %4829 = vmatpush.bf16.msra.mxu2 %v5621_v37  ;;  %v5620_v63 = vld [vmem:[%s8624_s10 + $0x70] sm:$0xff] }
 0xcb1   : > { %v4027_v56 = vmul.f32 %v7843_v32, %v4008_v24  ;;  %v4249_v58 = vmul.f32 %v7993_v0, %v4234_v8 }
 0xcb2   : > { %v4105_v2 = vadd.f32 1e-12, %v4093_v23  ;;  %v4146_v15 = vsub.f32 1.5, %v4145_v20 }
 0xcb3   : > { %v6043_v55 = vpop.eup %6042  ;;  %v8032_v38 = vsub.f32 %v7909_v60, %v4027_v56  ;;  %v8041_v21 = vadd.f32 %v8004_v12, %v4249_v58  ;;  %v5613_v56 = vld [vmem:[%s8624_s10 + $0x38] sm:$0xff] }
 0xcb4   : > { %6044 = vrsqrt.f32 %v4105_v2  ;;  %v4147_v7 = vmul.f32 %v6041_v17, %v4146_v15  ;;  %v4153_v33 = vmul.f32 %v6043_v55, %v4104_v13  ;;  %vm4159_vm12 = vweird.f32 %v6043_v55  ;;  %4830 = vmatpush.bf16.msra.mxu2 %v5620_v63  ;;  %4790 = vmatpush.bf16.msrb.mxu1 %v5613_v56 }
 0xcb5   : > { %v4051_v45 = vmul.f32 %v8032_v38, %v8032_v38  ;;  %vm4160_vm1 = vmor %vm4158_vm13, %vm4159_vm12  ;;  %vm4168_vm15 = vweird.f32 %v4105_v2 }
 0xcb6   : > { %v4151_v19 = vsel %vm4150_vm11, %v6041_v17, %v4147_v7  ;;  %v4154_v54 = vmul.f32 %v6043_v55, %v4153_v33 }
 0xcb7   : > { %v4235_v35 = vmul.f32 %v4151_v19, %v7883_v62  ;;  %v4085_v22 = vsel %vm568_vm0, %v4051_v45, 0.0  ;;  %v5612_v45 = vld [vmem:[%s8624_s10 + $0x30] sm:$0xff] }
 0xcb8   : > { %v4155_v39 = vmul.f32 0.5, %v4154_v54  ;;  %4086 = vadd.xlane.f32.xlu2 %v4085_v22  ;;  %4791 = vmatpush.bf16.msrb.mxu1 %v5612_v45  ;;  %v5607_v45 = vld [vmem:[%s8624_s10 + $0x8] sm:$0xff] }
 0xcb9   : > { %v4250_v60 = vmul.f32 %v7993_v0, %v4235_v35  ;;  %v5618_v35 = vld [vmem:[%s8624_s10 + $0x60] sm:$0xff] }
 0xcba   : > { %v6045_v1 = vpop.eup %6044  ;;  %v4156_v28 = vsub.f32 1.5, %v4155_v39 }
 0xcbb   : > { %v4163_v3 = vmul.f32 %v6045_v1, %v4105_v2  ;;  %v8044_v30 = vadd.f32 %v8004_v12, %v4250_v60  ;;  %vm4169_vm14 = vweird.f32 %v6045_v1 }
 0xcbc   : > { %v4157_v16 = vmul.f32 %v6043_v55, %v4156_v28  ;;  %vm4170_vm2 = vmor %vm4168_vm15, %vm4169_vm14  ;;  %v5611_v28 = vld [vmem:[%s8624_s10 + $0x28] sm:$0xff] }
 0xcbd   : > { %v4164_v62 = vmul.f32 %v6045_v1, %v4163_v3  ;;  %v4275_v47 = vpack.c.bf16 %v8044_v30, %v8041_v21  ;;  %4792 = vmatpush.bf16.msrb.mxu1 %v5611_v28  ;;  %v5606_v28 = vld [vmem:[%s8624_s10] sm:$0xff] }
 0xcbe   : > { %v4161_v31 = vsel %vm4160_vm1, %v6043_v55, %v4157_v16  ;;  %v5619_v55 = vld [vmem:[%s8624_s10 + $0x68] sm:$0xff] }
 0xcbf   : > { %v4165_v49 = vmul.f32 0.5, %v4164_v62  ;;  %5507 = vmatmul.msk.bf16.gmra.mxu3 %vm568_vm0, %v4275_v47  ;;  %5513 = vmatmul.msk.bf16.gmra.mxu0 %vm568_vm0, %v4275_v47  ;;  %v4236_v9 = vmul.f32 %v4161_v31, %v7893_v26  ;;  %v4072_v26 = vpop.xlane.xlu0 %4071 }
 0xcc0   : > { %4831 = vmatpush.bf16.msra.mxu2 %v5619_v55 }
 0xcc1   : > { %v4166_v25 = vsub.f32 1.5, %v4165_v49  ;;  %v4251_v52 = vmul.f32 %v7993_v0, %v4236_v9 }
 0xcc3   : > { %v4167_v48 = vmul.f32 %v6045_v1, %v4166_v25  ;;  %v8055_v4 = vadd.f32 %v8004_v12, %v4251_v52  ;;  %v5610_v25 = vld [vmem:[%s8624_s10 + $0x20] sm:$0xff] }
 0xcc4   : > { %4832 = vmatpush.bf16.msra.mxu2 %v5618_v35  ;;  %4793 = vmatpush.bf16.msrb.mxu1 %v5610_v25 }
 0xcc5   : > { %v4171_v43 = vsel %vm4170_vm2, %v6045_v1, %v4167_v48 }
 0xcc6   : > { %v4237_v41 = vmul.f32 %v4171_v43, %v7906_v36  ;;  %v4094_v36 = vmul.f32 %v4072_v26, %v7843_v32  ;;  %v4288_v26 = vld [vmem:[%s8623_s9] sm:$0x3] }
 0xcc7   : > { %v8155_v55 = vperm.slane %v4288_v26, 0 }
 0xcc8   : > { %v4252_v53 = vmul.f32 %v7993_v0, %v4237_v41  ;;  %v4106_v59 = vadd.f32 1e-12, %v4094_v36  ;;  %v5616_v41 = vld [vmem:[%s8624_s10 + $0x50] sm:$0xff] }
 0xcca   : > { %v8058_v27 = vadd.f32 %v8004_v12, %v4252_v53  ;;  %6046 = vrsqrt.f32 %v4106_v59  ;;  %vm4178_vm4 = vweird.f32 %v4106_v59 }
 0xccc   : > { %v4276_v44 = vpack.c.bf16 %v8058_v27, %v8055_v4 }
 0xccf   : > { %5508 = vmatmul.msk.bf16.gmra.mxu3 %vm568_vm0, %v4276_v44  ;;  %5514 = vmatmul.msk.bf16.gmra.mxu0 %vm568_vm0, %v4276_v44 }
 0xcd0   : > { %v6047_v11 = vpop.eup %6046 }
 0xcd1   : > { %v4173_v46 = vmul.f32 %v6047_v11, %v4106_v59  ;;  %vm4179_vm3 = vweird.f32 %v6047_v11 }
 0xcd2   : > { %vm4180_vm5 = vmor %vm4178_vm4, %vm4179_vm3 }
 0xcd3   : > { %v4174_v17 = vmul.f32 %v6047_v11, %v4173_v46 }
 0xcd5   : > { %v4175_v18 = vmul.f32 0.5, %v4174_v17 }
 0xcd7   : > { %v4176_v61 = vsub.f32 1.5, %v4175_v18 }
 0xcd9   : > { %v4177_v24 = vmul.f32 %v6047_v11, %v4176_v61 }
 0xcdb   : > { %v4181_v8 = vsel %vm4180_vm5, %v6047_v11, %v4177_v24  ;;  %v5609_v11 = vld [vmem:[%s8624_s10 + $0x18] sm:$0xff]  ;;  %v5614_v24 = vld [vmem:[%s8624_s10 + $0x40] sm:$0xff] }
 0xcdc   : > { %v4238_v58 = vmul.f32 %v4181_v8, %v7918_v29  ;;  %v5617_v29 = vld [vmem:[%s8624_s10 + $0x58] sm:$0xff]  ;;  %4794 = vmatpush.bf16.msrb.mxu1 %v5609_v11 }
 0xcdd   : > { %4833 = vmatpush.bf16.msra.mxu2 %v5617_v29 }
 0xcde   : > { %v4253_v47 = vmul.f32 %v7993_v0, %v4238_v58 }
 0xce0   : > { %v8113_v53 = vadd.f32 %v8004_v12, %v4253_v47 }
 0xce1   : > { %4834 = vmatpush.bf16.msra.mxu2 %v5616_v41 }
 0xd0b   : > { %v4075_v13 = vpop.xlane.xlu1 %4074 }
 0xd0c   : > { %v4095_v42 = vmul.f32 %v4075_v13, %v7843_v32  ;;  %v8129_v13 = vperm.slane %v4288_v26, 1 }
 0xd0e   : > { %v4107_v5 = vadd.f32 1e-12, %v4095_v42  ;;  %v5615_v42 = vld [vmem:[%s8624_s10 + $0x48] sm:$0xff] }
 0xd0f   : > { %4835 = vmatpush.bf16.msra.mxu2 %v5615_v42 }
 0xd10   : > { %6048 = vrsqrt.f32 %v4107_v5  ;;  %vm4188_vm7 = vweird.f32 %v4107_v5 }
 0xd13   : > { %v4078_v6 = vpop.xlane.xlu2 %4077  ;;  %4836 = vmatpush.bf16.msra.mxu2 %v5614_v24 }
 0xd14   : > { %v4096_v23 = vmul.f32 %v4078_v6, %v7843_v32  ;;  %v5608_v6 = vld [vmem:[%s8624_s10 + $0x10] sm:$0xff] }
 0xd15   : > { %4795 = vmatpush.bf16.msrb.mxu1 %v5608_v6 }
 0xd16   : > { %v6049_v50 = vpop.eup %6048  ;;  %v8073_v20 = vadd.f32 1e-12, %v4096_v23 }
 0xd17   : > { %v4183_v2 = vmul.f32 %v6049_v50, %v4107_v5  ;;  %vm4189_vm6 = vweird.f32 %v6049_v50 }
 0xd18   : > { %6050 = vrsqrt.f32 %v8073_v20  ;;  %vm4190_vm8 = vmor %vm4188_vm7, %vm4189_vm6  ;;  %vm4198_vm10 = vweird.f32 %v8073_v20 }
 0xd19   : > { %v4184_v15 = vmul.f32 %v6049_v50, %v4183_v2  ;;  %4796 = vmatpush.bf16.msrb.mxu1 %v5607_v45 }
 0xd1b   : > { %v4185_v7 = vmul.f32 0.5, %v4184_v15  ;;  %v4081_v33 = vpop.xlane.xlu0 %4080 }
 0xd1c   : > { %v4097_v19 = vmul.f32 %v4081_v33, %v7843_v32 }
 0xd1d   : > { %v4186_v54 = vsub.f32 1.5, %v4185_v7  ;;  %4797 = vmatpush.bf16.msrb.mxu1 %v5606_v28 }
 0xd1e   : > { %v6051_v22 = vpop.eup %6050  ;;  %v8090_v39 = vadd.f32 1e-12, %v4097_v19 }
 0xd1f   : > { %v4187_v1 = vmul.f32 %v6049_v50, %v4186_v54  ;;  %v4193_v60 = vmul.f32 %v6051_v22, %v8073_v20  ;;  %vm4199_vm9 = vweird.f32 %v6051_v22 }
 0xd20   : > { %6052 = vrsqrt.f32 %v8090_v39  ;;  %vm8134_vm11 = vmor %vm4198_vm10, %vm4199_vm9  ;;  %vm4208_vm13 = vweird.f32 %v8090_v39 }
 0xd21   : > { %v4191_v3 = vsel %vm4190_vm8, %v6049_v50, %v4187_v1  ;;  %v4194_v16 = vmul.f32 %v6051_v22, %v4193_v60 }
 0xd22   : > { %v4239_v62 = vmul.f32 %v4191_v3, %v7975_v57 }
 0xd23   : > { %v4195_v31 = vmul.f32 0.5, %v4194_v16  ;;  %v4084_v49 = vpop.xlane.xlu1 %4083 }
 0xd24   : > { %v4098_v9 = vmul.f32 %v4084_v49, %v7843_v32  ;;  %v4254_v48 = vmul.f32 %v7993_v0, %v4239_v62 }
 0xd25   : > { %v4196_v43 = vsub.f32 1.5, %v4195_v31 }
 0xd26   : > { %v6053_v57 = vpop.eup %6052  ;;  %v8110_v52 = vadd.f32 1e-12, %v4098_v9  ;;  %v8116_v44 = vadd.f32 %v8004_v12, %v4254_v48 }
 0xd27   : > { %v4197_v36 = vmul.f32 %v6051_v22, %v4196_v43  ;;  %v4203_v59 = vmul.f32 %v6053_v57, %v8090_v39  ;;  %vm4209_vm12 = vweird.f32 %v6053_v57 }
 0xd28   : > { %6054 = vrsqrt.f32 %v8110_v52  ;;  %v4277_v46 = vpack.c.bf16 %v8116_v44, %v8113_v53  ;;  %vm4210_vm1 = vmor %vm4208_vm13, %vm4209_vm12  ;;  %vm4218_vm15 = vweird.f32 %v8110_v52 }
 0xd29   : > { %v4204_v17 = vmul.f32 %v6053_v57, %v4203_v59  ;;  %v4201_v18 = vsel %vm8134_vm11, %v6051_v22, %v4197_v36 }
 0xd2a   : > { %5509 = vmatmul.msk.bf16.gmra.mxu3 %vm568_vm0, %v4277_v46  ;;  %5515 = vmatmul.msk.bf16.gmra.mxu0 %vm568_vm0, %v4277_v46  ;;  %v4240_v56 = vmul.f32 %v4201_v18, %v7983_v14 }
 0xd2b   : > { %v4205_v37 = vmul.f32 0.5, %v4204_v17  ;;  %v4087_v61 = vpop.xlane.xlu2 %4086 }
 0xd2c   : > { %v4099_v23 = vmul.f32 %v4087_v61, %v7843_v32  ;;  %v4400_v63 = vpop.f32.mrf.mxu0  ;;  %v4255_v58 = vmul.f32 %v7993_v0, %v4240_v56 }
 0xd2d   : > { %v4206_v50 = vsub.f32 1.5, %v4205_v37  ;;  %v8147_v20 = vadd.f32 %v4400_v63, %v8129_v13 }
 0xd2e   : > { %v6055_v2 = vpop.eup %6054  ;;  %v8153_v15 = vadd.f32 1e-12, %v4099_v23  ;;  %v8182_v49 = vadd.f32 %v8004_v12, %v4255_v58 }
 0xd2f   : > { %v4207_v8 = vmul.f32 %v6053_v57, %v4206_v50  ;;  %v4213_v7 = vmul.f32 %v6055_v2, %v8110_v52  ;;  %v4431_v33 = vmul.f32 %v8147_v20, %v8147_v20  ;;  %vm4219_vm14 = vweird.f32 %v6055_v2 }
 0xd30   : > { %6056 = vrsqrt.f32 %v8153_v15  ;;  %vm8194_vm2 = vmor %vm4218_vm15, %vm4219_vm14  ;;  %vm4228_vm4 = vweird.f32 %v8153_v15 }
 0xd31   : > { %v4211_v14 = vsel %vm4210_vm1, %v6053_v57, %v4207_v8  ;;  %v4214_v19 = vmul.f32 %v6055_v2, %v4213_v7  ;;  %v4455_v54 = vmul.f32 %v4431_v33, %v8147_v20 }
 0xd32   : > { %v4241_v35 = vmul.f32 %v4211_v14, %v7997_v34  ;;  %v4361_v22 = vpop.f32.mrf.mxu3 }
 0xd33   : > { %v4215_v39 = vmul.f32 0.5, %v4214_v19  ;;  %v4479_v1 = vmul.f32 0.044715, %v4455_v54  ;;  %v8169_v60 = vadd.f32 %v4361_v22, %v8155_v55 }
 0xd34   : > { %v4402_v3 = vpop.f32.mrf.mxu0  ;;  %v4256_v16 = vmul.f32 %v7993_v0, %v4241_v35 }
 0xd35   : > { %v4216_v29 = vsub.f32 1.5, %v4215_v39  ;;  %v4503_v62 = vadd.f32 %v4479_v1, %v8147_v20  ;;  %v4430_v34 = vmul.f32 %v8169_v60, %v8169_v60  ;;  %v8179_v47 = vadd.f32 %v4402_v3, %v8129_v13 }
 0xd36   : > { %v6057_v31 = vpop.eup %6056  ;;  %v8185_v25 = vadd.f32 %v8004_v12, %v4256_v16 }
 0xd37   : > { %v4217_v9 = vmul.f32 %v6055_v2, %v4216_v29  ;;  %v4223_v48 = vmul.f32 %v6057_v31, %v8153_v15  ;;  %v4527_v43 = vmul.f32 0.7978846, %v4503_v62  ;;  %v4454_v41 = vmul.f32 %v4430_v34, %v8169_v60 }
 0xd38   : > { %v4433_v57 = vmul.f32 %v8179_v47, %v8179_v47  ;;  %v4278_v26 = vpack.c.bf16 %v8185_v25, %v8182_v49  ;;  %vm4229_vm3 = vweird.f32 %v6057_v31 }
 0xd39   : > { %v4224_v36 = vmul.f32 %v6057_v31, %v4223_v48  ;;  %v4478_v11 = vmul.f32 0.044715, %v4454_v41  ;;  %v4221_v42 = vsel %vm8194_vm2, %v6055_v2, %v4217_v9  ;;  %6058 = vtanh.f32 %v4527_v43  ;;  %vm4230_vm5 = vmor %vm4228_vm4, %vm4229_vm3 }
 0xd3a   : > { %v4457_v46 = vmul.f32 %v4433_v57, %v8179_v47  ;;  %v4363_v17 = vpop.f32.mrf.mxu3  ;;  %5510 = vmatmul.msk.bf16.gmra.mxu3 %vm568_vm0, %v4278_v26  ;;  %5516 = vmatmul.msk.bf16.gmra.mxu0 %vm568_vm0, %v4278_v26  ;;  %v4242_v50 = vmul.f32 %v4221_v42, %v8019_v10 }
 0xd3b   : > { %v4225_v5 = vmul.f32 0.5, %v4224_v36  ;;  %v8204_v52 = vadd.f32 %v4363_v17, %v8155_v55  ;;  %v4502_v18 = vadd.f32 %v4478_v11, %v8169_v60 }
 0xd3c   : > { %v4481_v37 = vmul.f32 0.044715, %v4457_v46  ;;  %v4405_v61 = vpop.f32.mrf.mxu0  ;;  %v4257_v22 = vmul.f32 %v7993_v0, %v4242_v50 }
 0xd3d   : > { %v4226_v6 = vsub.f32 1.5, %v4225_v5  ;;  %v4432_v23 = vmul.f32 %v8204_v52, %v8204_v52  ;;  %v8210_v63 = vadd.f32 %v4405_v61, %v8129_v13  ;;  %v4526_v24 = vmul.f32 0.7978846, %v4502_v18 }
 0xd3e   : > { %v4505_v2 = vadd.f32 %v4481_v37, %v8179_v47  ;;  %v8233_v34 = vadd.f32 %v8004_v12, %v4257_v22 }
 0xd3f   : > { %v4227_v56 = vmul.f32 %v6057_v31, %v4226_v6  ;;  %v4456_v8 = vmul.f32 %v4432_v23, %v8204_v52  ;;  %v4435_v7 = vmul.f32 %v8210_v63, %v8210_v63  ;;  %v6059_v45 = vpop.eup %6058  ;;  %6060 = vtanh.f32 %v4526_v24 }
 0xd40   : > { %v4529_v33 = vmul.f32 0.7978846, %v4505_v2  ;;  %v4575_v1 = vadd.f32 1.0, %v6059_v45 }
 0xd41   : > { %v4231_v14 = vsel %vm4230_vm5, %v6057_v31, %v4227_v56  ;;  %v4480_v19 = vmul.f32 0.044715, %v4456_v8  ;;  %v4459_v54 = vmul.f32 %v4435_v7, %v8210_v63 }
 0xd42   : > { %v4243_v10 = vmul.f32 %v4231_v14, %v8032_v38  ;;  %6062 = vtanh.f32 %v4529_v33  ;;  %v4366_v35 = vpop.f32.mrf.mxu3  ;;  %v4599_v41 = vmul.f32 0.5, %v4575_v1 }
 0xd43   : > { %v4504_v15 = vadd.f32 %v4480_v19, %v8204_v52  ;;  %v4483_v58 = vmul.f32 0.044715, %v4459_v54  ;;  %v8223_v39 = vadd.f32 %v4366_v35, %v8155_v55 }
 0xd44   : > { %v4407_v28 = vpop.f32.mrf.mxu0  ;;  %v4258_v3 = vmul.f32 %v7993_v0, %v4243_v10  ;;  %v4623_v18 = vmul.f32 %v4599_v41, %v8147_v20 }
 0xd45   : > { %v4528_v16 = vmul.f32 0.7978846, %v4504_v15  ;;  %v4507_v29 = vadd.f32 %v4483_v58, %v8210_v63  ;;  %v4434_v38 = vmul.f32 %v8223_v39, %v8223_v39  ;;  %v8230_v62 = vadd.f32 %v4407_v28, %v8129_v13  ;;  %v6061_v9 = vpop.eup %6060 }
 0xd46   : > { %v8236_v31 = vadd.f32 %v8004_v12, %v4258_v3  ;;  %v4574_v11 = vadd.f32 1.0, %v6061_v9 }
 0xd47   : > { %6064 = vtanh.f32 %v4528_v16  ;;  %v4531_v48 = vmul.f32 0.7978846, %v4507_v29  ;;  %v4458_v0 = vmul.f32 %v4434_v38, %v8223_v39  ;;  %v4437_v57 = vmul.f32 %v8230_v62, %v8230_v62 }
 0xd48   : > { %v6063_v43 = vpop.eup %6062  ;;  %v4279_v26 = vpack.c.bf16 %v8236_v31, %v8233_v34  ;;  %v4598_v56 = vmul.f32 0.5, %v4574_v11 }
 0xd49   : > { %v4577_v36 = vadd.f32 1.0, %v6063_v43  ;;  %v4482_v59 = vmul.f32 0.044715, %v4458_v0  ;;  %v4461_v46 = vmul.f32 %v4437_v57, %v8230_v62  ;;  %6066 = vtanh.f32 %v4531_v48 }
 0xd4a   : > { %v4368_v12 = vpop.f32.mrf.mxu3  ;;  %5511 = vmatmul.msk.bf16.gmra.mxu3 %vm568_vm0, %v4279_v26  ;;  %5517 = vmatmul.msk.bf16.gmra.mxu0 %vm568_vm0, %v4279_v26  ;;  %v4622_v35 = vmul.f32 %v4598_v56, %v8169_v60 }
 0xd4b   : > { %v4601_v17 = vmul.f32 0.5, %v4577_v36  ;;  %v4506_v42 = vadd.f32 %v4482_v59, %v8223_v39  ;;  %v8248_v5 = vadd.f32 %v4368_v12, %v8155_v55  ;;  %v4485_v37 = vmul.f32 0.044715, %v4461_v46 }
 0xd4c   : > { %v4410_v61 = vpop.f32.mrf.mxu0 }
 0xd4d   : > { %v6065_v6 = vpop.eup %6064  ;;  %v4625_v23 = vmul.f32 %v4601_v17, %v8179_v47  ;;  %v4530_v50 = vmul.f32 0.7978846, %v4506_v42  ;;  %v4436_v24 = vmul.f32 %v8248_v5, %v8248_v5  ;;  %v8255_v2 = vadd.f32 %v4410_v61, %v8129_v13 }
 0xd4e   : > { %v4576_v8 = vadd.f32 1.0, %v6065_v6  ;;  %v4509_v7 = vadd.f32 %v4485_v37, %v8230_v62 }
 0xd4f   : > { %v4647_v33 = vpack.c.bf16 %v4625_v23, %v4623_v18  ;;  %v4460_v45 = vmul.f32 %v4436_v24, %v8248_v5  ;;  %v4439_v20 = vmul.f32 %v8255_v2, %v8255_v2  ;;  %v6067_v47 = vpop.eup %6066  ;;  %6068 = vtanh.f32 %v4530_v50 }
 0xd50   : > { %v4600_v14 = vmul.f32 0.5, %v4576_v8  ;;  %v4533_v19 = vmul.f32 0.7978846, %v4509_v7  ;;  %v4579_v29 = vadd.f32 1.0, %v6067_v47 }
 0xd51   : > { %v4484_v54 = vmul.f32 0.044715, %v4460_v45  ;;  %v4463_v10 = vmul.f32 %v4439_v20, %v8255_v2  ;;  %4837 = vmatmul.bf16.vlgmr.msra.gmra.mxu2 %v4647_v33 }
 0xd52   : > { %v4624_v22 = vmul.f32 %v4600_v14, %v8204_v52  ;;  %6070 = vtanh.f32 %v4533_v19  ;;  %v4371_v15 = vpop.f32.mrf.mxu3  ;;  %v4603_v26 = vmul.f32 0.5, %v4579_v29 }
 0xd53   : > { %v4508_v58 = vadd.f32 %v4484_v54, %v8248_v5  ;;  %v4487_v1 = vmul.f32 0.044715, %v4463_v10  ;;  %v8266_v28 = vadd.f32 %v4371_v15, %v8155_v55 }
 0xd54   : > { %v4646_v3 = vpack.c.bf16 %v4624_v22, %v4622_v35  ;;  %v4412_v16 = vpop.f32.mrf.mxu0  ;;  %v4627_v61 = vmul.f32 %v4603_v26, %v8210_v63 }
 0xd55   : > { %v4532_v38 = vmul.f32 0.7978846, %v4508_v58  ;;  %v4511_v9 = vadd.f32 %v4487_v1, %v8255_v2  ;;  %v4438_v48 = vmul.f32 %v8266_v28, %v8266_v28  ;;  %v4413_v60 = vadd.f32 %v4412_v16, %v8129_v13  ;;  %v6069_v52 = vpop.eup %6068 }
 0xd56   : > { %4798 = vmatmul.bf16.vlgmr.msrb.gmra.mxu1 %v4646_v3  ;;  %v4578_v12 = vadd.f32 1.0, %v6069_v52 }
 0xd57   : > { %6072 = vtanh.f32 %v4532_v38  ;;  %v4535_v0 = vmul.f32 0.7978846, %v4511_v9  ;;  %v4462_v43 = vmul.f32 %v4438_v48, %v8266_v28  ;;  %v4441_v41 = vmul.f32 %v4413_v60, %v4413_v60 }
 0xd58   : > { %v6071_v57 = vpop.eup %6070  ;;  %v4602_v7 = vmul.f32 0.5, %v4578_v12 }
 0xd59   : > { %v4486_v36 = vmul.f32 0.044715, %v4462_v43  ;;  %v4465_v59 = vmul.f32 %v4441_v41, %v4413_v60  ;;  %v4581_v11 = vadd.f32 1.0, %v6071_v57  ;;  %6074 = vtanh.f32 %v4535_v0 }
 0xd5a   : > { %v4373_v46 = vpop.f32.mrf.mxu3  ;;  %v4626_v54 = vmul.f32 %v4602_v7, %v8223_v39 }
 0xd5b   : > { %v4510_v17 = vadd.f32 %v4486_v36, %v8266_v28  ;;  %v4489_v42 = vmul.f32 0.044715, %v4465_v59  ;;  %v4374_v18 = vadd.f32 %v4373_v46, %v8155_v55  ;;  %v4605_v37 = vmul.f32 0.5, %v4581_v11 }
 0xd5d   : > { %v6073_v6 = vpop.eup %6072  ;;  %v4534_v23 = vmul.f32 0.7978846, %v4510_v17  ;;  %v4513_v50 = vadd.f32 %v4489_v42, %v4413_v60  ;;  %v4440_v24 = vmul.f32 %v4374_v18, %v4374_v18  ;;  %v4629_v56 = vmul.f32 %v4605_v37, %v8230_v62 }
 0xd5e   : > { %v4580_v8 = vadd.f32 1.0, %v6073_v6 }
 0xd5f   : > { %v4537_v33 = vmul.f32 0.7978846, %v4513_v50  ;;  %v4464_v45 = vmul.f32 %v4440_v24, %v4374_v18  ;;  %v4649_v20 = vpack.c.bf16 %v4629_v56, %v4627_v61  ;;  %v6075_v14 = vpop.eup %6074  ;;  %6076 = vtanh.f32 %v4534_v23 }
 0xd60   : > { %v4604_v19 = vmul.f32 0.5, %v4580_v8  ;;  %v4583_v22 = vadd.f32 1.0, %v6075_v14 }
 0xd61   : > { %6078 = vtanh.f32 %v4537_v33  ;;  %v4488_v47 = vmul.f32 0.044715, %v4464_v45  ;;  %4842 = vmatmul.bf16.gmra.mxu2 %v4649_v20 }
 0xd62   : > { %v4628_v63 = vmul.f32 %v4604_v19, %v8248_v5  ;;  %v4607_v3 = vmul.f32 0.5, %v4583_v22 }
 0xd63   : > { %v4512_v10 = vadd.f32 %v4488_v47, %v4374_v18 }
 0xd64   : > { %v4648_v35 = vpack.c.bf16 %v4628_v63, %v4626_v54  ;;  %v4631_v38 = vmul.f32 %v4607_v3, %v8255_v2 }
 0xd65   : > { %v4536_v15 = vmul.f32 0.7978846, %v4512_v10  ;;  %v6077_v62 = vpop.eup %6076 }
 0xd66   : > { %4803 = vmatmul.bf16.gmra.mxu1 %v4648_v35  ;;  %v4582_v29 = vadd.f32 1.0, %v6077_v62 }
 0xd67   : > { %v6079_v58 = vpop.eup %6078  ;;  %6080 = vtanh.f32 %v4536_v15 }
 0xd68   : > { %v4585_v1 = vadd.f32 1.0, %v6079_v58  ;;  %v4606_v0 = vmul.f32 0.5, %v4582_v29 }
 0xd6a   : > { %v4609_v16 = vmul.f32 0.5, %v4585_v1  ;;  %v4630_v43 = vmul.f32 %v4606_v0, %v8266_v28 }
 0xd6c   : > { %v4633_v9 = vmul.f32 %v4609_v16, %v4413_v60 }
 0xd6d   : > { %v6081_v48 = vpop.eup %6080 }
 0xd6e   : > { %v4651_v52 = vpack.c.bf16 %v4633_v9, %v4631_v38  ;;  %v4584_v39 = vadd.f32 1.0, %v6081_v48 }
 0xd70   : > { %v4608_v5 = vmul.f32 0.5, %v4584_v39 }
 0xd71   : > { %4847 = vmatmul.bf16.gmra.mxu2 %v4651_v52 }
 0xd72   : > { %v4632_v41 = vmul.f32 %v4608_v5, %v4374_v18 }
 0xd74   : > { %v4650_v57 = vpack.c.bf16 %v4632_v41, %v4630_v43 }
 0xd76   : > { %4808 = vmatmul.bf16.gmra.mxu1 %v4650_v57 }
 0xda7   : > { %v4415_v26 = vpop.f32.mrf.mxu0 }
 0xda8   : > { %v4416_v36 = vadd.f32 %v4415_v26, %v8129_v13 }
 0xdaa   : > { %v4443_v59 = vmul.f32 %v4416_v36, %v4416_v36 }
 0xdac   : > { %v4467_v11 = vmul.f32 %v4443_v59, %v4416_v36 }
 0xdad   : > { %v4376_v46 = vpop.f32.mrf.mxu3 }
 0xdae   : > { %v4491_v12 = vmul.f32 0.044715, %v4467_v11  ;;  %v8283_v2 = vadd.f32 %v4376_v46, %v8155_v55 }
 0xdaf   : > { %v4417_v60 = vpop.f32.mrf.mxu0 }
 0xdb0   : > { %v4515_v17 = vadd.f32 %v4491_v12, %v4416_v36  ;;  %v4442_v42 = vmul.f32 %v8283_v2, %v8283_v2  ;;  %v4418_v28 = vadd.f32 %v4417_v60, %v8129_v13 }
 0xdb2   : > { %v4539_v18 = vmul.f32 0.7978846, %v4515_v17  ;;  %v4466_v37 = vmul.f32 %v4442_v42, %v8283_v2  ;;  %v4445_v61 = vmul.f32 %v4418_v28, %v4418_v28 }
 0xdb4   : > { %v4490_v6 = vmul.f32 0.044715, %v4466_v37  ;;  %v4469_v23 = vmul.f32 %v4445_v61, %v4418_v28  ;;  %6082 = vtanh.f32 %v4539_v18 }
 0xdb5   : > { %v4378_v50 = vpop.f32.mrf.mxu3 }
 0xdb6   : > { %v4514_v24 = vadd.f32 %v4490_v6, %v8283_v2  ;;  %v4493_v56 = vmul.f32 0.044715, %v4469_v23  ;;  %v8291_v8 = vadd.f32 %v4378_v50, %v8155_v55 }
 0xdb7   : > { %v4420_v7 = vpop.f32.mrf.mxu0 }
 0xdb8   : > { %v4538_v33 = vmul.f32 0.7978846, %v4514_v24  ;;  %v4517_v45 = vadd.f32 %v4493_v56, %v4418_v28  ;;  %v4444_v20 = vmul.f32 %v8291_v8, %v8291_v8  ;;  %v8296_v14 = vadd.f32 %v4420_v7, %v8129_v13 }
 0xdba   : > { %v4541_v19 = vmul.f32 0.7978846, %v4517_v45  ;;  %v4468_v47 = vmul.f32 %v4444_v20, %v8291_v8  ;;  %v4447_v54 = vmul.f32 %v8296_v14, %v8296_v14  ;;  %6084 = vtanh.f32 %v4538_v33  ;;  %v6083_v63 = vpop.eup %6082 }
 0xdbb   : > { %v4587_v3 = vadd.f32 1.0, %v6083_v63 }
 0xdbc   : > { %6086 = vtanh.f32 %v4541_v19  ;;  %v4492_v10 = vmul.f32 0.044715, %v4468_v47  ;;  %v4471_v35 = vmul.f32 %v4447_v54, %v8296_v14 }
 0xdbd   : > { %v4381_v22 = vpop.f32.mrf.mxu3  ;;  %v4611_v41 = vmul.f32 0.5, %v4587_v3 }
 0xdbe   : > { %v4516_v15 = vadd.f32 %v4492_v10, %v8291_v8  ;;  %v4495_v62 = vmul.f32 0.044715, %v4471_v35  ;;  %v8304_v58 = vadd.f32 %v4381_v22, %v8155_v55 }
 0xdbf   : > { %v4422_v1 = vpop.f32.mrf.mxu0  ;;  %v4635_v18 = vmul.f32 %v4611_v41, %v4416_v36 }
 0xdc0   : > { %v4540_v16 = vmul.f32 0.7978846, %v4516_v15  ;;  %v4519_v29 = vadd.f32 %v4495_v62, %v8296_v14  ;;  %v4446_v38 = vmul.f32 %v8304_v58, %v8304_v58  ;;  %v8310_v9 = vadd.f32 %v4422_v1, %v8129_v13  ;;  %v6085_v48 = vpop.eup %6084 }
 0xdc1   : > { %v4586_v46 = vadd.f32 1.0, %v6085_v48 }
 0xdc2   : > { %v6087_v52 = vpop.eup %6086  ;;  %6088 = vtanh.f32 %v4540_v16  ;;  %v4543_v39 = vmul.f32 0.7978846, %v4519_v29  ;;  %v4470_v0 = vmul.f32 %v4446_v38, %v8304_v58  ;;  %v4449_v5 = vmul.f32 %v8310_v9, %v8310_v9 }
 0xdc3   : > { %v4589_v43 = vadd.f32 1.0, %v6087_v52  ;;  %v4610_v33 = vmul.f32 0.5, %v4586_v46 }
 0xdc4   : > { %v4494_v57 = vmul.f32 0.044715, %v4470_v0  ;;  %v4473_v26 = vmul.f32 %v4449_v5, %v8310_v9  ;;  %6090 = vtanh.f32 %v4543_v39 }
 0xdc5   : > { %v4383_v59 = vpop.f32.mrf.mxu3  ;;  %v4613_v11 = vmul.f32 0.5, %v4589_v43  ;;  %v4634_v10 = vmul.f32 %v4610_v33, %v8283_v2  ;;  %v8345_v2 = vld [vmem:[%s8625_s11] ss:$0 sm:$0xff] }
 0xdc6   : > { %v4518_v12 = vadd.f32 %v4494_v57, %v8304_v58  ;;  %v4497_v60 = vmul.f32 0.044715, %v4473_v26  ;;  %v8318_v17 = vadd.f32 %v4383_v59, %v8155_v55 }
 0xdc7   : > { %v4425_v42 = vpop.f32.mrf.mxu0  ;;  %v4637_v37 = vmul.f32 %v4613_v11, %v4418_v28 }
 0xdc8   : > { %v6089_v61 = vpop.eup %6088  ;;  %v4542_v6 = vmul.f32 0.7978846, %v4518_v12  ;;  %v4521_v23 = vadd.f32 %v4497_v60, %v8310_v9  ;;  %v4448_v50 = vmul.f32 %v8318_v17, %v8318_v17  ;;  %v8324_v24 = vadd.f32 %v4425_v42, %v8129_v13 }
 0xdc9   : > { %v4653_v56 = vpack.c.bf16 %v4637_v37, %v4635_v18  ;;  %v4588_v7 = vadd.f32 1.0, %v6089_v61 }
 0xdca   : > { %v4545_v45 = vmul.f32 0.7978846, %v4521_v23  ;;  %v4472_v20 = vmul.f32 %v4448_v50, %v8318_v17  ;;  %v4451_v36 = vmul.f32 %v8324_v24, %v8324_v24  ;;  %6092 = vtanh.f32 %v4542_v6  ;;  %v6091_v19 = vpop.eup %6090 }
 0xdcb   : > { %4852 = vmatmul.bf16.gmra.mxu2 %v4653_v56  ;;  %v4612_v28 = vmul.f32 0.5, %v4588_v7  ;;  %v4591_v16 = vadd.f32 1.0, %v6091_v19 }
 0xdcc   : > { %6094 = vtanh.f32 %v4545_v45  ;;  %v4496_v47 = vmul.f32 0.044715, %v4472_v20  ;;  %v4475_v54 = vmul.f32 %v4451_v36, %v8324_v24 }
 0xdcd   : > { %v4386_v63 = vpop.f32.mrf.mxu3  ;;  %v4636_v35 = vmul.f32 %v4612_v28, %v8291_v8  ;;  %v4615_v26 = vmul.f32 0.5, %v4591_v16 }
 0xdce   : > { %v4520_v22 = vadd.f32 %v4496_v47, %v8318_v17  ;;  %v4499_v15 = vmul.f32 0.044715, %v4475_v54  ;;  %v8334_v62 = vadd.f32 %v4386_v63, %v8155_v55 }
 0xdcf   : > { %v4427_v1 = vpop.f32.mrf.mxu0  ;;  %v4652_v3 = vpack.c.bf16 %v4636_v35, %v4634_v10  ;;  %v4639_v23 = vmul.f32 %v4615_v26, %v8296_v14 }
 0xdd0   : > { %v4544_v29 = vmul.f32 0.7978846, %v4520_v22  ;;  %v4523_v38 = vadd.f32 %v4499_v15, %v8324_v24  ;;  %v4450_v48 = vmul.f32 %v8334_v62, %v8334_v62  ;;  %v8340_v52 = vadd.f32 %v4427_v1, %v8129_v13  ;;  %v6093_v8 = vpop.eup %6092 }
 0xdd1   : > { %4813 = vmatmul.bf16.gmra.mxu1 %v4652_v3  ;;  %v4590_v42 = vadd.f32 1.0, %v6093_v8 }
 0xdd2   : > { %v6095_v39 = vpop.eup %6094  ;;  %6096 = vtanh.f32 %v4544_v29  ;;  %v4547_v0 = vmul.f32 0.7978846, %v4523_v38  ;;  %v4474_v5 = vmul.f32 %v4450_v48, %v8334_v62  ;;  %v4453_v43 = vmul.f32 %v8340_v52, %v8340_v52 }
 0xdd3   : > { %v4799_v41 = vpop.f32.mrf.mxu1  ;;  %v4593_v57 = vadd.f32 1.0, %v6095_v39  ;;  %v4614_v19 = vmul.f32 0.5, %v4590_v42 }
 0xdd4   : > { %v4498_v13 = vmul.f32 0.044715, %v4474_v5  ;;  %v4477_v59 = vmul.f32 %v4453_v43, %v8340_v52  ;;  %v4800_v11 = vadd.f32 %v8345_v2, %v4799_v41  ;;  %v4838_v46 = vpop.f32.mrf.mxu2  ;;  %6098 = vtanh.f32 %v4547_v0 }
 0xdd5   : > { %v4388_v12 = vpop.f32.mrf.mxu3  ;;  %v4617_v60 = vmul.f32 0.5, %v4593_v57  ;;  %v4638_v22 = vmul.f32 %v4614_v19, %v8304_v58 }
 0xdd6   : > { %v4522_v18 = vadd.f32 %v4498_v13, %v8334_v62  ;;  %v4501_v37 = vmul.f32 0.044715, %v4477_v59  ;;  %v4839_v61 = vadd.f32 %v4838_v46, %v4800_v11  ;;  %v4389_v6 = vadd.f32 %v4388_v12, %v8155_v55 }
 0xdd7   : > { %v4641_v50 = vmul.f32 %v4617_v60, %v8310_v9 }
 0xdd8   : > { %v6097_v56 = vpop.eup %6096  ;;  %v4546_v7 = vmul.f32 0.7978846, %v4522_v18  ;;  %v4525_v33 = vadd.f32 %v4501_v37, %v8340_v52  ;;  %v8358_v45 = vadd.f32 %v4839_v61, %v8013_v40  ;;  %v4452_v20 = vmul.f32 %v4389_v6, %v4389_v6 }
 0xdd9   : > { %v4655_v36 = vpack.c.bf16 %v4641_v50, %v4639_v23  ;;  %v4592_v28 = vadd.f32 1.0, %v6097_v56 }
 0xdda   : > { %v4549_v47 = vmul.f32 0.7978846, %v4525_v33  ;;  %v4476_v54 = vmul.f32 %v4452_v20, %v4389_v6  ;;  %v4882_v55 = vsel %vm568_vm0, %v8358_v45, 0.0  ;;  %v6099_v63 = vpop.eup %6098  ;;  %6100 = vtanh.f32 %v4546_v7 }
 0xddb   : > { %v4801_v14 = vpop.f32.mrf.mxu1  ;;  %4883 = vadd.xlane.f32.xlu0 %v4882_v55  ;;  %4857 = vmatmul.bf16.gmra.mxu2 %v4655_v36  ;;  %v4616_v9 = vmul.f32 0.5, %v4592_v28  ;;  %v4595_v29 = vadd.f32 1.0, %v6099_v63 }
 0xddc   : > { %6102 = vtanh.f32 %v4549_v47  ;;  %v4500_v10 = vmul.f32 0.044715, %v4476_v54  ;;  %v4802_v40 = vadd.f32 %v8345_v2, %v4801_v14  ;;  %v4840_v35 = vpop.f32.mrf.mxu2 }
 0xddd   : > { %v4640_v15 = vmul.f32 %v4616_v9, %v8318_v17  ;;  %v4619_v43 = vmul.f32 0.5, %v4595_v29 }
 0xdde   : > { %v4524_v1 = vadd.f32 %v4500_v10, %v4389_v6  ;;  %v4841_v3 = vadd.f32 %v4840_v35, %v4802_v40 }
 0xddf   : > { %v4654_v16 = vpack.c.bf16 %v4640_v15, %v4638_v22 }
 0xde0   : > { %v4548_v38 = vmul.f32 0.7978846, %v4524_v1  ;;  %v8366_v48 = vadd.f32 %v4841_v3, %v8016_v51  ;;  %v6101_v8 = vpop.eup %6100  ;;  %v4643_v51 = vmul.f32 %v4619_v43, %v8324_v24 }
 0xde1   : > { %4818 = vmatmul.bf16.gmra.mxu1 %v4654_v16  ;;  %v4594_v26 = vadd.f32 1.0, %v6101_v8 }
 0xde2   : > { %v6103_v39 = vpop.eup %6102  ;;  %6104 = vtanh.f32 %v4548_v38  ;;  %v4885_v0 = vsel %vm568_vm0, %v8366_v48, 0.0 }
 0xde3   : > { %v4804_v5 = vpop.f32.mrf.mxu1  ;;  %4886 = vadd.xlane.f32.xlu1 %v4885_v0  ;;  %v4597_v58 = vadd.f32 1.0, %v6103_v39  ;;  %v4618_v42 = vmul.f32 0.5, %v4594_v26 }
 0xde4   : > { %v4805_v17 = vadd.f32 %v8345_v2, %v4804_v5  ;;  %v4843_v41 = vpop.f32.mrf.mxu2 }
 0xde5   : > { %v4621_v57 = vmul.f32 0.5, %v4597_v58  ;;  %v4642_v24 = vmul.f32 %v4618_v42, %v8334_v62 }
 0xde6   : > { %v4844_v13 = vadd.f32 %v4843_v41, %v4805_v17 }
 0xde7   : > { %v4645_v59 = vmul.f32 %v4621_v57, %v8340_v52 }
 0xde8   : > { %v6105_v11 = vpop.eup %6104  ;;  %v8374_v46 = vadd.f32 %v4844_v13, %v8041_v21 }
 0xde9   : > { %v4657_v12 = vpack.c.bf16 %v4645_v59, %v4643_v51  ;;  %v4596_v60 = vadd.f32 1.0, %v6105_v11 }
 0xdea   : > { %v4888_v18 = vsel %vm568_vm0, %v8374_v46, 0.0 }
 0xdeb   : > { %v4806_v37 = vpop.f32.mrf.mxu1  ;;  %4889 = vadd.xlane.f32.xlu2 %v4888_v18  ;;  %4862 = vmatmul.bf16.gmra.mxu2 %v4657_v12  ;;  %v4620_v61 = vmul.f32 0.5, %v4596_v60 }
 0xdec   : > { %v4807_v23 = vadd.f32 %v8345_v2, %v4806_v37  ;;  %v4845_v50 = vpop.f32.mrf.mxu2 }
 0xded   : > { %v4644_v52 = vmul.f32 %v4620_v61, %v4389_v6 }
 0xdee   : > { %v4846_v56 = vadd.f32 %v4845_v50, %v4807_v23 }
 0xdef   : > { %v4656_v7 = vpack.c.bf16 %v4644_v52, %v4642_v24 }
 0xdf0   : > { %v8381_v21 = vadd.f32 %v4846_v56, %v8044_v30 }
 0xdf1   : > { %4823 = vmatmul.bf16.gmra.mxu1 %v4656_v7 }
 0xdf2   : > { %v4891_v33 = vsel %vm568_vm0, %v8381_v21, 0.0 }
 0xdf3   : > { %4892 = vadd.xlane.f32.xlu0 %v4891_v33  ;;  %v4809_v20 = vpop.f32.mrf.mxu1 }
 0xdf4   : > { %v4810_v36 = vadd.f32 %v8345_v2, %v4809_v20  ;;  %v4848_v28 = vpop.f32.mrf.mxu2 }
 0xdf6   : > { %v4849_v19 = vadd.f32 %v4848_v28, %v4810_v36 }
 0xdf8   : > { %v8387_v47 = vadd.f32 %v4849_v19, %v8055_v4 }
 0xdfa   : > { %v4894_v62 = vsel %vm568_vm0, %v8387_v47, 0.0 }
 0xdfb   : > { %v4811_v6 = vpop.f32.mrf.mxu1  ;;  %4895 = vadd.xlane.f32.xlu1 %v4894_v62 }
 0xdfc   : > { %v4812_v30 = vadd.f32 %v8345_v2, %v4811_v6  ;;  %v4850_v54 = vpop.f32.mrf.mxu2 }
 0xdfe   : > { %v4851_v55 = vadd.f32 %v4850_v54, %v4812_v30 }
 0xe00   : > { %v8393_v63 = vadd.f32 %v4851_v55, %v8058_v27 }
 0xe02   : > { %v4897_v14 = vsel %vm568_vm0, %v8393_v63, 0.0 }
 0xe03   : > { %4898 = vadd.xlane.f32.xlu2 %v4897_v14 }
 0xe4e   : > { %v4814_v9 = vpop.f32.mrf.mxu1  ;;  %v4853_v10 = vpop.f32.mrf.mxu2 }
 0xe4f   : > { %v4815_v4 = vadd.f32 %v8345_v2, %v4814_v9  ;;  %v4884_v58 = vpop.xlane.xlu0 %4883 }
 0xe50   : > { %v4918_v41 = vmul.f32 %v4884_v58, %v7843_v32 }
 0xe51   : > { %v4854_v40 = vadd.f32 %v4853_v10, %v4815_v4 }
 0xe52   : > { %v8421_v13 = vsub.f32 %v8358_v45, %v4918_v41 }
 0xe53   : > { %v8399_v35 = vadd.f32 %v4854_v40, %v8113_v53 }
 0xe55   : > { %v4900_v22 = vsel %vm568_vm0, %v8399_v35, 0.0 }
 0xe56   : > { %v4816_v15 = vpop.f32.mrf.mxu1  ;;  %4901 = vadd.xlane.f32.xlu0 %v4900_v22  ;;  %v4855_v1 = vpop.f32.mrf.mxu2 }
 0xe57   : > { %v4817_v27 = vadd.f32 %v8345_v2, %v4816_v15  ;;  %v4887_v51 = vpop.xlane.xlu1 %4886 }
 0xe58   : > { %v4919_v42 = vmul.f32 %v4887_v51, %v7843_v32 }
 0xe59   : > { %v4856_v3 = vadd.f32 %v4855_v1, %v4817_v27 }
 0xe5a   : > { %v8434_v61 = vsub.f32 %v8366_v48, %v4919_v42 }
 0xe5b   : > { %v8405_v16 = vadd.f32 %v4856_v3, %v8116_v44 }
 0xe5c   : > { %v4943_v28 = vmul.f32 %v8434_v61, %v8434_v61 }
 0xe5d   : > { %v4903_v29 = vsel %vm568_vm0, %v8405_v16, 0.0 }
 0xe5e   : > { %4904 = vadd.xlane.f32.xlu1 %v4903_v29  ;;  %v4819_v38 = vpop.f32.mrf.mxu1  ;;  %v4858_v8 = vpop.f32.mrf.mxu2  ;;  %v4957_v6 = vsel %vm568_vm0, %v4943_v28, 0.0 }
 0xe5f   : > { %v4820_v53 = vadd.f32 %v8345_v2, %v4819_v38  ;;  %v4890_v23 = vpop.xlane.xlu2 %4889 }
 0xe60   : > { %v4920_v20 = vmul.f32 %v4890_v23, %v7843_v32 }
 0xe61   : > { %v4859_v39 = vadd.f32 %v4858_v8, %v4820_v53 }
 0xe62   : > { %v8453_v62 = vsub.f32 %v8374_v46, %v4920_v20 }
 0xe63   : > { %v8411_v0 = vadd.f32 %v4859_v39, %v8182_v49 }
 0xe65   : > { %v4906_v5 = vsel %vm568_vm0, %v8411_v0, 0.0 }
 0xe66   : > { %v4821_v43 = vpop.f32.mrf.mxu1  ;;  %4907 = vadd.xlane.f32.xlu2 %v4906_v5  ;;  %v4860_v17 = vpop.f32.mrf.mxu2 }
 0xe67   : > { %v4822_v44 = vadd.f32 %v8345_v2, %v4821_v43  ;;  %v4893_v11 = vpop.xlane.xlu0 %4892 }
 0xe68   : > { %v4921_v37 = vmul.f32 %v4893_v11, %v7843_v32 }
 0xe69   : > { %v4861_v57 = vadd.f32 %v4860_v17, %v4822_v44 }
 0xe6a   : > { %v8440_v52 = vsub.f32 %v8381_v21, %v4921_v37 }
 0xe6b   : > { %v8418_v26 = vadd.f32 %v4861_v57, %v8185_v25  ;;  %v4942_v25 = vmul.f32 %v8421_v13, %v8421_v13 }
 0xe6c   : > { %v4945_v19 = vmul.f32 %v8440_v52, %v8440_v52 }
 0xe6d   : > { %v4909_v49 = vsel %vm568_vm0, %v8418_v26, 0.0  ;;  %v4954_v24 = vsel %vm568_vm0, %v4942_v25, 0.0 }
 0xe6e   : > { %v4824_v59 = vpop.f32.mrf.mxu1  ;;  %4910 = vadd.xlane.f32.xlu0 %v4909_v49  ;;  %v4863_v60 = vpop.f32.mrf.mxu2  ;;  %v4963_v55 = vsel %vm568_vm0, %v4945_v19, 0.0 }
 0xe6f   : > { %v4825_v12 = vadd.f32 %v8345_v2, %v4824_v59  ;;  %v4896_v56 = vpop.xlane.xlu1 %4895 }
 0xe70   : > { %v4922_v48 = vmul.f32 %v4896_v56, %v7843_v32 }
 0xe71   : > { %v4864_v18 = vadd.f32 %v4863_v60, %v4825_v12 }
 0xe73   : > { %v8431_v45 = vadd.f32 %v4864_v18, %v8233_v34 }
 0xe75   : > { %v4912_v50 = vsel %vm568_vm0, %v8431_v45, 0.0 }
 0xe76   : > { %v4826_v7 = vpop.f32.mrf.mxu1  ;;  %4913 = vadd.xlane.f32.xlu1 %v4912_v50  ;;  %4955 = vadd.xlane.f32.xlu0 %v4954_v24  ;;  %v4865_v34 = vpop.f32.mrf.mxu2 }
 0xe77   : > { %v4827_v33 = vadd.f32 %v8345_v2, %v4826_v7  ;;  %v8456_v2 = vsub.f32 %v8387_v47, %v4922_v48  ;;  %v4899_v54 = vpop.xlane.xlu2 %4898  ;;  %v4944_v47 = vmul.f32 %v8453_v62, %v8453_v62 }
 0xe79   : > { %v4866_v36 = vadd.f32 %v4865_v34, %v4827_v33  ;;  %v4946_v46 = vmul.f32 %v8456_v2, %v8456_v2  ;;  %v4960_v10 = vsel %vm568_vm0, %v4944_v47, 0.0 }
 0xe7b   : > { %v8450_v21 = vadd.f32 %v4866_v36, %v8236_v31  ;;  %v4923_v31 = vmul.f32 %v4899_v54, %v7843_v32  ;;  %v4966_v9 = vsel %vm568_vm0, %v4946_v46, 0.0 }
 0xe7d   : > { %v4915_v30 = vsel %vm568_vm0, %v8450_v21, 0.0  ;;  %v8468_v14 = vsub.f32 %v8393_v63, %v4923_v31 }
 0xe7e   : > { %4958 = vadd.xlane.f32.xlu1 %v4957_v6  ;;  %4916 = vadd.xlane.f32.xlu2 %v4915_v30 }
 0xe7f   : > { %4964 = vadd.xlane.f32.xlu0 %v4963_v55  ;;  %v4947_v4 = vmul.f32 %v8468_v14, %v8468_v14 }
 0xe81   : > { %v4969_v40 = vsel %vm568_vm0, %v4947_v4, 0.0 }
 0xe86   : > { %4967 = vadd.xlane.f32.xlu1 %v4966_v9  ;;  %4961 = vadd.xlane.f32.xlu2 %v4960_v10  ;;  %v8527_v10 = vld [vmem:[%s8626_s12] ss:$0 sm:$0xff] }
 0xe8e   : > { %4970 = vadd.xlane.f32.xlu2 %v4969_v40 }
 0xec9   : > { %v4902_v22 = vpop.xlane.xlu0 %4901 }
 0xeca   : > { %v4924_v15 = vmul.f32 %v4902_v22, %v7843_v32 }
 0xecc   : > { %v8477_v27 = vsub.f32 %v8399_v35, %v4924_v15  ;;  %v8533_v15 = vld [vmem:[%s8627_s13] ss:$0 sm:$0xff] }
 0xece   : > { %v4948_v63 = vmul.f32 %v8477_v27, %v8477_v27 }
 0xed0   : > { %v4972_v1 = vsel %vm568_vm0, %v4948_v63, 0.0 }
 0xed1   : > { %v4905_v3 = vpop.xlane.xlu1 %4904  ;;  %4973 = vadd.xlane.f32.xlu0 %v4972_v1 }
 0xed2   : > { %v4925_v29 = vmul.f32 %v4905_v3, %v7843_v32 }
 0xed4   : > { %v8484_v38 = vsub.f32 %v8405_v16, %v4925_v29 }
 0xed6   : > { %v4949_v53 = vmul.f32 %v8484_v38, %v8484_v38 }
 0xed8   : > { %v4975_v8 = vsel %vm568_vm0, %v4949_v53, 0.0 }
 0xed9   : > { %4976 = vadd.xlane.f32.xlu1 %v4975_v8  ;;  %v4908_v35 = vpop.xlane.xlu2 %4907 }
 0xeda   : > { %v4926_v39 = vmul.f32 %v4908_v35, %v7843_v32 }
 0xedc   : > { %v8491_v5 = vsub.f32 %v8411_v0, %v4926_v39 }
 0xede   : > { %v4950_v58 = vmul.f32 %v8491_v5, %v8491_v5 }
 0xee0   : > { %v4978_v43 = vsel %vm568_vm0, %v4950_v58, 0.0 }
 0xee1   : > { %4979 = vadd.xlane.f32.xlu2 %v4978_v43  ;;  %v4911_v16 = vpop.xlane.xlu0 %4910 }
 0xee2   : > { %v4927_v44 = vmul.f32 %v4911_v16, %v7843_v32 }
 0xee4   : > { %v8498_v17 = vsub.f32 %v8418_v26, %v4927_v44 }
 0xee6   : > { %v4951_v41 = vmul.f32 %v8498_v17, %v8498_v17 }
 0xee8   : > { %v4981_v57 = vsel %vm568_vm0, %v4951_v41, 0.0 }
 0xee9   : > { %v4914_v49 = vpop.xlane.xlu1 %4913  ;;  %4982 = vadd.xlane.f32.xlu0 %v4981_v57  ;;  %v4956_v0 = vpop.xlane.xlu0 %4955 }
 0xeea   : > { %v4928_v51 = vmul.f32 %v4914_v49, %v7843_v32  ;;  %v4990_v59 = vmul.f32 %v4956_v0, %v7843_v32 }
 0xeec   : > { %v8506_v11 = vsub.f32 %v8431_v45, %v4928_v51  ;;  %v5002_v12 = vadd.f32 1e-12, %v4990_v59 }
 0xeee   : > { %6106 = vrsqrt.f32 %v5002_v12  ;;  %v4952_v26 = vmul.f32 %v8506_v11, %v8506_v11  ;;  %vm5020_vm7 = vweird.f32 %v5002_v12 }
 0xef0   : > { %v4984_v60 = vsel %vm568_vm0, %v4952_v26, 0.0 }
 0xef1   : > { %4985 = vadd.xlane.f32.xlu1 %v4984_v60  ;;  %v4959_v42 = vpop.xlane.xlu1 %4958  ;;  %v4917_v18 = vpop.xlane.xlu2 %4916 }
 0xef2   : > { %v4991_v25 = vmul.f32 %v4959_v42, %v7843_v32  ;;  %v4929_v37 = vmul.f32 %v4917_v18, %v7843_v32  ;;  %v4965_v23 = vpop.xlane.xlu0 %4964 }
 0xef3   : > { %v4993_v50 = vmul.f32 %v4965_v23, %v7843_v32 }
 0xef4   : > { %v6107_v24 = vpop.eup %6106  ;;  %v5003_v45 = vadd.f32 1e-12, %v4991_v25  ;;  %v8515_v56 = vsub.f32 %v8450_v21, %v4929_v37 }
 0xef5   : > { %v5015_v7 = vmul.f32 %v6107_v24, %v5002_v12  ;;  %v5005_v33 = vadd.f32 1e-12, %v4993_v50  ;;  %vm5021_vm6 = vweird.f32 %v6107_v24 }
 0xef6   : > { %6108 = vrsqrt.f32 %v5003_v45  ;;  %v4953_v34 = vmul.f32 %v8515_v56, %v8515_v56  ;;  %vm5022_vm8 = vmor %vm5020_vm7, %vm5021_vm6  ;;  %vm5030_vm11 = vweird.f32 %v5003_v45 }
 0xef7   : > { %v5016_v20 = vmul.f32 %v6107_v24, %v5015_v7  ;;  %6110 = vrsqrt.f32 %v5005_v33  ;;  %vm5050_vm13 = vweird.f32 %v5005_v33 }
 0xef8   : > { %v4987_v48 = vsel %vm568_vm0, %v4953_v34, 0.0 }
 0xef9   : > { %v5017_v36 = vmul.f32 0.5, %v5016_v20  ;;  %v4968_v28 = vpop.xlane.xlu1 %4967  ;;  %4988 = vadd.xlane.f32.xlu2 %v4987_v48  ;;  %v4962_v19 = vpop.xlane.xlu2 %4961 }
 0xefa   : > { %v4994_v6 = vmul.f32 %v4968_v28, %v7843_v32  ;;  %v4992_v30 = vmul.f32 %v4962_v19, %v7843_v32 }
 0xefb   : > { %v5018_v21 = vsub.f32 1.5, %v5017_v36 }
 0xefc   : > { %v6109_v54 = vpop.eup %6108  ;;  %v5006_v55 = vadd.f32 1e-12, %v4994_v6  ;;  %v8522_v31 = vadd.f32 1e-12, %v4992_v30 }
 0xefd   : > { %v6111_v46 = vpop.eup %6110  ;;  %v5019_v47 = vmul.f32 %v6107_v24, %v5018_v21  ;;  %v5025_v9 = vmul.f32 %v6109_v54, %v5003_v45  ;;  %vm5031_vm9 = vweird.f32 %v6109_v54 }
 0xefe   : > { %v5045_v4 = vmul.f32 %v6111_v46, %v5005_v33  ;;  %6112 = vrsqrt.f32 %v5006_v55  ;;  %vm5051_vm10 = vweird.f32 %v6111_v46  ;;  %vm5032_vm12 = vmor %vm5030_vm11, %vm5031_vm9  ;;  %vm5060_vm2 = vweird.f32 %v5006_v55 }
 0xeff   : > { %v5023_v40 = vsel %vm5022_vm8, %v6107_v24, %v5019_v47  ;;  %v5026_v22 = vmul.f32 %v6109_v54, %v5025_v9  ;;  %6114 = vrsqrt.f32 %v8522_v31  ;;  %vm5052_vm1 = vmor %vm5050_vm13, %vm5051_vm10  ;;  %vm5040_vm4 = vweird.f32 %v8522_v31 }
 0xf00   : > { %v5134_v63 = vmul.f32 %v5023_v40, %v8421_v13  ;;  %v5046_v1 = vmul.f32 %v6111_v46, %v5045_v4 }
 0xf01   : > { %v5027_v3 = vmul.f32 0.5, %v5026_v22  ;;  %v4971_v29 = vpop.xlane.xlu2 %4970 }
 0xf02   : > { %v5149_v53 = vmul.f32 %v8527_v10, %v5134_v63  ;;  %v5047_v8 = vmul.f32 0.5, %v5046_v1  ;;  %v4995_v35 = vmul.f32 %v4971_v29, %v7843_v32 }
 0xf03   : > { %v5028_v39 = vsub.f32 1.5, %v5027_v3 }
 0xf04   : > { %v6113_v58 = vpop.eup %6112  ;;  %v5164_v13 = vadd.f32 %v8533_v15, %v5149_v53  ;;  %v5048_v43 = vsub.f32 1.5, %v5047_v8  ;;  %v5007_v16 = vadd.f32 1e-12, %v4995_v35 }
 0xf05   : > { %v6115_v44 = vpop.eup %6114  ;;  %v5029_v41 = vmul.f32 %v6109_v54, %v5028_v39  ;;  %v5055_v57 = vmul.f32 %v6113_v58, %v5006_v55  ;;  %vm5061_vm14 = vweird.f32 %v6113_v58 }
 0xf06   : > { %5176 = vst.msk [vmem:[%s8543_s20] sm:$0xff] %vm568_vm0, %v5164_v13  ;;  %v5049_v49 = vmul.f32 %v6111_v46, %v5048_v43  ;;  %v5035_v0 = vmul.f32 %v6115_v44, %v8522_v31  ;;  %6116 = vrsqrt.f32 %v5007_v16  ;;  %vm5041_vm15 = vweird.f32 %v6115_v44  ;;  %vm5062_vm3 = vmor %vm5060_vm2, %vm5061_vm14 }
 0xf07   : > { %v5033_v51 = vsel %vm5032_vm12, %v6109_v54, %v5029_v41  ;;  %v5056_v59 = vmul.f32 %v6113_v58, %v5055_v57  ;;  %vm5042_vm5 = vmor %vm5040_vm4, %vm5041_vm15  ;;  %vm5070_vm7 = vweird.f32 %v5007_v16 }
 0xf08   : > { %v5135_v12 = vmul.f32 %v5033_v51, %v8434_v61  ;;  %v5053_v26 = vsel %vm5052_vm1, %v6111_v46, %v5049_v49  ;;  %v5036_v60 = vmul.f32 %v6115_v44, %v5035_v0 }
 0xf09   : > { %v5137_v42 = vmul.f32 %v5053_v26, %v8440_v52  ;;  %v5057_v18 = vmul.f32 0.5, %v5056_v59 }
 0xf0a   : > { %v5150_v25 = vmul.f32 %v8527_v10, %v5135_v12  ;;  %v5037_v37 = vmul.f32 0.5, %v5036_v60 }
 0xf0b   : > { %v5152_v23 = vmul.f32 %v8527_v10, %v5137_v42  ;;  %v5058_v50 = vsub.f32 1.5, %v5057_v18 }
 0xf0c   : > { %v6117_v24 = vpop.eup %6116  ;;  %v5165_v45 = vadd.f32 %v8533_v15, %v5150_v25  ;;  %v5038_v7 = vsub.f32 1.5, %v5037_v37 }
 0xf0d   : > { %v5167_v61 = vadd.f32 %v8533_v15, %v5152_v23  ;;  %v5059_v33 = vmul.f32 %v6113_v58, %v5058_v50  ;;  %v5065_v34 = vmul.f32 %v6117_v24, %v5007_v16  ;;  %vm5071_vm6 = vweird.f32 %v6117_v24 }
 0xf0e   : > { %5177 = vst.msk [vmem:[%s8543_s20 + $0x8] sm:$0xff] %vm568_vm0, %v5165_v45  ;;  %v5039_v52 = vmul.f32 %v6115_v44, %v5038_v7  ;;  %vm5072_vm8 = vmor %vm5070_vm7, %vm5071_vm6 }
 0xf0f   : > { %5179 = vst.msk [vmem:[%s8543_s20 + $0x18] sm:$0xff] %vm568_vm0, %v5167_v61  ;;  %v5063_v20 = vsel %vm5062_vm3, %v6113_v58, %v5059_v33  ;;  %v5066_v48 = vmul.f32 %v6117_v24, %v5065_v34 }
 0xf10   : > { %v5138_v36 = vmul.f32 %v5063_v20, %v8456_v2  ;;  %v5043_v28 = vsel %vm5042_vm5, %v6115_v44, %v5039_v52 }
 0xf11   : > { %v5136_v19 = vmul.f32 %v5043_v28, %v8453_v62  ;;  %v5067_v6 = vmul.f32 0.5, %v5066_v48 }
 0xf12   : > { %v5153_v30 = vmul.f32 %v8527_v10, %v5138_v36 }
 0xf13   : > { %v5151_v21 = vmul.f32 %v8527_v10, %v5136_v19  ;;  %v5068_v54 = vsub.f32 1.5, %v5067_v6 }
 0xf14   : > { %v5168_v55 = vadd.f32 %v8533_v15, %v5153_v30 }
 0xf15   : > { %v5166_v31 = vadd.f32 %v8533_v15, %v5151_v21  ;;  %v5069_v46 = vmul.f32 %v6117_v24, %v5068_v54 }
 0xf16   : > { %5180 = vst.msk [vmem:[%s8543_s20 + $0x20] sm:$0xff] %vm568_vm0, %v5168_v55 }
 0xf17   : > { %5178 = vst.msk [vmem:[%s8543_s20 + $0x10] sm:$0xff] %vm568_vm0, %v5166_v31  ;;  %v5073_v62 = vsel %vm5072_vm8, %v6117_v24, %v5069_v46 }
 0xf18   : > { %v5139_v2 = vmul.f32 %v5073_v62, %v8468_v14 }
 0xf1a   : > { %v5154_v47 = vmul.f32 %v8527_v10, %v5139_v2 }
 0xf1c   : > { %v5169_v9 = vadd.f32 %v8533_v15, %v5154_v47 }
 0xf1e   : > { %5181 = vst.msk [vmem:[%s8543_s20 + $0x28] sm:$0xff] %vm568_vm0, %v5169_v9 }
 0xf44   : > { %v4974_v4 = vpop.xlane.xlu0 %4973 }
 0xf45   : > { %v4996_v40 = vmul.f32 %v4974_v4, %v7843_v32 }
 0xf47   : > { %v5008_v22 = vadd.f32 1e-12, %v4996_v40 }
 0xf49   : > { %6118 = vrsqrt.f32 %v5008_v22  ;;  %vm5080_vm10 = vweird.f32 %v5008_v22 }
 0xf4c   : > { %v4977_v63 = vpop.xlane.xlu1 %4976 }
 0xf4d   : > { %v4997_v1 = vmul.f32 %v4977_v63, %v7843_v32 }
 0xf4f   : > { %v6119_v3 = vpop.eup %6118  ;;  %v5009_v29 = vadd.f32 1e-12, %v4997_v1 }
 0xf50   : > { %v5075_v53 = vmul.f32 %v6119_v3, %v5008_v22  ;;  %vm5081_vm9 = vweird.f32 %v6119_v3 }
 0xf51   : > { %6120 = vrsqrt.f32 %v5009_v29  ;;  %vm5082_vm11 = vmor %vm5080_vm10, %vm5081_vm9  ;;  %vm5090_vm13 = vweird.f32 %v5009_v29 }
 0xf52   : > { %v5076_v8 = vmul.f32 %v6119_v3, %v5075_v53 }
 0xf54   : > { %v5077_v14 = vmul.f32 0.5, %v5076_v8  ;;  %v4980_v35 = vpop.xlane.xlu2 %4979 }
 0xf55   : > { %v4998_v39 = vmul.f32 %v4980_v35, %v7843_v32 }
 0xf56   : > { %v5078_v58 = vsub.f32 1.5, %v5077_v14 }
 0xf57   : > { %v6121_v13 = vpop.eup %6120  ;;  %v5010_v43 = vadd.f32 1e-12, %v4998_v39 }
 0xf58   : > { %v5079_v16 = vmul.f32 %v6119_v3, %v5078_v58  ;;  %v5085_v44 = vmul.f32 %v6121_v13, %v5009_v29  ;;  %vm5091_vm12 = vweird.f32 %v6121_v13 }
 0xf59   : > { %6122 = vrsqrt.f32 %v5010_v43  ;;  %vm5092_vm1 = vmor %vm5090_vm13, %vm5091_vm12  ;;  %vm5100_vm15 = vweird.f32 %v5010_v43 }
 0xf5a   : > { %v5083_v41 = vsel %vm5082_vm11, %v6119_v3, %v5079_v16  ;;  %v5086_v57 = vmul.f32 %v6121_v13, %v5085_v44 }
 0xf5b   : > { %v5140_v49 = vmul.f32 %v5083_v41, %v8477_v27 }
 0xf5c   : > { %v5087_v0 = vmul.f32 0.5, %v5086_v57  ;;  %v4983_v51 = vpop.xlane.xlu0 %4982 }
 0xf5d   : > { %v5155_v59 = vmul.f32 %v8527_v10, %v5140_v49  ;;  %v4999_v12 = vmul.f32 %v4983_v51, %v7843_v32 }
 0xf5e   : > { %v5088_v26 = vsub.f32 1.5, %v5087_v0 }
 0xf5f   : > { %v6123_v60 = vpop.eup %6122  ;;  %v5170_v42 = vadd.f32 %v8533_v15, %v5155_v59  ;;  %v5011_v18 = vadd.f32 1e-12, %v4999_v12 }
 0xf60   : > { %v5089_v25 = vmul.f32 %v6121_v13, %v5088_v26  ;;  %v5095_v37 = vmul.f32 %v6123_v60, %v5010_v43  ;;  %vm5101_vm14 = vweird.f32 %v6123_v60 }
 0xf61   : > { %5182 = vst.msk [vmem:[%s8543_s20 + $0x30] sm:$0xff] %vm568_vm0, %v5170_v42  ;;  %6124 = vrsqrt.f32 %v5011_v18  ;;  %vm5102_vm2 = vmor %vm5100_vm15, %vm5101_vm14  ;;  %vm5110_vm4 = vweird.f32 %v5011_v18 }
 0xf62   : > { %v5093_v27 = vsel %vm5092_vm1, %v6121_v13, %v5089_v25  ;;  %v5096_v23 = vmul.f32 %v6123_v60, %v5095_v37 }
 0xf63   : > { %v5141_v50 = vmul.f32 %v5093_v27, %v8484_v38 }
 0xf64   : > { %v5097_v24 = vmul.f32 0.5, %v5096_v23  ;;  %v4986_v45 = vpop.xlane.xlu1 %4985 }
 0xf65   : > { %v5156_v7 = vmul.f32 %v8527_v10, %v5141_v50  ;;  %v5000_v61 = vmul.f32 %v4986_v45, %v7843_v32 }
 0xf66   : > { %v5098_v33 = vsub.f32 1.5, %v5097_v24 }
 0xf67   : > { %v6125_v34 = vpop.eup %6124  ;;  %v5171_v52 = vadd.f32 %v8533_v15, %v5156_v7  ;;  %v5012_v20 = vadd.f32 1e-12, %v5000_v61 }
 0xf68   : > { %v5099_v48 = vmul.f32 %v6123_v60, %v5098_v33  ;;  %v5105_v36 = vmul.f32 %v6125_v34, %v5011_v18  ;;  %vm5111_vm3 = vweird.f32 %v6125_v34 }
 0xf69   : > { %5183 = vst.msk [vmem:[%s8543_s20 + $0x38] sm:$0xff] %vm568_vm0, %v5171_v52  ;;  %6126 = vrsqrt.f32 %v5012_v20  ;;  %vm5112_vm5 = vmor %vm5110_vm4, %vm5111_vm3  ;;  %vm5120_vm7 = vweird.f32 %v5012_v20 }
 0xf6a   : > { %v5103_v38 = vsel %vm5102_vm2, %v6123_v60, %v5099_v48  ;;  %v5106_v28 = vmul.f32 %v6125_v34, %v5105_v36 }
 0xf6b   : > { %v5142_v19 = vmul.f32 %v5103_v38, %v8491_v5 }
 0xf6c   : > { %v5107_v6 = vmul.f32 0.5, %v5106_v28  ;;  %v4989_v30 = vpop.xlane.xlu2 %4988 }
 0xf6d   : > { %v5157_v21 = vmul.f32 %v8527_v10, %v5142_v19  ;;  %v5001_v54 = vmul.f32 %v4989_v30, %v7843_v32 }
 0xf6e   : > { %v5108_v55 = vsub.f32 1.5, %v5107_v6 }
 0xf6f   : > { %v6127_v31 = vpop.eup %6126  ;;  %v5172_v46 = vadd.f32 %v8533_v15, %v5157_v21  ;;  %v5013_v62 = vadd.f32 1e-12, %v5001_v54 }
 0xf70   : > { %v5109_v2 = vmul.f32 %v6125_v34, %v5108_v55  ;;  %v5115_v47 = vmul.f32 %v6127_v31, %v5012_v20  ;;  %vm5121_vm6 = vweird.f32 %v6127_v31 }
 0xf71   : > { %5184 = vst.msk [vmem:[%s8543_s20 + $0x40] sm:$0xff] %vm568_vm0, %v5172_v46  ;;  %6128 = vrsqrt.f32 %v5013_v62  ;;  %vm5122_vm8 = vmor %vm5120_vm7, %vm5121_vm6  ;;  %vm5130_vm10 = vweird.f32 %v5013_v62 }
 0xf72   : > { %v5113_v5 = vsel %vm5112_vm5, %v6125_v34, %v5109_v2  ;;  %v5116_v9 = vmul.f32 %v6127_v31, %v5115_v47 }
 0xf73   : > { %v5143_v4 = vmul.f32 %v5113_v5, %v8498_v17 }
 0xf74   : > { %v5117_v40 = vmul.f32 0.5, %v5116_v9 }
 0xf75   : > { %v5158_v32 = vmul.f32 %v8527_v10, %v5143_v4 }
 0xf76   : > { %v5118_v22 = vsub.f32 1.5, %v5117_v40 }
 0xf77   : > { %v6129_v63 = vpop.eup %6128  ;;  %v5173_v1 = vadd.f32 %v8533_v15, %v5158_v32 }
 0xf78   : > { %v5119_v3 = vmul.f32 %v6127_v31, %v5118_v22  ;;  %v5125_v29 = vmul.f32 %v6129_v63, %v5013_v62  ;;  %vm5131_vm9 = vweird.f32 %v6129_v63 }
 0xf79   : > { %5185 = vst.msk [vmem:[%s8543_s20 + $0x48] sm:$0xff] %vm568_vm0, %v5173_v1  ;;  %vm5132_vm11 = vmor %vm5130_vm10, %vm5131_vm9 }
 0xf7a   : > { %v5123_v53 = vsel %vm5122_vm8, %v6127_v31, %v5119_v3  ;;  %v5126_v8 = vmul.f32 %v6129_v63, %v5125_v29 }
 0xf7b   : > { %v5144_v17 = vmul.f32 %v5123_v53, %v8506_v11 }
 0xf7c   : > { %v5127_v14 = vmul.f32 0.5, %v5126_v8 }
 0xf7d   : > { %v5159_v35 = vmul.f32 %v8527_v10, %v5144_v17 }
 0xf7e   : > { %v5128_v39 = vsub.f32 1.5, %v5127_v14 }
 0xf7f   : > { %v5174_v58 = vadd.f32 %v8533_v15, %v5159_v35 }
 0xf80   : > { %v5129_v13 = vmul.f32 %v6129_v63, %v5128_v39 }
 0xf81   : > { %5186 = vst.msk [vmem:[%s8543_s20 + $0x50] sm:$0xff] %vm568_vm0, %v5174_v58 }
 0xf82   : > { %v5133_v43 = vsel %vm5132_vm11, %v6129_v63, %v5129_v13 }
 0xf83   : > { %v5145_v16 = vmul.f32 %v5133_v43, %v8515_v56 }
 0xf85   : > { %v5160_v44 = vmul.f32 %v8527_v10, %v5145_v16 }
 0xf87   : > { %v5175_v41 = vadd.f32 %v8533_v15, %v5160_v44 }
 0xf89   : > { %5187 = vst.msk [vmem:[%s8543_s20 + $0x58] sm:$0xff] %vm568_vm0, %v5175_v41 }
 0xf8a PF: > { %s24_s29 = sadd.s32 1, %s6158_s29  }
 0xf8b   : > { %p21_p4 = scmp.ge.s32.totalorder %s24_s29, 4  }
 0xf8d   :  { %23 = sbr.rel (!%p21_p4) target bundleno = 1 (0x1), region = 109 }

</bundles_post_ra>
